<compile_context>
chip_gen: v7x
topology: tpu7x:2x2x1
jax: 0.10.0
libtpu: 0.0.40
codegen_flags: <defaults>
</compile_context>

<pallas_src>
import functools

import jax
import jax.numpy as jnp
from jax import lax
from jax.experimental import pallas as pl
from jax.experimental.pallas import tpu as pltpu


D_INPUT = 19
CIN_PAD = 32          # input channels zero-padded to a full sublane group
D_MODEL = 32
N_DEPTH = 3
FM = 3                # feature_map_size
PB_DIM = 16           # lstm_pb_dim
LSTM_H = 32           # lstm_d_model
VMEM_LIMIT = 32 * 1024 * 1024


def _leaky_relu(x, slope=0.01):
    return jnp.where(x >= 0, x, slope * x)


def _round_up(n, m):
    return ((n + m - 1) // m) * m


def _pick_batch_tile(b):
    for bt in (8, 4, 2, 1):
        if b % bt == 0:
            return bt
    return 1


def _pick_lstm_batch_blocks(b):
    # Split the recurrence over 2 grid points (v7x second TensorCore) only when
    # the half-batch keeps the block's sublane dim a multiple of 8.
    if b % 2 == 0 and (b // 2) % 8 == 0:
        return 2
    return 1


# --------------------------- fused CNN kernel ---------------------------

def cnn_fused_kernel(x_ref, m_ref, w0_ref, b0_ref, w1_ref, b1_ref, w2_ref, b2_ref,
                     o_ref, *, Wp):
    # x_ref : (32, BT*NF)  lane-dense: channels on sublanes, padded-flat spatial
    #                      (per-image stride NF, zero halo + zero tail) on lanes.
    # m_ref : (1,  BT*NF)  interior mask (1.0 inside the original HxW, else 0).
    # w0    : (C, 32)      1x1 conv weight (Cin zero-padded to 32).
    # w1/w2 : (9, C, C)    3x3 conv weights, tap k = kh*3 + kw, each (Cout, Cin).
    # b*    : (C, 1)
    # o_ref : (C, BT*NF)   final padded feature map (zero halo == F.pad(center)).
    ncols = x_ref.shape[1]
    mask = m_ref[...]
    x = x_ref[...]

    # conv0: 1x1 conv + LeakyReLU, one (C,32)x(32,ncols) MXU matmul, masked to
    # keep the halo (conv padding / final F.pad) exactly zero.
    a0 = jnp.dot(w0_ref[...], x, preferred_element_type=jnp.float32) + b0_ref[...]
    cur = _leaky_relu(a0) * mask

    # two (3x3 conv + LeakyReLU) + residual layers.  Taps are pltpu.roll lane
    # shifts of the padded map (shifts never leave an image's own NF-wide slot
    # for interior positions), accumulated as 9 small matmuls — no im2col
    # concatenate, no compacting copies.
    for w_ref, b_ref in ((w1_ref, b1_ref), (w2_ref, b2_ref)):
        acc = None
        for k in range(9):
            dh, dw = k // 3 - 1, k % 3 - 1
            delta = dh * Wp + dw
            tap = cur if delta == 0 else pltpu.roll(cur, shift=(-delta) % ncols, axis=1)
            d = jnp.dot(w_ref[k], tap, preferred_element_type=jnp.float32)
            acc = d if acc is None else acc + d
        # reference adds the residual AFTER the activation:
        #   x = LeakyReLU(conv(x)); x = x + conv_outputs[-1]
        cur = (_leaky_relu(acc + b_ref[...]) + cur) * mask

    o_ref[...] = cur


def cnn_stack(x_flat, mask, params, *, Wp, NF, bt):
    """x_flat: (32, B*NF) lane-dense padded input -> (C, B*NF) padded features."""
    C = D_MODEL
    total = x_flat.shape[1]
    nblk = total // (bt * NF)
    kernel = functools.partial(cnn_fused_kernel, Wp=Wp)
    return pl.pallas_call(
        kernel,
        out_shape=jax.ShapeDtypeStruct((C, total), jnp.float32),
        grid_spec=pltpu.PrefetchScalarGridSpec(
            num_scalar_prefetch=0,
            grid=(nblk,),
            in_specs=[
                pl.BlockSpec((CIN_PAD, bt * NF), lambda b: (0, b)),
                pl.BlockSpec((1, bt * NF), lambda b: (0, b)),
                pl.BlockSpec((C, CIN_PAD), lambda b: (0, 0)),
                pl.BlockSpec((C, 1), lambda b: (0, 0)),
                pl.BlockSpec((9, C, C), lambda b: (0, 0, 0)),
                pl.BlockSpec((C, 1), lambda b: (0, 0)),
                pl.BlockSpec((9, C, C), lambda b: (0, 0, 0)),
                pl.BlockSpec((C, 1), lambda b: (0, 0)),
            ],
            out_specs=pl.BlockSpec((C, bt * NF), lambda b: (0, b)),
        ),
        compiler_params=pltpu.CompilerParams(
            dimension_semantics=("parallel",),
            vmem_limit_bytes=VMEM_LIMIT,
        ),
    )(x_flat, mask, params['conv0_w'], params['conv0_b'],
      params['conv1_w'], params['conv1_b'], params['conv2_w'], params['conv2_b'])


# ------------------------------ LSTM kernel ------------------------------

def lstm_kernel(xg_ref, len_ref, whh_ref, o_ref):
    # xg_ref : (T, Bt, 4H)  pre-computed x@W_ih + b (gate order i,f,g,o), 128 lanes.
    # len_ref: (Bt, 1)      int32 sequence lengths.
    # whh    : (H, 4H)      packed recurrent weights.
    # o_ref  : (T, Bt, H)
    T = xg_ref.shape[0]
    Bt = xg_ref.shape[1]
    H = whh_ref.shape[0]
    lens = len_ref[...]                      # loaded once; no per-step mask DMA
    whh = whh_ref[...]

    def step(t, carry):
        h, c = carry                         # register-carried state (no VMEM RT)
        g = xg_ref[t] + jnp.dot(h, whh, preferred_element_type=jnp.float32)  # (Bt,4H)
        i_g = jax.nn.sigmoid(g[:, 0 * H:1 * H])
        f_g = jax.nn.sigmoid(g[:, 1 * H:2 * H])
        g_g = jnp.tanh(g[:, 2 * H:3 * H])
        o_g = jax.nn.sigmoid(g[:, 3 * H:4 * H])
        c_new = f_g * c + i_g * g_g
        h_new = o_g * jnp.tanh(c_new)
        valid = t < lens                     # (Bt,1) bool
        # freeze state past each length (pack semantics), zero padded outputs
        # (pad_packed_sequence with padding_value=0 semantics).
        o_ref[t] = jnp.where(valid, h_new, 0.0)
        return (jnp.where(valid, h_new, h), jnp.where(valid, c_new, c))

    h0 = jnp.zeros((Bt, H), jnp.float32)
    c0 = jnp.zeros((Bt, H), jnp.float32)
    lax.fori_loop(0, T, step, (h0, c0), unroll=8)


def lstm_recurrence(xg_tbg, len_b1, whh_packed):
    """Serial LSTM recurrence.  xg_tbg: (T,B,4H) hoisted input proj -> (T,B,H)."""
    T, B, G = xg_tbg.shape
    H = whh_packed.shape[0]
    nb = _pick_lstm_batch_blocks(B)
    bt = B // nb
    return pl.pallas_call(
        lstm_kernel,
        out_shape=jax.ShapeDtypeStruct((T, B, H), jnp.float32),
        grid_spec=pltpu.PrefetchScalarGridSpec(
            num_scalar_prefetch=0,
            grid=(nb,),
            in_specs=[
                pl.BlockSpec((T, bt, G), lambda b: (0, b, 0)),
                pl.BlockSpec((bt, 1), lambda b: (b, 0)),
                pl.BlockSpec((H, G), lambda b: (0, 0)),
            ],
            out_specs=pl.BlockSpec((T, bt, H), lambda b: (0, b, 0)),
        ),
        compiler_params=pltpu.CompilerParams(
            dimension_semantics=("parallel",),
            vmem_limit_bytes=VMEM_LIMIT,
        ),
    )(xg_tbg, len_b1, whh_packed)


# ----------------------------- params -----------------------------

def init_params(key):
    ks = jax.random.split(key, 12)
    s = 0.05
    p = {}
    # nn.Conv2d(19, 32, (1,1)) -> (Cout, Cin) with Cin zero-padded to 32
    w0 = jax.random.normal(ks[0], (D_MODEL, D_INPUT), jnp.float32) * s
    p['conv0_w'] = jnp.pad(w0, ((0, 0), (0, CIN_PAD - D_INPUT)))
    p['conv0_b'] = jax.random.normal(ks[1], (D_MODEL, 1), jnp.float32) * s
    for d in range(N_DEPTH - 1):
        # nn.Conv2d(32, 32, (3,3), padding=1): (Cout,Cin,kh,kw) -> (9, Cout, Cin)
        w = jax.random.normal(ks[2 + d], (D_MODEL, D_MODEL, 3, 3), jnp.float32) * s
        b = jax.random.normal(ks[4 + d], (D_MODEL, 1), jnp.float32) * s
        p[f'conv{d + 1}_w'] = jnp.transpose(w, (2, 3, 0, 1)).reshape(9, D_MODEL, D_MODEL)
        p[f'conv{d + 1}_b'] = b
    # TODO(synk): embedder_lib.TrajBreakEmbedder is unavailable; deterministic
    # stand-in = pose-embedding + breakpoint-embedding lookup of the same dim.
    p['pose_emb'] = jax.random.normal(ks[6], (8, PB_DIM), jnp.float32) * s
    p['bk_emb'] = jax.random.normal(ks[7], (2, PB_DIM), jnp.float32) * s
    lstm_in = D_MODEL * FM * FM + PB_DIM
    w_ih = jax.random.normal(ks[8], (4 * LSTM_H, lstm_in), jnp.float32) * s
    w_hh = jax.random.normal(ks[9], (4 * LSTM_H, LSTM_H), jnp.float32) * s
    b_ih = jax.random.normal(ks[10], (4 * LSTM_H,), jnp.float32) * s
    b_hh = jax.random.normal(ks[11], (4 * LSTM_H,), jnp.float32) * s
    # PyTorch gate order i, f, g, o; packed along a single 4H output axis.
    p['w_ih_p'] = jnp.transpose(w_ih)                 # (Din, 4H)
    p['w_hh_p'] = jnp.transpose(w_hh)                 # (H, 4H)
    p['lstm_b_p'] = (b_ih + b_hh)[None, :]            # (1, 4H)
    return p


# ----------------------------- forward -----------------------------

def cnn_lstm_state_encoder_forward(params, x, traj):
    """x: (B, H, W, 19) NHWC.  traj: tuple of (len_i, 3) int32 arrays (h, w, pose)."""
    B, H, W, Cin = x.shape
    C = D_MODEL
    Hp, Wp = H + 2, W + 2
    NF = _round_up(Hp * Wp, 128)                 # lane-dense padded-flat spatial
    lengths = [int(t.shape[0]) for t in traj]
    L = sum(lengths)
    Tmax = max(lengths)
    T = _round_up(Tmax, 8)                       # bucketed -> fewer Mosaic recompiles

    # channel-15 clamp (torch: input[:, 15] = clamp(..., 0, 1) on NCHW == NHWC ch 15)
    x = x.at[..., 15].set(jnp.clip(x[..., 15], 0.0, 1.0))

    # ---- lane-dense padded input layout: (Cin->32 sublanes, B*NF lanes) ----
    x_chw = jnp.transpose(x, (3, 0, 1, 2))                               # (19,B,H,W)
    x_chw = jnp.pad(x_chw, ((0, CIN_PAD - Cin), (0, 0), (1, 1), (1, 1)))  # (32,B,Hp,Wp)
    x_flat = x_chw.reshape(CIN_PAD, B, Hp * Wp)
    x_flat = jnp.pad(x_flat, ((0, 0), (0, 0), (0, NF - Hp * Wp)))
    x_flat = x_flat.reshape(CIN_PAD, B * NF)

    # interior mask: 1.0 at the original HxW positions, 0 on the halo/tail.
    pidx = jnp.arange(NF, dtype=jnp.int32)
    hh, ww = pidx // Wp, pidx % Wp
    interior = ((hh >= 1) & (hh <= H) & (ww >= 1) & (ww <= W)).astype(jnp.float32)
    mask = jnp.tile(interior, (B,))[None, :]                             # (1, B*NF)

    # ---- fused CNN stack (single Pallas kernel, batched grid, lane-dense) ----
    bt = _pick_batch_tile(B)
    ffp = cnn_stack(x_flat, mask, params, Wp=Wp, NF=NF, bt=bt)           # (C, B*NF)

    # ---- trajectory patch gather (data-dependent; XLA gather under jit) ----
    # TODO(synk): could be further fused into a PrefetchScalarGridSpec Pallas
    # gather emitting lstm input directly; kept in XLA for robustness.
    coords = jnp.concatenate(list(traj), axis=0)                         # (L, 3)
    batch_idx = jnp.concatenate(
        [jnp.full((n,), i, jnp.int32) for i, n in enumerate(lengths)])
    h_mask, w_mask, pose = coords[:, 0], coords[:, 1], coords[:, 2]
    rows = h_mask[:, None, None] + jnp.arange(FM, dtype=jnp.int32)[None, :, None]
    cols = w_mask[:, None, None] + jnp.arange(FM, dtype=jnp.int32)[None, None, :]
    gidx = batch_idx[:, None, None] * NF + rows * Wp + cols              # (L,3,3)
    patch = jnp.take(ffp, gidx.reshape(-1), axis=1).reshape(C, L, FM, FM)
    feature = jnp.transpose(patch, (1, 0, 2, 3))                         # (L,C,3,3)
    # TODO(synk): rotate_feature_map path (hex_util.Hex_Rotator) has no open
    # reference implementation; config sets rotate_feature_map=False.
    spatial_feature = feature.reshape(L, C, FM * FM)                     # (L,C,9)
    feat = jnp.transpose(spatial_feature, (0, 2, 1)).reshape(L, FM * FM * C)

    # pose/breakpoint feature, lstm_input_merge_type == 'cat'
    bk = jnp.zeros_like(pose)
    pb_feature = params['pose_emb'][pose] + params['bk_emb'][bk]
    feat = jnp.concatenate([feat, pb_feature], axis=1)                   # (L, 9C+PB)
    Din = feat.shape[1]

    # ---- pad_sequence as a single vectorized gather ----
    offs, acc = [], 0
    for n in lengths:
        offs.append(acc)
        acc += n
    offs = jnp.array(offs, jnp.int32)
    len_arr = jnp.array(lengths, jnp.int32)
    t_idx = jnp.arange(T, dtype=jnp.int32)
    src_tb = offs[None, :] + t_idx[:, None]                              # (T, B)
    valid_tb = t_idx[:, None] < len_arr[None, :]
    src_tb = jnp.where(valid_tb, src_tb, L)                              # pad -> zero row

    feat_ext = jnp.concatenate([feat, jnp.zeros((1, Din), jnp.float32)], axis=0)
    lstm_in_tbd = feat_ext[src_tb]                                       # (T, B, Din)
    spat_ext = jnp.concatenate(
        [spatial_feature, jnp.zeros((1, C, FM * FM), jnp.float32)], axis=0)
    spat_pad = spat_ext[jnp.transpose(src_tb)]                           # (B, T, C, 9)

    # ---- LSTM: input projection hoisted to one XLA matmul, serial recurrence
    #      with packed 4H gates and register-carried state in Pallas ----
    xg = jnp.einsum('tbd,dg->tbg', lstm_in_tbd, params['w_ih_p'],
                    preferred_element_type=jnp.float32) + params['lstm_b_p']
    lstm_out_tbh = lstm_recurrence(xg, len_arr[:, None], params['w_hh_p'])
    lstm_out = jnp.transpose(lstm_out_tbh, (1, 0, 2))                    # (B, T, H)

    # ---- lstm_skip + 'spatial-cat' merge ----
    ff = jnp.broadcast_to(lstm_out[..., None], (B, T, LSTM_H, FM * FM))
    cat = jnp.concatenate([ff, spat_pad], axis=2)                        # (B,T,H+C,9)
    final = jnp.transpose(cat, (0, 1, 3, 2)).reshape(B, T * FM * FM, LSTM_H + C)
    final = final[:, :Tmax * FM * FM]            # undo internal T bucketing

    attn_mask = (jnp.arange(Tmax * FM * FM, dtype=jnp.int32)[None, :]
                 < (FM * FM) * len_arr[:, None])
    return final, attn_mask


# ----------------------------- demo -----------------------------

if __name__ == "__main__":
    key = jax.random.PRNGKey(0)
    kx, kp, kt = jax.random.split(key, 3)

    B, Hs, Ws = 2, 16, 16
    x = jax.random.normal(kx, (B, Hs, Ws, D_INPUT), jnp.float32)

    lengths = [5, 8]
    traj = []
    tkeys = jax.random.split(kt, 3 * len(lengths))
    for i, n in enumerate(lengths):
        hh = jax.random.randint(tkeys[3 * i + 0], (n, 1), 0, Hs)
        ww = jax.random.randint(tkeys[3 * i + 1], (n, 1), 0, Ws)
        pp = jax.random.randint(tkeys[3 * i + 2], (n, 1), 1, 7)
        traj.append(jnp.concatenate([hh, ww, pp], axis=1).astype(jnp.int32))

    params = init_params(kp)
    forward = jax.jit(cnn_lstm_state_encoder_forward)
    final_feature, attn_mask = forward(params, x, tuple(traj))
    jax.block_until_ready((final_feature, attn_mask))

    assert final_feature.shape == (B, max(lengths) * FM * FM, LSTM_H + D_MODEL)
    assert attn_mask.shape == (B, max(lengths) * FM * FM) and attn_mask.dtype == jnp.bool_
    print("KERNEL_OK")
</pallas_src>

<mosaic_0001>
module attributes {stable_mosaic.version = 11 : i64} {
  func.func @cnn_fused_kernel(%arg0: i32, %arg1: memref<32x768xf32, #tpu.memory_space<vmem>>, %arg2: memref<1x768xf32, #tpu.memory_space<vmem>>, %arg3: memref<32x32xf32, #tpu.memory_space<vmem>>, %arg4: memref<32x1xf32, #tpu.memory_space<vmem>>, %arg5: memref<9x32x32xf32, #tpu.memory_space<vmem>>, %arg6: memref<32x1xf32, #tpu.memory_space<vmem>>, %arg7: memref<9x32x32xf32, #tpu.memory_space<vmem>>, %arg8: memref<32x1xf32, #tpu.memory_space<vmem>>, %arg9: memref<32x768xf32, #tpu.memory_space<vmem>>) attributes {dimension_semantics = [#tpu.dimension_semantics<parallel>], iteration_bounds = array<i64: 1>, scalar_prefetch = 0 : i64, scratch_operands = 0 : i64, tpu.core_type = #tpu.core_type<tc>, window_params = [{transform_indices = @transform_0, window_bounds = array<i64: 32, 768>}, {transform_indices = @transform_1, window_bounds = array<i64: 1, 768>}, {pipeline_mode = #tpu.pipeline_mode<synchronous>, transform_indices = @transform_2, window_bounds = array<i64: 32, 32>}, {pipeline_mode = #tpu.pipeline_mode<synchronous>, transform_indices = @transform_3, window_bounds = array<i64: 32, 1>}, {pipeline_mode = #tpu.pipeline_mode<synchronous>, transform_indices = @transform_4, window_bounds = array<i64: 9, 32, 32>}, {pipeline_mode = #tpu.pipeline_mode<synchronous>, transform_indices = @transform_5, window_bounds = array<i64: 32, 1>}, {pipeline_mode = #tpu.pipeline_mode<synchronous>, transform_indices = @transform_6, window_bounds = array<i64: 9, 32, 32>}, {pipeline_mode = #tpu.pipeline_mode<synchronous>, transform_indices = @transform_7, window_bounds = array<i64: 32, 1>}, {transform_indices = @transform_8, window_bounds = array<i64: 32, 768>}]} {
    %c0 = arith.constant 0 : index
    %c0_0 = arith.constant 0 : index
    %0 = vector.load %arg2[%c0, %c0_0] : memref<1x768xf32, #tpu.memory_space<vmem>>, vector<1x768xf32>
    %c0_1 = arith.constant 0 : index
    %c0_2 = arith.constant 0 : index
    %1 = vector.load %arg1[%c0_1, %c0_2] : memref<32x768xf32, #tpu.memory_space<vmem>>, vector<32x768xf32>
    %c0_3 = arith.constant 0 : index
    %c0_4 = arith.constant 0 : index
    %2 = vector.load %arg3[%c0_3, %c0_4] : memref<32x32xf32, #tpu.memory_space<vmem>>, vector<32x32xf32>
    %cst = arith.constant dense<0.000000e+00> : vector<32x768xf32>
    %3 = tpu.matmul %2, %1, %cst {dimension_numbers = #tpu.dot_dimension_numbers<[1], [0], [0], [1], [0, 0, 1, 1], [], []>} : vector<32x32xf32>, vector<32x768xf32>, vector<32x768xf32> -> vector<32x768xf32>
    %c0_5 = arith.constant 0 : index
    %c0_6 = arith.constant 0 : index
    %4 = vector.load %arg4[%c0_5, %c0_6] : memref<32x1xf32, #tpu.memory_space<vmem>>, vector<32x1xf32>
    %5 = vector.broadcast %4 : vector<32x1xf32> to vector<32x768xf32>
    %6 = arith.addf %3, %5 : vector<32x768xf32>
    %cst_7 = arith.constant 0.000000e+00 : f32
    %7 = vector.broadcast %cst_7 : f32 to vector<32x768xf32>
    %8 = arith.cmpf oge, %6, %7 : vector<32x768xf32>
    %cst_8 = arith.constant 0.00999999977 : f32
    %9 = vector.broadcast %cst_8 : f32 to vector<32x768xf32>
    %10 = arith.mulf %9, %6 : vector<32x768xf32>
    %11 = arith.select %8, %6, %10 : vector<32x768xi1>, vector<32x768xf32>
    %12 = vector.broadcast %0 : vector<1x768xf32> to vector<32x768xf32>
    %13 = arith.mulf %11, %12 : vector<32x768xf32>
    %c19_i32 = arith.constant 19 : i32
    %14 = tpu.dynamic_rotate %13 by %c19_i32 dim 1 : vector<32x768xf32>, i32 -> vector<32x768xf32>
    %c0_9 = arith.constant 0 : index
    %c0_10 = arith.constant 0 : index
    %c0_11 = arith.constant 0 : index
    %15 = vector.load %arg5[%c0_9, %c0_10, %c0_11] : memref<9x32x32xf32, #tpu.memory_space<vmem>>, vector<1x32x32xf32>
    %16 = vector.shape_cast %15 : vector<1x32x32xf32> to vector<32x32xf32>
    %cst_12 = arith.constant dense<0.000000e+00> : vector<32x768xf32>
    %17 = tpu.matmul %16, %14, %cst_12 {dimension_numbers = #tpu.dot_dimension_numbers<[1], [0], [0], [1], [0, 0, 1, 1], [], []>} : vector<32x32xf32>, vector<32x768xf32>, vector<32x768xf32> -> vector<32x768xf32>
    %c18_i32 = arith.constant 18 : i32
    %18 = tpu.dynamic_rotate %13 by %c18_i32 dim 1 : vector<32x768xf32>, i32 -> vector<32x768xf32>
    %c1 = arith.constant 1 : index
    %c0_13 = arith.constant 0 : index
    %c0_14 = arith.constant 0 : index
    %19 = vector.load %arg5[%c1, %c0_13, %c0_14] : memref<9x32x32xf32, #tpu.memory_space<vmem>>, vector<1x32x32xf32>
    %20 = vector.shape_cast %19 : vector<1x32x32xf32> to vector<32x32xf32>
    %cst_15 = arith.constant dense<0.000000e+00> : vector<32x768xf32>
    %21 = tpu.matmul %20, %18, %cst_15 {dimension_numbers = #tpu.dot_dimension_numbers<[1], [0], [0], [1], [0, 0, 1, 1], [], []>} : vector<32x32xf32>, vector<32x768xf32>, vector<32x768xf32> -> vector<32x768xf32>
    %22 = arith.addf %17, %21 : vector<32x768xf32>
    %c17_i32 = arith.constant 17 : i32
    %23 = tpu.dynamic_rotate %13 by %c17_i32 dim 1 : vector<32x768xf32>, i32 -> vector<32x768xf32>
    %c2 = arith.constant 2 : index
    %c0_16 = arith.constant 0 : index
    %c0_17 = arith.constant 0 : index
    %24 = vector.load %arg5[%c2, %c0_16, %c0_17] : memref<9x32x32xf32, #tpu.memory_space<vmem>>, vector<1x32x32xf32>
    %25 = vector.shape_cast %24 : vector<1x32x32xf32> to vector<32x32xf32>
    %cst_18 = arith.constant dense<0.000000e+00> : vector<32x768xf32>
    %26 = tpu.matmul %25, %23, %cst_18 {dimension_numbers = #tpu.dot_dimension_numbers<[1], [0], [0], [1], [0, 0, 1, 1], [], []>} : vector<32x32xf32>, vector<32x768xf32>, vector<32x768xf32> -> vector<32x768xf32>
    %27 = arith.addf %22, %26 : vector<32x768xf32>
    %c1_i32 = arith.constant 1 : i32
    %28 = tpu.dynamic_rotate %13 by %c1_i32 dim 1 : vector<32x768xf32>, i32 -> vector<32x768xf32>
    %c3 = arith.constant 3 : index
    %c0_19 = arith.constant 0 : index
    %c0_20 = arith.constant 0 : index
    %29 = vector.load %arg5[%c3, %c0_19, %c0_20] : memref<9x32x32xf32, #tpu.memory_space<vmem>>, vector<1x32x32xf32>
    %30 = vector.shape_cast %29 : vector<1x32x32xf32> to vector<32x32xf32>
    %cst_21 = arith.constant dense<0.000000e+00> : vector<32x768xf32>
    %31 = tpu.matmul %30, %28, %cst_21 {dimension_numbers = #tpu.dot_dimension_numbers<[1], [0], [0], [1], [0, 0, 1, 1], [], []>} : vector<32x32xf32>, vector<32x768xf32>, vector<32x768xf32> -> vector<32x768xf32>
    %32 = arith.addf %27, %31 : vector<32x768xf32>
    %c4 = arith.constant 4 : index
    %c0_22 = arith.constant 0 : index
    %c0_23 = arith.constant 0 : index
    %33 = vector.load %arg5[%c4, %c0_22, %c0_23] : memref<9x32x32xf32, #tpu.memory_space<vmem>>, vector<1x32x32xf32>
    %34 = vector.shape_cast %33 : vector<1x32x32xf32> to vector<32x32xf32>
    %cst_24 = arith.constant dense<0.000000e+00> : vector<32x768xf32>
    %35 = tpu.matmul %34, %13, %cst_24 {dimension_numbers = #tpu.dot_dimension_numbers<[1], [0], [0], [1], [0, 0, 1, 1], [], []>} : vector<32x32xf32>, vector<32x768xf32>, vector<32x768xf32> -> vector<32x768xf32>
    %36 = arith.addf %32, %35 : vector<32x768xf32>
    %c767_i32 = arith.constant 767 : i32
    %37 = tpu.dynamic_rotate %13 by %c767_i32 dim 1 : vector<32x768xf32>, i32 -> vector<32x768xf32>
    %c5 = arith.constant 5 : index
    %c0_25 = arith.constant 0 : index
    %c0_26 = arith.constant 0 : index
    %38 = vector.load %arg5[%c5, %c0_25, %c0_26] : memref<9x32x32xf32, #tpu.memory_space<vmem>>, vector<1x32x32xf32>
    %39 = vector.shape_cast %38 : vector<1x32x32xf32> to vector<32x32xf32>
    %cst_27 = arith.constant dense<0.000000e+00> : vector<32x768xf32>
    %40 = tpu.matmul %39, %37, %cst_27 {dimension_numbers = #tpu.dot_dimension_numbers<[1], [0], [0], [1], [0, 0, 1, 1], [], []>} : vector<32x32xf32>, vector<32x768xf32>, vector<32x768xf32> -> vector<32x768xf32>
    %41 = arith.addf %36, %40 : vector<32x768xf32>
    %c751_i32 = arith.constant 751 : i32
    %42 = tpu.dynamic_rotate %13 by %c751_i32 dim 1 : vector<32x768xf32>, i32 -> vector<32x768xf32>
    %c6 = arith.constant 6 : index
    %c0_28 = arith.constant 0 : index
    %c0_29 = arith.constant 0 : index
    %43 = vector.load %arg5[%c6, %c0_28, %c0_29] : memref<9x32x32xf32, #tpu.memory_space<vmem>>, vector<1x32x32xf32>
    %44 = vector.shape_cast %43 : vector<1x32x32xf32> to vector<32x32xf32>
    %cst_30 = arith.constant dense<0.000000e+00> : vector<32x768xf32>
    %45 = tpu.matmul %44, %42, %cst_30 {dimension_numbers = #tpu.dot_dimension_numbers<[1], [0], [0], [1], [0, 0, 1, 1], [], []>} : vector<32x32xf32>, vector<32x768xf32>, vector<32x768xf32> -> vector<32x768xf32>
    %46 = arith.addf %41, %45 : vector<32x768xf32>
    %c750_i32 = arith.constant 750 : i32
    %47 = tpu.dynamic_rotate %13 by %c750_i32 dim 1 : vector<32x768xf32>, i32 -> vector<32x768xf32>
    %c7 = arith.constant 7 : index
    %c0_31 = arith.constant 0 : index
    %c0_32 = arith.constant 0 : index
    %48 = vector.load %arg5[%c7, %c0_31, %c0_32] : memref<9x32x32xf32, #tpu.memory_space<vmem>>, vector<1x32x32xf32>
    %49 = vector.shape_cast %48 : vector<1x32x32xf32> to vector<32x32xf32>
    %cst_33 = arith.constant dense<0.000000e+00> : vector<32x768xf32>
    %50 = tpu.matmul %49, %47, %cst_33 {dimension_numbers = #tpu.dot_dimension_numbers<[1], [0], [0], [1], [0, 0, 1, 1], [], []>} : vector<32x32xf32>, vector<32x768xf32>, vector<32x768xf32> -> vector<32x768xf32>
    %51 = arith.addf %46, %50 : vector<32x768xf32>
    %c749_i32 = arith.constant 749 : i32
    %52 = tpu.dynamic_rotate %13 by %c749_i32 dim 1 : vector<32x768xf32>, i32 -> vector<32x768xf32>
    %c8 = arith.constant 8 : index
    %c0_34 = arith.constant 0 : index
    %c0_35 = arith.constant 0 : index
    %53 = vector.load %arg5[%c8, %c0_34, %c0_35] : memref<9x32x32xf32, #tpu.memory_space<vmem>>, vector<1x32x32xf32>
    %54 = vector.shape_cast %53 : vector<1x32x32xf32> to vector<32x32xf32>
    %cst_36 = arith.constant dense<0.000000e+00> : vector<32x768xf32>
    %55 = tpu.matmul %54, %52, %cst_36 {dimension_numbers = #tpu.dot_dimension_numbers<[1], [0], [0], [1], [0, 0, 1, 1], [], []>} : vector<32x32xf32>, vector<32x768xf32>, vector<32x768xf32> -> vector<32x768xf32>
    %56 = arith.addf %51, %55 : vector<32x768xf32>
    %c0_37 = arith.constant 0 : index
    %c0_38 = arith.constant 0 : index
    %57 = vector.load %arg6[%c0_37, %c0_38] : memref<32x1xf32, #tpu.memory_space<vmem>>, vector<32x1xf32>
    %58 = vector.broadcast %57 : vector<32x1xf32> to vector<32x768xf32>
    %59 = arith.addf %56, %58 : vector<32x768xf32>
    %cst_39 = arith.constant 0.000000e+00 : f32
    %60 = vector.broadcast %cst_39 : f32 to vector<32x768xf32>
    %61 = arith.cmpf oge, %59, %60 : vector<32x768xf32>
    %cst_40 = arith.constant 0.00999999977 : f32
    %62 = vector.broadcast %cst_40 : f32 to vector<32x768xf32>
    %63 = arith.mulf %62, %59 : vector<32x768xf32>
    %64 = arith.select %61, %59, %63 : vector<32x768xi1>, vector<32x768xf32>
    %65 = arith.addf %64, %13 : vector<32x768xf32>
    %66 = vector.broadcast %0 : vector<1x768xf32> to vector<32x768xf32>
    %67 = arith.mulf %65, %66 : vector<32x768xf32>
    %c19_i32_41 = arith.constant 19 : i32
    %68 = tpu.dynamic_rotate %67 by %c19_i32_41 dim 1 : vector<32x768xf32>, i32 -> vector<32x768xf32>
    %c0_42 = arith.constant 0 : index
    %c0_43 = arith.constant 0 : index
    %c0_44 = arith.constant 0 : index
    %69 = vector.load %arg7[%c0_42, %c0_43, %c0_44] : memref<9x32x32xf32, #tpu.memory_space<vmem>>, vector<1x32x32xf32>
    %70 = vector.shape_cast %69 : vector<1x32x32xf32> to vector<32x32xf32>
    %cst_45 = arith.constant dense<0.000000e+00> : vector<32x768xf32>
    %71 = tpu.matmul %70, %68, %cst_45 {dimension_numbers = #tpu.dot_dimension_numbers<[1], [0], [0], [1], [0, 0, 1, 1], [], []>} : vector<32x32xf32>, vector<32x768xf32>, vector<32x768xf32> -> vector<32x768xf32>
    %c18_i32_46 = arith.constant 18 : i32
    %72 = tpu.dynamic_rotate %67 by %c18_i32_46 dim 1 : vector<32x768xf32>, i32 -> vector<32x768xf32>
    %c1_47 = arith.constant 1 : index
    %c0_48 = arith.constant 0 : index
    %c0_49 = arith.constant 0 : index
    %73 = vector.load %arg7[%c1_47, %c0_48, %c0_49] : memref<9x32x32xf32, #tpu.memory_space<vmem>>, vector<1x32x32xf32>
    %74 = vector.shape_cast %73 : vector<1x32x32xf32> to vector<32x32xf32>
    %cst_50 = arith.constant dense<0.000000e+00> : vector<32x768xf32>
    %75 = tpu.matmul %74, %72, %cst_50 {dimension_numbers = #tpu.dot_dimension_numbers<[1], [0], [0], [1], [0, 0, 1, 1], [], []>} : vector<32x32xf32>, vector<32x768xf32>, vector<32x768xf32> -> vector<32x768xf32>
    %76 = arith.addf %71, %75 : vector<32x768xf32>
    %c17_i32_51 = arith.constant 17 : i32
    %77 = tpu.dynamic_rotate %67 by %c17_i32_51 dim 1 : vector<32x768xf32>, i32 -> vector<32x768xf32>
    %c2_52 = arith.constant 2 : index
    %c0_53 = arith.constant 0 : index
    %c0_54 = arith.constant 0 : index
    %78 = vector.load %arg7[%c2_52, %c0_53, %c0_54] : memref<9x32x32xf32, #tpu.memory_space<vmem>>, vector<1x32x32xf32>
    %79 = vector.shape_cast %78 : vector<1x32x32xf32> to vector<32x32xf32>
    %cst_55 = arith.constant dense<0.000000e+00> : vector<32x768xf32>
    %80 = tpu.matmul %79, %77, %cst_55 {dimension_numbers = #tpu.dot_dimension_numbers<[1], [0], [0], [1], [0, 0, 1, 1], [], []>} : vector<32x32xf32>, vector<32x768xf32>, vector<32x768xf32> -> vector<32x768xf32>
    %81 = arith.addf %76, %80 : vector<32x768xf32>
    %c1_i32_56 = arith.constant 1 : i32
    %82 = tpu.dynamic_rotate %67 by %c1_i32_56 dim 1 : vector<32x768xf32>, i32 -> vector<32x768xf32>
    %c3_57 = arith.constant 3 : index
    %c0_58 = arith.constant 0 : index
    %c0_59 = arith.constant 0 : index
    %83 = vector.load %arg7[%c3_57, %c0_58, %c0_59] : memref<9x32x32xf32, #tpu.memory_space<vmem>>, vector<1x32x32xf32>
    %84 = vector.shape_cast %83 : vector<1x32x32xf32> to vector<32x32xf32>
    %cst_60 = arith.constant dense<0.000000e+00> : vector<32x768xf32>
    %85 = tpu.matmul %84, %82, %cst_60 {dimension_numbers = #tpu.dot_dimension_numbers<[1], [0], [0], [1], [0, 0, 1, 1], [], []>} : vector<32x32xf32>, vector<32x768xf32>, vector<32x768xf32> -> vector<32x768xf32>
    %86 = arith.addf %81, %85 : vector<32x768xf32>
    %c4_61 = arith.constant 4 : index
    %c0_62 = arith.constant 0 : index
    %c0_63 = arith.constant 0 : index
    %87 = vector.load %arg7[%c4_61, %c0_62, %c0_63] : memref<9x32x32xf32, #tpu.memory_space<vmem>>, vector<1x32x32xf32>
    %88 = vector.shape_cast %87 : vector<1x32x32xf32> to vector<32x32xf32>
    %cst_64 = arith.constant dense<0.000000e+00> : vector<32x768xf32>
    %89 = tpu.matmul %88, %67, %cst_64 {dimension_numbers = #tpu.dot_dimension_numbers<[1], [0], [0], [1], [0, 0, 1, 1], [], []>} : vector<32x32xf32>, vector<32x768xf32>, vector<32x768xf32> -> vector<32x768xf32>
    %90 = arith.addf %86, %89 : vector<32x768xf32>
    %c767_i32_65 = arith.constant 767 : i32
    %91 = tpu.dynamic_rotate %67 by %c767_i32_65 dim 1 : vector<32x768xf32>, i32 -> vector<32x768xf32>
    %c5_66 = arith.constant 5 : index
    %c0_67 = arith.constant 0 : index
    %c0_68 = arith.constant 0 : index
    %92 = vector.load %arg7[%c5_66, %c0_67, %c0_68] : memref<9x32x32xf32, #tpu.memory_space<vmem>>, vector<1x32x32xf32>
    %93 = vector.shape_cast %92 : vector<1x32x32xf32> to vector<32x32xf32>
    %cst_69 = arith.constant dense<0.000000e+00> : vector<32x768xf32>
    %94 = tpu.matmul %93, %91, %cst_69 {dimension_numbers = #tpu.dot_dimension_numbers<[1], [0], [0], [1], [0, 0, 1, 1], [], []>} : vector<32x32xf32>, vector<32x768xf32>, vector<32x768xf32> -> vector<32x768xf32>
    %95 = arith.addf %90, %94 : vector<32x768xf32>
    %c751_i32_70 = arith.constant 751 : i32
    %96 = tpu.dynamic_rotate %67 by %c751_i32_70 dim 1 : vector<32x768xf32>, i32 -> vector<32x768xf32>
    %c6_71 = arith.constant 6 : index
    %c0_72 = arith.constant 0 : index
    %c0_73 = arith.constant 0 : index
    %97 = vector.load %arg7[%c6_71, %c0_72, %c0_73] : memref<9x32x32xf32, #tpu.memory_space<vmem>>, vector<1x32x32xf32>
    %98 = vector.shape_cast %97 : vector<1x32x32xf32> to vector<32x32xf32>
    %cst_74 = arith.constant dense<0.000000e+00> : vector<32x768xf32>
    %99 = tpu.matmul %98, %96, %cst_74 {dimension_numbers = #tpu.dot_dimension_numbers<[1], [0], [0], [1], [0, 0, 1, 1], [], []>} : vector<32x32xf32>, vector<32x768xf32>, vector<32x768xf32> -> vector<32x768xf32>
    %100 = arith.addf %95, %99 : vector<32x768xf32>
    %c750_i32_75 = arith.constant 750 : i32
    %101 = tpu.dynamic_rotate %67 by %c750_i32_75 dim 1 : vector<32x768xf32>, i32 -> vector<32x768xf32>
    %c7_76 = arith.constant 7 : index
    %c0_77 = arith.constant 0 : index
    %c0_78 = arith.constant 0 : index
    %102 = vector.load %arg7[%c7_76, %c0_77, %c0_78] : memref<9x32x32xf32, #tpu.memory_space<vmem>>, vector<1x32x32xf32>
    %103 = vector.shape_cast %102 : vector<1x32x32xf32> to vector<32x32xf32>
    %cst_79 = arith.constant dense<0.000000e+00> : vector<32x768xf32>
    %104 = tpu.matmul %103, %101, %cst_79 {dimension_numbers = #tpu.dot_dimension_numbers<[1], [0], [0], [1], [0, 0, 1, 1], [], []>} : vector<32x32xf32>, vector<32x768xf32>, vector<32x768xf32> -> vector<32x768xf32>
    %105 = arith.addf %100, %104 : vector<32x768xf32>
    %c749_i32_80 = arith.constant 749 : i32
    %106 = tpu.dynamic_rotate %67 by %c749_i32_80 dim 1 : vector<32x768xf32>, i32 -> vector<32x768xf32>
    %c8_81 = arith.constant 8 : index
    %c0_82 = arith.constant 0 : index
    %c0_83 = arith.constant 0 : index
    %107 = vector.load %arg7[%c8_81, %c0_82, %c0_83] : memref<9x32x32xf32, #tpu.memory_space<vmem>>, vector<1x32x32xf32>
    %108 = vector.shape_cast %107 : vector<1x32x32xf32> to vector<32x32xf32>
    %cst_84 = arith.constant dense<0.000000e+00> : vector<32x768xf32>
    %109 = tpu.matmul %108, %106, %cst_84 {dimension_numbers = #tpu.dot_dimension_numbers<[1], [0], [0], [1], [0, 0, 1, 1], [], []>} : vector<32x32xf32>, vector<32x768xf32>, vector<32x768xf32> -> vector<32x768xf32>
    %110 = arith.addf %105, %109 : vector<32x768xf32>
    %c0_85 = arith.constant 0 : index
    %c0_86 = arith.constant 0 : index
    %111 = vector.load %arg8[%c0_85, %c0_86] : memref<32x1xf32, #tpu.memory_space<vmem>>, vector<32x1xf32>
    %112 = vector.broadcast %111 : vector<32x1xf32> to vector<32x768xf32>
    %113 = arith.addf %110, %112 : vector<32x768xf32>
    %cst_87 = arith.constant 0.000000e+00 : f32
    %114 = vector.broadcast %cst_87 : f32 to vector<32x768xf32>
    %115 = arith.cmpf oge, %113, %114 : vector<32x768xf32>
    %cst_88 = arith.constant 0.00999999977 : f32
    %116 = vector.broadcast %cst_88 : f32 to vector<32x768xf32>
    %117 = arith.mulf %116, %113 : vector<32x768xf32>
    %118 = arith.select %115, %113, %117 : vector<32x768xi1>, vector<32x768xf32>
    %119 = arith.addf %118, %67 : vector<32x768xf32>
    %120 = vector.broadcast %0 : vector<1x768xf32> to vector<32x768xf32>
    %121 = arith.mulf %119, %120 : vector<32x768xf32>
    %c0_89 = arith.constant 0 : index
    %c0_90 = arith.constant 0 : index
    %122 = vector.load %arg9[%c0_89, %c0_90] : memref<32x768xf32, #tpu.memory_space<vmem>>, vector<32x768xf32>
    tpu.vector_store %arg9[%c0_89, %c0_90], %121 {strides = array<i32>} : memref<32x768xf32, #tpu.memory_space<vmem>>, vector<32x768xf32>,
    return
  }
  func.func @transform_0(%arg0: i32) -> (i32, i32) {
    %c0_i32 = arith.constant 0 : i32
    %c0_i32_0 = arith.constant 0 : i32
    return %c0_i32, %arg0 : i32, i32
  }
  func.func @transform_1(%arg0: i32) -> (i32, i32) {
    %c0_i32 = arith.constant 0 : i32
    %c0_i32_0 = arith.constant 0 : i32
    return %c0_i32, %arg0 : i32, i32
  }
  func.func @transform_2(%arg0: i32) -> (i32, i32) {
    %c0_i32 = arith.constant 0 : i32
    %c0_i32_0 = arith.constant 0 : i32
    %c0_i32_1 = arith.constant 0 : i32
    return %c0_i32, %c0_i32_0 : i32, i32
  }
  func.func @transform_3(%arg0: i32) -> (i32, i32) {
    %c0_i32 = arith.constant 0 : i32
    %c0_i32_0 = arith.constant 0 : i32
    %c0_i32_1 = arith.constant 0 : i32
    return %c0_i32, %c0_i32_0 : i32, i32
  }
  func.func @transform_4(%arg0: i32) -> (i32, i32, i32) {
    %c0_i32 = arith.constant 0 : i32
    %c0_i32_0 = arith.constant 0 : i32
    %c0_i32_1 = arith.constant 0 : i32
    %c0_i32_2 = arith.constant 0 : i32
    return %c0_i32, %c0_i32_0, %c0_i32_1 : i32, i32, i32
  }
  func.func @transform_5(%arg0: i32) -> (i32, i32) {
    %c0_i32 = arith.constant 0 : i32
    %c0_i32_0 = arith.constant 0 : i32
    %c0_i32_1 = arith.constant 0 : i32
    return %c0_i32, %c0_i32_0 : i32, i32
  }
  func.func @transform_6(%arg0: i32) -> (i32, i32, i32) {
    %c0_i32 = arith.constant 0 : i32
    %c0_i32_0 = arith.constant 0 : i32
    %c0_i32_1 = arith.constant 0 : i32
    %c0_i32_2 = arith.constant 0 : i32
    return %c0_i32, %c0_i32_0, %c0_i32_1 : i32, i32, i32
  }
  func.func @transform_7(%arg0: i32) -> (i32, i32) {
    %c0_i32 = arith.constant 0 : i32
    %c0_i32_0 = arith.constant 0 : i32
    %c0_i32_1 = arith.constant 0 : i32
    return %c0_i32, %c0_i32_0 : i32, i32
  }
  func.func @transform_8(%arg0: i32) -> (i32, i32) {
    %c0_i32 = arith.constant 0 : i32
    %c0_i32_0 = arith.constant 0 : i32
    return %c0_i32, %arg0 : i32, i32
  }
}

module attributes {stable_mosaic.version = 11 : i64} {
  func.func @lstm_kernel(%arg0: i32, %arg1: memref<8x2x128xf32, #tpu.memory_space<vmem>>, %arg2: memref<2x1xi32, #tpu.memory_space<vmem>>, %arg3: memref<32x128xf32, #tpu.memory_space<vmem>>, %arg4: memref<8x2x32xf32, #tpu.memory_space<vmem>>) attributes {dimension_semantics = [#tpu.dimension_semantics<parallel>], iteration_bounds = array<i64: 1>, scalar_prefetch = 0 : i64, scratch_operands = 0 : i64, tpu.core_type = #tpu.core_type<tc>, window_params = [{transform_indices = @transform_0, window_bounds = array<i64: 8, 2, 128>}, {transform_indices = @transform_1, window_bounds = array<i64: 2, 1>}, {pipeline_mode = #tpu.pipeline_mode<synchronous>, transform_indices = @transform_2, window_bounds = array<i64: 32, 128>}, {transform_indices = @transform_3, window_bounds = array<i64: 8, 2, 32>}]} {
    %c0 = arith.constant 0 : index
    %c0_0 = arith.constant 0 : index
    %0 = vector.load %arg2[%c0, %c0_0] : memref<2x1xi32, #tpu.memory_space<vmem>>, vector<2x1xi32>
    %c0_1 = arith.constant 0 : index
    %c0_2 = arith.constant 0 : index
    %1 = vector.load %arg3[%c0_1, %c0_2] : memref<32x128xf32, #tpu.memory_space<vmem>>, vector<32x128xf32>
    %cst = arith.constant 0.000000e+00 : f32
    %2 = vector.broadcast %cst : f32 to vector<2x32xf32>
    %cst_3 = arith.constant 0.000000e+00 : f32
    %3 = vector.broadcast %cst_3 : f32 to vector<2x32xf32>
    %c0_i32 = arith.constant 0 : i32
    %4 = arith.index_cast %c0_i32 : i32 to index
    %c0_4 = arith.constant 0 : index
    %c0_5 = arith.constant 0 : index
    %5 = vector.load %arg1[%4, %c0_4, %c0_5] : memref<8x2x128xf32, #tpu.memory_space<vmem>>, vector<1x2x128xf32>
    %6 = vector.shape_cast %5 : vector<1x2x128xf32> to vector<2x128xf32>
    %cst_6 = arith.constant dense<0.000000e+00> : vector<2x128xf32>
    %7 = tpu.matmul %2, %1, %cst_6 {dimension_numbers = #tpu.dot_dimension_numbers<[1], [0], [0], [1], [0, 0, 1, 1], [], []>} : vector<2x32xf32>, vector<32x128xf32>, vector<2x128xf32> -> vector<2x128xf32>
    %8 = arith.addf %6, %7 : vector<2x128xf32>
    %9 = vector.extract_strided_slice %8 {offsets = [0, 0], sizes = [2, 32], strides = [1, 1]} : vector<2x128xf32> to vector<2x32xf32>
    %10 = arith.negf %9 : vector<2x32xf32>
    %11 = math.exp %10 : vector<2x32xf32>
    %cst_7 = arith.constant 1.000000e+00 : f32
    %12 = vector.broadcast %cst_7 : f32 to vector<2x32xf32>
    %13 = arith.addf %12, %11 : vector<2x32xf32>
    %14 = arith.divf %12, %13 : vector<2x32xf32>
    %15 = vector.extract_strided_slice %8 {offsets = [0, 32], sizes = [2, 32], strides = [1, 1]} : vector<2x128xf32> to vector<2x32xf32>
    %16 = arith.negf %15 : vector<2x32xf32>
    %17 = math.exp %16 : vector<2x32xf32>
    %cst_8 = arith.constant 1.000000e+00 : f32
    %18 = vector.broadcast %cst_8 : f32 to vector<2x32xf32>
    %19 = arith.addf %18, %17 : vector<2x32xf32>
    %20 = arith.divf %18, %19 : vector<2x32xf32>
    %21 = vector.extract_strided_slice %8 {offsets = [0, 64], sizes = [2, 32], strides = [1, 1]} : vector<2x128xf32> to vector<2x32xf32>
    %22 = math.tanh %21 : vector<2x32xf32>
    %23 = vector.extract_strided_slice %8 {offsets = [0, 96], sizes = [2, 32], strides = [1, 1]} : vector<2x128xf32> to vector<2x32xf32>
    %24 = arith.negf %23 : vector<2x32xf32>
    %25 = math.exp %24 : vector<2x32xf32>
    %cst_9 = arith.constant 1.000000e+00 : f32
    %26 = vector.broadcast %cst_9 : f32 to vector<2x32xf32>
    %27 = arith.addf %26, %25 : vector<2x32xf32>
    %28 = arith.divf %26, %27 : vector<2x32xf32>
    %29 = arith.mulf %20, %3 : vector<2x32xf32>
    %30 = arith.mulf %14, %22 : vector<2x32xf32>
    %31 = arith.addf %29, %30 : vector<2x32xf32>
    %32 = math.tanh %31 : vector<2x32xf32>
    %33 = arith.mulf %28, %32 : vector<2x32xf32>
    %34 = vector.broadcast %c0_i32 : i32 to vector<2x1xi32>
    %35 = arith.cmpi slt, %34, %0 : vector<2x1xi32>
    %cst_10 = arith.constant 0.000000e+00 : f32
    %36 = vector.shape_cast %35 : vector<2x1xi1> to vector<2x1xi1>
    %37 = vector.broadcast %36 : vector<2x1xi1> to vector<2x32xi1>
    %38 = vector.broadcast %cst_10 : f32 to vector<2x32xf32>
    %39 = arith.select %37, %33, %38 : vector<2x32xi1>, vector<2x32xf32>
    %40 = arith.index_cast %c0_i32 : i32 to index
    %c0_11 = arith.constant 0 : index
    %c0_12 = arith.constant 0 : index
    %41 = vector.load %arg4[%40, %c0_11, %c0_12] : memref<8x2x32xf32, #tpu.memory_space<vmem>>, vector<1x2x32xf32>
    %42 = vector.shape_cast %41 : vector<1x2x32xf32> to vector<2x32xf32>
    %43 = vector.shape_cast %39 : vector<2x32xf32> to vector<1x2x32xf32>
    tpu.vector_store %arg4[%40, %c0_11, %c0_12], %43 {strides = array<i32>} : memref<8x2x32xf32, #tpu.memory_space<vmem>>, vector<1x2x32xf32>,
    %44 = vector.shape_cast %35 : vector<2x1xi1> to vector<2x1xi1>
    %45 = vector.broadcast %44 : vector<2x1xi1> to vector<2x32xi1>
    %46 = arith.select %45, %33, %2 : vector<2x32xi1>, vector<2x32xf32>
    %47 = vector.shape_cast %35 : vector<2x1xi1> to vector<2x1xi1>
    %48 = vector.broadcast %47 : vector<2x1xi1> to vector<2x32xi1>
    %49 = arith.select %48, %31, %3 : vector<2x32xi1>, vector<2x32xf32>
    %c1_i32 = arith.constant 1 : i32
    %50 = arith.index_cast %c1_i32 : i32 to index
    %c0_13 = arith.constant 0 : index
    %c0_14 = arith.constant 0 : index
    %51 = vector.load %arg1[%50, %c0_13, %c0_14] : memref<8x2x128xf32, #tpu.memory_space<vmem>>, vector<1x2x128xf32>
    %52 = vector.shape_cast %51 : vector<1x2x128xf32> to vector<2x128xf32>
    %cst_15 = arith.constant dense<0.000000e+00> : vector<2x128xf32>
    %53 = tpu.matmul %46, %1, %cst_15 {dimension_numbers = #tpu.dot_dimension_numbers<[1], [0], [0], [1], [0, 0, 1, 1], [], []>} : vector<2x32xf32>, vector<32x128xf32>, vector<2x128xf32> -> vector<2x128xf32>
    %54 = arith.addf %52, %53 : vector<2x128xf32>
    %55 = vector.extract_strided_slice %54 {offsets = [0, 0], sizes = [2, 32], strides = [1, 1]} : vector<2x128xf32> to vector<2x32xf32>
    %56 = arith.negf %55 : vector<2x32xf32>
    %57 = math.exp %56 : vector<2x32xf32>
    %cst_16 = arith.constant 1.000000e+00 : f32
    %58 = vector.broadcast %cst_16 : f32 to vector<2x32xf32>
    %59 = arith.addf %58, %57 : vector<2x32xf32>
    %60 = arith.divf %58, %59 : vector<2x32xf32>
    %61 = vector.extract_strided_slice %54 {offsets = [0, 32], sizes = [2, 32], strides = [1, 1]} : vector<2x128xf32> to vector<2x32xf32>
    %62 = arith.negf %61 : vector<2x32xf32>
    %63 = math.exp %62 : vector<2x32xf32>
    %cst_17 = arith.constant 1.000000e+00 : f32
    %64 = vector.broadcast %cst_17 : f32 to vector<2x32xf32>
    %65 = arith.addf %64, %63 : vector<2x32xf32>
    %66 = arith.divf %64, %65 : vector<2x32xf32>
    %67 = vector.extract_strided_slice %54 {offsets = [0, 64], sizes = [2, 32], strides = [1, 1]} : vector<2x128xf32> to vector<2x32xf32>
    %68 = math.tanh %67 : vector<2x32xf32>
    %69 = vector.extract_strided_slice %54 {offsets = [0, 96], sizes = [2, 32], strides = [1, 1]} : vector<2x128xf32> to vector<2x32xf32>
    %70 = arith.negf %69 : vector<2x32xf32>
    %71 = math.exp %70 : vector<2x32xf32>
    %cst_18 = arith.constant 1.000000e+00 : f32
    %72 = vector.broadcast %cst_18 : f32 to vector<2x32xf32>
    %73 = arith.addf %72, %71 : vector<2x32xf32>
    %74 = arith.divf %72, %73 : vector<2x32xf32>
    %75 = arith.mulf %66, %49 : vector<2x32xf32>
    %76 = arith.mulf %60, %68 : vector<2x32xf32>
    %77 = arith.addf %75, %76 : vector<2x32xf32>
    %78 = math.tanh %77 : vector<2x32xf32>
    %79 = arith.mulf %74, %78 : vector<2x32xf32>
    %80 = vector.broadcast %c1_i32 : i32 to vector<2x1xi32>
    %81 = arith.cmpi slt, %80, %0 : vector<2x1xi32>
    %cst_19 = arith.constant 0.000000e+00 : f32
    %82 = vector.shape_cast %81 : vector<2x1xi1> to vector<2x1xi1>
    %83 = vector.broadcast %82 : vector<2x1xi1> to vector<2x32xi1>
    %84 = vector.broadcast %cst_19 : f32 to vector<2x32xf32>
    %85 = arith.select %83, %79, %84 : vector<2x32xi1>, vector<2x32xf32>
    %86 = arith.index_cast %c1_i32 : i32 to index
    %c0_20 = arith.constant 0 : index
    %c0_21 = arith.constant 0 : index
    %87 = vector.load %arg4[%86, %c0_20, %c0_21] : memref<8x2x32xf32, #tpu.memory_space<vmem>>, vector<1x2x32xf32>
    %88 = vector.shape_cast %87 : vector<1x2x32xf32> to vector<2x32xf32>
    %89 = vector.shape_cast %85 : vector<2x32xf32> to vector<1x2x32xf32>
    tpu.vector_store %arg4[%86, %c0_20, %c0_21], %89 {strides = array<i32>} : memref<8x2x32xf32, #tpu.memory_space<vmem>>, vector<1x2x32xf32>,
    %90 = vector.shape_cast %81 : vector<2x1xi1> to vector<2x1xi1>
    %91 = vector.broadcast %90 : vector<2x1xi1> to vector<2x32xi1>
    %92 = arith.select %91, %79, %46 : vector<2x32xi1>, vector<2x32xf32>
    %93 = vector.shape_cast %81 : vector<2x1xi1> to vector<2x1xi1>
    %94 = vector.broadcast %93 : vector<2x1xi1> to vector<2x32xi1>
    %95 = arith.select %94, %77, %49 : vector<2x32xi1>, vector<2x32xf32>
    %c2_i32 = arith.constant 2 : i32
    %96 = arith.index_cast %c2_i32 : i32 to index
    %c0_22 = arith.constant 0 : index
    %c0_23 = arith.constant 0 : index
    %97 = vector.load %arg1[%96, %c0_22, %c0_23] : memref<8x2x128xf32, #tpu.memory_space<vmem>>, vector<1x2x128xf32>
    %98 = vector.shape_cast %97 : vector<1x2x128xf32> to vector<2x128xf32>
    %cst_24 = arith.constant dense<0.000000e+00> : vector<2x128xf32>
    %99 = tpu.matmul %92, %1, %cst_24 {dimension_numbers = #tpu.dot_dimension_numbers<[1], [0], [0], [1], [0, 0, 1, 1], [], []>} : vector<2x32xf32>, vector<32x128xf32>, vector<2x128xf32> -> vector<2x128xf32>
    %100 = arith.addf %98, %99 : vector<2x128xf32>
    %101 = vector.extract_strided_slice %100 {offsets = [0, 0], sizes = [2, 32], strides = [1, 1]} : vector<2x128xf32> to vector<2x32xf32>
    %102 = arith.negf %101 : vector<2x32xf32>
    %103 = math.exp %102 : vector<2x32xf32>
    %cst_25 = arith.constant 1.000000e+00 : f32
    %104 = vector.broadcast %cst_25 : f32 to vector<2x32xf32>
    %105 = arith.addf %104, %103 : vector<2x32xf32>
    %106 = arith.divf %104, %105 : vector<2x32xf32>
    %107 = vector.extract_strided_slice %100 {offsets = [0, 32], sizes = [2, 32], strides = [1, 1]} : vector<2x128xf32> to vector<2x32xf32>
    %108 = arith.negf %107 : vector<2x32xf32>
    %109 = math.exp %108 : vector<2x32xf32>
    %cst_26 = arith.constant 1.000000e+00 : f32
    %110 = vector.broadcast %cst_26 : f32 to vector<2x32xf32>
    %111 = arith.addf %110, %109 : vector<2x32xf32>
    %112 = arith.divf %110, %111 : vector<2x32xf32>
    %113 = vector.extract_strided_slice %100 {offsets = [0, 64], sizes = [2, 32], strides = [1, 1]} : vector<2x128xf32> to vector<2x32xf32>
    %114 = math.tanh %113 : vector<2x32xf32>
    %115 = vector.extract_strided_slice %100 {offsets = [0, 96], sizes = [2, 32], strides = [1, 1]} : vector<2x128xf32> to vector<2x32xf32>
    %116 = arith.negf %115 : vector<2x32xf32>
    %117 = math.exp %116 : vector<2x32xf32>
    %cst_27 = arith.constant 1.000000e+00 : f32
    %118 = vector.broadcast %cst_27 : f32 to vector<2x32xf32>
    %119 = arith.addf %118, %117 : vector<2x32xf32>
    %120 = arith.divf %118, %119 : vector<2x32xf32>
    %121 = arith.mulf %112, %95 : vector<2x32xf32>
    %122 = arith.mulf %106, %114 : vector<2x32xf32>
    %123 = arith.addf %121, %122 : vector<2x32xf32>
    %124 = math.tanh %123 : vector<2x32xf32>
    %125 = arith.mulf %120, %124 : vector<2x32xf32>
    %126 = vector.broadcast %c2_i32 : i32 to vector<2x1xi32>
    %127 = arith.cmpi slt, %126, %0 : vector<2x1xi32>
    %cst_28 = arith.constant 0.000000e+00 : f32
    %128 = vector.shape_cast %127 : vector<2x1xi1> to vector<2x1xi1>
    %129 = vector.broadcast %128 : vector<2x1xi1> to vector<2x32xi1>
    %130 = vector.broadcast %cst_28 : f32 to vector<2x32xf32>
    %131 = arith.select %129, %125, %130 : vector<2x32xi1>, vector<2x32xf32>
    %132 = arith.index_cast %c2_i32 : i32 to index
    %c0_29 = arith.constant 0 : index
    %c0_30 = arith.constant 0 : index
    %133 = vector.load %arg4[%132, %c0_29, %c0_30] : memref<8x2x32xf32, #tpu.memory_space<vmem>>, vector<1x2x32xf32>
    %134 = vector.shape_cast %133 : vector<1x2x32xf32> to vector<2x32xf32>
    %135 = vector.shape_cast %131 : vector<2x32xf32> to vector<1x2x32xf32>
    tpu.vector_store %arg4[%132, %c0_29, %c0_30], %135 {strides = array<i32>} : memref<8x2x32xf32, #tpu.memory_space<vmem>>, vector<1x2x32xf32>,
    %136 = vector.shape_cast %127 : vector<2x1xi1> to vector<2x1xi1>
    %137 = vector.broadcast %136 : vector<2x1xi1> to vector<2x32xi1>
    %138 = arith.select %137, %125, %92 : vector<2x32xi1>, vector<2x32xf32>
    %139 = vector.shape_cast %127 : vector<2x1xi1> to vector<2x1xi1>
    %140 = vector.broadcast %139 : vector<2x1xi1> to vector<2x32xi1>
    %141 = arith.select %140, %123, %95 : vector<2x32xi1>, vector<2x32xf32>
    %c3_i32 = arith.constant 3 : i32
    %142 = arith.index_cast %c3_i32 : i32 to index
    %c0_31 = arith.constant 0 : index
    %c0_32 = arith.constant 0 : index
    %143 = vector.load %arg1[%142, %c0_31, %c0_32] : memref<8x2x128xf32, #tpu.memory_space<vmem>>, vector<1x2x128xf32>
    %144 = vector.shape_cast %143 : vector<1x2x128xf32> to vector<2x128xf32>
    %cst_33 = arith.constant dense<0.000000e+00> : vector<2x128xf32>
    %145 = tpu.matmul %138, %1, %cst_33 {dimension_numbers = #tpu.dot_dimension_numbers<[1], [0], [0], [1], [0, 0, 1, 1], [], []>} : vector<2x32xf32>, vector<32x128xf32>, vector<2x128xf32> -> vector<2x128xf32>
    %146 = arith.addf %144, %145 : vector<2x128xf32>
    %147 = vector.extract_strided_slice %146 {offsets = [0, 0], sizes = [2, 32], strides = [1, 1]} : vector<2x128xf32> to vector<2x32xf32>
    %148 = arith.negf %147 : vector<2x32xf32>
    %149 = math.exp %148 : vector<2x32xf32>
    %cst_34 = arith.constant 1.000000e+00 : f32
    %150 = vector.broadcast %cst_34 : f32 to vector<2x32xf32>
    %151 = arith.addf %150, %149 : vector<2x32xf32>
    %152 = arith.divf %150, %151 : vector<2x32xf32>
    %153 = vector.extract_strided_slice %146 {offsets = [0, 32], sizes = [2, 32], strides = [1, 1]} : vector<2x128xf32> to vector<2x32xf32>
    %154 = arith.negf %153 : vector<2x32xf32>
    %155 = math.exp %154 : vector<2x32xf32>
    %cst_35 = arith.constant 1.000000e+00 : f32
    %156 = vector.broadcast %cst_35 : f32 to vector<2x32xf32>
    %157 = arith.addf %156, %155 : vector<2x32xf32>
    %158 = arith.divf %156, %157 : vector<2x32xf32>
    %159 = vector.extract_strided_slice %146 {offsets = [0, 64], sizes = [2, 32], strides = [1, 1]} : vector<2x128xf32> to vector<2x32xf32>
    %160 = math.tanh %159 : vector<2x32xf32>
    %161 = vector.extract_strided_slice %146 {offsets = [0, 96], sizes = [2, 32], strides = [1, 1]} : vector<2x128xf32> to vector<2x32xf32>
    %162 = arith.negf %161 : vector<2x32xf32>
    %163 = math.exp %162 : vector<2x32xf32>
    %cst_36 = arith.constant 1.000000e+00 : f32
    %164 = vector.broadcast %cst_36 : f32 to vector<2x32xf32>
    %165 = arith.addf %164, %163 : vector<2x32xf32>
    %166 = arith.divf %164, %165 : vector<2x32xf32>
    %167 = arith.mulf %158, %141 : vector<2x32xf32>
    %168 = arith.mulf %152, %160 : vector<2x32xf32>
    %169 = arith.addf %167, %168 : vector<2x32xf32>
    %170 = math.tanh %169 : vector<2x32xf32>
    %171 = arith.mulf %166, %170 : vector<2x32xf32>
    %172 = vector.broadcast %c3_i32 : i32 to vector<2x1xi32>
    %173 = arith.cmpi slt, %172, %0 : vector<2x1xi32>
    %cst_37 = arith.constant 0.000000e+00 : f32
    %174 = vector.shape_cast %173 : vector<2x1xi1> to vector<2x1xi1>
    %175 = vector.broadcast %174 : vector<2x1xi1> to vector<2x32xi1>
    %176 = vector.broadcast %cst_37 : f32 to vector<2x32xf32>
    %177 = arith.select %175, %171, %176 : vector<2x32xi1>, vector<2x32xf32>
    %178 = arith.index_cast %c3_i32 : i32 to index
    %c0_38 = arith.constant 0 : index
    %c0_39 = arith.constant 0 : index
    %179 = vector.load %arg4[%178, %c0_38, %c0_39] : memref<8x2x32xf32, #tpu.memory_space<vmem>>, vector<1x2x32xf32>
    %180 = vector.shape_cast %179 : vector<1x2x32xf32> to vector<2x32xf32>
    %181 = vector.shape_cast %177 : vector<2x32xf32> to vector<1x2x32xf32>
    tpu.vector_store %arg4[%178, %c0_38, %c0_39], %181 {strides = array<i32>} : memref<8x2x32xf32, #tpu.memory_space<vmem>>, vector<1x2x32xf32>,
    %182 = vector.shape_cast %173 : vector<2x1xi1> to vector<2x1xi1>
    %183 = vector.broadcast %182 : vector<2x1xi1> to vector<2x32xi1>
    %184 = arith.select %183, %171, %138 : vector<2x32xi1>, vector<2x32xf32>
    %185 = vector.shape_cast %173 : vector<2x1xi1> to vector<2x1xi1>
    %186 = vector.broadcast %185 : vector<2x1xi1> to vector<2x32xi1>
    %187 = arith.select %186, %169, %141 : vector<2x32xi1>, vector<2x32xf32>
    %c4_i32 = arith.constant 4 : i32
    %188 = arith.index_cast %c4_i32 : i32 to index
    %c0_40 = arith.constant 0 : index
    %c0_41 = arith.constant 0 : index
    %189 = vector.load %arg1[%188, %c0_40, %c0_41] : memref<8x2x128xf32, #tpu.memory_space<vmem>>, vector<1x2x128xf32>
    %190 = vector.shape_cast %189 : vector<1x2x128xf32> to vector<2x128xf32>
    %cst_42 = arith.constant dense<0.000000e+00> : vector<2x128xf32>
    %191 = tpu.matmul %184, %1, %cst_42 {dimension_numbers = #tpu.dot_dimension_numbers<[1], [0], [0], [1], [0, 0, 1, 1], [], []>} : vector<2x32xf32>, vector<32x128xf32>, vector<2x128xf32> -> vector<2x128xf32>
    %192 = arith.addf %190, %191 : vector<2x128xf32>
    %193 = vector.extract_strided_slice %192 {offsets = [0, 0], sizes = [2, 32], strides = [1, 1]} : vector<2x128xf32> to vector<2x32xf32>
    %194 = arith.negf %193 : vector<2x32xf32>
    %195 = math.exp %194 : vector<2x32xf32>
    %cst_43 = arith.constant 1.000000e+00 : f32
    %196 = vector.broadcast %cst_43 : f32 to vector<2x32xf32>
    %197 = arith.addf %196, %195 : vector<2x32xf32>
    %198 = arith.divf %196, %197 : vector<2x32xf32>
    %199 = vector.extract_strided_slice %192 {offsets = [0, 32], sizes = [2, 32], strides = [1, 1]} : vector<2x128xf32> to vector<2x32xf32>
    %200 = arith.negf %199 : vector<2x32xf32>
    %201 = math.exp %200 : vector<2x32xf32>
    %cst_44 = arith.constant 1.000000e+00 : f32
    %202 = vector.broadcast %cst_44 : f32 to vector<2x32xf32>
    %203 = arith.addf %202, %201 : vector<2x32xf32>
    %204 = arith.divf %202, %203 : vector<2x32xf32>
    %205 = vector.extract_strided_slice %192 {offsets = [0, 64], sizes = [2, 32], strides = [1, 1]} : vector<2x128xf32> to vector<2x32xf32>
    %206 = math.tanh %205 : vector<2x32xf32>
    %207 = vector.extract_strided_slice %192 {offsets = [0, 96], sizes = [2, 32], strides = [1, 1]} : vector<2x128xf32> to vector<2x32xf32>
    %208 = arith.negf %207 : vector<2x32xf32>
    %209 = math.exp %208 : vector<2x32xf32>
    %cst_45 = arith.constant 1.000000e+00 : f32
    %210 = vector.broadcast %cst_45 : f32 to vector<2x32xf32>
    %211 = arith.addf %210, %209 : vector<2x32xf32>
    %212 = arith.divf %210, %211 : vector<2x32xf32>
    %213 = arith.mulf %204, %187 : vector<2x32xf32>
    %214 = arith.mulf %198, %206 : vector<2x32xf32>
    %215 = arith.addf %213, %214 : vector<2x32xf32>
    %216 = math.tanh %215 : vector<2x32xf32>
    %217 = arith.mulf %212, %216 : vector<2x32xf32>
    %218 = vector.broadcast %c4_i32 : i32 to vector<2x1xi32>
    %219 = arith.cmpi slt, %218, %0 : vector<2x1xi32>
    %cst_46 = arith.constant 0.000000e+00 : f32
    %220 = vector.shape_cast %219 : vector<2x1xi1> to vector<2x1xi1>
    %221 = vector.broadcast %220 : vector<2x1xi1> to vector<2x32xi1>
    %222 = vector.broadcast %cst_46 : f32 to vector<2x32xf32>
    %223 = arith.select %221, %217, %222 : vector<2x32xi1>, vector<2x32xf32>
    %224 = arith.index_cast %c4_i32 : i32 to index
    %c0_47 = arith.constant 0 : index
    %c0_48 = arith.constant 0 : index
    %225 = vector.load %arg4[%224, %c0_47, %c0_48] : memref<8x2x32xf32, #tpu.memory_space<vmem>>, vector<1x2x32xf32>
    %226 = vector.shape_cast %225 : vector<1x2x32xf32> to vector<2x32xf32>
    %227 = vector.shape_cast %223 : vector<2x32xf32> to vector<1x2x32xf32>
    tpu.vector_store %arg4[%224, %c0_47, %c0_48], %227 {strides = array<i32>} : memref<8x2x32xf32, #tpu.memory_space<vmem>>, vector<1x2x32xf32>,
    %228 = vector.shape_cast %219 : vector<2x1xi1> to vector<2x1xi1>
    %229 = vector.broadcast %228 : vector<2x1xi1> to vector<2x32xi1>
    %230 = arith.select %229, %217, %184 : vector<2x32xi1>, vector<2x32xf32>
    %231 = vector.shape_cast %219 : vector<2x1xi1> to vector<2x1xi1>
    %232 = vector.broadcast %231 : vector<2x1xi1> to vector<2x32xi1>
    %233 = arith.select %232, %215, %187 : vector<2x32xi1>, vector<2x32xf32>
    %c5_i32 = arith.constant 5 : i32
    %234 = arith.index_cast %c5_i32 : i32 to index
    %c0_49 = arith.constant 0 : index
    %c0_50 = arith.constant 0 : index
    %235 = vector.load %arg1[%234, %c0_49, %c0_50] : memref<8x2x128xf32, #tpu.memory_space<vmem>>, vector<1x2x128xf32>
    %236 = vector.shape_cast %235 : vector<1x2x128xf32> to vector<2x128xf32>
    %cst_51 = arith.constant dense<0.000000e+00> : vector<2x128xf32>
    %237 = tpu.matmul %230, %1, %cst_51 {dimension_numbers = #tpu.dot_dimension_numbers<[1], [0], [0], [1], [0, 0, 1, 1], [], []>} : vector<2x32xf32>, vector<32x128xf32>, vector<2x128xf32> -> vector<2x128xf32>
    %238 = arith.addf %236, %237 : vector<2x128xf32>
    %239 = vector.extract_strided_slice %238 {offsets = [0, 0], sizes = [2, 32], strides = [1, 1]} : vector<2x128xf32> to vector<2x32xf32>
    %240 = arith.negf %239 : vector<2x32xf32>
    %241 = math.exp %240 : vector<2x32xf32>
    %cst_52 = arith.constant 1.000000e+00 : f32
    %242 = vector.broadcast %cst_52 : f32 to vector<2x32xf32>
    %243 = arith.addf %242, %241 : vector<2x32xf32>
    %244 = arith.divf %242, %243 : vector<2x32xf32>
    %245 = vector.extract_strided_slice %238 {offsets = [0, 32], sizes = [2, 32], strides = [1, 1]} : vector<2x128xf32> to vector<2x32xf32>
    %246 = arith.negf %245 : vector<2x32xf32>
    %247 = math.exp %246 : vector<2x32xf32>
    %cst_53 = arith.constant 1.000000e+00 : f32
    %248 = vector.broadcast %cst_53 : f32 to vector<2x32xf32>
    %249 = arith.addf %248, %247 : vector<2x32xf32>
    %250 = arith.divf %248, %249 : vector<2x32xf32>
    %251 = vector.extract_strided_slice %238 {offsets = [0, 64], sizes = [2, 32], strides = [1, 1]} : vector<2x128xf32> to vector<2x32xf32>
    %252 = math.tanh %251 : vector<2x32xf32>
    %253 = vector.extract_strided_slice %238 {offsets = [0, 96], sizes = [2, 32], strides = [1, 1]} : vector<2x128xf32> to vector<2x32xf32>
    %254 = arith.negf %253 : vector<2x32xf32>
    %255 = math.exp %254 : vector<2x32xf32>
    %cst_54 = arith.constant 1.000000e+00 : f32
    %256 = vector.broadcast %cst_54 : f32 to vector<2x32xf32>
    %257 = arith.addf %256, %255 : vector<2x32xf32>
    %258 = arith.divf %256, %257 : vector<2x32xf32>
    %259 = arith.mulf %250, %233 : vector<2x32xf32>
    %260 = arith.mulf %244, %252 : vector<2x32xf32>
    %261 = arith.addf %259, %260 : vector<2x32xf32>
    %262 = math.tanh %261 : vector<2x32xf32>
    %263 = arith.mulf %258, %262 : vector<2x32xf32>
    %264 = vector.broadcast %c5_i32 : i32 to vector<2x1xi32>
    %265 = arith.cmpi slt, %264, %0 : vector<2x1xi32>
    %cst_55 = arith.constant 0.000000e+00 : f32
    %266 = vector.shape_cast %265 : vector<2x1xi1> to vector<2x1xi1>
    %267 = vector.broadcast %266 : vector<2x1xi1> to vector<2x32xi1>
    %268 = vector.broadcast %cst_55 : f32 to vector<2x32xf32>
    %269 = arith.select %267, %263, %268 : vector<2x32xi1>, vector<2x32xf32>
    %270 = arith.index_cast %c5_i32 : i32 to index
    %c0_56 = arith.constant 0 : index
    %c0_57 = arith.constant 0 : index
    %271 = vector.load %arg4[%270, %c0_56, %c0_57] : memref<8x2x32xf32, #tpu.memory_space<vmem>>, vector<1x2x32xf32>
    %272 = vector.shape_cast %271 : vector<1x2x32xf32> to vector<2x32xf32>
    %273 = vector.shape_cast %269 : vector<2x32xf32> to vector<1x2x32xf32>
    tpu.vector_store %arg4[%270, %c0_56, %c0_57], %273 {strides = array<i32>} : memref<8x2x32xf32, #tpu.memory_space<vmem>>, vector<1x2x32xf32>,
    %274 = vector.shape_cast %265 : vector<2x1xi1> to vector<2x1xi1>
    %275 = vector.broadcast %274 : vector<2x1xi1> to vector<2x32xi1>
    %276 = arith.select %275, %263, %230 : vector<2x32xi1>, vector<2x32xf32>
    %277 = vector.shape_cast %265 : vector<2x1xi1> to vector<2x1xi1>
    %278 = vector.broadcast %277 : vector<2x1xi1> to vector<2x32xi1>
    %279 = arith.select %278, %261, %233 : vector<2x32xi1>, vector<2x32xf32>
    %c6_i32 = arith.constant 6 : i32
    %280 = arith.index_cast %c6_i32 : i32 to index
    %c0_58 = arith.constant 0 : index
    %c0_59 = arith.constant 0 : index
    %281 = vector.load %arg1[%280, %c0_58, %c0_59] : memref<8x2x128xf32, #tpu.memory_space<vmem>>, vector<1x2x128xf32>
    %282 = vector.shape_cast %281 : vector<1x2x128xf32> to vector<2x128xf32>
    %cst_60 = arith.constant dense<0.000000e+00> : vector<2x128xf32>
    %283 = tpu.matmul %276, %1, %cst_60 {dimension_numbers = #tpu.dot_dimension_numbers<[1], [0], [0], [1], [0, 0, 1, 1], [], []>} : vector<2x32xf32>, vector<32x128xf32>, vector<2x128xf32> -> vector<2x128xf32>
    %284 = arith.addf %282, %283 : vector<2x128xf32>
    %285 = vector.extract_strided_slice %284 {offsets = [0, 0], sizes = [2, 32], strides = [1, 1]} : vector<2x128xf32> to vector<2x32xf32>
    %286 = arith.negf %285 : vector<2x32xf32>
    %287 = math.exp %286 : vector<2x32xf32>
    %cst_61 = arith.constant 1.000000e+00 : f32
    %288 = vector.broadcast %cst_61 : f32 to vector<2x32xf32>
    %289 = arith.addf %288, %287 : vector<2x32xf32>
    %290 = arith.divf %288, %289 : vector<2x32xf32>
    %291 = vector.extract_strided_slice %284 {offsets = [0, 32], sizes = [2, 32], strides = [1, 1]} : vector<2x128xf32> to vector<2x32xf32>
    %292 = arith.negf %291 : vector<2x32xf32>
    %293 = math.exp %292 : vector<2x32xf32>
    %cst_62 = arith.constant 1.000000e+00 : f32
    %294 = vector.broadcast %cst_62 : f32 to vector<2x32xf32>
    %295 = arith.addf %294, %293 : vector<2x32xf32>
    %296 = arith.divf %294, %295 : vector<2x32xf32>
    %297 = vector.extract_strided_slice %284 {offsets = [0, 64], sizes = [2, 32], strides = [1, 1]} : vector<2x128xf32> to vector<2x32xf32>
    %298 = math.tanh %297 : vector<2x32xf32>
    %299 = vector.extract_strided_slice %284 {offsets = [0, 96], sizes = [2, 32], strides = [1, 1]} : vector<2x128xf32> to vector<2x32xf32>
    %300 = arith.negf %299 : vector<2x32xf32>
    %301 = math.exp %300 : vector<2x32xf32>
    %cst_63 = arith.constant 1.000000e+00 : f32
    %302 = vector.broadcast %cst_63 : f32 to vector<2x32xf32>
    %303 = arith.addf %302, %301 : vector<2x32xf32>
    %304 = arith.divf %302, %303 : vector<2x32xf32>
    %305 = arith.mulf %296, %279 : vector<2x32xf32>
    %306 = arith.mulf %290, %298 : vector<2x32xf32>
    %307 = arith.addf %305, %306 : vector<2x32xf32>
    %308 = math.tanh %307 : vector<2x32xf32>
    %309 = arith.mulf %304, %308 : vector<2x32xf32>
    %310 = vector.broadcast %c6_i32 : i32 to vector<2x1xi32>
    %311 = arith.cmpi slt, %310, %0 : vector<2x1xi32>
    %cst_64 = arith.constant 0.000000e+00 : f32
    %312 = vector.shape_cast %311 : vector<2x1xi1> to vector<2x1xi1>
    %313 = vector.broadcast %312 : vector<2x1xi1> to vector<2x32xi1>
    %314 = vector.broadcast %cst_64 : f32 to vector<2x32xf32>
    %315 = arith.select %313, %309, %314 : vector<2x32xi1>, vector<2x32xf32>
    %316 = arith.index_cast %c6_i32 : i32 to index
    %c0_65 = arith.constant 0 : index
    %c0_66 = arith.constant 0 : index
    %317 = vector.load %arg4[%316, %c0_65, %c0_66] : memref<8x2x32xf32, #tpu.memory_space<vmem>>, vector<1x2x32xf32>
    %318 = vector.shape_cast %317 : vector<1x2x32xf32> to vector<2x32xf32>
    %319 = vector.shape_cast %315 : vector<2x32xf32> to vector<1x2x32xf32>
    tpu.vector_store %arg4[%316, %c0_65, %c0_66], %319 {strides = array<i32>} : memref<8x2x32xf32, #tpu.memory_space<vmem>>, vector<1x2x32xf32>,
    %320 = vector.shape_cast %311 : vector<2x1xi1> to vector<2x1xi1>
    %321 = vector.broadcast %320 : vector<2x1xi1> to vector<2x32xi1>
    %322 = arith.select %321, %309, %276 : vector<2x32xi1>, vector<2x32xf32>
    %323 = vector.shape_cast %311 : vector<2x1xi1> to vector<2x1xi1>
    %324 = vector.broadcast %323 : vector<2x1xi1> to vector<2x32xi1>
    %325 = arith.select %324, %307, %279 : vector<2x32xi1>, vector<2x32xf32>
    %c7_i32 = arith.constant 7 : i32
    %326 = arith.index_cast %c7_i32 : i32 to index
    %c0_67 = arith.constant 0 : index
    %c0_68 = arith.constant 0 : index
    %327 = vector.load %arg1[%326, %c0_67, %c0_68] : memref<8x2x128xf32, #tpu.memory_space<vmem>>, vector<1x2x128xf32>
    %328 = vector.shape_cast %327 : vector<1x2x128xf32> to vector<2x128xf32>
    %cst_69 = arith.constant dense<0.000000e+00> : vector<2x128xf32>
    %329 = tpu.matmul %322, %1, %cst_69 {dimension_numbers = #tpu.dot_dimension_numbers<[1], [0], [0], [1], [0, 0, 1, 1], [], []>} : vector<2x32xf32>, vector<32x128xf32>, vector<2x128xf32> -> vector<2x128xf32>
    %330 = arith.addf %328, %329 : vector<2x128xf32>
    %331 = vector.extract_strided_slice %330 {offsets = [0, 0], sizes = [2, 32], strides = [1, 1]} : vector<2x128xf32> to vector<2x32xf32>
    %332 = arith.negf %331 : vector<2x32xf32>
    %333 = math.exp %332 : vector<2x32xf32>
    %cst_70 = arith.constant 1.000000e+00 : f32
    %334 = vector.broadcast %cst_70 : f32 to vector<2x32xf32>
    %335 = arith.addf %334, %333 : vector<2x32xf32>
    %336 = arith.divf %334, %335 : vector<2x32xf32>
    %337 = vector.extract_strided_slice %330 {offsets = [0, 32], sizes = [2, 32], strides = [1, 1]} : vector<2x128xf32> to vector<2x32xf32>
    %338 = arith.negf %337 : vector<2x32xf32>
    %339 = math.exp %338 : vector<2x32xf32>
    %cst_71 = arith.constant 1.000000e+00 : f32
    %340 = vector.broadcast %cst_71 : f32 to vector<2x32xf32>
    %341 = arith.addf %340, %339 : vector<2x32xf32>
    %342 = arith.divf %340, %341 : vector<2x32xf32>
    %343 = vector.extract_strided_slice %330 {offsets = [0, 64], sizes = [2, 32], strides = [1, 1]} : vector<2x128xf32> to vector<2x32xf32>
    %344 = math.tanh %343 : vector<2x32xf32>
    %345 = vector.extract_strided_slice %330 {offsets = [0, 96], sizes = [2, 32], strides = [1, 1]} : vector<2x128xf32> to vector<2x32xf32>
    %346 = arith.negf %345 : vector<2x32xf32>
    %347 = math.exp %346 : vector<2x32xf32>
    %cst_72 = arith.constant 1.000000e+00 : f32
    %348 = vector.broadcast %cst_72 : f32 to vector<2x32xf32>
    %349 = arith.addf %348, %347 : vector<2x32xf32>
    %350 = arith.divf %348, %349 : vector<2x32xf32>
    %351 = arith.mulf %342, %325 : vector<2x32xf32>
    %352 = arith.mulf %336, %344 : vector<2x32xf32>
    %353 = arith.addf %351, %352 : vector<2x32xf32>
    %354 = math.tanh %353 : vector<2x32xf32>
    %355 = arith.mulf %350, %354 : vector<2x32xf32>
    %356 = vector.broadcast %c7_i32 : i32 to vector<2x1xi32>
    %357 = arith.cmpi slt, %356, %0 : vector<2x1xi32>
    %cst_73 = arith.constant 0.000000e+00 : f32
    %358 = vector.shape_cast %357 : vector<2x1xi1> to vector<2x1xi1>
    %359 = vector.broadcast %358 : vector<2x1xi1> to vector<2x32xi1>
    %360 = vector.broadcast %cst_73 : f32 to vector<2x32xf32>
    %361 = arith.select %359, %355, %360 : vector<2x32xi1>, vector<2x32xf32>
    %362 = arith.index_cast %c7_i32 : i32 to index
    %c0_74 = arith.constant 0 : index
    %c0_75 = arith.constant 0 : index
    %363 = vector.load %arg4[%362, %c0_74, %c0_75] : memref<8x2x32xf32, #tpu.memory_space<vmem>>, vector<1x2x32xf32>
    %364 = vector.shape_cast %363 : vector<1x2x32xf32> to vector<2x32xf32>
    %365 = vector.shape_cast %361 : vector<2x32xf32> to vector<1x2x32xf32>
    tpu.vector_store %arg4[%362, %c0_74, %c0_75], %365 {strides = array<i32>} : memref<8x2x32xf32, #tpu.memory_space<vmem>>, vector<1x2x32xf32>,
    %366 = vector.shape_cast %357 : vector<2x1xi1> to vector<2x1xi1>
    %367 = vector.broadcast %366 : vector<2x1xi1> to vector<2x32xi1>
    %368 = arith.select %367, %355, %322 : vector<2x32xi1>, vector<2x32xf32>
    %369 = vector.shape_cast %357 : vector<2x1xi1> to vector<2x1xi1>
    %370 = vector.broadcast %369 : vector<2x1xi1> to vector<2x32xi1>
    %371 = arith.select %370, %353, %325 : vector<2x32xi1>, vector<2x32xf32>
    %c8_i32 = arith.constant 8 : i32
    return
  }
  func.func @transform_0(%arg0: i32) -> (i32, i32, i32) {
    %c0_i32 = arith.constant 0 : i32
    %c0_i32_0 = arith.constant 0 : i32
    %c0_i32_1 = arith.constant 0 : i32
    return %c0_i32, %arg0, %c0_i32_0 : i32, i32, i32
  }
  func.func @transform_1(%arg0: i32) -> (i32, i32) {
    %c0_i32 = arith.constant 0 : i32
    %c0_i32_0 = arith.constant 0 : i32
    return %arg0, %c0_i32 : i32, i32
  }
  func.func @transform_2(%arg0: i32) -> (i32, i32) {
    %c0_i32 = arith.constant 0 : i32
    %c0_i32_0 = arith.constant 0 : i32
    %c0_i32_1 = arith.constant 0 : i32
    return %c0_i32, %c0_i32_0 : i32, i32
  }
  func.func @transform_3(%arg0: i32) -> (i32, i32, i32) {
    %c0_i32 = arith.constant 0 : i32
    %c0_i32_0 = arith.constant 0 : i32
    %c0_i32_1 = arith.constant 0 : i32
    return %c0_i32, %arg0, %c0_i32_0 : i32, i32, i32
  }
}

</mosaic_0001>

<bundles_post_ra>
// kernel: cnn_lstm_state_encoder_forward.3
= control target key start
LH: loop header
LB: loop body
LE: loop exit
PB: predicated region body
PF: predicated region fallthrough
CT: control target
= control target key end

     0   :  { %v1228_v0 = vmov 0.0|0.0   ;;  %vm1229_vm0 = vmmov 0   ;;  %v1230_v4 = vmov 0.0   ;;  %v1231_v8 = vmov 0   ;;  %s1232_s23 = smov 64   ;;  %s1503_s2 = inlined_call_operand.vmem [shape: f32[32,128], index: 2, kind: input, shape index: {}]   ;;  %s1504_s1 = inlined_call_operand.vmem [shape: s32[2,1], index: 1, kind: input, shape index: {}]   ;;  %s1505_s0 = inlined_call_operand.vmem [shape: f32[8,2,128], index: 0, kind: input, shape index: {}]   ;;  %s1506_s3 = inlined_call_operand.vmem [shape: f32[8,2,32], index: 3, kind: output, shape index: {}]  }
   0x1   :  { %1108 = vmatprep.subr.bf16.mxu0 %v1228_v0  ;;  %v15_v1 = vld [vmem:[%s1503_s2] sm:$0xff]  ;;  %v16_v2 = vld [vmem:[%s1503_s2 + $0x8] sm:$0xff]  ;;  %v17_v3 = vld [vmem:[%s1503_s2 + $0x10] sm:$0xff]  ;;  %1028 = vmatprep.mubr.msk.f32.mxu0 %vm1229_vm0, %v1230_v4  ;;  %vm130_vm3 = vcmask 254976   ;;  %vm20_vm4 = vcmask 261120  }
   0x2   :  { %v1266_v5 = vpack.c.bf16 %v16_v2, %v15_v1  ;;  %v18_v6 = vld [vmem:[%s1503_s2 + $0x18] sm:$0xff]  ;;  %1114 = vmatprep.subr.bf16.mxu1 %v1228_v0  ;;  %1039 = vmatprep.mubr.msk.f32.mxu1 %vm1229_vm0, %v1230_v4  ;;  %v1295_v9 = vld [vmem:[%s1504_s1] sm:$0x3]  ;;  %s1233_s1 = smov 32   ;;  %v952_v31 = vld [vmem:[%s1505_s0 + $0x2] sm:$0x3] }
   0x3   :  { %v1275_v7 = vpack.c.bf16 %v18_v6, %v17_v3  ;;  %1162 = vset.pattern.permute.xlu1 %v1231_v8  ;;  %1163 = vset.pattern.permute.xlu0 %v1231_v8  ;;  %vm119_vm1 = vcmp.gt.s32.totalorder %v1295_v9, 0  ;;  %v19_v11 = vld [vmem:[%s1505_s0] sm:$0x3]  ;;  %vm232_vm5 = vcmp.gt.s32.totalorder %v1295_v9, 1  ;;  %v956_v53 = vld [vmem:[%s1505_s0 + $0x4] sm:$0x3] }
   0x4   :  { %1110 = vmatpush3.bf16.msra.mxu0 %v1266_v5  ;;  %1116 = vmatpush3.bf16.msra.mxu1 %v1266_v5  ;;  %v120_v10 = vsel %vm119_vm1, 1, %v1231_v8  ;;  %v233_v36 = vsel %vm232_vm5, 1, %v1231_v8  ;;  %vm349_vm7 = vcmp.gt.s32.totalorder %v1295_v9, 2  ;;  %vm466_vm9 = vcmp.gt.s32.totalorder %v1295_v9, 3 }
   0x5   :  { %1111 = vmatprep.subr.bf16.mxu0 %v1228_v0  ;;  %1117 = vmatprep.subr.bf16.mxu1 %v1228_v0  ;;  %v350_v58 = vsel %vm349_vm7, 1, %v1231_v8  ;;  %vm583_vm11 = vcmp.gt.s32.totalorder %v1295_v9, 4  ;;  %vm700_vm13 = vcmp.gt.s32.totalorder %v1295_v9, 5  ;;  %vm817_vm15 = vcmp.gt.s32.totalorder %v1295_v9, 6 }
   0x6   :  { %122 = vperm.xlu1 %1162, %v120_v10   ;;  %vm934_vm1 = vcmp.gt.s32.totalorder %v1295_v9, 7 }
   0x8   :  { %1113 = vmatpush3.bf16.msra.mxu0 %v1275_v7  ;;  %1119 = vmatpush3.bf16.msra.mxu1 %v1275_v7 }
   0x9   :  { %1120 = vmatprep.subr.bf16.mxu0 %v1228_v0  ;;  %1126 = vmatprep.subr.bf16.mxu1 %v1228_v0 }
   0xb   :  { %1029 = vmatmul.mubr.f32.vlgmr.msra.gmra.mrb[0].mxu0 %v1230_v4 }
   0xc   :  { %1122 = vmatpush3.bf16.msra.mxu0 %v1266_v5  ;;  %1050 = vmatprep.mubr.msk.f32.mxu0 %vm1229_vm0, %v1230_v4 }
   0xd   :  { %1123 = vmatprep.subr.bf16.mxu0 %v1228_v0 }
  0x10   :  { %1125 = vmatpush3.bf16.msra.mxu0 %v1275_v7 }
  0x11   :  { %1132 = vmatprep.subr.bf16.mxu0 %v1228_v0 }
  0x85   :  { %v123_v26 = vpop.permute.xlu1 %122 }
  0x86   :  { %vm124_vm2 = vcmp.eq.s32.totalorder %v123_v26, 1 }
  0xde   :  { %v90_v12 = vpop.f32.mrb[0].mxu0 }
  0xdf   :  { %v94_v13 = vadd.f32 %v90_v12, %v19_v11  ;;  %v1030_v14 = vpop.f32.mrb[1].mxu0 }
  0xe1   :  { %1164 = vtanh.f32 %v94_v13  ;;  %v951_v16 = vmul.f32 -1.442695, %v94_v13 }
  0xe3   :  { %1166 = vpow2.f32 %v951_v16 }
  0xeb   :  { %v1165_v15 = vpop.eup %1164 }
  0xec   :  { %104 = vrot.lane.b32.xlu0 %v1165_v15, %s1232_s23 }
  0xed   :  { %v1167_v17 = vpop.eup %1166 }
  0xee   :  { %v98_v18 = vadd.f32 1.0, %v1167_v17  ;;  %v960_v17 = vld [vmem:[%s1505_s0 + $0x6] sm:$0x3] }
  0xf0   :  { %1168 = vrcp.f32 %v98_v18 }
  0xfa   :  { %v1169_v19 = vpop.eup %1168 }
  0xfb   :  { %v102_v22 = vmul.f32 0.0, %v1169_v19 }
 0x15e   :  { %v105_v20 = vpop.permute.xlu0 %104 }
 0x15f   :  { %v107_v21 = vmul.f32 %v1169_v19, %v105_v20 }
 0x161   :  { %109 = vrot.lane.b32.xlu0 %v107_v21, %s1233_s1 }
 0x1d3   :  { %v110_v23 = vpop.permute.xlu0 %109 }
 0x1d4   :  { %v112_v24 = vadd.f32 %v110_v23, %v102_v22  ;;  %v467_v22 = vsel %vm466_vm9, 1, %v1231_v8 }
 0x1d6   :  { %1170 = vtanh.f32 %v112_v24  ;;  %v132_v43 = vsel %vm124_vm2, %v112_v24, 0.0 }
 0x1e0   :  { %v1171_v25 = vpop.eup %1170 }
 0x1e1   :  { %115 = vrot.lane.b32.xlu1 %v1171_v25, %s1232_s23 }
 0x253   :  { %v116_v27 = vpop.permute.xlu1 %115 }
 0x254   :  { %v118_v28 = vmul.f32 %v1169_v19, %v116_v27 }
 0x256   :  { %v125_v29 = vsel %vm124_vm2, %v118_v28, 0.0 }
 0x257   :  { %127 = vrot.lane.b32.xlu0 %v125_v29, %s1233_s1 }
 0x2c9   :  { %v128_v30 = vpop.permute.xlu0 %127 }
 0x2ca   :  { %131 = vst.msk [vmem:[%s1506_s3] sm:$0x3] %vm130_vm3, %v128_v30  ;;  %1040 = vmatmul.mubr.msk.f32.vlgmr.msra.gmra.mrb[0].mxu1 %vm20_vm4, %v128_v30 }
 0x2cb   :  { %1128 = vmatpush3.bf16.msra.mxu1 %v1266_v5  ;;  %1061 = vmatprep.mubr.msk.f32.mxu1 %vm1229_vm0, %v1230_v4 }
 0x2cc   :  { %1129 = vmatprep.subr.bf16.mxu1 %v1228_v0 }
 0x2cf   :  { %1131 = vmatpush3.bf16.msra.mxu1 %v1275_v7 }
 0x2d0   :  { %1138 = vmatprep.subr.bf16.mxu1 %v1228_v0 }
 0x39d   :  { %v203_v32 = vpop.f32.mrb[0].mxu1 }
 0x39e   :  { %v207_v33 = vadd.f32 %v952_v31, %v203_v32  ;;  %v1041_v34 = vpop.f32.mrb[1].mxu1 }
 0x3a0   :  { %1172 = vtanh.f32 %v207_v33  ;;  %v954_v37 = vmul.f32 -1.442695, %v207_v33 }
 0x3a2   :  { %1174 = vpow2.f32 %v954_v37 }
 0x3aa   :  { %v1173_v35 = vpop.eup %1172 }
 0x3ab   :  { %217 = vrot.lane.b32.xlu1 %v1173_v35, %s1232_s23 }
 0x3ac   :  { %v1175_v38 = vpop.eup %1174 }
 0x3ad   :  { %v211_v39 = vadd.f32 1.0, %v1175_v38 }
 0x3af   :  { %235 = vperm.xlu1 %1162, %v233_v36   ;;  %1176 = vrcp.f32 %v211_v39  ;;  %v964_v39 = vld [vmem:[%s1505_s0 + $0x8] sm:$0x3] }
 0x3b9   :  { %v1177_v40 = vpop.eup %1176 }
 0x3ba   :  { %v215_v44 = vmul.f32 %v1177_v40, %v132_v43 }
 0x41d   :  { %v218_v41 = vpop.permute.xlu1 %217 }
 0x41e   :  { %v220_v42 = vmul.f32 %v1177_v40, %v218_v41 }
 0x420   :  { %222 = vrot.lane.b32.xlu0 %v220_v42, %s1233_s1 }
 0x42e   :  { %v1328_v48 = vpop.permute.xlu1 %235 }
 0x42f   :  { %vm237_vm6 = vcmp.eq.s32.totalorder %v1328_v48, 1 }
 0x492   :  { %v223_v45 = vpop.permute.xlu0 %222 }
 0x493   :  { %v225_v46 = vadd.f32 %v223_v45, %v215_v44  ;;  %v584_v44 = vsel %vm583_vm11, 1, %v1231_v8 }
 0x495   :  { %1178 = vtanh.f32 %v225_v46  ;;  %v246_v2 = vsel %vm237_vm6, %v225_v46, %v132_v43 }
 0x49f   :  { %v1179_v47 = vpop.eup %1178 }
 0x4a0   :  { %228 = vrot.lane.b32.xlu0 %v1179_v47, %s1232_s23 }
 0x512   :  { %v229_v49 = vpop.permute.xlu0 %228 }
 0x513   :  { %v1330_v50 = vmul.f32 %v1177_v40, %v229_v49 }
 0x515   :  { %v245_v51 = vsel %vm237_vm6, %v1330_v50, %v125_v29 }
 0x516   :  { %250 = vrot.lane.b32.xlu1 %v245_v51, %s1233_s1 }
 0x588   :  { %v251_v52 = vpop.permute.xlu1 %250 }
 0x589   :  { %1051 = vmatmul.mubr.msk.f32.vlgmr.msra.gmra.mrb[2].mxu0 %vm20_vm4, %v251_v52 }
 0x58a   :  { %1134 = vmatpush3.bf16.msra.mxu0 %v1266_v5  ;;  %1072 = vmatprep.mubr.msk.f32.mxu0 %vm1229_vm0, %v1230_v4 }
 0x58b   :  { %1135 = vmatprep.subr.bf16.mxu0 %v1228_v0 }
 0x58e   :  { %1137 = vmatpush3.bf16.msra.mxu0 %v1275_v7 }
 0x58f   :  { %1144 = vmatprep.subr.bf16.mxu0 %v1228_v0 }
 0x65c   :  { %v320_v54 = vpop.f32.mrb[2].mxu0 }
 0x65d   :  { %v324_v55 = vadd.f32 %v956_v53, %v320_v54  ;;  %v1052_v56 = vpop.f32.mrb[3].mxu0 }
 0x65f   :  { %1180 = vtanh.f32 %v324_v55  ;;  %v958_v59 = vmul.f32 -1.442695, %v324_v55 }
 0x661   :  { %1182 = vpow2.f32 %v958_v59 }
 0x669   :  { %v1181_v57 = vpop.eup %1180 }
 0x66a   :  { %334 = vrot.lane.b32.xlu0 %v1181_v57, %s1232_s23 }
 0x66b   :  { %v1183_v60 = vpop.eup %1182 }
 0x66c   :  { %v328_v61 = vadd.f32 1.0, %v1183_v60 }
 0x66e   :  { %352 = vperm.xlu0 %1163, %v350_v58   ;;  %1184 = vrcp.f32 %v328_v61 }
 0x678   :  { %v1185_v62 = vpop.eup %1184 }
 0x679   :  { %v332_v3 = vmul.f32 %v1185_v62, %v246_v2 }
 0x6dc   :  { %v335_v63 = vpop.permute.xlu0 %334 }
 0x6dd   :  { %v337_v1 = vmul.f32 %v1185_v62, %v335_v63  ;;  %v968_v63 = vld [vmem:[%s1505_s0 + $0xa] sm:$0x3] }
 0x6df   :  { %339 = vrot.lane.b32.xlu1 %v337_v1, %s1233_s1 }
 0x6ed   :  { %v1354_v12 = vpop.permute.xlu0 %352 }
 0x6ee   :  { %vm354_vm8 = vcmp.eq.s32.totalorder %v1354_v12, 1 }
 0x751   :  { %v340_v6 = vpop.permute.xlu1 %339 }
 0x752   :  { %v342_v10 = vadd.f32 %v340_v6, %v332_v3 }
 0x754   :  { %1186 = vtanh.f32 %v342_v10  ;;  %v363_v29 = vsel %vm354_vm8, %v342_v10, %v246_v2 }
 0x75e   :  { %v1187_v11 = vpop.eup %1186 }
 0x75f   :  { %345 = vrot.lane.b32.xlu1 %v1187_v11, %s1232_s23 }
 0x7d1   :  { %v346_v13 = vpop.permute.xlu1 %345 }
 0x7d2   :  { %v1356_v14 = vmul.f32 %v1185_v62, %v346_v13 }
 0x7d4   :  { %v362_v15 = vsel %vm354_vm8, %v1356_v14, %v245_v51 }
 0x7d5   :  { %367 = vrot.lane.b32.xlu1 %v362_v15, %s1233_s1 }
 0x847   :  { %v368_v16 = vpop.permute.xlu1 %367 }
 0x848   :  { %1062 = vmatmul.mubr.msk.f32.vlgmr.msra.gmra.mrb[2].mxu1 %vm20_vm4, %v368_v16 }
 0x849   :  { %1140 = vmatpush3.bf16.msra.mxu1 %v1266_v5  ;;  %1083 = vmatprep.mubr.msk.f32.mxu1 %vm1229_vm0, %v1230_v4 }
 0x84a   :  { %1141 = vmatprep.subr.bf16.mxu1 %v1228_v0 }
 0x84d   :  { %1143 = vmatpush3.bf16.msra.mxu1 %v1275_v7 }
 0x84e   :  { %1150 = vmatprep.subr.bf16.mxu1 %v1228_v0 }
 0x91b   :  { %v437_v18 = vpop.f32.mrb[2].mxu1 }
 0x91c   :  { %v441_v19 = vadd.f32 %v960_v17, %v437_v18  ;;  %v1063_v20 = vpop.f32.mrb[3].mxu1 }
 0x91e   :  { %1188 = vtanh.f32 %v441_v19  ;;  %v962_v23 = vmul.f32 -1.442695, %v441_v19 }
 0x920   :  { %1190 = vpow2.f32 %v962_v23 }
 0x928   :  { %v1189_v21 = vpop.eup %1188 }
 0x929   :  { %451 = vrot.lane.b32.xlu0 %v1189_v21, %s1232_s23 }
 0x92a   :  { %v1191_v24 = vpop.eup %1190 }
 0x92b   :  { %v445_v25 = vadd.f32 1.0, %v1191_v24 }
 0x92d   :  { %469 = vperm.xlu0 %1163, %v467_v22   ;;  %1192 = vrcp.f32 %v445_v25  ;;  %v972_v25 = vld [vmem:[%s1505_s0 + $0xc] sm:$0x3] }
 0x937   :  { %v1193_v26 = vpop.eup %1192 }
 0x938   :  { %v449_v30 = vmul.f32 %v1193_v26, %v363_v29 }
 0x99b   :  { %v452_v27 = vpop.permute.xlu0 %451 }
 0x99c   :  { %v454_v28 = vmul.f32 %v1193_v26, %v452_v27 }
 0x99e   :  { %456 = vrot.lane.b32.xlu1 %v454_v28, %s1233_s1 }
 0x9ac   :  { %v1380_v34 = vpop.permute.xlu0 %469 }
 0x9ad   :  { %vm471_vm10 = vcmp.eq.s32.totalorder %v1380_v34, 1 }
 0xa10   :  { %v457_v31 = vpop.permute.xlu1 %456 }
 0xa11   :  { %v459_v32 = vadd.f32 %v457_v31, %v449_v30  ;;  %v818_v30 = vsel %vm817_vm15, 1, %v1231_v8 }
 0xa13   :  { %1194 = vtanh.f32 %v459_v32  ;;  %v480_v53 = vsel %vm471_vm10, %v459_v32, %v363_v29 }
 0xa1d   :  { %v1195_v33 = vpop.eup %1194 }
 0xa1e   :  { %462 = vrot.lane.b32.xlu1 %v1195_v33, %s1232_s23 }
 0xa90   :  { %v463_v35 = vpop.permute.xlu1 %462 }
 0xa91   :  { %v1382_v36 = vmul.f32 %v1193_v26, %v463_v35 }
 0xa93   :  { %v479_v37 = vsel %vm471_vm10, %v1382_v36, %v362_v15 }
 0xa94   :  { %484 = vrot.lane.b32.xlu0 %v479_v37, %s1233_s1 }
 0xb06   :  { %v485_v38 = vpop.permute.xlu0 %484 }
 0xb07   :  { %1073 = vmatmul.mubr.msk.f32.vlgmr.msra.gmra.mrb[4].mxu0 %vm20_vm4, %v485_v38 }
 0xb08   :  { %1146 = vmatpush3.bf16.msra.mxu0 %v1266_v5  ;;  %1094 = vmatprep.mubr.msk.f32.mxu0 %vm1229_vm0, %v1230_v4 }
 0xb09   :  { %1147 = vmatprep.subr.bf16.mxu0 %v1228_v0 }
 0xb0c   :  { %1149 = vmatpush3.bf16.msra.mxu0 %v1275_v7 }
 0xbda   :  { %v554_v40 = vpop.f32.mrb[4].mxu0 }
 0xbdb   :  { %v558_v41 = vadd.f32 %v964_v39, %v554_v40  ;;  %v1074_v42 = vpop.f32.mrb[5].mxu0 }
 0xbdd   :  { %1196 = vtanh.f32 %v558_v41  ;;  %v966_v45 = vmul.f32 -1.442695, %v558_v41 }
 0xbdf   :  { %1198 = vpow2.f32 %v966_v45 }
 0xbe7   :  { %v1197_v43 = vpop.eup %1196 }
 0xbe8   :  { %568 = vrot.lane.b32.xlu1 %v1197_v43, %s1232_s23 }
 0xbe9   :  { %v1199_v46 = vpop.eup %1198 }
 0xbea   :  { %v562_v47 = vadd.f32 1.0, %v1199_v46 }
 0xbec   :  { %586 = vperm.xlu1 %1162, %v584_v44   ;;  %1200 = vrcp.f32 %v562_v47 }
 0xbf6   :  { %v1201_v49 = vpop.eup %1200 }
 0xbf7   :  { %v566_v54 = vmul.f32 %v1201_v49, %v480_v53 }
 0xc5a   :  { %v569_v51 = vpop.permute.xlu1 %568 }
 0xc5b   :  { %v571_v52 = vmul.f32 %v1201_v49, %v569_v51  ;;  %v976_v51 = vld [vmem:[%s1505_s0 + $0xe] sm:$0x3] }
 0xc5d   :  { %573 = vrot.lane.b32.xlu0 %v571_v52, %s1233_s1 }
 0xc6b   :  { %v1405_v58 = vpop.permute.xlu1 %586 }
 0xc6c   :  { %vm588_vm12 = vcmp.eq.s32.totalorder %v1405_v58, 1 }
 0xccf   :  { %v574_v55 = vpop.permute.xlu0 %573 }
 0xcd0   :  { %v576_v56 = vadd.f32 %v574_v55, %v566_v54 }
 0xcd2   :  { %1202 = vtanh.f32 %v576_v56  ;;  %v597_v15 = vsel %vm588_vm12, %v576_v56, %v480_v53  ;;  %v935_v56 = vsel %vm934_vm1, 1, %v1231_v8 }
 0xcdc   :  { %v1203_v57 = vpop.eup %1202 }
 0xcdd   :  { %579 = vrot.lane.b32.xlu0 %v1203_v57, %s1232_s23  ;;  %v238_v57 = vsel %vm237_vm6, %v1330_v50, 0.0 }
 0xd4f   :  { %v580_v59 = vpop.permute.xlu0 %579 }
 0xd50   :  { %v1407_v60 = vmul.f32 %v1201_v49, %v580_v59  ;;  %v472_v59 = vsel %vm471_vm10, %v1382_v36, 0.0 }
 0xd52   :  { %v596_v61 = vsel %vm588_vm12, %v1407_v60, %v479_v37 }
 0xd53   :  { %601 = vrot.lane.b32.xlu1 %v596_v61, %s1233_s1 }
 0xdc5   :  { %v602_v62 = vpop.permute.xlu1 %601 }
 0xdc6   :  { %1084 = vmatmul.mubr.msk.f32.vlgmr.msra.gmra.mrb[4].mxu1 %vm20_vm4, %v602_v62 }
 0xdc7   :  { %1152 = vmatpush3.bf16.msra.mxu1 %v1266_v5  ;;  %1105 = vmatprep.mubr.msk.f32.mxu1 %vm1229_vm0, %v1230_v4  ;;  %v701_v5 = vsel %vm700_vm13, 1, %v1231_v8 }
 0xdc8   :  { %1153 = vmatprep.subr.bf16.mxu1 %v1228_v0 }
 0xdcb   :  { %1155 = vmatpush3.bf16.msra.mxu1 %v1275_v7 }
 0xe99   :  { %v671_v1 = vpop.f32.mrb[4].mxu1 }
 0xe9a   :  { %v675_v2 = vadd.f32 %v968_v63, %v671_v1  ;;  %v1085_v3 = vpop.f32.mrb[5].mxu1 }
 0xe9c   :  { %1204 = vtanh.f32 %v675_v2  ;;  %v970_v4 = vmul.f32 -1.442695, %v675_v2 }
 0xe9e   :  { %1206 = vpow2.f32 %v970_v4 }
 0xea6   :  { %v1205_v6 = vpop.eup %1204 }
 0xea7   :  { %685 = vrot.lane.b32.xlu0 %v1205_v6, %s1232_s23 }
 0xea8   :  { %v1207_v0 = vpop.eup %1206 }
 0xea9   :  { %v679_v7 = vadd.f32 1.0, %v1207_v0 }
 0xeab   :  { %703 = vperm.xlu0 %1163, %v701_v5   ;;  %1208 = vrcp.f32 %v679_v7  ;;  %v355_v7 = vsel %vm354_vm8, %v1356_v14, 0.0 }
 0xeb5   :  { %v1209_v10 = vpop.eup %1208 }
 0xeb6   :  { %v683_v16 = vmul.f32 %v1209_v10, %v597_v15 }
 0xf19   :  { %v686_v11 = vpop.permute.xlu0 %685 }
 0xf1a   :  { %v688_v13 = vmul.f32 %v1209_v10, %v686_v11 }
 0xf1c   :  { %690 = vrot.lane.b32.xlu1 %v688_v13, %s1233_s1 }
 0xf2a   :  { %v704_v20 = vpop.permute.xlu0 %703 }
 0xf2b   :  { %vm705_vm14 = vcmp.eq.s32.totalorder %v704_v20, 1 }
 0xf8e   :  { %v691_v17 = vpop.permute.xlu1 %690 }
 0xf8f   :  { %v693_v18 = vadd.f32 %v691_v17, %v683_v16 }
 0xf91   :  { %1210 = vtanh.f32 %v693_v18  ;;  %v714_v39 = vsel %vm705_vm14, %v693_v18, %v597_v15 }
 0xf9b   :  { %v1211_v19 = vpop.eup %1210 }
 0xf9c   :  { %696 = vrot.lane.b32.xlu1 %v1211_v19, %s1232_s23 }
0x100e   :  { %v697_v21 = vpop.permute.xlu1 %696 }
0x100f   :  { %v699_v22 = vmul.f32 %v1209_v10, %v697_v21  ;;  %v589_v10 = vsel %vm588_vm12, %v1407_v60, 0.0 }
0x1011   :  { %v713_v23 = vsel %vm705_vm14, %v699_v22, %v596_v61  ;;  %v706_v9 = vsel %vm705_vm14, %v699_v22, 0.0 }
0x1012   :  { %718 = vrot.lane.b32.xlu0 %v713_v23, %s1233_s1 }
0x1084   :  { %v719_v24 = vpop.permute.xlu0 %718 }
0x1085   :  { %1095 = vmatmul.mubr.msk.f32.vlgmr.msra.gmra.mrb[6].mxu0 %vm20_vm4, %v719_v24 }
0x1158   :  { %v788_v26 = vpop.f32.mrb[6].mxu0 }
0x1159   :  { %v792_v27 = vadd.f32 %v972_v25, %v788_v26  ;;  %v1096_v28 = vpop.f32.mrb[7].mxu0 }
0x115b   :  { %1212 = vtanh.f32 %v792_v27  ;;  %v974_v31 = vmul.f32 -1.442695, %v792_v27 }
0x115d   :  { %1214 = vpow2.f32 %v974_v31 }
0x1165   :  { %v1213_v29 = vpop.eup %1212 }
0x1166   :  { %802 = vrot.lane.b32.xlu1 %v1213_v29, %s1232_s23 }
0x1167   :  { %v1215_v32 = vpop.eup %1214 }
0x1168   :  { %v796_v33 = vadd.f32 1.0, %v1215_v32 }
0x116a   :  { %820 = vperm.xlu1 %1162, %v818_v30   ;;  %1216 = vrcp.f32 %v796_v33 }
0x1174   :  { %v1217_v35 = vpop.eup %1216 }
0x1175   :  { %v800_v40 = vmul.f32 %v1217_v35, %v714_v39 }
0x11d8   :  { %v803_v37 = vpop.permute.xlu1 %802 }
0x11d9   :  { %v805_v38 = vmul.f32 %v1217_v35, %v803_v37 }
0x11db   :  { %807 = vrot.lane.b32.xlu0 %v805_v38, %s1233_s1 }
0x11e9   :  { %v821_v44 = vpop.permute.xlu1 %820 }
0x11ea   :  { %vm822_vm0 = vcmp.eq.s32.totalorder %v821_v44, 1 }
0x124d   :  { %v808_v41 = vpop.permute.xlu0 %807 }
0x124e   :  { %v810_v42 = vadd.f32 %v808_v41, %v800_v40 }
0x1250   :  { %1218 = vtanh.f32 %v810_v42  ;;  %v831_v3 = vsel %vm822_vm0, %v810_v42, %v714_v39 }
0x125a   :  { %v1219_v43 = vpop.eup %1218 }
0x125b   :  { %813 = vrot.lane.b32.xlu0 %v1219_v43, %s1232_s23 }
0x12cd   :  { %v814_v45 = vpop.permute.xlu0 %813 }
0x12ce   :  { %v816_v46 = vmul.f32 %v1217_v35, %v814_v45 }
0x12d0   :  { %v830_v47 = vsel %vm822_vm0, %v816_v46, %v713_v23  ;;  %v823_v11 = vsel %vm822_vm0, %v816_v46, 0.0 }
0x12d1   :  { %835 = vrot.lane.b32.xlu1 %v830_v47, %s1233_s1 }
0x1343   :  { %v836_v49 = vpop.permute.xlu1 %835 }
0x1344   :  { %1106 = vmatmul.mubr.msk.f32.vlgmr.msra.gmra.mrb[6].mxu1 %vm20_vm4, %v836_v49 }
0x1417   :  { %v905_v52 = vpop.f32.mrb[6].mxu1 }
0x1418   :  { %v909_v53 = vadd.f32 %v976_v51, %v905_v52  ;;  %v1107_v54 = vpop.f32.mrb[7].mxu1 }
0x141a   :  { %1220 = vtanh.f32 %v909_v53  ;;  %v978_v61 = vmul.f32 -1.442695, %v909_v53 }
0x141c   :  { %1222 = vpow2.f32 %v978_v61 }
0x1424   :  { %v1221_v55 = vpop.eup %1220 }
0x1425   :  { %919 = vrot.lane.b32.xlu0 %v1221_v55, %s1232_s23 }
0x1426   :  { %v1223_v8 = vpop.eup %1222 }
0x1427   :  { %v913_v62 = vadd.f32 1.0, %v1223_v8 }
0x1429   :  { %937 = vperm.xlu0 %1163, %v935_v56   ;;  %1224 = vrcp.f32 %v913_v62 }
0x142d   :  { %240 = vrot.lane.b32.xlu0 %v238_v57, %s1233_s1 }
0x1431   :  { %474 = vrot.lane.b32.xlu0 %v472_v59, %s1233_s1 }
0x1433   :  { %v1225_v63 = vpop.eup %1224 }
0x1434   :  { %v917_v6 = vmul.f32 %v1225_v63, %v831_v3 }
0x1435   :  { %708 = vrot.lane.b32.xlu0 %v706_v9, %s1233_s1 }
0x1497   :  { %v920_v48 = vpop.permute.xlu0 %919 }
0x1498   :  { %v922_v50 = vmul.f32 %v1225_v63, %v920_v48 }
0x149a   :  { %924 = vrot.lane.b32.xlu1 %v922_v50, %s1233_s1 }
0x14a8   :  { %v938_v1 = vpop.permute.xlu0 %937 }
0x14a9   :  { %vm939_vm2 = vcmp.eq.s32.totalorder %v938_v1, 1 }
0x14ac   :  { %v241_v2 = vpop.permute.xlu0 %240 }
0x14ad   :  { %955 = vst.msk [vmem:[%s1506_s3 + $0x2] sm:$0x3] %vm130_vm3, %v241_v2 }
0x14b0   :  { %v475_v34 = vpop.permute.xlu0 %474 }
0x14b1   :  { %963 = vst.msk [vmem:[%s1506_s3 + $0x6] sm:$0x3] %vm130_vm3, %v475_v34 }
0x14b4   :  { %v709_v36 = vpop.permute.xlu0 %708 }
0x14b5   :  { %971 = vst.msk [vmem:[%s1506_s3 + $0xa] sm:$0x3] %vm130_vm3, %v709_v36 }
0x150c   :  { %v925_v5 = vpop.permute.xlu1 %924 }
0x150d   :  { %v927_v4 = vadd.f32 %v925_v5, %v917_v6 }
0x150f   :  { %1226 = vtanh.f32 %v927_v4 }
0x1519   :  { %v1227_v0 = vpop.eup %1226 }
0x151a   :  { %930 = vrot.lane.b32.xlu1 %v1227_v0, %s1232_s23 }
0x151e   :  { %357 = vrot.lane.b32.xlu1 %v355_v7, %s1233_s1 }
0x1522   :  { %591 = vrot.lane.b32.xlu1 %v589_v10, %s1233_s1 }
0x1526   :  { %825 = vrot.lane.b32.xlu1 %v823_v11, %s1233_s1 }
0x158c   :  { %v931_v13 = vpop.permute.xlu1 %930 }
0x158d   :  { %v933_v15 = vmul.f32 %v1225_v63, %v931_v13 }
0x158f   :  { %v940_v16 = vsel %vm939_vm2, %v933_v15, 0.0 }
0x1590   :  { %942 = vrot.lane.b32.xlu0 %v940_v16, %s1233_s1  ;;  %v358_v12 = vpop.permute.xlu1 %357 }
0x1591   :  { %959 = vst.msk [vmem:[%s1506_s3 + $0x4] sm:$0x3] %vm130_vm3, %v358_v12 }
0x1594   :  { %v592_v14 = vpop.permute.xlu1 %591 }
0x1595   :  { %967 = vst.msk [vmem:[%s1506_s3 + $0x8] sm:$0x3] %vm130_vm3, %v592_v14 }
0x1598   :  { %v826_v58 = vpop.permute.xlu1 %825 }
0x1599   :  { %975 = vst.msk [vmem:[%s1506_s3 + $0xc] sm:$0x3] %vm130_vm3, %v826_v58 }
0x1602   :  { %v943_v60 = vpop.permute.xlu0 %942 }
0x1603   :  { %979 = vst.msk [vmem:[%s1506_s3 + $0xe] sm:$0x3] %vm130_vm3, %v943_v60 }

// kernel: cnn_lstm_state_encoder_forward.2
= control target key start
LH: loop header
LB: loop body
LE: loop exit
PB: predicated region body
PF: predicated region fallthrough
CT: control target
= control target key end

     0   :  { %v13543_v3 = vmov 0.0   ;;  %v9570_v4 = vmov 0   ;;  %vm82_vm0 = vcmask 261120   ;;  %v435_v46 = vlaneseq  ;;  %s9572_s24 = smov 19   ;;  %s9573_s25 = smov 17   ;;  %s13532_s0 = inlined_call_operand.vmem [shape: f32[32,768], index: 0, kind: input, shape index: {}]   ;;  %s13533_s2 = inlined_call_operand.vmem [shape: f32[32,32], index: 2, kind: input, shape index: {}]   ;;  %s13534_s3 = inlined_call_operand.vmem [shape: f32[32,1], index: 3, kind: input, shape index: {}]   ;;  %s13535_s1 = inlined_call_operand.vmem [shape: f32[1,768], index: 1, kind: input, shape index: {}]   ;;  %s13536_s4 = inlined_call_operand.vmem [shape: f32[9,32,32], index: 4, kind: input, shape index: {}]   ;;  %s13537_s5 = inlined_call_operand.vmem [shape: f32[32,1], index: 5, kind: input, shape index: {}]   ;;  %s13538_s6 = inlined_call_operand.vmem [shape: f32[9,32,32], index: 6, kind: input, shape index: {}]   ;;  %s13539_s7 = inlined_call_operand.vmem [shape: f32[32,1], index: 7, kind: input, shape index: {}]   ;;  %s13540_s8 = inlined_call_operand.vmem [shape: f32[32,768], index: 8, kind: output, shape index: {}]  }
   0x1   :  { %v31_v0 = vld [vmem:[%s13532_s0 + $0x8] sm:$0xff]  ;;  %v37_v1 = vld [vmem:[%s13532_s0 + $0x38] sm:$0xff]  ;;  %v30_v2 = vld [vmem:[%s13532_s0] sm:$0xff]  ;;  %159 = vmatprep.mubr.f32.mxu1 %v13543_v3  ;;  %8607 = vset.pattern.permute.xlu0 %v9570_v4  ;;  %s9574_s26 = smov 1   ;;  %s9575_s27 = smov 127  }
   0x2   :  { %v7753_v5 = vpack.c.bf16 %v37_v1, %v31_v0  ;;  %v36_v6 = vld [vmem:[%s13532_s0 + $0x30] sm:$0xff]  ;;  %v43_v7 = vld [vmem:[%s13532_s0 + $0x68] sm:$0xff]  ;;  %v49_v8 = vld [vmem:[%s13532_s0 + $0x98] sm:$0xff]  ;;  %8608 = vset.pattern.permute.xlu1 %v9570_v4  ;;  %3279 = vmatprep.mubr.f32.mxu0 %v13543_v3  ;;  %v9749_v48 = vshrl.u32 %v435_v46, 7  ;;  %s9576_s28 = smov 111   ;;  %s9577_s12 = smov 110  }
   0x3   :  { %v7755_v9 = vpack.c.bf16 %v36_v6, %v30_v2  ;;  %v7757_v10 = vpack.c.bf16 %v49_v8, %v43_v7  ;;  %v42_v11 = vld [vmem:[%s13532_s0 + $0x60] sm:$0xff]  ;;  %v48_v12 = vld [vmem:[%s13532_s0 + $0x90] sm:$0xff]  ;;  %v33_v13 = vld [vmem:[%s13532_s0 + $0x18] sm:$0xff]  ;;  %s9578_s15 = smov 109  }
   0x4   :  { %7754 = vmatprep.subr.bf16.mxu1 %v7753_v5  ;;  %v39_v14 = vld [vmem:[%s13532_s0 + $0x48] sm:$0xff]  ;;  %v7759_v15 = vpack.c.bf16 %v48_v12, %v42_v11  ;;  %v32_v17 = vld [vmem:[%s13532_s0 + $0x10] sm:$0xff]  ;;  %v38_v18 = vld [vmem:[%s13532_s0 + $0x40] sm:$0xff]  ;;  %v437_v52 = vsub.s32 0, %v9749_v48  ;;  %v441_v57 = vsub.s32 1, %v9749_v48 }
   0x5   :  { %7756 = vmatpush1.bf16.msra.mxu1 %v7755_v9  ;;  %v7761_v16 = vpack.c.bf16 %v39_v14, %v33_v13  ;;  %v45_v19 = vld [vmem:[%s13532_s0 + $0x78] sm:$0xff]  ;;  %v51_v20 = vld [vmem:[%s13532_s0 + $0xa8] sm:$0xff]  ;;  %v54_v21 = vld [vmem:[%s13533_s2] sm:$0xff]  ;;  %v7763_v22 = vpack.c.bf16 %v38_v18, %v32_v17 }
   0x6   :  { %7758 = vmatprep.subr.bf16.mxu1 %v7757_v10  ;;  %v7765_v23 = vpack.c.bf16 %v51_v20, %v45_v19  ;;  %v44_v24 = vld [vmem:[%s13532_s0 + $0x70] sm:$0xff]  ;;  %v50_v25 = vld [vmem:[%s13532_s0 + $0xa0] sm:$0xff]  ;;  %v35_v27 = vld [vmem:[%s13532_s0 + $0x28] sm:$0xff] }
   0x7   :  { %v58_v26 = vld [vmem:[%s13534_s3] sm:$0xff]  ;;  %v41_v28 = vld [vmem:[%s13532_s0 + $0x58] sm:$0xff]  ;;  %v60_v29 = vld [vmem:[%s13534_s3 + $0x10] sm:$0xff]  ;;  %v7767_v32 = vpack.c.bf16 %v50_v25, %v44_v24 }
   0x8   :  { %64 = vperm.xlu0 %8607, %v58_v26   ;;  %v59_v30 = vld [vmem:[%s13534_s3 + $0x8] sm:$0xff]  ;;  %74 = vperm.xlu1 %8608, %v60_v29   ;;  %v61_v33 = vld [vmem:[%s13534_s3 + $0x18] sm:$0xff]  ;;  %v7769_v34 = vpack.c.bf16 %v41_v28, %v35_v27  ;;  %v56_v35 = vld [vmem:[%s13533_s2 + $0x10] sm:$0xff] }
   0x9   :  { %7760 = vmatpush1.bf16.msra.mxu1 %v7759_v15  ;;  %v55_v31 = vld [vmem:[%s13533_s2 + $0x8] sm:$0xff]  ;;  %v57_v36 = vld [vmem:[%s13533_s2 + $0x18] sm:$0xff]  ;;  %v34_v37 = vld [vmem:[%s13532_s0 + $0x20] sm:$0xff] }
   0xa   :  { %7762 = vmatprep.subr.bf16.mxu1 %v7761_v16  ;;  %v40_v38 = vld [vmem:[%s13532_s0 + $0x50] sm:$0xff]  ;;  %v47_v39 = vld [vmem:[%s13532_s0 + $0x88] sm:$0xff]  ;;  %v53_v40 = vld [vmem:[%s13532_s0 + $0xb8] sm:$0xff] }
   0xb   :  { %v7771_v41 = vpack.c.bf16 %v40_v38, %v34_v37  ;;  %v7773_v42 = vpack.c.bf16 %v53_v40, %v47_v39  ;;  %v46_v43 = vld [vmem:[%s13532_s0 + $0x80] sm:$0xff]  ;;  %v52_v44 = vld [vmem:[%s13532_s0 + $0xb0] sm:$0xff] }
   0xc   :  { %7461 = vmatmul.mubr.msk.f32.vlgmr.msra.gmra.mrb[0].mxu1 %vm82_vm0, %v54_v21  ;;  %69 = vperm.xlu0 %8607, %v59_v30   ;;  %v7775_v45 = vpack.c.bf16 %v52_v44, %v46_v43  ;;  %v9759_v55 = vld [vmem:[%s13535_s1] sm:$0x3f]  ;;  %s9571_s1 = smov 18   ;;  %v445_v43 = vsub.s32 2, %v9749_v48 }
   0xd   :  { %165 = vmatprep.mubr.f32.mxu1 %v13543_v3  ;;  %7764 = vmatpush1.bf16.msra.mxu1 %v7763_v22  ;;  %v9766_v63 = vrot.slane %v9759_v55, %v437_v52  ;;  %v9770_v2 = vrot.slane %v9759_v55, %v441_v57 }
   0xe   :  { %7766 = vmatprep.subr.bf16.mxu1 %v7765_v23  ;;  %79 = vperm.xlu1 %8608, %v61_v33  }
   0xf   :  { %13664 = vst [vmem:[#allocation2_spill] sm:$0xff] %v9766_v63  ;;  %13665 = vst [vmem:[#allocation3_spill] sm:$0xff] %v9770_v2 }
  0x10   :  { %7462 = vmatmul.mubr.msk.f32.gmra.mrb[2].mxu1 %vm82_vm0, %v55_v31 }
  0x11   :  { %171 = vmatprep.mubr.f32.mxu1 %v13543_v3  ;;  %7768 = vmatpush1.bf16.msra.mxu1 %v7767_v32 }
  0x12   :  { %7770 = vmatprep.subr.bf16.mxu1 %v7769_v34 }
  0x14   :  { %7463 = vmatmul.mubr.msk.f32.gmra.mrb[4].mxu1 %vm82_vm0, %v56_v35 }
  0x15   :  { %177 = vmatprep.mubr.f32.mxu1 %v13543_v3 }
  0x18   :  { %7464 = vmatmul.mubr.msk.f32.gmra.mrb[6].mxu1 %vm82_vm0, %v57_v36 }
  0x19   :  { %248 = vmatprep.mubr.f32.mxu1 %v13543_v3 }
  0x1c   :  { %7465 = vmatmul.mubr.msk.f32.vlgmr.msra.gmra.mrb[8].mxu1 %vm82_vm0, %v54_v21 }
  0x1d   :  { %254 = vmatprep.mubr.f32.mxu1 %v13543_v3  ;;  %7772 = vmatpush1.bf16.msra.mxu1 %v7771_v41 }
  0x1e   :  { %7774 = vmatprep.subr.bf16.mxu1 %v7773_v42 }
  0x20   :  { %7466 = vmatmul.mubr.msk.f32.gmra.mrb[10].mxu1 %vm82_vm0, %v55_v31 }
  0x21   :  { %260 = vmatprep.mubr.f32.mxu1 %v13543_v3  ;;  %7776 = vmatpush1.bf16.msra.mxu1 %v7775_v45  ;;  %v449_v45 = vsub.s32 3, %v9749_v48 }
  0x24   :  { %7467 = vmatmul.mubr.msk.f32.gmra.mrb[12].mxu1 %vm82_vm0, %v56_v35 }
  0x25   :  { %266 = vmatprep.mubr.f32.mxu1 %v13543_v3 }
  0x28   :  { %7468 = vmatmul.mubr.msk.f32.gmra.mrb[14].mxu1 %vm82_vm0, %v57_v36 }
  0x29   :  { %337 = vmatprep.mubr.f32.mxu1 %v13543_v3 }
  0x2c   :  { %7469 = vmatmul.mubr.msk.f32.vlgmr.msra.gmra.mrb[16].mxu1 %vm82_vm0, %v54_v21 }
  0x2d   :  { %343 = vmatprep.mubr.f32.mxu1 %v13543_v3 }
  0x30   :  { %7470 = vmatmul.mubr.msk.f32.gmra.mrb[18].mxu1 %vm82_vm0, %v55_v31 }
  0x31   :  { %349 = vmatprep.mubr.f32.mxu1 %v13543_v3 }
  0x34   :  { %7471 = vmatmul.mubr.msk.f32.gmra.mrb[20].mxu1 %vm82_vm0, %v56_v35 }
  0x35   :  { %355 = vmatprep.mubr.f32.mxu1 %v13543_v3 }
  0x38   :  { %7472 = vmatmul.mubr.msk.f32.gmra.mrb[22].mxu1 %vm82_vm0, %v57_v36 }
  0x39   :  { %722 = vmatprep.mubr.f32.mxu1 %v13543_v3 }
  0x87   :  { %v9746_v47 = vpop.permute.xlu0 %64  ;;  %v9762_v60 = vpop.permute.xlu1 %74 }
  0x8b   :  { %v9754_v54 = vpop.permute.xlu0 %69 }
  0x8d   :  { %v9779_v14 = vpop.permute.xlu1 %79 }
  0xdf   :  { %v161_v49 = vpop.f32.mrb[0].mxu1 }
  0xe0   :  { %v162_v50 = vadd.f32 %v161_v49, %v9746_v47  ;;  %v163_v51 = vpop.f32.mrb[1].mxu1 }
  0xe1   :  { %v164_v53 = vadd.f32 %v163_v51, %v9746_v47 }
  0xe2   :  { %v386_v56 = vmul.f32 0.01, %v162_v50  ;;  %vm362_vm1 = vcmp.ge.f32.partialorder %v162_v50, 0.0 }
  0xe3   :  { %v387_v58 = vmul.f32 0.01, %v164_v53  ;;  %v167_v59 = vpop.f32.mrb[2].mxu1  ;;  %vm363_vm2 = vcmp.ge.f32.partialorder %v164_v53, 0.0 }
  0xe4   :  { %v168_v61 = vadd.f32 %v167_v59, %v9754_v54  ;;  %v169_v62 = vpop.f32.mrb[3].mxu1  ;;  %v410_v1 = vsel %vm362_vm1, %v162_v50, %v386_v56  ;;  %v457_v50 = vsub.s32 5, %v9749_v48  ;;  %v9823_v59 = vrot.slane %v9759_v55, %v445_v43 }
  0xe5   :  { %v170_v0 = vadd.f32 %v169_v62, %v9754_v54  ;;  %v411_v5 = vsel %vm363_vm2, %v164_v53, %v387_v58  ;;  %v9774_v11 = vmul.f32 %v9766_v63, %v410_v1 }
  0xe6   :  { %vm368_vm3 = vcmp.ge.f32.partialorder %v168_v61, 0.0  ;;  %v392_v4 = vmul.f32 0.01, %v168_v61  ;;  %v9782_v15 = vmul.f32 %v9770_v2, %v411_v5  ;;  %13668 = vst [vmem:[#allocation6_spill] sm:$0xff] %v9823_v59 }
  0xe7   :  { %vm369_vm4 = vcmp.ge.f32.partialorder %v170_v0, 0.0  ;;  %v393_v6 = vmul.f32 0.01, %v170_v0  ;;  %v173_v7 = vpop.f32.mrb[4].mxu1 }
  0xe8   :  { %v416_v8 = vsel %vm368_vm3, %v168_v61, %v392_v4  ;;  %v174_v9 = vadd.f32 %v173_v7, %v9762_v60  ;;  %v175_v10 = vpop.f32.mrb[5].mxu1  ;;  %13666 = vst [vmem:[#allocation4_spill] sm:$0xff] %v9782_v15  ;;  %v453_v7 = vsub.s32 4, %v9749_v48 }
  0xe9   :  { %v9777_v12 = vmul.f32 %v9766_v63, %v416_v8  ;;  %v417_v13 = vsel %vm369_vm4, %v170_v0, %v393_v6  ;;  %v176_v35 = vadd.f32 %v175_v10, %v9762_v60  ;;  %v9827_v0 = vrot.slane %v9759_v55, %v449_v45 }
  0xea   :  { %v9785_v16 = vmul.f32 %v9770_v2, %v417_v13  ;;  %v398_v17 = vmul.f32 0.01, %v174_v9  ;;  %vm374_vm5 = vcmp.ge.f32.partialorder %v174_v9, 0.0  ;;  %v9839_v8 = vrot.slane %v9759_v55, %v457_v50 }
  0xeb   :  { %v179_v18 = vpop.f32.mrb[6].mxu1  ;;  %v9789_v19 = vpack.i.bf16 %v9777_v12, %v9774_v11  ;;  %v399_v39 = vmul.f32 0.01, %v176_v35  ;;  %vm375_vm7 = vcmp.ge.f32.partialorder %v176_v35, 0.0  ;;  %13669 = vst [vmem:[#allocation7_spill] sm:$0xff] %v9827_v0 }
  0xec   :  { %13667 = vst [vmem:[#allocation5_spill] sm:$0xff] %v9785_v16  ;;  %v180_v20 = vadd.f32 %v179_v18, %v9779_v14  ;;  %v181_v21 = vpop.f32.mrb[7].mxu1  ;;  %v9794_v22 = vpack.i.bf16 %v9785_v16, %v9782_v15  ;;  %v422_v23 = vsel %vm374_vm5, %v174_v9, %v398_v17  ;;  %13670 = vst [vmem:[#allocation8_spill] sm:$0xff] %v9839_v8 }
  0xed   :  { %8610 = vrot.lane.b32.xlu0 %v9789_v19, %s9571_s1  ;;  %v9801_v28 = vmul.f32 %v9766_v63, %v422_v23  ;;  %v182_v36 = vadd.f32 %v181_v21, %v9779_v14  ;;  %v423_v51 = vsel %vm375_vm7, %v176_v35, %v399_v39 }
  0xee   :  { %vm380_vm6 = vcmp.ge.f32.partialorder %v180_v20, 0.0  ;;  %v404_v24 = vmul.f32 0.01, %v180_v20  ;;  %8615 = vrot.lane.b32.xlu1 %v9794_v22, %s9571_s1  ;;  %v9832_v5 = vmul.f32 %v9770_v2, %v423_v51 }
  0xef   :  { %v250_v25 = vpop.f32.mrb[8].mxu1  ;;  %v405_v40 = vmul.f32 0.01, %v182_v36  ;;  %vm381_vm8 = vcmp.ge.f32.partialorder %v182_v36, 0.0 }
  0xf0   :  { %v428_v26 = vsel %vm380_vm6, %v180_v20, %v404_v24  ;;  %v252_v27 = vpop.f32.mrb[9].mxu1  ;;  %v251_v42 = vadd.f32 %v250_v25, %v9746_v47 }
  0xf1   :  { %v9804_v29 = vmul.f32 %v9766_v63, %v428_v26  ;;  %v429_v52 = vsel %vm381_vm8, %v182_v36, %v405_v40  ;;  %v253_v61 = vadd.f32 %v252_v27, %v9746_v47 }
  0xf2   :  { %v388_v58 = vmul.f32 0.01, %v251_v42  ;;  %vm364_vm10 = vcmp.ge.f32.partialorder %v251_v42, 0.0  ;;  %v9835_v6 = vmul.f32 %v9770_v2, %v429_v52 }
  0xf3   :  { %v256_v30 = vpop.f32.mrb[10].mxu1  ;;  %v9808_v31 = vpack.i.bf16 %v9804_v29, %v9801_v28  ;;  %vm365_vm12 = vcmp.ge.f32.partialorder %v253_v61, 0.0  ;;  %v389_v20 = vmul.f32 0.01, %v253_v61 }
  0xf4   :  { %v258_v32 = vpop.f32.mrb[11].mxu1  ;;  %v257_v53 = vadd.f32 %v256_v30, %v9754_v54  ;;  %v412_v18 = vsel %vm364_vm10, %v251_v42, %v388_v58 }
  0xf5   :  { %8620 = vrot.lane.b32.xlu1 %v9808_v31, %s9571_s1  ;;  %v259_v1 = vadd.f32 %v258_v32, %v9754_v54  ;;  %v9851_v35 = vmul.f32 %v9823_v59, %v412_v18  ;;  %v413_v52 = vsel %vm365_vm12, %v253_v61, %v389_v20 }
  0xf6   :  { %v394_v9 = vmul.f32 0.01, %v257_v53  ;;  %vm370_vm13 = vcmp.ge.f32.partialorder %v257_v53, 0.0 }
  0xf7   :  { %v262_v33 = vpop.f32.mrb[12].mxu1  ;;  %v395_v23 = vmul.f32 0.01, %v259_v1  ;;  %vm371_vm14 = vcmp.ge.f32.partialorder %v259_v1, 0.0 }
  0xf8   :  { %v264_v34 = vpop.f32.mrb[13].mxu1  ;;  %v263_v27 = vadd.f32 %v262_v33, %v9762_v60  ;;  %v418_v36 = vsel %vm370_vm13, %v257_v53, %v394_v9 }
  0xf9   :  { %v265_v42 = vadd.f32 %v264_v34, %v9762_v60  ;;  %v419_v45 = vsel %vm371_vm14, %v259_v1, %v395_v23  ;;  %v9867_v53 = vmul.f32 %v9823_v59, %v418_v36  ;;  %v9898_v23 = vmul.f32 %v9827_v0, %v413_v52 }
  0xfa   :  { %v400_v34 = vmul.f32 0.01, %v263_v27  ;;  %vm376_vm3 = vcmp.ge.f32.partialorder %v263_v27, 0.0 }
  0xfb   :  { %v268_v37 = vpop.f32.mrb[14].mxu1  ;;  %vm377_vm4 = vcmp.ge.f32.partialorder %v265_v42, 0.0 }
  0xfc   :  { %v270_v38 = vpop.f32.mrb[15].mxu1  ;;  %v269_v24 = vadd.f32 %v268_v37, %v9779_v14  ;;  %v9855_v37 = vpack.i.bf16 %v9835_v6, %v9832_v5 }
  0xfd   :  { %v271_v33 = vadd.f32 %v270_v38, %v9779_v14 }
  0xfe   :  { %vm382_vm1 = vcmp.ge.f32.partialorder %v269_v24, 0.0 }
  0xff   :  { %v9814_v41 = vpop.f32.mrb[16].mxu1  ;;  %vm383_vm5 = vcmp.ge.f32.partialorder %v271_v33, 0.0 }
 0x100   :  { %v341_v44 = vpop.f32.mrb[17].mxu1  ;;  %v340_v38 = vadd.f32 %v9814_v41, %v9746_v47  ;;  %v424_v41 = vsel %vm376_vm3, %v263_v27, %v400_v34 }
 0x101   :  { %v342_v49 = vadd.f32 %v341_v44, %v9746_v47 }
 0x102   :  { %vm366_vm7 = vcmp.ge.f32.partialorder %v340_v38, 0.0 }
 0x103   :  { %v391_v56 = vmul.f32 0.01, %v342_v49  ;;  %v345_v57 = vpop.f32.mrb[18].mxu1  ;;  %vm367_vm9 = vcmp.ge.f32.partialorder %v342_v49, 0.0 }
 0x104   :  { %v347_v62 = vpop.f32.mrb[19].mxu1  ;;  %v346_v50 = vadd.f32 %v345_v57, %v9754_v54  ;;  %v407_v57 = vmul.f32 0.01, %v271_v33 }
 0x105   :  { %v348_v4 = vadd.f32 %v347_v62, %v9754_v54  ;;  %v415_v10 = vsel %vm367_vm9, %v342_v49, %v391_v56  ;;  %v406_v49 = vmul.f32 0.01, %v269_v24  ;;  %v9874_v54 = vmul.f32 %v9827_v0, %v419_v45 }
 0x106   :  { %v9845_v30 = vmul.f32 %v9839_v8, %v415_v10  ;;  %v396_v62 = vmul.f32 0.01, %v346_v50  ;;  %vm372_vm6 = vcmp.ge.f32.partialorder %v346_v50, 0.0  ;;  %v401_v10 = vmul.f32 0.01, %v265_v42 }
 0x107   :  { %vm373_vm11 = vcmp.ge.f32.partialorder %v348_v4, 0.0  ;;  %v397_v13 = vmul.f32 0.01, %v348_v4  ;;  %v351_v17 = vpop.f32.mrb[20].mxu1  ;;  %v430_v61 = vsel %vm382_vm1, %v269_v24, %v406_v49  ;;  %v431_v24 = vsel %vm383_vm5, %v271_v33, %v407_v57 }
 0x108   :  { %v353_v21 = vpop.f32.mrb[21].mxu1  ;;  %v352_v18 = vadd.f32 %v351_v17, %v9762_v60  ;;  %v9887_v20 = vmul.f32 %v9823_v59, %v430_v61  ;;  %v9906_v17 = vrot.slane %v9759_v55, %v453_v7  ;;  %v425_v27 = vsel %vm377_vm4, %v265_v42, %v401_v10 }
 0x109   :  { %v421_v25 = vsel %vm373_vm11, %v348_v4, %v397_v13  ;;  %v354_v26 = vadd.f32 %v353_v21, %v9762_v60  ;;  %v390_v13 = vmul.f32 0.01, %v340_v38  ;;  %v9895_v21 = vpack.i.bf16 %v9867_v53, %v9851_v35 }
 0x10a   :  { %v9848_v32 = vmul.f32 %v9839_v8, %v421_v25  ;;  %v420_v25 = vsel %vm372_vm6, %v346_v50, %v396_v62  ;;  %v9901_v60 = vmul.f32 %v9823_v59, %v424_v41  ;;  %13673 = vst [vmem:[#allocation11_spill] sm:$0xff] %v9906_v17  ;;  %v9918_v48 = vmul.f32 %v9827_v0, %v431_v24 }
 0x10b   :  { %v403_v39 = vmul.f32 0.01, %v354_v26  ;;  %v357_v40 = vpop.f32.mrb[22].mxu1  ;;  %vm379_vm15 = vcmp.ge.f32.partialorder %v354_v26, 0.0  ;;  %v414_v36 = vsel %vm366_vm7, %v340_v38, %v390_v13  ;;  %v9921_v55 = vmul.f32 %v9906_v17, %v420_v25 }
 0x10c   :  { %v359_v43 = vpop.f32.mrb[23].mxu1  ;;  %v9861_v44 = vpack.i.bf16 %v9848_v32, %v9845_v30  ;;  %v358_v1 = vadd.f32 %v357_v40, %v9779_v14  ;;  %v9915_v40 = vpack.i.bf16 %v9874_v54, %v9898_v23  ;;  %13674 = vst [vmem:[#allocation12_spill] sm:$0xff] %v9918_v48  ;;  %vm378_vm9 = vcmp.ge.f32.partialorder %v352_v18, 0.0 }
 0x10d   :  { %v360_v51 = vadd.f32 %v359_v43, %v9779_v14  ;;  %v427_v56 = vsel %vm379_vm15, %v354_v26, %v403_v39  ;;  %v402_v39 = vmul.f32 0.01, %v352_v18  ;;  %13675 = vst [vmem:[#allocation13_spill] sm:$0xff] %v9921_v55  ;;  %v9925_v7 = vpack.i.bf16 %v9887_v20, %v9901_v60 }
 0x10e   :  { %8625 = vrot.lane.b32.xlu0 %v9861_v44, %s9571_s1  ;;  %v9878_v9 = vmul.f32 %v9839_v8, %v427_v56  ;;  %v408_v26 = vmul.f32 0.01, %v358_v1  ;;  %vm384_vm8 = vcmp.ge.f32.partialorder %v358_v1, 0.0  ;;  %v9928_v42 = vmul.f32 %v9827_v0, %v425_v27 }
 0x10f   :  { %vm385_vm2 = vcmp.ge.f32.partialorder %v360_v51, 0.0  ;;  %v409_v58 = vmul.f32 0.01, %v360_v51  ;;  %v9931_v43 = vmul.f32 %v9906_v17, %v414_v36  ;;  %v426_v45 = vsel %vm378_vm9, %v352_v18, %v402_v39 }
 0x110   :  { %13671 = vst [vmem:[#allocation9_spill] sm:$0xff] %v9878_v9  ;;  %v432_v33 = vsel %vm384_vm8, %v358_v1, %v408_v26  ;;  %13676 = vst [vmem:[#allocation14_spill] sm:$0xff] %v9928_v42  ;;  %v9942_v50 = vpack.i.bf16 %v9918_v48, %v9928_v42  ;;  %v9949_v52 = vmul.f32 %v9906_v17, %v426_v45  ;;  %v10020_v38 = vand.u32 127, %v435_v46 }
 0x111   :  { %v433_v4 = vsel %vm385_vm2, %v360_v51, %v409_v58  ;;  %13677 = vst [vmem:[#allocation15_spill] sm:$0xff] %v9931_v43  ;;  %v9938_v49 = vmul.f32 %v9906_v17, %v432_v33  ;;  %v9946_v51 = vpack.i.bf16 %v9921_v55, %v9931_v43 }
 0x112   :  { %v9881_v47 = vmul.f32 %v9839_v8, %v433_v4  ;;  %8630 = vrot.lane.b32.xlu0 %v9855_v37, %s9571_s1  ;;  %13679 = vst [vmem:[#allocation17_spill] sm:$0xff] %v9949_v52  ;;  %vm616_vm10 = vcmp.lt.s32.totalorder %v10020_v38, 18  ;;  %vm539_vm11 = vcmp.lt.s32.totalorder %v10020_v38, 19  ;;  %vm1252_vm12 = vcmp.lt.s32.totalorder %v10020_v38, 17 }
 0x113   :  { %13678 = vst [vmem:[#allocation16_spill] sm:$0xff] %v9938_v49  ;;  %v9957_v34 = vpack.i.bf16 %v9938_v49, %v9949_v52  ;;  %vm1633_vm13 = vcmp.lt.s32.totalorder %v10020_v38, 1  ;;  %vm3084_vm14 = vcmp.lt.s32.totalorder %v10020_v38, 110  ;;  %vm3465_vm15 = vcmp.lt.s32.totalorder %v10020_v38, 109 }
 0x114   :  { %13672 = vst [vmem:[#allocation10_spill] sm:$0xff] %v9881_v47  ;;  %v9891_v14 = vpack.i.bf16 %v9881_v47, %v9878_v9  ;;  %vm2322_vm1 = vcmp.lt.s32.totalorder %v10020_v38, 127  ;;  %vm2703_vm2 = vcmp.lt.s32.totalorder %v10020_v38, 111 }
 0x116   :  { %8635 = vrot.lane.b32.xlu1 %v9891_v14, %s9571_s1  ;;  %8640 = vrot.lane.b32.xlu0 %v9895_v21, %s9571_s1 }
 0x11a   :  { %8645 = vrot.lane.b32.xlu1 %v9915_v40, %s9571_s1  ;;  %8650 = vrot.lane.b32.xlu0 %v9925_v7, %s9571_s1 }
 0x11e   :  { %8655 = vrot.lane.b32.xlu1 %v9942_v50, %s9571_s1  ;;  %8660 = vrot.lane.b32.xlu0 %v9946_v51, %s9571_s1 }
 0x122   :  { %8665 = vrot.lane.b32.xlu1 %v9957_v34, %s9571_s1  ;;  %8670 = vrot.lane.b32.xlu0 %v9789_v19, %s9572_s24 }
 0x126   :  { %8675 = vrot.lane.b32.xlu1 %v9794_v22, %s9572_s24  ;;  %8680 = vrot.lane.b32.xlu0 %v9861_v44, %s9572_s24 }
 0x12a   :  { %8685 = vrot.lane.b32.xlu1 %v9808_v31, %s9572_s24  ;;  %8690 = vrot.lane.b32.xlu0 %v9855_v37, %s9572_s24 }
 0x12e   :  { %8695 = vrot.lane.b32.xlu1 %v9891_v14, %s9572_s24  ;;  %8700 = vrot.lane.b32.xlu0 %v9895_v21, %s9572_s24 }
 0x132   :  { %8705 = vrot.lane.b32.xlu1 %v9915_v40, %s9572_s24  ;;  %8710 = vrot.lane.b32.xlu0 %v9925_v7, %s9572_s24 }
 0x136   :  { %8715 = vrot.lane.b32.xlu1 %v9942_v50, %s9572_s24  ;;  %8720 = vrot.lane.b32.xlu0 %v9946_v51, %s9572_s24 }
 0x13a   :  { %8725 = vrot.lane.b32.xlu1 %v9957_v34, %s9572_s24  ;;  %8730 = vrot.lane.b32.xlu0 %v9789_v19, %s9573_s25 }
 0x13e   :  { %8735 = vrot.lane.b32.xlu1 %v9794_v22, %s9573_s25  ;;  %8740 = vrot.lane.b32.xlu0 %v9861_v44, %s9573_s25 }
 0x142   :  { %8745 = vrot.lane.b32.xlu1 %v9808_v31, %s9573_s25  ;;  %8750 = vrot.lane.b32.xlu0 %v9855_v37, %s9573_s25 }
 0x146   :  { %8755 = vrot.lane.b32.xlu1 %v9891_v14, %s9573_s25  ;;  %8760 = vrot.lane.b32.xlu0 %v9895_v21, %s9573_s25 }
 0x14a   :  { %8765 = vrot.lane.b32.xlu1 %v9915_v40, %s9573_s25  ;;  %8770 = vrot.lane.b32.xlu0 %v9925_v7, %s9573_s25 }
 0x14e   :  { %8775 = vrot.lane.b32.xlu1 %v9942_v50, %s9573_s25  ;;  %8780 = vrot.lane.b32.xlu0 %v9946_v51, %s9573_s25 }
 0x152   :  { %8785 = vrot.lane.b32.xlu1 %v9957_v34, %s9573_s25  ;;  %8790 = vrot.lane.b32.xlu0 %v9789_v19, %s9574_s26 }
 0x156   :  { %8795 = vrot.lane.b32.xlu1 %v9794_v22, %s9574_s26  ;;  %8800 = vrot.lane.b32.xlu0 %v9861_v44, %s9574_s26 }
 0x15a   :  { %8805 = vrot.lane.b32.xlu1 %v9808_v31, %s9574_s26  ;;  %8810 = vrot.lane.b32.xlu0 %v9855_v37, %s9574_s26 }
 0x15e   :  { %8815 = vrot.lane.b32.xlu1 %v9891_v14, %s9574_s26  ;;  %8820 = vrot.lane.b32.xlu0 %v9895_v21, %s9574_s26 }
 0x15f   :  { %v8611_v56 = vpop.permute.xlu0 %8610 }
 0x160   :  { %v8613_v58 = vunpack.i.h.bf16 %v8611_v56  ;;  %v8612_v57 = vunpack.i.l.bf16 %v8611_v56  ;;  %v10027_v61 = vpop.permute.xlu1 %8615 }
 0x161   :  { %v8618_v62 = vunpack.i.h.bf16 %v10027_v61  ;;  %v13545_v1 = vunpack.i.l.bf16 %v10027_v61 }
 0x162   :  { %8825 = vrot.lane.b32.xlu1 %v9915_v40, %s9574_s26  ;;  %8830 = vrot.lane.b32.xlu0 %v9925_v7, %s9574_s26 }
 0x163   :  { %v633_v46 = vsel %vm616_vm10, %v8612_v57, %v13545_v1  ;;  %v634_v4 = vsel %vm616_vm10, %v8613_v58, %v8618_v62 }
 0x164   :  { %v7777_v41 = vpack.c.bf16 %v634_v4, %v633_v46 }
 0x166   :  { %8835 = vrot.lane.b32.xlu1 %v9942_v50, %s9574_s26  ;;  %8840 = vrot.lane.b32.xlu0 %v9946_v51, %s9574_s26 }
 0x167   :  { %7778 = vmatprep.subr.bf16.mxu1 %v7777_v41  ;;  %v8621_v24 = vpop.permute.xlu1 %8620 }
 0x168   :  { %v8623_v39 = vunpack.i.h.bf16 %v8621_v24  ;;  %v8622_v33 = vunpack.i.l.bf16 %v8621_v24 }
 0x16a   :  { %8845 = vrot.lane.b32.xlu1 %v9957_v34, %s9574_s26  ;;  %8850 = vrot.lane.b32.xlu0 %v9794_v22, %s9575_s27 }
 0x16e   :  { %8855 = vrot.lane.b32.xlu1 %v9895_v21, %s9575_s27  ;;  %8860 = vrot.lane.b32.xlu0 %v9789_v19, %s9575_s27 }
 0x172   :  { %8865 = vrot.lane.b32.xlu1 %v9855_v37, %s9575_s27  ;;  %8870 = vrot.lane.b32.xlu0 %v9925_v7, %s9575_s27 }
 0x176   :  { %8875 = vrot.lane.b32.xlu1 %v9808_v31, %s9575_s27  ;;  %8880 = vrot.lane.b32.xlu0 %v9915_v40, %s9575_s27 }
 0x17a   :  { %8885 = vrot.lane.b32.xlu1 %v9946_v51, %s9575_s27  ;;  %8890 = vrot.lane.b32.xlu0 %v9942_v50, %s9575_s27 }
 0x17e   :  { %8895 = vrot.lane.b32.xlu1 %v9957_v34, %s9575_s27  ;;  %8900 = vrot.lane.b32.xlu0 %v9861_v44, %s9575_s27 }
 0x180   :  { %v10071_v10 = vpop.permute.xlu0 %8625 }
 0x181   :  { %v13541_v13 = vunpack.i.h.bf16 %v10071_v10  ;;  %v13542_v18 = vunpack.i.l.bf16 %v10071_v10  ;;  %v13683_v59 = vunpack.i.h.bf16 %v10071_v10 }
 0x182   :  { %8905 = vrot.lane.b32.xlu1 %v9891_v14, %s9575_s27  ;;  %8910 = vrot.lane.b32.xlu0 %v9794_v22, %s9576_s28 }
 0x183   :  { %v637_v25 = vsel %vm616_vm10, %v13542_v18, %v8612_v57  ;;  %v638_v26 = vsel %vm616_vm10, %v13541_v13, %v8613_v58 }
 0x184   :  { %v8631_v27 = vpop.permute.xlu0 %8630  ;;  %v7779_v36 = vpack.c.bf16 %v638_v26, %v637_v25 }
 0x185   :  { %v8633_v45 = vunpack.i.h.bf16 %v8631_v27  ;;  %v8632_v56 = vunpack.i.l.bf16 %v8631_v27 }
 0x186   :  { %8915 = vrot.lane.b32.xlu1 %v9895_v21, %s9576_s28  ;;  %8920 = vrot.lane.b32.xlu0 %v9789_v19, %s9576_s28 }
 0x187   :  { %7780 = vmatpush1.bf16.msra.mxu1 %v7779_v36  ;;  %v635_v57 = vsel %vm616_vm10, %v8622_v33, %v8632_v56  ;;  %v636_v46 = vsel %vm616_vm10, %v8623_v39, %v8633_v45 }
 0x188   :  { %v10095_v58 = vpop.permute.xlu1 %8635  ;;  %v8641_v4 = vpop.permute.xlu0 %8640  ;;  %v7781_v41 = vpack.c.bf16 %v636_v46, %v635_v57 }
 0x189   :  { %v13546_v24 = vunpack.i.h.bf16 %v10095_v58  ;;  %v13547_v25 = vunpack.i.l.bf16 %v10095_v58  ;;  %v8643_v36 = vunpack.i.h.bf16 %v8641_v4  ;;  %v8642_v57 = vunpack.i.l.bf16 %v8641_v4 }
 0x18a   :  { %8925 = vrot.lane.b32.xlu1 %v9855_v37, %s9576_s28  ;;  %8930 = vrot.lane.b32.xlu0 %v9925_v7, %s9576_s28 }
 0x18b   :  { %v639_v26 = vsel %vm616_vm10, %v13547_v25, %v8622_v33  ;;  %v640_v27 = vsel %vm616_vm10, %v13546_v24, %v8623_v39  ;;  %7782 = vmatprep.subr.bf16.mxu1 %v7781_v41  ;;  %v630_v39 = vsel %vm616_vm10, %v8618_v62, %v8643_v36  ;;  %v13680_v33 = vunpack.i.l.bf16 %v10027_v61  ;;  %v10130_v41 = vld [vmem:[%s13536_s4 + $0x20] sm:$0xff] }
 0x18c   :  { %v10111_v46 = vpop.permute.xlu1 %8645  ;;  %v8651_v13 = vpop.permute.xlu0 %8650  ;;  %v7783_v18 = vpack.c.bf16 %v640_v27, %v639_v26 }
 0x18d   :  { %v8648_v3 = vunpack.i.h.bf16 %v10111_v46  ;;  %v8647_v1 = vunpack.i.l.bf16 %v10111_v46  ;;  %v629_v4 = vsel %vm616_vm10, %v13680_v33, %v8642_v57  ;;  %v8653_v46 = vunpack.i.h.bf16 %v8651_v13 }
 0x18e   :  { %8935 = vrot.lane.b32.xlu1 %v9808_v31, %s9576_s28  ;;  %8940 = vrot.lane.b32.xlu0 %v9915_v40, %s9576_s28  ;;  %v8652_v24 = vunpack.i.l.bf16 %v8651_v13  ;;  %v10149_v13 = vld [vmem:[%s13536_s4 + $0x28] sm:$0xff] }
 0x18f   :  { %7784 = vmatpush1.bf16.msra.mxu1 %v7783_v18  ;;  %v625_v26 = vsel %vm616_vm10, %v8642_v57, %v8647_v1  ;;  %v626_v27 = vsel %vm616_vm10, %v8643_v36, %v8648_v3  ;;  %v7787_v57 = vpack.c.bf16 %v630_v39, %v629_v4 }
 0x190   :  { %v10136_v62 = vpop.permute.xlu1 %8655  ;;  %v8661_v61 = vpop.permute.xlu0 %8660  ;;  %v7785_v25 = vpack.c.bf16 %v626_v27, %v625_v26  ;;  %v631_v26 = vsel %vm616_vm10, %v8632_v56, %v8652_v24  ;;  %v632_v27 = vsel %vm616_vm10, %v8633_v45, %v8653_v46 }
 0x191   :  { %v8658_v33 = vunpack.i.h.bf16 %v10136_v62  ;;  %v8657_v18 = vunpack.i.l.bf16 %v10136_v62  ;;  %v8663_v17 = vunpack.i.h.bf16 %v8661_v61  ;;  %v8662_v0 = vunpack.i.l.bf16 %v8661_v61 }
 0x192   :  { %7477 = vmatmul.mubr.msk.f32.vlgmr.msra.gmra.mrb[24].mxu1 %vm82_vm0, %v10130_v41  ;;  %8945 = vrot.lane.b32.xlu1 %v9946_v51, %s9576_s28  ;;  %v13681_v62 = vmov 0.0   ;;  %v13682_v61 = vunpack.i.l.bf16 %v10071_v10  ;;  %v10180_v10 = vld [vmem:[%s13536_s4 + $0x30] sm:$0xff] }
 0x193   :  { %8950 = vrot.lane.b32.xlu0 %v9942_v50, %s9576_s28  ;;  %7786 = vmatprep.subr.bf16.mxu1 %v7785_v25  ;;  %v627_v36 = vsel %vm616_vm10, %v8652_v24, %v8657_v18  ;;  %v628_v25 = vsel %vm616_vm10, %v8653_v46, %v8658_v33  ;;  %v618_v56 = vsel %vm616_vm10, %v8663_v17, %v13683_v59 }
 0x194   :  { %7788 = vmatpush1.bf16.msra.mxu1 %v7787_v57  ;;  %v8666_v39 = vpop.permute.xlu1 %8665  ;;  %v10157_v4 = vpop.permute.xlu0 %8670  ;;  %728 = vmatprep.mubr.f32.mxu1 %v13681_v62  ;;  %v617_v8 = vsel %vm616_vm10, %v8662_v0, %v13682_v61  ;;  %v7789_v45 = vpack.c.bf16 %v628_v25, %v627_v36  ;;  %v7791_v24 = vpack.c.bf16 %v632_v27, %v631_v26  ;;  %v10195_v36 = vld [vmem:[%s13536_s4 + $0x38] sm:$0xff] }
 0x195   :  { %v7793_v57 = vpack.c.bf16 %v618_v56, %v617_v8  ;;  %v8668_v26 = vunpack.i.h.bf16 %v8666_v39  ;;  %v8667_v27 = vunpack.i.l.bf16 %v8666_v39  ;;  %v622_v61 = vsel %vm616_vm10, %v8648_v3, %v8663_v17 }
 0x196   :  { %7478 = vmatmul.mubr.msk.f32.gmra.mrb[26].mxu1 %vm82_vm0, %v10149_v13  ;;  %8955 = vrot.lane.b32.xlu1 %v9957_v34, %s9576_s28  ;;  %v621_v56 = vsel %vm616_vm10, %v8647_v1, %v8662_v0  ;;  %v13684_v3 = vunpack.i.l.bf16 %v10095_v58  ;;  %v13685_v17 = vunpack.i.h.bf16 %v10095_v58  ;;  %v8673_v63 = vunpack.i.h.bf16 %v10157_v4 }
 0x197   :  { %8960 = vrot.lane.b32.xlu0 %v9861_v44, %s9576_s28  ;;  %734 = vmatprep.mubr.f32.mxu1 %v13681_v62  ;;  %v7795_v39 = vpack.c.bf16 %v622_v61, %v621_v56  ;;  %v624_v2 = vsel %vm616_vm10, %v8658_v33, %v8668_v26  ;;  %v8672_v49 = vunpack.i.l.bf16 %v10157_v4 }
 0x198   :  { %7790 = vmatprep.subr.bf16.mxu1 %v7789_v45  ;;  %v10182_v59 = vpop.permute.xlu1 %8675  ;;  %v10184_v46 = vpop.permute.xlu0 %8680  ;;  %v619_v0 = vsel %vm616_vm10, %v8667_v27, %v13684_v3  ;;  %v620_v1 = vsel %vm616_vm10, %v8668_v26, %v13685_v17  ;;  %v623_v45 = vsel %vm616_vm10, %v8657_v18, %v8667_v27 }
 0x199   :  { %7792 = vmatpush1.bf16.msra.mxu1 %v7791_v24  ;;  %v7797_v58 = vpack.c.bf16 %v620_v1, %v619_v0  ;;  %v13686_v33 = vunpack.i.l.bf16 %v10182_v59  ;;  %v13687_v26 = vunpack.i.h.bf16 %v10182_v59  ;;  %v7799_v56 = vpack.c.bf16 %v624_v2, %v623_v45 }
 0x19a   :  { %7794 = vmatprep.subr.bf16.mxu1 %v7793_v57  ;;  %7479 = vmatmul.mubr.msk.f32.gmra.mrb[28].mxu1 %vm82_vm0, %v10180_v10  ;;  %v13562_v2 = vunpack.i.h.bf16 %v10184_v46  ;;  %v13563_v45 = vunpack.i.l.bf16 %v10184_v46 }
 0x19b   :  { %8965 = vrot.lane.b32.xlu1 %v9891_v14, %s9576_s28  ;;  %8970 = vrot.lane.b32.xlu0 %v9794_v22, %s9577_s12  ;;  %v556_v4 = vsel %vm539_vm11, %v8672_v49, %v13686_v33  ;;  %v557_v27 = vsel %vm539_vm11, %v8673_v63, %v13687_v26 }
 0x19c   :  { %v10197_v8 = vpop.permute.xlu1 %8685  ;;  %v10199_v25 = vpop.permute.xlu0 %8690  ;;  %740 = vmatprep.mubr.f32.mxu1 %v13681_v62 }
 0x19d   :  { %v8688_v17 = vunpack.i.h.bf16 %v10197_v8  ;;  %v8687_v1 = vunpack.i.l.bf16 %v10197_v8  ;;  %v561_v8 = vsel %vm539_vm11, %v13562_v2, %v8673_v63  ;;  %v13688_v2 = vunpack.i.l.bf16 %v10199_v25 }
 0x19e   :  { %7480 = vmatmul.mubr.msk.f32.gmra.mrb[30].mxu1 %vm82_vm0, %v10195_v36 }
 0x19f   :  { %8975 = vrot.lane.b32.xlu1 %v9895_v21, %s9577_s12  ;;  %8980 = vrot.lane.b32.xlu0 %v9789_v19, %s9577_s12 }
 0x1a0   :  { %v10214_v24 = vpop.permute.xlu1 %8695  ;;  %v10216_v57 = vpop.permute.xlu0 %8700  ;;  %811 = vmatprep.mubr.f32.mxu1 %v13681_v62 }
 0x1a1   :  { %v13690_v47 = vunpack.i.h.bf16 %v10214_v24  ;;  %v8703_v55 = vunpack.i.h.bf16 %v10216_v57 }
 0x1a2   :  { %7481 = vmatmul.mubr.msk.f32.vlgmr.msra.gmra.mrb[32].mxu1 %vm82_vm0, %v10130_v41 }
 0x1a3   :  { %7796 = vmatpush1.bf16.msra.mxu1 %v7795_v39  ;;  %8985 = vrot.lane.b32.xlu1 %v9855_v37, %s9577_s12  ;;  %v7801_v39 = vpack.c.bf16 %v557_v27, %v556_v4  ;;  %v560_v27 = vsel %vm539_vm11, %v13563_v45, %v8672_v49  ;;  %v558_v45 = vsel %vm539_vm11, %v8687_v1, %v13688_v2  ;;  %v8702_v2 = vunpack.i.l.bf16 %v10216_v57 }
 0x1a4   :  { %8990 = vrot.lane.b32.xlu0 %v9925_v7, %s9577_s12  ;;  %v10240_v61 = vpop.permute.xlu1 %8705  ;;  %v10242_v18 = vpop.permute.xlu0 %8710  ;;  %7798 = vmatprep.subr.bf16.mxu1 %v7797_v58  ;;  %v7803_v33 = vpack.c.bf16 %v561_v8, %v560_v27  ;;  %v563_v9 = vsel %vm539_vm11, %v13690_v47, %v8688_v17  ;;  %v13694_v8 = vunpack.i.l.bf16 %v10182_v59 }
 0x1a5   :  { %817 = vmatprep.mubr.f32.mxu1 %v13681_v62  ;;  %v13691_v57 = vunpack.i.l.bf16 %v10240_v61 }
 0x1a6   :  { %7482 = vmatmul.mubr.msk.f32.gmra.mrb[34].mxu1 %vm82_vm0, %v10149_v13 }
 0x1a7   :  { %7800 = vmatpush1.bf16.msra.mxu1 %v7799_v56  ;;  %823 = vmatprep.mubr.f32.mxu1 %v13681_v62  ;;  %v13689_v56 = vunpack.i.h.bf16 %v10199_v25 }
 0x1a8   :  { %8995 = vrot.lane.b32.xlu1 %v9808_v31, %s9577_s12  ;;  %9000 = vrot.lane.b32.xlu0 %v9915_v40, %s9577_s12  ;;  %v10260_v3 = vpop.permute.xlu1 %8715  ;;  %v10262_v0 = vpop.permute.xlu0 %8720 }
 0x1a9   :  { %7802 = vmatprep.subr.bf16.mxu1 %v7801_v39  ;;  %v8697_v39 = vunpack.i.l.bf16 %v10214_v24  ;;  %v559_v58 = vsel %vm539_vm11, %v8688_v17, %v13689_v56 }
 0x1aa   :  { %7483 = vmatmul.mubr.msk.f32.gmra.mrb[36].mxu1 %vm82_vm0, %v10180_v10  ;;  %v7805_v56 = vpack.c.bf16 %v559_v58, %v558_v45  ;;  %v13692_v45 = vunpack.i.h.bf16 %v10240_v61 }
 0x1ab   :  { %829 = vmatprep.mubr.f32.mxu1 %v13681_v62  ;;  %v562_v52 = vsel %vm539_vm11, %v8697_v39, %v8687_v1 }
 0x1ac   :  { %9005 = vrot.lane.b32.xlu1 %v9946_v51, %s9577_s12  ;;  %9010 = vrot.lane.b32.xlu0 %v9942_v50, %s9577_s12  ;;  %v10277_v4 = vpop.permute.xlu1 %8725  ;;  %v10279_v26 = vpop.permute.xlu0 %8730  ;;  %v549_v17 = vsel %vm539_vm11, %v8703_v55, %v13692_v45  ;;  %v7807_v58 = vpack.c.bf16 %v563_v9, %v562_v52  ;;  %v8718_v9 = vunpack.i.h.bf16 %v10260_v3  ;;  %v8717_v52 = vunpack.i.l.bf16 %v10260_v3 }
 0x1ad   :  { %v13696_v45 = vunpack.i.h.bf16 %v10199_v25 }
 0x1ae   :  { %7484 = vmatmul.mubr.msk.f32.gmra.mrb[38].mxu1 %vm82_vm0, %v10195_v36 }
 0x1af   :  { %900 = vmatprep.mubr.f32.mxu1 %v13681_v62 }
 0x1b0   :  { %9015 = vrot.lane.b32.xlu1 %v9957_v34, %s9577_s12  ;;  %9020 = vrot.lane.b32.xlu0 %v9861_v44, %s9577_s12  ;;  %v10300_v63 = vpop.permute.xlu1 %8735  ;;  %v10302_v49 = vpop.permute.xlu0 %8740 }
 0x1b2   :  { %7485 = vmatmul.mubr.msk.f32.vlgmr.msra.gmra.mrb[40].mxu1 %vm82_vm0, %v10130_v41  ;;  %v548_v41 = vsel %vm539_vm11, %v8702_v2, %v13691_v57  ;;  %v8713_v57 = vunpack.i.h.bf16 %v10242_v18 }
 0x1b3   :  { %7804 = vmatpush1.bf16.msra.mxu1 %v7803_v33  ;;  %906 = vmatprep.mubr.f32.mxu1 %v13681_v62 }
 0x1b4   :  { %9025 = vrot.lane.b32.xlu1 %v9891_v14, %s9577_s12  ;;  %9030 = vrot.lane.b32.xlu0 %v9794_v22, %s9578_s15  ;;  %v10329_v1 = vpop.permute.xlu1 %8745  ;;  %v10331_v47 = vpop.permute.xlu0 %8750  ;;  %v7809_v22 = vpack.c.bf16 %v549_v17, %v548_v41  ;;  %v555_v17 = vsel %vm539_vm11, %v13696_v45, %v8713_v57  ;;  %v3799_v45 = vld [vmem:[%s13537_s5 + $0x8] sm:$0xff] }
 0x1b5   :  { %7806 = vmatprep.subr.bf16.mxu1 %v7805_v56  ;;  %v552_v56 = vsel %vm539_vm11, %v13694_v8, %v8702_v2 }
 0x1b6   :  { %7486 = vmatmul.mubr.msk.f32.gmra.mrb[42].mxu1 %vm82_vm0, %v10149_v13  ;;  %v13693_v13 = vunpack.i.h.bf16 %v10182_v59  ;;  %v8722_v59 = vunpack.i.l.bf16 %v10262_v0 }
 0x1b7   :  { %7808 = vmatpush1.bf16.msra.mxu1 %v7807_v58  ;;  %912 = vmatprep.mubr.f32.mxu1 %v13681_v62 }
 0x1b8   :  { %9035 = vrot.lane.b32.xlu1 %v9895_v21, %s9578_s15  ;;  %9040 = vrot.lane.b32.xlu0 %v9789_v19, %s9578_s15  ;;  %v10348_v33 = vpop.permute.xlu1 %8755  ;;  %v10350_v27 = vpop.permute.xlu0 %8760 }
 0x1b9   :  { %7810 = vmatprep.subr.bf16.mxu1 %v7809_v22  ;;  %v10415_v22 = vld [vmem:[%s13536_s4 + $0x8] sm:$0xff] }
 0x1ba   :  { %7487 = vmatmul.mubr.msk.f32.gmra.mrb[44].mxu1 %vm82_vm0, %v10180_v10  ;;  %v553_v10 = vsel %vm539_vm11, %v13693_v13, %v8703_v55  ;;  %v8723_v55 = vunpack.i.h.bf16 %v10262_v0  ;;  %v551_v0 = vsel %vm539_vm11, %v8713_v57, %v8718_v9 }
 0x1bb   :  { %918 = vmatprep.mubr.f32.mxu1 %v13681_v62  ;;  %v7811_v41 = vpack.c.bf16 %v553_v10, %v552_v56  ;;  %v13697_v10 = vunpack.i.l.bf16 %v10184_v46  ;;  %v13698_v56 = vunpack.i.h.bf16 %v10184_v46 }
 0x1bc   :  { %9045 = vrot.lane.b32.xlu1 %v9855_v37, %s9578_s15  ;;  %9050 = vrot.lane.b32.xlu0 %v9925_v7, %s9578_s15  ;;  %v10361_v19 = vpop.permute.xlu1 %8765  ;;  %v10363_v21 = vpop.permute.xlu0 %8770  ;;  %v8712_v37 = vunpack.i.l.bf16 %v10242_v18  ;;  %v10381_v7 = vld [vmem:[%s13536_s4] sm:$0xff] }
 0x1bd   :  { %v540_v8 = vsel %vm539_vm11, %v8722_v59, %v13697_v10  ;;  %v541_v57 = vsel %vm539_vm11, %v8723_v55, %v13698_v56  ;;  %v13574_v56 = vunpack.i.l.bf16 %v10300_v63 }
 0x1be   :  { %7488 = vmatmul.mubr.msk.f32.gmra.mrb[46].mxu1 %vm82_vm0, %v10195_v36  ;;  %v550_v2 = vsel %vm539_vm11, %v8712_v37, %v8717_v52 }
 0x1bf   :  { %1001 = vmatprep.mubr.f32.mxu1 %v13681_v62  ;;  %v7813_v58 = vpack.c.bf16 %v551_v0, %v550_v2  ;;  %v3798_v0 = vld [vmem:[%s13537_s5] sm:$0xff] }
 0x1c0   :  { %9055 = vrot.lane.b32.xlu1 %v9808_v31, %s9578_s15  ;;  %9060 = vrot.lane.b32.xlu0 %v9861_v44, %s9578_s15  ;;  %v10389_v18 = vpop.permute.xlu1 %8775  ;;  %v10391_v36 = vpop.permute.xlu0 %8780  ;;  %v13695_v31 = vunpack.i.l.bf16 %v10199_v25 }
 0x1c2   :  { %v554_v44 = vsel %vm539_vm11, %v13695_v31, %v8712_v37  ;;  %7489 = vmatmul.mubr.msk.f32.vlgmr.msra.gmra.mrb[24].mxu1 %vm82_vm0, %v10381_v7  ;;  %v8727_v31 = vunpack.i.l.bf16 %v10277_v4 }
 0x1c3   :  { %7812 = vmatpush1.bf16.msra.mxu1 %v7811_v41  ;;  %1007 = vmatprep.mubr.f32.mxu1 %v13681_v62  ;;  %v7815_v37 = vpack.c.bf16 %v555_v17, %v554_v44  ;;  %v8728_v41 = vunpack.i.h.bf16 %v10277_v4  ;;  %v3800_v4 = vld [vmem:[%s13537_s5 + $0x10] sm:$0xff]  ;;  %v13699_v17 = vunpack.i.h.bf16 %v10240_v61 }
 0x1c4   :  { %9065 = vrot.lane.b32.xlu1 %v9946_v51, %s9578_s15  ;;  %9070 = vrot.lane.b32.xlu0 %v9891_v14, %s9578_s15  ;;  %v10421_v25 = vpop.permute.xlu1 %8785  ;;  %v10423_v13 = vpop.permute.xlu0 %8790  ;;  %v7817_v14 = vpack.c.bf16 %v541_v57, %v540_v8  ;;  %v10439_v51 = vld [vmem:[%s13536_s4 + $0x10] sm:$0xff]  ;;  %v13575_v8 = vunpack.i.h.bf16 %v10300_v63  ;;  %v542_v57 = vsel %vm539_vm11, %v8727_v31, %v8697_v39  ;;  %v546_v39 = vsel %vm539_vm11, %v8717_v52, %v8727_v31 }
 0x1c5   :  { %7814 = vmatprep.subr.bf16.mxu1 %v7813_v58  ;;  %v545_v58 = vsel %vm539_vm11, %v13699_v17, %v8723_v55  ;;  %v13701_v55 = vunpack.i.h.bf16 %v10214_v24  ;;  %v3801_v24 = vld [vmem:[%s13537_s5 + $0x18] sm:$0xff] }
 0x1c6   :  { %7490 = vmatmul.mubr.msk.f32.gmra.mrb[26].mxu1 %vm82_vm0, %v10415_v22 }
 0x1c7   :  { %7816 = vmatpush1.bf16.msra.mxu1 %v7815_v37  ;;  %1013 = vmatprep.mubr.f32.mxu1 %v13681_v62 }
 0x1c8   :  { %9075 = vrot.lane.b32.xlu1 %v9957_v34, %s9578_s15  ;;  %9080 = vrot.lane.b32.xlu0 %v9915_v40, %s9578_s15  ;;  %v10445_v46 = vpop.permute.xlu1 %8795  ;;  %v10447_v2 = vpop.permute.xlu0 %8800  ;;  %v10460_v40 = vld [vmem:[%s13536_s4 + $0x18] sm:$0xff] }
 0x1c9   :  { %7818 = vmatprep.subr.bf16.mxu1 %v7817_v14  ;;  %v8733_v14 = vunpack.i.h.bf16 %v10279_v26 }
 0x1ca   :  { %7491 = vmatmul.mubr.msk.f32.gmra.mrb[28].mxu1 %vm82_vm0, %v10439_v51 }
 0x1cb   :  { %1019 = vmatprep.mubr.f32.mxu1 %v13681_v62  ;;  %v1270_v52 = vsel %vm1252_vm12, %v8733_v14, %v13575_v8 }
 0x1cc   :  { %9085 = vrot.lane.b32.xlu1 %v9942_v50, %s9578_s15  ;;  %3804 = vperm.xlu0 %8607, %v3798_v0   ;;  %v10464_v34 = vpop.permute.xlu1 %8805  ;;  %v10466_v44 = vpop.permute.xlu0 %8810  ;;  %v13700_v50 = vunpack.i.l.bf16 %v10240_v61  ;;  %v543_v61 = vsel %vm539_vm11, %v8728_v41, %v13701_v55  ;;  %v8732_v0 = vunpack.i.l.bf16 %v10279_v26  ;;  %v8748_v55 = vunpack.i.h.bf16 %v10329_v1 }
 0x1ce   :  { %v544_v10 = vsel %vm539_vm11, %v13700_v50, %v8722_v59  ;;  %7492 = vmatmul.mubr.msk.f32.gmra.mrb[30].mxu1 %vm82_vm0, %v10460_v40  ;;  %v1269_v26 = vsel %vm1252_vm12, %v8732_v0, %v13574_v56  ;;  %v8762_v56 = vunpack.i.l.bf16 %v10350_v27 }
 0x1cf   :  { %1090 = vmatprep.mubr.f32.mxu1 %v13681_v62  ;;  %v7819_v17 = vpack.c.bf16 %v545_v58, %v544_v10  ;;  %v7825_v31 = vpack.c.bf16 %v1270_v52, %v1269_v26  ;;  %v13572_v10 = vunpack.i.h.bf16 %v10302_v49  ;;  %v13579_v26 = vunpack.i.h.bf16 %v10348_v33 }
 0x1d0   :  { %3809 = vperm.xlu1 %8608, %v3799_v45   ;;  %3814 = vperm.xlu0 %8607, %v3800_v4   ;;  %v10496_v59 = vpop.permute.xlu1 %8815  ;;  %v10498_v37 = vpop.permute.xlu0 %8820  ;;  %v547_v45 = vsel %vm539_vm11, %v8718_v9, %v8728_v41  ;;  %v7821_v4 = vpack.c.bf16 %v543_v61, %v542_v57  ;;  %v13573_v57 = vunpack.i.l.bf16 %v10302_v49  ;;  %v8747_v61 = vunpack.i.l.bf16 %v10329_v1 }
 0x1d1   :  { %v7823_v41 = vpack.c.bf16 %v547_v45, %v546_v39  ;;  %v1274_v1 = vsel %vm1252_vm12, %v13572_v10, %v8733_v14 }
 0x1d2   :  { %7493 = vmatmul.mubr.msk.f32.vlgmr.msra.gmra.mrb[32].mxu1 %vm82_vm0, %v10381_v7 }
 0x1d3   :  { %7820 = vmatpush1.bf16.msra.mxu1 %v7819_v17  ;;  %1096 = vmatprep.mubr.f32.mxu1 %v13681_v62  ;;  %v8753_v17 = vunpack.i.h.bf16 %v10331_v47 }
 0x1d4   :  { %3819 = vperm.xlu1 %8608, %v3801_v24   ;;  %7822 = vmatprep.subr.bf16.mxu1 %v7821_v4  ;;  %v10523_v3 = vpop.permute.xlu1 %8825  ;;  %v10525_v9 = vpop.permute.xlu0 %8830  ;;  %v8752_v24 = vunpack.i.l.bf16 %v10331_v47  ;;  %v1273_v4 = vsel %vm1252_vm12, %v13573_v57, %v8732_v0  ;;  %v13578_v47 = vunpack.i.l.bf16 %v10348_v33  ;;  %v8763_v57 = vunpack.i.h.bf16 %v10350_v27 }
 0x1d5   :  { %v7827_v8 = vpack.c.bf16 %v1274_v1, %v1273_v4  ;;  %v13702_v27 = vunpack.i.l.bf16 %v10361_v19  ;;  %v13703_v1 = vunpack.i.h.bf16 %v10361_v19 }
 0x1d6   :  { %7494 = vmatmul.mubr.msk.f32.gmra.mrb[34].mxu1 %vm82_vm0, %v10415_v22  ;;  %v1271_v0 = vsel %vm1252_vm12, %v8747_v61, %v8752_v24  ;;  %v1275_v52 = vsel %vm1252_vm12, %v13578_v47, %v8747_v61 }
 0x1d7   :  { %7824 = vmatpush1.bf16.msra.mxu1 %v7823_v41  ;;  %1102 = vmatprep.mubr.f32.mxu1 %v13681_v62  ;;  %v1276_v41 = vsel %vm1252_vm12, %v13579_v26, %v8748_v55  ;;  %v1261_v4 = vsel %vm1252_vm12, %v8762_v56, %v13702_v27  ;;  %v1262_v61 = vsel %vm1252_vm12, %v8763_v57, %v13703_v1  ;;  %v8777_v27 = vunpack.i.l.bf16 %v10389_v18 }
 0x1d8   :  { %7826 = vmatprep.subr.bf16.mxu1 %v7825_v31  ;;  %v10531_v58 = vpop.permute.xlu1 %8835  ;;  %v10533_v50 = vpop.permute.xlu0 %8840  ;;  %v1272_v31 = vsel %vm1252_vm12, %v8748_v55, %v8753_v17  ;;  %v13705_v1 = vunpack.i.h.bf16 %v10300_v63  ;;  %v8782_v26 = vunpack.i.l.bf16 %v10391_v36 }
 0x1d9   :  { %v7829_v43 = vpack.c.bf16 %v1272_v31, %v1271_v0 }
 0x1da   :  { %7495 = vmatmul.mubr.msk.f32.gmra.mrb[36].mxu1 %vm82_vm0, %v10439_v51 }
 0x1db   :  { %1108 = vmatprep.mubr.f32.mxu1 %v13681_v62 }
 0x1dc   :  { %v10544_v39 = vpop.permute.xlu1 %8845  ;;  %v10546_v45 = vpop.permute.xlu0 %8850 }
 0x1de   :  { %7496 = vmatmul.mubr.msk.f32.gmra.mrb[38].mxu1 %vm82_vm0, %v10460_v40 }
 0x1df   :  { %1179 = vmatprep.mubr.f32.mxu1 %v13681_v62 }
 0x1e0   :  { %v10567_v14 = vpop.permute.xlu1 %8855  ;;  %v10569_v10 = vpop.permute.xlu0 %8860 }
 0x1e2   :  { %7497 = vmatmul.mubr.msk.f32.vlgmr.msra.gmra.mrb[40].mxu1 %vm82_vm0, %v10381_v7  ;;  %v7831_v7 = vpack.c.bf16 %v1276_v41, %v1275_v52  ;;  %v8773_v41 = vunpack.i.h.bf16 %v10363_v21 }
 0x1e3   :  { %7828 = vmatpush1.bf16.msra.mxu1 %v7827_v8  ;;  %1185 = vmatprep.mubr.f32.mxu1 %v13681_v62  ;;  %v7833_v8 = vpack.c.bf16 %v1262_v61, %v1261_v4  ;;  %v8772_v4 = vunpack.i.l.bf16 %v10363_v21  ;;  %v1266_v61 = vsel %vm1252_vm12, %v13705_v1, %v8763_v57  ;;  %v10630_v21 = vld [vmem:[%s13536_s4 + $0x40] sm:$0xff] }
 0x1e4   :  { %7830 = vmatprep.subr.bf16.mxu1 %v7829_v43  ;;  %v10592_v47 = vpop.permute.xlu1 %8865  ;;  %v10594_v55 = vpop.permute.xlu0 %8870  ;;  %v13581_v43 = vunpack.i.h.bf16 %v10389_v18 }
 0x1e5   :  { %v1267_v1 = vsel %vm1252_vm12, %v8752_v24, %v8772_v4 }
 0x1e6   :  { %7498 = vmatmul.mubr.msk.f32.gmra.mrb[42].mxu1 %vm82_vm0, %v10415_v22 }
 0x1e7   :  { %7832 = vmatpush1.bf16.msra.mxu1 %v7831_v7  ;;  %1191 = vmatprep.mubr.f32.mxu1 %v13681_v62 }
 0x1e8   :  { %7834 = vmatprep.subr.bf16.mxu1 %v7833_v8  ;;  %v10599_v0 = vpop.permute.xlu1 %8875  ;;  %v10601_v31 = vpop.permute.xlu0 %8880  ;;  %v8783_v8 = vunpack.i.h.bf16 %v10391_v36 }
 0x1ea   :  { %7499 = vmatmul.mubr.msk.f32.gmra.mrb[44].mxu1 %vm82_vm0, %v10439_v51  ;;  %v13706_v51 = vunpack.i.l.bf16 %v10300_v63  ;;  %v1263_v63 = vsel %vm1252_vm12, %v8772_v4, %v8777_v27  ;;  %v13709_v4 = vunpack.i.h.bf16 %v10302_v49 }
 0x1eb   :  { %1197 = vmatprep.mubr.f32.mxu1 %v13681_v62 }
 0x1ec   :  { %v10608_v52 = vpop.permute.xlu1 %8885  ;;  %v10610_v22 = vpop.permute.xlu0 %8890  ;;  %v1265_v7 = vsel %vm1252_vm12, %v13706_v51, %v8762_v56  ;;  %v1264_v56 = vsel %vm1252_vm12, %v8773_v41, %v13581_v43  ;;  %v1268_v51 = vsel %vm1252_vm12, %v8753_v17, %v8773_v41  ;;  %v10652_v43 = vld [vmem:[%s13536_s4 + $0x48] sm:$0xff]  ;;  %v1254_v17 = vsel %vm1252_vm12, %v8783_v8, %v13709_v4 }
 0x1ed   :  { %13704 = vst [vmem:[#allocation18_spill] sm:$0xff] %v10610_v22  ;;  %v7835_v36 = vpack.c.bf16 %v1266_v61, %v1265_v7  ;;  %v7837_v22 = vpack.c.bf16 %v1264_v56, %v1263_v63  ;;  %v13708_v61 = vunpack.i.l.bf16 %v10302_v49  ;;  %v7839_v63 = vpack.c.bf16 %v1268_v51, %v1267_v1  ;;  %v10672_v49 = vld [vmem:[%s13536_s4 + $0x50] sm:$0xff] }
 0x1ee   :  { %7500 = vmatmul.mubr.msk.f32.gmra.mrb[46].mxu1 %vm82_vm0, %v10460_v40  ;;  %v8788_v1 = vunpack.i.h.bf16 %v10421_v25  ;;  %v8787_v51 = vunpack.i.l.bf16 %v10421_v25 }
 0x1ef   :  { %1358 = vmatprep.mubr.f32.mxu1 %v13681_v62  ;;  %v1253_v24 = vsel %vm1252_vm12, %v8782_v26, %v13708_v61  ;;  %v10686_v61 = vld [vmem:[%s13536_s4 + $0x58] sm:$0xff] }
 0x1f0   :  { %v10638_v40 = vpop.permute.xlu1 %8895  ;;  %v10640_v57 = vpop.permute.xlu0 %8900  ;;  %v7841_v56 = vpack.c.bf16 %v1254_v17, %v1253_v24  ;;  %v13716_v17 = vunpack.i.h.bf16 %v10361_v19 }
 0x1f1   :  { %13707 = vst [vmem:[#allocation19_spill] sm:$0xff] %v10640_v57 }
 0x1f2   :  { %7505 = vmatmul.mubr.msk.f32.vlgmr.msra.gmra.mrb[24].mxu1 %vm82_vm0, %v10630_v21 }
 0x1f3   :  { %7836 = vmatpush1.bf16.msra.mxu1 %v7835_v36  ;;  %1364 = vmatprep.mubr.f32.mxu1 %v13681_v62 }
 0x1f4   :  { %7838 = vmatprep.subr.bf16.mxu1 %v7837_v22  ;;  %v10662_v41 = vpop.permute.xlu1 %8905  ;;  %v10664_v7 = vpop.permute.xlu0 %8910 }
 0x1f5   :  { %13710 = vst [vmem:[#allocation20_spill] sm:$0xff] %v10662_v41  ;;  %13711 = vst [vmem:[#allocation21_spill] sm:$0xff] %v10664_v7 }
 0x1f6   :  { %7506 = vmatmul.mubr.msk.f32.gmra.mrb[26].mxu1 %vm82_vm0, %v10652_v43 }
 0x1f7   :  { %7840 = vmatpush1.bf16.msra.mxu1 %v7839_v63  ;;  %1370 = vmatprep.mubr.f32.mxu1 %v13681_v62  ;;  %v1258_v63 = vsel %vm1252_vm12, %v13716_v17, %v8783_v8  ;;  %v13719_v8 = vunpack.i.h.bf16 %v10348_v33 }
 0x1f8   :  { %7842 = vmatprep.subr.bf16.mxu1 %v7841_v56  ;;  %v10674_v36 = vpop.permute.xlu1 %8915  ;;  %v10676_v22 = vpop.permute.xlu0 %8920  ;;  %v13717_v56 = vunpack.i.l.bf16 %v10361_v19 }
 0x1f9   :  { %13712 = vst [vmem:[#allocation22_spill] sm:$0xff] %v10674_v36  ;;  %13713 = vst [vmem:[#allocation23_spill] sm:$0xff] %v10676_v22  ;;  %v1256_v19 = vsel %vm1252_vm12, %v8788_v1, %v13719_v8  ;;  %v8792_v22 = vunpack.i.l.bf16 %v10423_v13  ;;  %v1259_v36 = vsel %vm1252_vm12, %v8777_v27, %v8787_v51 }
 0x1fa   :  { %7507 = vmatmul.mubr.msk.f32.gmra.mrb[28].mxu1 %vm82_vm0, %v10672_v49  ;;  %v1257_v25 = vsel %vm1252_vm12, %v13717_v56, %v8782_v26  ;;  %v8793_v56 = vunpack.i.h.bf16 %v10423_v13  ;;  %v13724_v13 = vunpack.i.h.bf16 %v10445_v46 }
 0x1fb   :  { %1376 = vmatprep.mubr.f32.mxu1 %v13681_v62  ;;  %v7843_v7 = vpack.c.bf16 %v1258_v63, %v1257_v25  ;;  %v13590_v63 = vunpack.i.l.bf16 %v10447_v2 }
 0x1fc   :  { %v10688_v24 = vpop.permute.xlu1 %8925  ;;  %v10690_v4 = vpop.permute.xlu0 %8930  ;;  %v1651_v27 = vsel %vm1633_vm13, %v8793_v56, %v13724_v13  ;;  %v13596_v13 = vunpack.i.l.bf16 %v10496_v59 }
 0x1fd   :  { %13714 = vst [vmem:[#allocation24_spill] sm:$0xff] %v10688_v24  ;;  %13715 = vst [vmem:[#allocation25_spill] sm:$0xff] %v10690_v4  ;;  %v13718_v4 = vunpack.i.l.bf16 %v10348_v33 }
 0x1fe   :  { %7508 = vmatmul.mubr.msk.f32.gmra.mrb[30].mxu1 %vm82_vm0, %v10686_v61 }
 0x1ff   :  { %1447 = vmatprep.mubr.f32.mxu1 %v13681_v62  ;;  %v1255_v24 = vsel %vm1252_vm12, %v8787_v51, %v13718_v4  ;;  %v13722_v4 = vunpack.i.h.bf16 %v10389_v18 }
 0x200   :  { %v10714_v26 = vpop.permute.xlu1 %8935  ;;  %v10716_v17 = vpop.permute.xlu0 %8940  ;;  %v7845_v8 = vpack.c.bf16 %v1256_v19, %v1255_v24  ;;  %v13589_v24 = vunpack.i.h.bf16 %v10447_v2  ;;  %v8808_v19 = vunpack.i.h.bf16 %v10464_v34 }
 0x201   :  { %13720 = vst [vmem:[#allocation26_spill] sm:$0xff] %v10714_v26  ;;  %13721 = vst [vmem:[#allocation27_spill] sm:$0xff] %v10716_v17  ;;  %v1260_v33 = vsel %vm1252_vm12, %v13722_v4, %v8788_v1  ;;  %v13723_v17 = vunpack.i.l.bf16 %v10445_v46  ;;  %v13591_v4 = vunpack.i.l.bf16 %v10466_v44 }
 0x202   :  { %7509 = vmatmul.mubr.msk.f32.vlgmr.msra.gmra.mrb[32].mxu1 %vm82_vm0, %v10630_v21  ;;  %v7847_v51 = vpack.c.bf16 %v1260_v33, %v1259_v36  ;;  %v13592_v36 = vunpack.i.h.bf16 %v10466_v44 }
 0x203   :  { %7844 = vmatpush1.bf16.msra.mxu1 %v7843_v7  ;;  %v1650_v26 = vsel %vm1633_vm13, %v8792_v22, %v13723_v17  ;;  %1453 = vmatprep.mubr.f32.mxu1 %v13681_v62  ;;  %v8807_v17 = vunpack.i.l.bf16 %v10464_v34  ;;  %v1655_v34 = vsel %vm1633_vm13, %v13589_v24, %v8793_v56  ;;  %v8823_v56 = vunpack.i.h.bf16 %v10498_v37 }
 0x204   :  { %7846 = vmatprep.subr.bf16.mxu1 %v7845_v8  ;;  %v10736_v18 = vpop.permute.xlu1 %8945  ;;  %v7849_v7 = vpack.c.bf16 %v1651_v27, %v1650_v26  ;;  %v1654_v26 = vsel %vm1633_vm13, %v13590_v63, %v8792_v22  ;;  %v1653_v22 = vsel %vm1633_vm13, %v8808_v19, %v13592_v36  ;;  %v13731_v36 = vunpack.i.h.bf16 %v10496_v59 }
 0x205   :  { %13725 = vst [vmem:[#allocation28_spill] sm:$0xff] %v10736_v18  ;;  %v10739_v1 = vpop.permute.xlu0 %8950  ;;  %v7851_v63 = vpack.c.bf16 %v1655_v34, %v1654_v26  ;;  %v8822_v24 = vunpack.i.l.bf16 %v10498_v37 }
 0x206   :  { %13726 = vst [vmem:[#allocation29_spill] sm:$0xff] %v10739_v1  ;;  %7510 = vmatmul.mubr.msk.f32.gmra.mrb[34].mxu1 %vm82_vm0, %v10652_v43 }
 0x207   :  { %7848 = vmatpush1.bf16.msra.mxu1 %v7847_v51  ;;  %1459 = vmatprep.mubr.f32.mxu1 %v13681_v62 }
 0x208   :  { %7850 = vmatprep.subr.bf16.mxu1 %v7849_v7  ;;  %v10746_v25 = vpop.permute.xlu1 %8955  ;;  %v1652_v7 = vsel %vm1633_vm13, %v8807_v17, %v13591_v4  ;;  %v1656_v4 = vsel %vm1633_vm13, %v13596_v13, %v8807_v17  ;;  %v13734_v17 = vunpack.i.h.bf16 %v10523_v3 }
 0x209   :  { %13727 = vst [vmem:[#allocation30_spill] sm:$0xff] %v10746_v25  ;;  %v10752_v33 = vpop.permute.xlu0 %8960  ;;  %v7853_v8 = vpack.c.bf16 %v1653_v22, %v1652_v7 }
 0x20a   :  { %13728 = vst [vmem:[#allocation31_spill] sm:$0xff] %v10752_v33  ;;  %7511 = vmatmul.mubr.msk.f32.gmra.mrb[36].mxu1 %vm82_vm0, %v10672_v49 }
 0x20b   :  { %1465 = vmatprep.mubr.f32.mxu1 %v13681_v62 }
 0x20d   :  { %v10767_v27 = vpop.permute.xlu1 %8965  ;;  %v10769_v51 = vpop.permute.xlu0 %8970 }
 0x20e   :  { %13729 = vst [vmem:[#allocation32_spill] sm:$0xff] %v10767_v27  ;;  %13730 = vst [vmem:[#allocation33_spill] sm:$0xff] %v10769_v51  ;;  %7512 = vmatmul.mubr.msk.f32.gmra.mrb[38].mxu1 %vm82_vm0, %v10686_v61  ;;  %v1657_v27 = vsel %vm1633_vm13, %v13731_v36, %v8808_v19  ;;  %v13601_v26 = vunpack.i.h.bf16 %v10769_v51  ;;  %v13597_v34 = vunpack.i.l.bf16 %v10769_v51  ;;  %v13733_v19 = vunpack.i.l.bf16 %v10523_v3 }
 0x20f   :  { %1536 = vmatprep.mubr.f32.mxu1 %v13681_v62  ;;  %v1643_v36 = vsel %vm1633_vm13, %v8823_v56, %v13734_v17 }
 0x210   :  { %v1642_v37 = vsel %vm1633_vm13, %v8822_v24, %v13733_v19  ;;  %v8832_v19 = vunpack.i.l.bf16 %v10525_v9 }
 0x211   :  { %v8976_v33 = vpop.permute.xlu1 %8975  ;;  %v10795_v1 = vpop.permute.xlu0 %8980 }
 0x212   :  { %13732 = vst [vmem:[#allocation34_spill] sm:$0xff] %v10795_v1  ;;  %v8978_v7 = vunpack.i.h.bf16 %v8976_v33  ;;  %v8977_v22 = vunpack.i.l.bf16 %v8976_v33  ;;  %7513 = vmatmul.mubr.msk.f32.vlgmr.msra.gmra.mrb[40].mxu1 %vm82_vm0, %v10630_v21 }
 0x213   :  { %7852 = vmatpush1.bf16.msra.mxu1 %v7851_v63  ;;  %1542 = vmatprep.mubr.f32.mxu1 %v13681_v62  ;;  %v7855_v63 = vpack.c.bf16 %v1657_v27, %v1656_v4  ;;  %v13741_v27 = vunpack.i.h.bf16 %v10445_v46 }
 0x214   :  { %7854 = vmatprep.subr.bf16.mxu1 %v7853_v8  ;;  %v10814_v33 = vsel %vm3084_vm14, %v13597_v34, %v8977_v22  ;;  %v10820_v21 = vsel %vm3084_vm14, %v13601_v26, %v8978_v7  ;;  %v7857_v8 = vpack.c.bf16 %v1643_v36, %v1642_v37 }
 0x215   :  { %13735 = vst [vmem:[#allocation35_spill] sm:$0xff] %v10814_v33  ;;  %13736 = vst [vmem:[#allocation36_spill] sm:$0xff] %v10820_v21  ;;  %v10824_v13 = vpop.permute.xlu1 %8985  ;;  %v1647_v37 = vsel %vm1633_vm13, %v13741_v27, %v8823_v56  ;;  %v13744_v56 = vunpack.i.h.bf16 %v10531_v58  ;;  %v10882_v27 = vld [vmem:[%s13536_s4 + $0x60] sm:$0xff]  ;;  %v13746_v21 = vunpack.i.h.bf16 %v10466_v44 }
 0x216   :  { %13737 = vst [vmem:[#allocation37_spill] sm:$0xff] %v10824_v13  ;;  %v10826_v17 = vpop.permute.xlu0 %8990  ;;  %7514 = vmatmul.mubr.msk.f32.gmra.mrb[42].mxu1 %vm82_vm0, %v10652_v43  ;;  %v13603_v34 = vunpack.i.h.bf16 %v10824_v13  ;;  %v13602_v51 = vunpack.i.l.bf16 %v10824_v13  ;;  %v13742_v13 = vunpack.i.l.bf16 %v10445_v46 }
 0x217   :  { %v8993_v1 = vunpack.i.h.bf16 %v10826_v17  ;;  %v8992_v26 = vunpack.i.l.bf16 %v10826_v17  ;;  %7856 = vmatpush1.bf16.msra.mxu1 %v7855_v63  ;;  %1548 = vmatprep.mubr.f32.mxu1 %v13681_v62  ;;  %v13745_v17 = vunpack.i.l.bf16 %v10466_v44  ;;  %v13747_v44 = vunpack.i.l.bf16 %v10447_v2 }
 0x218   :  { %7858 = vmatprep.subr.bf16.mxu1 %v7857_v8 }
 0x219   :  { %v10839_v4 = vsel %vm3084_vm14, %v13602_v51, %v8992_v26  ;;  %v10845_v43 = vsel %vm3084_vm14, %v13603_v34, %v8993_v1  ;;  %v8833_v34 = vunpack.i.h.bf16 %v10525_v9  ;;  %v13743_v9 = vunpack.i.l.bf16 %v10531_v58 }
 0x21a   :  { %13738 = vst [vmem:[#allocation38_spill] sm:$0xff] %v10839_v4  ;;  %13739 = vst [vmem:[#allocation39_spill] sm:$0xff] %v10845_v43  ;;  %v10849_v36 = vpop.permute.xlu1 %8995  ;;  %v9001_v63 = vpop.permute.xlu0 %9000  ;;  %7515 = vmatmul.mubr.msk.f32.gmra.mrb[44].mxu1 %vm82_vm0, %v10672_v49  ;;  %v1646_v49 = vsel %vm1633_vm13, %v13742_v13, %v8822_v24 }
 0x21b   :  { %13740 = vst [vmem:[#allocation40_spill] sm:$0xff] %v10849_v36  ;;  %v9003_v8 = vunpack.i.h.bf16 %v9001_v63  ;;  %v9002_v51 = vunpack.i.l.bf16 %v9001_v63  ;;  %1554 = vmatprep.mubr.f32.mxu1 %v13681_v62  ;;  %v1644_v36 = vsel %vm1633_vm13, %v8832_v19, %v13743_v9  ;;  %v1645_v46 = vsel %vm1633_vm13, %v8833_v34, %v13744_v56 }
 0x21c   :  { %v1648_v56 = vsel %vm1633_vm13, %v13745_v17, %v8832_v19  ;;  %v7859_v33 = vpack.c.bf16 %v1647_v37, %v1646_v49  ;;  %v1649_v25 = vsel %vm1633_vm13, %v13746_v21, %v8833_v34  ;;  %v7861_v18 = vpack.c.bf16 %v1645_v46, %v1644_v36 }
 0x21d   :  { %v3094_v9 = vsel %vm3084_vm14, %v8978_v7, %v9003_v8  ;;  %v13748_v34 = vunpack.i.l.bf16 %v10533_v50  ;;  %v13749_v21 = vunpack.i.h.bf16 %v10447_v2  ;;  %v13750_v37 = vunpack.i.h.bf16 %v10533_v50 }
 0x21e   :  { %v9006_v4 = vpop.permute.xlu1 %9005  ;;  %v9011_v43 = vpop.permute.xlu0 %9010  ;;  %7516 = vmatmul.mubr.msk.f32.gmra.mrb[46].mxu1 %vm82_vm0, %v10686_v61  ;;  %v3093_v61 = vsel %vm3084_vm14, %v8977_v22, %v9002_v51  ;;  %v7863_v2 = vpack.c.bf16 %v1649_v25, %v1648_v56 }
 0x21f   :  { %v9008_v24 = vunpack.i.h.bf16 %v9006_v4  ;;  %v9007_v13 = vunpack.i.l.bf16 %v9006_v4  ;;  %1739 = vmatprep.mubr.f32.mxu1 %v13681_v62  ;;  %v9013_v63 = vunpack.i.h.bf16 %v9011_v43  ;;  %v9012_v4 = vunpack.i.l.bf16 %v9011_v43 }
 0x220   :  { %v10906_v43 = vpack.c.bf16 %v3094_v9, %v3093_v61  ;;  %v1635_v36 = vsel %vm1633_vm13, %v13750_v37, %v13749_v21  ;;  %v10926_v61 = vld [vmem:[%s13536_s4 + $0x68] sm:$0xff]  ;;  %v10987_v21 = vld [vmem:[%s13536_s4 + $0xe0] sm:$0xff]  ;;  %v8848_v37 = vunpack.i.h.bf16 %v10544_v39 }
 0x221   :  { %v3089_v22 = vsel %vm3084_vm14, %v9002_v51, %v9007_v13  ;;  %v3090_v7 = vsel %vm3084_vm14, %v9003_v8, %v9008_v24  ;;  %v1634_v51 = vsel %vm1633_vm13, %v13748_v34, %v13747_v44  ;;  %v3095_v9 = vsel %vm3084_vm14, %v8992_v26, %v9012_v4 }
 0x222   :  { %v9016_v41 = vpop.permute.xlu1 %9015  ;;  %v10900_v57 = vpop.permute.xlu0 %9020  ;;  %7521 = vmatmul.mubr.msk.f32.vlgmr.msra.gmra.mrb[24].mxu1 %vm82_vm0, %v10882_v27  ;;  %v10904_v19 = vpack.c.bf16 %v3090_v7, %v3089_v22 }
 0x223   :  { %v9018_v17 = vunpack.i.h.bf16 %v9016_v41  ;;  %v9017_v8 = vunpack.i.l.bf16 %v9016_v41  ;;  %v13617_v49 = vunpack.i.h.bf16 %v10900_v57  ;;  %v13618_v46 = vunpack.i.l.bf16 %v10900_v57  ;;  %7860 = vmatpush1.bf16.msra.mxu1 %v7859_v33  ;;  %1745 = vmatprep.mubr.f32.mxu1 %v13681_v62 }
 0x224   :  { %7862 = vmatprep.subr.bf16.mxu1 %v7861_v18  ;;  %7954 = vmatprep.subr.bf16.mxu0 %v10904_v19  ;;  %v3096_v41 = vsel %vm3084_vm14, %v8993_v1, %v9013_v63 }
 0x225   :  { %v10937_v33 = vsel %vm3084_vm14, %v9008_v24, %v13617_v49  ;;  %v10943_v18 = vsel %vm3084_vm14, %v9007_v13, %v13618_v46  ;;  %7956 = vmatpush1.bf16.msra.mxu0 %v10906_v43  ;;  %v3091_v25 = vsel %vm3084_vm14, %v9012_v4, %v9017_v8  ;;  %v3092_v1 = vsel %vm3084_vm14, %v9013_v63, %v9018_v17  ;;  %v10968_v63 = vld [vmem:[%s13536_s4 + $0x70] sm:$0xff] }
 0x226   :  { %13751 = vst [vmem:[#allocation41_spill] sm:$0xff] %v10943_v18  ;;  %v10950_v26 = vpop.permute.xlu1 %9025  ;;  %v10952_v56 = vpop.permute.xlu0 %9030  ;;  %7522 = vmatmul.mubr.msk.f32.gmra.mrb[26].mxu1 %vm82_vm0, %v10926_v61  ;;  %v7865_v24 = vpack.c.bf16 %v1635_v36, %v1634_v51  ;;  %v10956_v22 = vpack.c.bf16 %v3092_v1, %v3091_v25  ;;  %v10962_v44 = vpack.c.bf16 %v3096_v41, %v3095_v9  ;;  %v8847_v36 = vunpack.i.l.bf16 %v10544_v39  ;;  %v11008_v39 = vld [vmem:[%s13536_s4 + $0x78] sm:$0xff] }
 0x227   :  { %13752 = vst [vmem:[#allocation42_spill] sm:$0xff] %v10952_v56  ;;  %v13615_v7 = vunpack.i.h.bf16 %v10950_v26  ;;  %v13616_v4 = vunpack.i.l.bf16 %v10950_v26  ;;  %7864 = vmatpush1.bf16.msra.mxu1 %v7863_v2  ;;  %1751 = vmatprep.mubr.f32.mxu1 %v13681_v62  ;;  %v13620_v9 = vunpack.i.h.bf16 %v10952_v56  ;;  %v13619_v41 = vunpack.i.l.bf16 %v10952_v56 }
 0x228   :  { %7866 = vmatprep.subr.bf16.mxu1 %v7865_v24  ;;  %7958 = vmatprep.subr.bf16.mxu0 %v10956_v22  ;;  %v13755_v24 = vunpack.i.h.bf16 %v10533_v50  ;;  %v13758_v49 = vunpack.i.l.bf16 %v10523_v3 }
 0x229   :  { %v10975_v34 = vsel %vm3084_vm14, %v9017_v8, %v13616_v4  ;;  %v10981_v51 = vsel %vm3084_vm14, %v9018_v17, %v13615_v7  ;;  %7960 = vmatpush1.bf16.msra.mxu0 %v10962_v44  ;;  %v13756_v17 = vunpack.i.h.bf16 %v10523_v3  ;;  %v13757_v4 = vunpack.i.l.bf16 %v10533_v50 }
 0x22a   :  { %13753 = vst [vmem:[#allocation43_spill] sm:$0xff] %v10975_v34  ;;  %13754 = vst [vmem:[#allocation44_spill] sm:$0xff] %v10981_v51  ;;  %v10992_v8 = vpop.permute.xlu1 %9035  ;;  %v10994_v2 = vpop.permute.xlu0 %9040  ;;  %7523 = vmatmul.mubr.msk.f32.gmra.mrb[28].mxu1 %vm82_vm0, %v10968_v63  ;;  %v13761_v34 = vunpack.i.h.bf16 %v10496_v59  ;;  %v13765_v50 = vunpack.i.h.bf16 %v10531_v58 }
 0x22b   :  { %v9038_v25 = vunpack.i.h.bf16 %v10992_v8  ;;  %v9037_v1 = vunpack.i.l.bf16 %v10992_v8  ;;  %1757 = vmatprep.mubr.f32.mxu1 %v13681_v62  ;;  %v1639_v13 = vsel %vm1633_vm13, %v13756_v17, %v13755_v24  ;;  %v1638_v17 = vsel %vm1633_vm13, %v13758_v49, %v13757_v4 }
 0x22c   :  { %7589 = vmatmul.mubr.msk.f32.vlgmr.msra.gmra.mrb[0].mxu0 %vm82_vm0, %v10987_v21  ;;  %v1637_v3 = vsel %vm1633_vm13, %v8848_v37, %v13761_v34  ;;  %v7867_v18 = vpack.c.bf16 %v1639_v13, %v1638_v17  ;;  %v1641_v13 = vsel %vm1633_vm13, %v13765_v50, %v8848_v37  ;;  %v7873_v37 = vpack.c.bf16 %v9785_v16, %v9782_v15 }
 0x22d   :  { %3285 = vmatprep.mubr.f32.mxu0 %v13681_v62  ;;  %v11023_v8 = vsel %vm3465_vm15, %v13619_v41, %v9037_v1  ;;  %v11029_v7 = vsel %vm3465_vm15, %v13620_v9, %v9038_v25  ;;  %v13760_v41 = vunpack.i.l.bf16 %v10496_v59 }
 0x22e   :  { %v11037_v24 = vpop.permute.xlu1 %9045  ;;  %v11039_v46 = vpop.permute.xlu0 %9050  ;;  %7524 = vmatmul.mubr.msk.f32.gmra.mrb[30].mxu1 %vm82_vm0, %v11008_v39 }
 0x22f   :  { %13759 = vst [vmem:[#allocation45_spill] sm:$0xff] %v11037_v24  ;;  %v1636_v9 = vsel %vm1633_vm13, %v8847_v36, %v13760_v41  ;;  %v13629_v49 = vunpack.i.h.bf16 %v11037_v24  ;;  %v13626_v4 = vunpack.i.l.bf16 %v11037_v24  ;;  %v9053_v51 = vunpack.i.h.bf16 %v11039_v46  ;;  %1828 = vmatprep.mubr.f32.mxu1 %v13681_v62 }
 0x230   :  { %v9052_v56 = vunpack.i.l.bf16 %v11039_v46  ;;  %v13764_v41 = vunpack.i.l.bf16 %v10531_v58  ;;  %v7869_v24 = vpack.c.bf16 %v1637_v3, %v1636_v9 }
 0x231   :  { %v11068_v34 = vsel %vm3465_vm15, %v13629_v49, %v9053_v51 }
 0x232   :  { %v11062_v59 = vsel %vm3465_vm15, %v13626_v4, %v9052_v56  ;;  %13763 = vst [vmem:[#allocation47_spill] sm:$0xff] %v11068_v34  ;;  %v1640_v46 = vsel %vm1633_vm13, %v13764_v41, %v8847_v36  ;;  %v11078_v17 = vpop.permute.xlu1 %9055  ;;  %v11080_v4 = vpop.permute.xlu0 %9060  ;;  %7525 = vmatmul.mubr.msk.f32.vlgmr.msra.gmra.mrb[32].mxu1 %vm82_vm0, %v10882_v27 }
 0x233   :  { %13762 = vst [vmem:[#allocation46_spill] sm:$0xff] %v11062_v59  ;;  %13766 = vst [vmem:[#allocation48_spill] sm:$0xff] %v11080_v4  ;;  %7868 = vmatpush1.bf16.msra.mxu1 %v7867_v18  ;;  %1834 = vmatprep.mubr.f32.mxu1 %v13681_v62  ;;  %v7871_v36 = vpack.c.bf16 %v1641_v13, %v1640_v46  ;;  %v13634_v50 = vunpack.i.h.bf16 %v11080_v4  ;;  %v13630_v9 = vunpack.i.l.bf16 %v11080_v4 }
 0x234   :  { %7870 = vmatprep.subr.bf16.mxu1 %v7869_v24 }
 0x236   :  { %v9066_v58 = vpop.permute.xlu1 %9065  ;;  %v11087_v41 = vpop.permute.xlu0 %9070  ;;  %7526 = vmatmul.mubr.msk.f32.gmra.mrb[34].mxu1 %vm82_vm0, %v10926_v61 }
 0x237   :  { %13767 = vst [vmem:[#allocation49_spill] sm:$0xff] %v11087_v41  ;;  %v9068_v3 = vunpack.i.h.bf16 %v9066_v58  ;;  %v9067_v49 = vunpack.i.l.bf16 %v9066_v58  ;;  %7872 = vmatpush1.bf16.msra.mxu1 %v7871_v36  ;;  %1840 = vmatprep.mubr.f32.mxu1 %v13681_v62  ;;  %v13639_v46 = vunpack.i.h.bf16 %v11087_v41  ;;  %v13636_v13 = vunpack.i.l.bf16 %v11087_v41 }
 0x238   :  { %7874 = vmatprep.subr.bf16.mxu1 %v7873_v37 }
 0x239   :  { %v11100_v18 = vsel %vm3465_vm15, %v9067_v49, %v13630_v9  ;;  %v11106_v24 = vsel %vm3465_vm15, %v9068_v3, %v13634_v50 }
 0x23a   :  { %13768 = vst [vmem:[#allocation50_spill] sm:$0xff] %v11100_v18  ;;  %13769 = vst [vmem:[#allocation51_spill] sm:$0xff] %v11106_v24  ;;  %v9076_v36 = vpop.permute.xlu1 %9075  ;;  %v9081_v58 = vpop.permute.xlu0 %9080  ;;  %7527 = vmatmul.mubr.msk.f32.gmra.mrb[36].mxu1 %vm82_vm0, %v10968_v63 }
 0x23b   :  { %v9078_v9 = vunpack.i.h.bf16 %v9076_v36  ;;  %v9077_v16 = vunpack.i.l.bf16 %v9076_v36  ;;  %v9083_v15 = vunpack.i.h.bf16 %v9081_v58  ;;  %v9082_v59 = vunpack.i.l.bf16 %v9081_v58  ;;  %1846 = vmatprep.mubr.f32.mxu1 %v13681_v62 }
 0x23d   :  { %v11119_v50 = vsel %vm3465_vm15, %v9077_v16, %v13636_v13  ;;  %v11125_v34 = vsel %vm3465_vm15, %v9078_v9, %v13639_v46  ;;  %v3475_v37 = vsel %vm3465_vm15, %v9038_v25, %v9083_v15  ;;  %v3474_v36 = vsel %vm3465_vm15, %v9037_v1, %v9082_v59  ;;  %v11140_v46 = vld [vmem:[%s13536_s4 + $0xe8] sm:$0xff] }
 0x23e   :  { %v9086_v58 = vpop.permute.xlu1 %9085  ;;  %7528 = vmatmul.mubr.msk.f32.gmra.mrb[38].mxu1 %vm82_vm0, %v11008_v39  ;;  %v3470_v13 = vsel %vm3465_vm15, %v9082_v59, %v9067_v49  ;;  %v3471_v18 = vsel %vm3465_vm15, %v9083_v15, %v9068_v3  ;;  %v7979_v24 = vpack.c.bf16 %v3475_v37, %v3474_v36  ;;  %7590 = vmatmul.mubr.msk.f32.gmra.mrb[2].mxu0 %vm82_vm0, %v11140_v46  ;;  %v13646_v25 = vunpack.i.l.bf16 %v10569_v10 }
 0x23f   :  { %v9088_v1 = vunpack.i.h.bf16 %v9086_v58  ;;  %v9087_v41 = vunpack.i.l.bf16 %v9086_v58  ;;  %v7977_v4 = vpack.c.bf16 %v3471_v18, %v3470_v13  ;;  %1917 = vmatprep.mubr.f32.mxu1 %v13681_v62  ;;  %v7875_v15 = vpack.c.bf16 %v9777_v12, %v9774_v11  ;;  %3660 = vmatprep.mubr.f32.mxu0 %v13681_v62  ;;  %v11227_v58 = vld [vmem:[%s13536_s4 + $0x98] sm:$0xff] }
 0x240   :  { %v7877_v13 = vpack.c.bf16 %v9835_v6, %v9832_v5 }
 0x241   :  { %v3476_v49 = vsel %vm3465_vm15, %v9052_v56, %v9087_v41  ;;  %v3477_v59 = vsel %vm3465_vm15, %v9053_v51, %v9088_v1  ;;  %7978 = vmatprep.subr.bf16.mxu0 %v7977_v4  ;;  %v3472_v3 = vsel %vm3465_vm15, %v9087_v41, %v9077_v16  ;;  %v3473_v18 = vsel %vm3465_vm15, %v9088_v1, %v9078_v9  ;;  %v11172_v56 = vld [vmem:[%s13536_s4 + $0x100] sm:$0xff] }
 0x242   :  { %7980 = vmatpush1.bf16.msra.mxu0 %v7979_v24  ;;  %7529 = vmatmul.mubr.msk.f32.vlgmr.msra.gmra.mrb[40].mxu1 %vm82_vm0, %v10882_v27  ;;  %v7981_v37 = vpack.c.bf16 %v3473_v18, %v3472_v3  ;;  %v7983_v36 = vpack.c.bf16 %v3477_v59, %v3476_v49  ;;  %v7879_v16 = vpack.c.bf16 %v9804_v29, %v9801_v28  ;;  %v11219_v24 = vld [vmem:[%s13536_s4 + $0x90] sm:$0xff]  ;;  %v13645_v1 = vunpack.i.h.bf16 %v10567_v14  ;;  %v13770_v3 = vld [vmem:[#allocation15_spill] sm:$0xff]  ;;  %v13771_v18 = vld [vmem:[#allocation13_spill] sm:$0xff] }
 0x243   :  { %7876 = vmatpush1.bf16.msra.mxu1 %v7875_v15  ;;  %1923 = vmatprep.mubr.f32.mxu1 %v13681_v62  ;;  %v7881_v27 = vpack.c.bf16 %v9874_v54, %v9898_v23  ;;  %v7883_v51 = vpack.c.bf16 %v9867_v53, %v9851_v35  ;;  %v7885_v4 = vpack.c.bf16 %v9918_v48, %v9928_v42  ;;  %v13644_v15 = vunpack.i.l.bf16 %v10567_v14 }
 0x244   :  { %7878 = vmatprep.subr.bf16.mxu1 %v7877_v13  ;;  %7982 = vmatprep.subr.bf16.mxu0 %v7981_v37  ;;  %v7887_v41 = vpack.c.bf16 %v9887_v20, %v9901_v60  ;;  %v7889_v9 = vpack.c.bf16 %v9848_v32, %v9845_v30  ;;  %v8853_v49 = vunpack.i.h.bf16 %v10546_v45  ;;  %v8852_v59 = vunpack.i.l.bf16 %v10546_v45  ;;  %v13772_v37 = vld [vmem:[#allocation9_spill] sm:$0xff] }
 0x245   :  { %v7891_v13 = vpack.c.bf16 %v13771_v18, %v13770_v3 }
 0x246   :  { %7984 = vmatpush1.bf16.msra.mxu0 %v7983_v36  ;;  %7530 = vmatmul.mubr.msk.f32.gmra.mrb[42].mxu1 %vm82_vm0, %v10926_v61  ;;  %v11183_v61 = vld [vmem:[%s13536_s4 + $0x108] sm:$0xff]  ;;  %v13773_v36 = vld [vmem:[#allocation10_spill] sm:$0xff]  ;;  %v2336_v45 = vsel %vm2322_vm1, %v8853_v49, %v13645_v1  ;;  %v8873_v1 = vunpack.i.h.bf16 %v10594_v55 }
 0x247   :  { %7880 = vmatpush1.bf16.msra.mxu1 %v7879_v16  ;;  %1929 = vmatprep.mubr.f32.mxu1 %v13681_v62  ;;  %v7893_v16 = vpack.c.bf16 %v13773_v36, %v13772_v37 }
 0x248   :  { %7882 = vmatprep.subr.bf16.mxu1 %v7881_v27  ;;  %v2335_v27 = vsel %vm2322_vm1, %v8852_v59, %v13644_v15  ;;  %v8867_v15 = vunpack.i.l.bf16 %v10592_v47 }
 0x249   :  { %7605 = vmatmul.mubr.msk.f32.vlgmr.msra.gmra.mrb[0].mxu0 %vm82_vm0, %v11172_v56 }
 0x24a   :  { %7531 = vmatmul.mubr.msk.f32.gmra.mrb[44].mxu1 %vm82_vm0, %v10968_v63  ;;  %3666 = vmatprep.mubr.f32.mxu0 %v13681_v62  ;;  %v11195_v63 = vld [vmem:[%s13536_s4 + $0x80] sm:$0xff] }
 0x24b   :  { %1935 = vmatprep.mubr.f32.mxu1 %v13681_v62 }
 0x24d   :  { %7606 = vmatmul.mubr.msk.f32.gmra.mrb[2].mxu0 %vm82_vm0, %v11183_v61 }
 0x24e   :  { %7532 = vmatmul.mubr.msk.f32.gmra.mrb[46].mxu1 %vm82_vm0, %v11008_v39  ;;  %3672 = vmatprep.mubr.f32.mxu0 %v13681_v62  ;;  %v11207_v39 = vld [vmem:[%s13536_s4 + $0x88] sm:$0xff] }
 0x24f   :  { %2047 = vmatprep.mubr.f32.mxu1 %v13681_v62 }
 0x252   :  { %7537 = vmatmul.mubr.msk.f32.vlgmr.msra.gmra.mrb[24].mxu1 %vm82_vm0, %v11195_v63 }
 0x253   :  { %7884 = vmatpush1.bf16.msra.mxu1 %v7883_v51  ;;  %2053 = vmatprep.mubr.f32.mxu1 %v13681_v62  ;;  %v13774_v51 = vld [vmem:[#allocation17_spill] sm:$0xff] }
 0x254   :  { %7886 = vmatprep.subr.bf16.mxu1 %v7885_v4  ;;  %v13775_v4 = vld [vmem:[#allocation16_spill] sm:$0xff] }
 0x256   :  { %7538 = vmatmul.mubr.msk.f32.gmra.mrb[26].mxu1 %vm82_vm0, %v11207_v39 }
 0x257   :  { %7888 = vmatpush1.bf16.msra.mxu1 %v7887_v41  ;;  %2059 = vmatprep.mubr.f32.mxu1 %v13681_v62  ;;  %v7895_v41 = vpack.c.bf16 %v13775_v4, %v13774_v51  ;;  %v8872_v51 = vunpack.i.l.bf16 %v10594_v55 }
 0x258   :  { %7890 = vmatprep.subr.bf16.mxu1 %v7889_v9  ;;  %v7897_v9 = vpack.c.bf16 %v2336_v45, %v2335_v27  ;;  %v2339_v27 = vsel %vm2322_vm1, %v13646_v25, %v8852_v59 }
 0x259   :  { %v2337_v59 = vsel %vm2322_vm1, %v8867_v15, %v8872_v51 }
 0x25a   :  { %7539 = vmatmul.mubr.msk.f32.gmra.mrb[28].mxu1 %vm82_vm0, %v11219_v24 }
 0x25b   :  { %2065 = vmatprep.mubr.f32.mxu1 %v13681_v62 }
 0x25e   :  { %7540 = vmatmul.mubr.msk.f32.gmra.mrb[30].mxu1 %vm82_vm0, %v11227_v58 }
 0x25f   :  { %2136 = vmatprep.mubr.f32.mxu1 %v13681_v62 }
 0x262   :  { %7541 = vmatmul.mubr.msk.f32.vlgmr.msra.gmra.mrb[32].mxu1 %vm82_vm0, %v11195_v63 }
 0x263   :  { %7892 = vmatpush1.bf16.msra.mxu1 %v7891_v13  ;;  %2142 = vmatprep.mubr.f32.mxu1 %v13681_v62  ;;  %v13647_v13 = vunpack.i.h.bf16 %v10569_v10 }
 0x264   :  { %7894 = vmatprep.subr.bf16.mxu1 %v7893_v16  ;;  %v8868_v16 = vunpack.i.h.bf16 %v10592_v47  ;;  %v8877_v47 = vunpack.i.l.bf16 %v10599_v0 }
 0x265   :  { %v2340_v45 = vsel %vm2322_vm1, %v13647_v13, %v8853_v49  ;;  %v8883_v49 = vunpack.i.h.bf16 %v10601_v31  ;;  %v8882_v13 = vunpack.i.l.bf16 %v10601_v31  ;;  %v13777_v31 = vunpack.i.l.bf16 %v10608_v52 }
 0x266   :  { %7542 = vmatmul.mubr.msk.f32.gmra.mrb[34].mxu1 %vm82_vm0, %v11207_v39  ;;  %v2338_v25 = vsel %vm2322_vm1, %v8868_v16, %v8873_v1  ;;  %v2341_v55 = vsel %vm2322_vm1, %v8877_v47, %v8867_v15 }
 0x267   :  { %7896 = vmatpush1.bf16.msra.mxu1 %v7895_v41  ;;  %2148 = vmatprep.mubr.f32.mxu1 %v13681_v62  ;;  %v7899_v41 = vpack.c.bf16 %v2340_v45, %v2339_v27  ;;  %v7901_v3 = vpack.c.bf16 %v2338_v25, %v2337_v59  ;;  %v2327_v27 = vsel %vm2322_vm1, %v8882_v13, %v13777_v31  ;;  %v13778_v45 = vunpack.i.h.bf16 %v10608_v52 }
 0x268   :  { %7898 = vmatprep.subr.bf16.mxu1 %v7897_v9  ;;  %v13776_v9 = vunpack.i.h.bf16 %v10599_v0  ;;  %v13780_v59 = vunpack.i.h.bf16 %v10567_v14 }
 0x269   :  { %v2328_v15 = vsel %vm2322_vm1, %v8883_v49, %v13778_v45 }
 0x26a   :  { %7543 = vmatmul.mubr.msk.f32.gmra.mrb[36].mxu1 %vm82_vm0, %v11219_v24  ;;  %v2342_v4 = vsel %vm2322_vm1, %v13776_v9, %v8868_v16  ;;  %v11309_v16 = vld [vmem:[%s13536_s4 + $0x110] sm:$0xff]  ;;  %v2332_v31 = vsel %vm2322_vm1, %v13780_v59, %v8883_v49  ;;  %v11364_v59 = vld [vmem:[%s13536_s4 + $0xa8] sm:$0xff] }
 0x26b   :  { %2154 = vmatprep.mubr.f32.mxu1 %v13681_v62  ;;  %7607 = vmatmul.mubr.msk.f32.gmra.mrb[4].mxu0 %vm82_vm0, %v11309_v16  ;;  %v7903_v25 = vpack.c.bf16 %v2342_v4, %v2341_v55  ;;  %v13779_v4 = vld [vmem:[#allocation18_spill] sm:$0xff] }
 0x26c   :  { %3678 = vmatprep.mubr.f32.mxu0 %v13681_v62  ;;  %v8893_v55 = vunpack.i.h.bf16 %v13779_v4  ;;  %v8892_v9 = vunpack.i.l.bf16 %v13779_v4 }
 0x26e   :  { %7544 = vmatmul.mubr.msk.f32.gmra.mrb[38].mxu1 %vm82_vm0, %v11227_v58 }
 0x26f   :  { %2225 = vmatprep.mubr.f32.mxu1 %v13681_v62 }
 0x272   :  { %7545 = vmatmul.mubr.msk.f32.vlgmr.msra.gmra.mrb[40].mxu1 %vm82_vm0, %v11195_v63  ;;  %v7905_v63 = vpack.c.bf16 %v2328_v15, %v2327_v27  ;;  %v13781_v27 = vunpack.i.l.bf16 %v10567_v14 }
 0x273   :  { %7900 = vmatpush1.bf16.msra.mxu1 %v7899_v41  ;;  %2231 = vmatprep.mubr.f32.mxu1 %v13681_v62  ;;  %v11320_v41 = vld [vmem:[%s13536_s4 + $0x118] sm:$0xff] }
 0x274   :  { %7902 = vmatprep.subr.bf16.mxu1 %v7901_v3  ;;  %7608 = vmatmul.mubr.msk.f32.gmra.mrb[6].mxu0 %vm82_vm0, %v11320_v41  ;;  %v8897_v3 = vunpack.i.l.bf16 %v10638_v40 }
 0x275   :  { %4195 = vmatprep.mubr.f32.mxu0 %v13681_v62 }
 0x276   :  { %7546 = vmatmul.mubr.msk.f32.gmra.mrb[42].mxu1 %vm82_vm0, %v11207_v39  ;;  %v8898_v39 = vunpack.i.h.bf16 %v10638_v40  ;;  %v13782_v40 = vld [vmem:[#allocation19_spill] sm:$0xff]  ;;  %v2329_v14 = vsel %vm2322_vm1, %v8892_v9, %v8897_v3 }
 0x277   :  { %7904 = vmatpush1.bf16.msra.mxu1 %v7903_v25  ;;  %2237 = vmatprep.mubr.f32.mxu1 %v13681_v62  ;;  %v8903_v45 = vunpack.i.h.bf16 %v13782_v40  ;;  %v8902_v15 = vunpack.i.l.bf16 %v13782_v40  ;;  %v11348_v25 = vld [vmem:[%s13536_s4 + $0xa0] sm:$0xff] }
 0x278   :  { %7906 = vmatprep.subr.bf16.mxu1 %v7905_v63  ;;  %v2334_v63 = vsel %vm2322_vm1, %v8873_v1, %v8893_v55 }
 0x27a   :  { %7547 = vmatmul.mubr.msk.f32.gmra.mrb[44].mxu1 %vm82_vm0, %v11219_v24  ;;  %v2331_v24 = vsel %vm2322_vm1, %v13781_v27, %v8882_v13  ;;  %v2330_v13 = vsel %vm2322_vm1, %v8893_v55, %v8898_v39 }
 0x27b   :  { %2243 = vmatprep.mubr.f32.mxu1 %v13681_v62  ;;  %v7907_v49 = vpack.c.bf16 %v2332_v31, %v2331_v24  ;;  %v7909_v4 = vpack.c.bf16 %v2330_v13, %v2329_v14  ;;  %v13783_v31 = vunpack.i.l.bf16 %v10569_v10  ;;  %v11380_v24 = vld [vmem:[%s13536_s4 + $0xb0] sm:$0xff]  ;;  %v11390_v13 = vld [vmem:[%s13536_s4 + $0xb8] sm:$0xff] }
 0x27e   :  { %7548 = vmatmul.mubr.msk.f32.gmra.mrb[46].mxu1 %vm82_vm0, %v11227_v58  ;;  %v2333_v58 = vsel %vm2322_vm1, %v8872_v51, %v8892_v9  ;;  %v2343_v51 = vsel %vm2322_vm1, %v8902_v15, %v13783_v31  ;;  %v13784_v9 = vunpack.i.h.bf16 %v10569_v10  ;;  %v13785_v10 = vld [vmem:[#allocation20_spill] sm:$0xff]  ;;  %v13788_v31 = vld [vmem:[#allocation22_spill] sm:$0xff] }
 0x27f   :  { %2428 = vmatprep.mubr.f32.mxu1 %v13681_v62  ;;  %v7911_v55 = vpack.c.bf16 %v2334_v63, %v2333_v58  ;;  %v8908_v40 = vunpack.i.h.bf16 %v13785_v10  ;;  %v8907_v14 = vunpack.i.l.bf16 %v13785_v10  ;;  %v13787_v63 = vunpack.i.l.bf16 %v10608_v52 }
 0x280   :  { %v2344_v1 = vsel %vm2322_vm1, %v8903_v45, %v13784_v9  ;;  %v13648_v9 = vunpack.i.l.bf16 %v13788_v31 }
 0x281   :  { %v7913_v27 = vpack.c.bf16 %v2344_v1, %v2343_v51  ;;  %v13649_v51 = vunpack.i.h.bf16 %v13788_v31  ;;  %v2345_v1 = vsel %vm2322_vm1, %v8907_v14, %v8877_v47 }
 0x282   :  { %7553 = vmatmul.mubr.msk.f32.vlgmr.msra.gmra.mrb[24].mxu1 %vm82_vm0, %v11348_v25 }
 0x283   :  { %7908 = vmatpush1.bf16.msra.mxu1 %v7907_v49  ;;  %2434 = vmatprep.mubr.f32.mxu1 %v13681_v62  ;;  %v13786_v49 = vunpack.i.h.bf16 %v10608_v52 }
 0x284   :  { %7910 = vmatprep.subr.bf16.mxu1 %v7909_v4  ;;  %v2323_v4 = vsel %vm2322_vm1, %v13787_v63, %v8902_v15  ;;  %v13790_v15 = vld [vmem:[#allocation21_spill] sm:$0xff]  ;;  %v2326_v63 = vsel %vm2322_vm1, %v8898_v39, %v8908_v40 }
 0x285   :  { %v2324_v58 = vsel %vm2322_vm1, %v13786_v49, %v8903_v45  ;;  %v13789_v45 = vunpack.i.h.bf16 %v10599_v0  ;;  %v2325_v49 = vsel %vm2322_vm1, %v8897_v3, %v8907_v14 }
 0x286   :  { %7554 = vmatmul.mubr.msk.f32.gmra.mrb[26].mxu1 %vm82_vm0, %v11364_v59  ;;  %v7915_v10 = vpack.c.bf16 %v2324_v58, %v2323_v4  ;;  %v7919_v14 = vpack.c.bf16 %v2326_v63, %v2325_v49 }
 0x287   :  { %7912 = vmatpush1.bf16.msra.mxu1 %v7911_v55  ;;  %2440 = vmatprep.mubr.f32.mxu1 %v13681_v62  ;;  %v2346_v52 = vsel %vm2322_vm1, %v8908_v40, %v13789_v45  ;;  %v8913_v55 = vunpack.i.h.bf16 %v13790_v15  ;;  %v13791_v40 = vld [vmem:[#allocation23_spill] sm:$0xff] }
 0x288   :  { %7914 = vmatprep.subr.bf16.mxu1 %v7913_v27  ;;  %v8912_v27 = vunpack.i.l.bf16 %v13790_v15  ;;  %v7917_v0 = vpack.c.bf16 %v2346_v52, %v2345_v1  ;;  %v8923_v58 = vunpack.i.h.bf16 %v13791_v40  ;;  %v8922_v4 = vunpack.i.l.bf16 %v13791_v40  ;;  %v13792_v1 = vld [vmem:[#allocation24_spill] sm:$0xff]  ;;  %v13793_v15 = vld [vmem:[#allocation25_spill] sm:$0xff] }
 0x289   :  { %v2717_v3 = vsel %vm2703_vm2, %v8913_v55, %v13649_v51  ;;  %v8928_v45 = vunpack.i.h.bf16 %v13792_v1  ;;  %v8927_v52 = vunpack.i.l.bf16 %v13792_v1  ;;  %v8932_v49 = vunpack.i.l.bf16 %v13793_v15 }
 0x28a   :  { %7555 = vmatmul.mubr.msk.f32.gmra.mrb[28].mxu1 %vm82_vm0, %v11380_v24  ;;  %v2716_v47 = vsel %vm2703_vm2, %v8912_v27, %v13648_v9  ;;  %v2720_v63 = vsel %vm2703_vm2, %v8922_v4, %v8912_v27 }
 0x28b   :  { %2446 = vmatprep.mubr.f32.mxu1 %v13681_v62  ;;  %v7921_v39 = vpack.c.bf16 %v2717_v3, %v2716_v47  ;;  %v13794_v47 = vld [vmem:[#allocation26_spill] sm:$0xff] }
 0x28e   :  { %7556 = vmatmul.mubr.msk.f32.gmra.mrb[30].mxu1 %vm82_vm0, %v11390_v13 }
 0x28f   :  { %2517 = vmatprep.mubr.f32.mxu1 %v13681_v62 }
 0x292   :  { %7557 = vmatmul.mubr.msk.f32.vlgmr.msra.gmra.mrb[32].mxu1 %vm82_vm0, %v11348_v25 }
 0x293   :  { %7916 = vmatpush1.bf16.msra.mxu1 %v7915_v10  ;;  %2523 = vmatprep.mubr.f32.mxu1 %v13681_v62  ;;  %v8933_v10 = vunpack.i.h.bf16 %v13793_v15  ;;  %v2718_v15 = vsel %vm2703_vm2, %v8927_v52, %v8932_v49 }
 0x294   :  { %7918 = vmatprep.subr.bf16.mxu1 %v7917_v0  ;;  %v2721_v0 = vsel %vm2703_vm2, %v8923_v58, %v8913_v55  ;;  %v13796_v55 = vld [vmem:[#allocation27_spill] sm:$0xff] }
 0x295   :  { %v2719_v27 = vsel %vm2703_vm2, %v8928_v45, %v8933_v10  ;;  %v8943_v9 = vunpack.i.h.bf16 %v13796_v55  ;;  %v8942_v51 = vunpack.i.l.bf16 %v13796_v55  ;;  %v7923_v3 = vpack.c.bf16 %v2721_v0, %v2720_v63 }
 0x296   :  { %7558 = vmatmul.mubr.msk.f32.gmra.mrb[34].mxu1 %vm82_vm0, %v11364_v59  ;;  %v7925_v48 = vpack.c.bf16 %v2719_v27, %v2718_v15  ;;  %v13799_v15 = vld [vmem:[#allocation29_spill] sm:$0xff]  ;;  %v13801_v27 = vunpack.i.l.bf16 %v13788_v31 }
 0x297   :  { %7920 = vmatpush1.bf16.msra.mxu1 %v7919_v14  ;;  %2529 = vmatprep.mubr.f32.mxu1 %v13681_v62  ;;  %v8937_v14 = vunpack.i.l.bf16 %v13794_v47 }
 0x298   :  { %7922 = vmatprep.subr.bf16.mxu1 %v7921_v39  ;;  %v13795_v39 = vld [vmem:[#allocation28_spill] sm:$0xff] }
 0x299   :  { %v8948_v40 = vunpack.i.h.bf16 %v13795_v39  ;;  %v8947_v1 = vunpack.i.l.bf16 %v13795_v39  ;;  %v2722_v42 = vsel %vm2703_vm2, %v8937_v14, %v8927_v52  ;;  %v13797_v39 = vunpack.i.h.bf16 %v13794_v47 }
 0x29a   :  { %7559 = vmatmul.mubr.msk.f32.gmra.mrb[36].mxu1 %vm82_vm0, %v11380_v24 }
 0x29b   :  { %2535 = vmatprep.mubr.f32.mxu1 %v13681_v62  ;;  %v2723_v18 = vsel %vm2703_vm2, %v13797_v39, %v8928_v45  ;;  %v2708_v63 = vsel %vm2703_vm2, %v8942_v51, %v8947_v1  ;;  %v2709_v0 = vsel %vm2703_vm2, %v8943_v9, %v8948_v40  ;;  %v13802_v39 = vld [vmem:[#allocation31_spill] sm:$0xff] }
 0x29c   :  { %v7927_v52 = vpack.c.bf16 %v2723_v18, %v2722_v42  ;;  %v7929_v55 = vpack.c.bf16 %v2709_v0, %v2708_v63  ;;  %v8952_v42 = vunpack.i.l.bf16 %v13799_v15  ;;  %v13800_v18 = vunpack.i.h.bf16 %v13788_v31 }
 0x29d   :  { %v8963_v63 = vunpack.i.h.bf16 %v13802_v39  ;;  %v8962_v0 = vunpack.i.l.bf16 %v13802_v39 }
 0x29e   :  { %7560 = vmatmul.mubr.msk.f32.gmra.mrb[38].mxu1 %vm82_vm0, %v11390_v13 }
 0x29f   :  { %2606 = vmatprep.mubr.f32.mxu1 %v13681_v62  ;;  %v2704_v39 = vsel %vm2703_vm2, %v8947_v1, %v8962_v0 }
 0x2a2   :  { %7561 = vmatmul.mubr.msk.f32.vlgmr.msra.gmra.mrb[40].mxu1 %vm82_vm0, %v11348_v25  ;;  %v13798_v25 = vld [vmem:[#allocation30_spill] sm:$0xff] }
 0x2a3   :  { %7924 = vmatpush1.bf16.msra.mxu1 %v7923_v3  ;;  %2612 = vmatprep.mubr.f32.mxu1 %v13681_v62  ;;  %v8958_v45 = vunpack.i.h.bf16 %v13798_v25  ;;  %v8957_v3 = vunpack.i.l.bf16 %v13798_v25 }
 0x2a4   :  { %7926 = vmatprep.subr.bf16.mxu1 %v7925_v48  ;;  %v8953_v48 = vunpack.i.h.bf16 %v13799_v15  ;;  %v7566_v15 = vld [vmem:[%s13536_s4 + $0xc8] sm:$0xff] }
 0x2a6   :  { %7562 = vmatmul.mubr.msk.f32.gmra.mrb[42].mxu1 %vm82_vm0, %v11364_v59  ;;  %v2713_v59 = vsel %vm2703_vm2, %v13800_v18, %v8943_v9  ;;  %v2710_v9 = vsel %vm2703_vm2, %v8952_v42, %v8957_v3  ;;  %v2711_v31 = vsel %vm2703_vm2, %v8953_v48, %v8958_v45  ;;  %v2724_v18 = vsel %vm2703_vm2, %v8962_v0, %v8922_v4  ;;  %v13806_v0 = vld [vmem:[#allocation35_spill] sm:$0xff] }
 0x2a7   :  { %7928 = vmatpush1.bf16.msra.mxu1 %v7927_v52  ;;  %2618 = vmatprep.mubr.f32.mxu1 %v13681_v62  ;;  %v7565_v52 = vld [vmem:[%s13536_s4 + $0xc0] sm:$0xff]  ;;  %v7933_v25 = vpack.c.bf16 %v2711_v31, %v2710_v9  ;;  %v13804_v31 = vunpack.i.h.bf16 %v13794_v47  ;;  %v13805_v47 = vld [vmem:[#allocation36_spill] sm:$0xff] }
 0x2a8   :  { %7930 = vmatprep.subr.bf16.mxu1 %v7929_v55  ;;  %v2715_v55 = vsel %vm2703_vm2, %v8933_v10, %v8953_v48  ;;  %v7567_v48 = vld [vmem:[%s13536_s4 + $0xd0] sm:$0xff] }
 0x2aa   :  { %7563 = vmatmul.mubr.msk.f32.gmra.mrb[44].mxu1 %vm82_vm0, %v11380_v24  ;;  %v2712_v24 = vsel %vm2703_vm2, %v13801_v27, %v8942_v51 }
 0x2ab   :  { %2624 = vmatprep.mubr.f32.mxu1 %v13681_v62  ;;  %v7931_v51 = vpack.c.bf16 %v2713_v59, %v2712_v24  ;;  %v2725_v59 = vsel %vm2703_vm2, %v8963_v63, %v8923_v58  ;;  %v7568_v58 = vld [vmem:[%s13536_s4 + $0xd8] sm:$0xff]  ;;  %v2705_v24 = vsel %vm2703_vm2, %v8948_v40, %v8963_v63 }
 0x2ac   :  { %v7937_v10 = vpack.c.bf16 %v2725_v59, %v2724_v18  ;;  %v13809_v18 = vld [vmem:[#allocation33_spill] sm:$0xff] }
 0x2ad   :  { %v13810_v59 = vunpack.i.l.bf16 %v13809_v18 }
 0x2ae   :  { %7564 = vmatmul.mubr.msk.f32.gmra.mrb[46].mxu1 %vm82_vm0, %v11390_v13  ;;  %v2714_v13 = vsel %vm2703_vm2, %v8932_v49, %v8952_v42  ;;  %v13803_v42 = vld [vmem:[#allocation32_spill] sm:$0xff] }
 0x2af   :  { %2809 = vmatprep.mubr.f32.mxu1 %v13681_v62  ;;  %v7935_v49 = vpack.c.bf16 %v2715_v55, %v2714_v13  ;;  %v8968_v4 = vunpack.i.h.bf16 %v13803_v42  ;;  %v8967_v27 = vunpack.i.l.bf16 %v13803_v42  ;;  %v7939_v13 = vpack.c.bf16 %v2705_v24, %v2704_v39 }
 0x2b0   :  { %v13807_v55 = vpack.c.bf16 %v13805_v47, %v13806_v0  ;;  %v13822_v0 = vunpack.i.h.bf16 %v10950_v26 }
 0x2b1   :  { %v2726_v9 = vsel %vm2703_vm2, %v8967_v27, %v8937_v14  ;;  %v2706_v40 = vsel %vm2703_vm2, %v8957_v3, %v8967_v27  ;;  %v2707_v1 = vsel %vm2703_vm2, %v8958_v45, %v8968_v4  ;;  %v13808_v3 = vld [vmem:[#allocation34_spill] sm:$0xff] }
 0x2b2   :  { %7569 = vmatmul.mubr.msk.f32.vlgmr.msra.gmra.mrb[24].mxu1 %vm82_vm0, %v7565_v52  ;;  %v7943_v14 = vpack.c.bf16 %v2707_v1, %v2706_v40  ;;  %v8982_v45 = vunpack.i.l.bf16 %v13808_v3  ;;  %v13816_v1 = vld [vmem:[#allocation39_spill] sm:$0xff] }
 0x2b3   :  { %7932 = vmatpush1.bf16.msra.mxu1 %v7931_v51  ;;  %2815 = vmatprep.mubr.f32.mxu1 %v13681_v62  ;;  %v2727_v51 = vsel %vm2703_vm2, %v8968_v4, %v13804_v31  ;;  %v13812_v4 = vld [vmem:[#allocation40_spill] sm:$0xff] }
 0x2b4   :  { %7934 = vmatprep.subr.bf16.mxu1 %v7933_v25  ;;  %v7941_v63 = vpack.c.bf16 %v2727_v51, %v2726_v9  ;;  %v8983_v25 = vunpack.i.h.bf16 %v13808_v3  ;;  %v8998_v27 = vunpack.i.h.bf16 %v13812_v4  ;;  %v8997_v24 = vunpack.i.l.bf16 %v13812_v4  ;;  %v13813_v9 = vld [vmem:[#allocation37_spill] sm:$0xff] }
 0x2b5   :  { %v13814_v31 = vunpack.i.l.bf16 %v13813_v9  ;;  %v9043_v3 = vunpack.i.h.bf16 %v10994_v2  ;;  %v9058_v4 = vunpack.i.h.bf16 %v11078_v17 }
 0x2b6   :  { %7570 = vmatmul.mubr.msk.f32.gmra.mrb[26].mxu1 %vm82_vm0, %v7566_v15 }
 0x2b7   :  { %7936 = vmatpush1.bf16.msra.mxu1 %v7935_v49  ;;  %2821 = vmatprep.mubr.f32.mxu1 %v13681_v62  ;;  %v3101_v49 = vsel %vm3084_vm14, %v8982_v45, %v13810_v59  ;;  %v3103_v51 = vsel %vm3084_vm14, %v8997_v24, %v13814_v31 }
 0x2b8   :  { %7938 = vmatprep.subr.bf16.mxu1 %v7937_v10  ;;  %v13811_v10 = vunpack.i.h.bf16 %v13809_v18  ;;  %v13823_v18 = vld [vmem:[#allocation41_spill] sm:$0xff] }
 0x2b9   :  { %v13824_v59 = vpack.c.bf16 %v10937_v33, %v13823_v18  ;;  %v13828_v33 = vld [vmem:[#allocation44_spill] sm:$0xff] }
 0x2ba   :  { %7571 = vmatmul.mubr.msk.f32.gmra.mrb[28].mxu1 %vm82_vm0, %v7567_v48  ;;  %v3102_v42 = vsel %vm3084_vm14, %v8983_v25, %v13811_v10 }
 0x2bb   :  { %2827 = vmatprep.mubr.f32.mxu1 %v13681_v62  ;;  %v7947_v39 = vpack.c.bf16 %v3102_v42, %v3101_v49  ;;  %v13825_v49 = vld [vmem:[#allocation42_spill] sm:$0xff] }
 0x2bc   :  { %v13826_v10 = vunpack.i.l.bf16 %v13825_v49  ;;  %v13827_v42 = vunpack.i.h.bf16 %v13825_v49 }
 0x2be   :  { %7572 = vmatmul.mubr.msk.f32.gmra.mrb[30].mxu1 %vm82_vm0, %v7568_v58 }
 0x2bf   :  { %2898 = vmatprep.mubr.f32.mxu1 %v13681_v62 }
 0x2c2   :  { %7573 = vmatmul.mubr.msk.f32.vlgmr.msra.gmra.mrb[32].mxu1 %vm82_vm0, %v7565_v52 }
 0x2c3   :  { %7940 = vmatpush1.bf16.msra.mxu1 %v7939_v13  ;;  %2904 = vmatprep.mubr.f32.mxu1 %v13681_v62  ;;  %v13815_v13 = vunpack.i.h.bf16 %v13813_v9  ;;  %v13831_v9 = vpack.c.bf16 %v11029_v7, %v11023_v8 }
 0x2c4   :  { %7942 = vmatprep.subr.bf16.mxu1 %v7941_v63  ;;  %v13817_v63 = vld [vmem:[#allocation38_spill] sm:$0xff] }
 0x2c5   :  { %v3104_v40 = vsel %vm3084_vm14, %v8998_v27, %v13815_v13 }
 0x2c6   :  { %7574 = vmatmul.mubr.msk.f32.gmra.mrb[34].mxu1 %vm82_vm0, %v7566_v15  ;;  %v7951_v47 = vpack.c.bf16 %v3104_v40, %v3103_v51  ;;  %v13832_v51 = vld [vmem:[#allocation45_spill] sm:$0xff] }
 0x2c7   :  { %7944 = vmatpush1.bf16.msra.mxu1 %v7943_v14  ;;  %2910 = vmatprep.mubr.f32.mxu1 %v13681_v62  ;;  %v13818_v14 = vpack.c.bf16 %v13816_v1, %v13817_v63  ;;  %v13833_v13 = vunpack.i.l.bf16 %v13832_v51  ;;  %v13835_v63 = vld [vmem:[#allocation48_spill] sm:$0xff] }
 0x2c8   :  { %7946 = vmatprep.subr.bf16.mxu1 %v13807_v55  ;;  %v3108_v55 = vsel %vm3084_vm14, %v13822_v0, %v8998_v27  ;;  %v9057_v27 = vunpack.i.l.bf16 %v11078_v17  ;;  %v13834_v17 = vunpack.i.h.bf16 %v13832_v51  ;;  %v13836_v7 = vunpack.i.l.bf16 %v13835_v63 }
 0x2ca   :  { %7575 = vmatmul.mubr.msk.f32.gmra.mrb[36].mxu1 %vm82_vm0, %v7567_v48  ;;  %v3484_v40 = vsel %vm3465_vm15, %v9057_v27, %v13833_v13  ;;  %v3485_v1 = vsel %vm3465_vm15, %v9058_v4, %v13834_v17  ;;  %v11725_v17 = vpop.permute.xlu0 %3804 }
 0x2cb   :  { %2916 = vmatprep.mubr.f32.mxu1 %v13681_v62 }
 0x2ce   :  { %7576 = vmatmul.mubr.msk.f32.gmra.mrb[38].mxu1 %vm82_vm0, %v7568_v58 }
 0x2cf   :  { %2987 = vmatprep.mubr.f32.mxu1 %v13681_v62 }
 0x2d2   :  { %7577 = vmatmul.mubr.msk.f32.vlgmr.msra.gmra.mrb[40].mxu1 %vm82_vm0, %v7565_v52  ;;  %v13819_v52 = vunpack.i.l.bf16 %v10900_v57 }
 0x2d3   :  { %7948 = vmatpush1.bf16.msra.mxu1 %v7947_v39  ;;  %2993 = vmatprep.mubr.f32.mxu1 %v13681_v62 }
 0x2d4   :  { %7950 = vmatprep.subr.bf16.mxu1 %v13818_v14  ;;  %v13837_v14 = vunpack.i.h.bf16 %v13835_v63 }
 0x2d6   :  { %7578 = vmatmul.mubr.msk.f32.gmra.mrb[42].mxu1 %vm82_vm0, %v7566_v15  ;;  %v13820_v15 = vunpack.i.h.bf16 %v10900_v57  ;;  %v7584_v57 = vld [vmem:[%s13536_s4 + $0xf8] sm:$0xff] }
 0x2d7   :  { %7952 = vmatpush1.bf16.msra.mxu1 %v7951_v47  ;;  %2999 = vmatprep.mubr.f32.mxu1 %v13681_v62  ;;  %v3487_v47 = vsel %vm3465_vm15, %v13837_v14, %v9043_v3 }
 0x2d8   :  { %8209 = vmatprep.subr.bf16.mxu1 %v10904_v19  ;;  %v3105_v19 = vsel %vm3084_vm14, %v13819_v52, %v8982_v45  ;;  %v13838_v52 = vld [vmem:[#allocation47_spill] sm:$0xff] }
 0x2da   :  { %7579 = vmatmul.mubr.msk.f32.gmra.mrb[44].mxu1 %vm82_vm0, %v7567_v48  ;;  %v3106_v48 = vsel %vm3084_vm14, %v13820_v15, %v8983_v25  ;;  %v9042_v25 = vunpack.i.l.bf16 %v10994_v2  ;;  %v3483_v2 = vsel %vm3465_vm15, %v9043_v3, %v13827_v42  ;;  %v13845_v3 = vld [vmem:[#allocation50_spill] sm:$0xff] }
 0x2db   :  { %3005 = vmatprep.mubr.f32.mxu1 %v13681_v62 }
 0x2dc   :  { %v3486_v8 = vsel %vm3465_vm15, %v13836_v7, %v9042_v25 }
 0x2de   :  { %7580 = vmatmul.mubr.msk.f32.gmra.mrb[46].mxu1 %vm82_vm0, %v7568_v58  ;;  %v7961_v58 = vpack.c.bf16 %v3106_v48, %v3105_v19  ;;  %v13839_v19 = vld [vmem:[#allocation46_spill] sm:$0xff]  ;;  %v7975_v48 = vpack.c.bf16 %v3485_v1, %v3484_v40 }
 0x2df   :  { %3190 = vmatprep.mubr.f32.mxu1 %v13681_v62  ;;  %v13840_v15 = vpack.c.bf16 %v13838_v52, %v13839_v19 }
 0x2e2   :  { %7585 = vmatmul.mubr.msk.f32.vlgmr.msra.gmra.mrb[24].mxu1 %vm82_vm0, %v10987_v21 }
 0x2e3   :  { %8211 = vmatpush1.bf16.msra.mxu1 %v10906_v43  ;;  %3196 = vmatprep.mubr.f32.mxu1 %v13681_v62  ;;  %v7583_v43 = vld [vmem:[%s13536_s4 + $0xf0] sm:$0xff] }
 0x2e4   :  { %8210 = vmatprep.subr.bf16.mxu1 %v10956_v22  ;;  %v13821_v22 = vunpack.i.l.bf16 %v10950_v26  ;;  %v3482_v26 = vsel %vm3465_vm15, %v9042_v25, %v13826_v10 }
 0x2e5   :  { %v7971_v31 = vpack.c.bf16 %v3483_v2, %v3482_v26 }
 0x2e6   :  { %7586 = vmatmul.mubr.msk.f32.gmra.mrb[26].mxu1 %vm82_vm0, %v11140_v46 }
 0x2e7   :  { %8212 = vmatpush1.bf16.msra.mxu1 %v10962_v44  ;;  %3202 = vmatprep.mubr.f32.mxu1 %v13681_v62  ;;  %v3107_v44 = vsel %vm3084_vm14, %v13821_v22, %v8997_v24  ;;  %v13829_v24 = vld [vmem:[#allocation43_spill] sm:$0xff] }
 0x2e8   :  { %7962 = vmatprep.subr.bf16.mxu1 %v7961_v58  ;;  %v7965_v45 = vpack.c.bf16 %v3108_v55, %v3107_v44  ;;  %v13830_v39 = vpack.c.bf16 %v13828_v33, %v13829_v24  ;;  %v13841_v58 = vld [vmem:[#allocation49_spill] sm:$0xff]  ;;  %v13844_v55 = vld [vmem:[#allocation51_spill] sm:$0xff] }
 0x2e9   :  { %v13842_v22 = vunpack.i.l.bf16 %v13841_v58  ;;  %v13846_v25 = vpack.c.bf16 %v13844_v55, %v13845_v3 }
 0x2ea   :  { %7587 = vmatmul.mubr.msk.f32.gmra.mrb[28].mxu1 %vm82_vm0, %v7583_v43 }
 0x2eb   :  { %3208 = vmatprep.mubr.f32.mxu1 %v13681_v62  ;;  %v3488_v44 = vsel %vm3465_vm15, %v13842_v22, %v9057_v27 }
 0x2ee   :  { %7588 = vmatmul.mubr.msk.f32.gmra.mrb[30].mxu1 %vm82_vm0, %v7584_v57 }
 0x2ef   :  { %3291 = vmatprep.mubr.f32.mxu1 %v13681_v62 }
 0x2f2   :  { %7591 = vmatmul.mubr.msk.f32.vlgmr.msra.gmra.mrb[36].mxu1 %vm82_vm0, %v7583_v43 }
 0x2f3   :  { %7964 = vmatpush1.bf16.msra.mxu1 %v13824_v59  ;;  %3297 = vmatprep.mubr.f32.mxu1 %v13681_v62 }
 0x2f4   :  { %7966 = vmatprep.subr.bf16.mxu1 %v7965_v45 }
 0x2f6   :  { %7592 = vmatmul.mubr.msk.f32.gmra.mrb[38].mxu1 %vm82_vm0, %v7584_v57 }
 0x2f7   :  { %7968 = vmatpush1.bf16.msra.mxu1 %v13830_v39  ;;  %3368 = vmatprep.mubr.f32.mxu1 %v13681_v62 }
 0x2f8   :  { %7970 = vmatprep.subr.bf16.mxu1 %v13831_v9 }
 0x2fa   :  { %7593 = vmatmul.mubr.msk.f32.vlgmr.msra.gmra.mrb[40].mxu1 %vm82_vm0, %v10987_v21  ;;  %v7985_v21 = vpack.c.bf16 %v3487_v47, %v3486_v8  ;;  %v11729_v47 = vpop.permute.xlu1 %3809 }
 0x2fb   :  { %7972 = vmatpush1.bf16.msra.mxu1 %v7971_v31  ;;  %3374 = vmatprep.mubr.f32.mxu1 %v13681_v62 }
 0x2fc   :  { %7974 = vmatprep.subr.bf16.mxu1 %v13840_v15 }
 0x2fe   :  { %7594 = vmatmul.mubr.msk.f32.gmra.mrb[42].mxu1 %vm82_vm0, %v11140_v46  ;;  %v13843_v46 = vunpack.i.h.bf16 %v13841_v58 }
 0x2ff   :  { %7976 = vmatpush1.bf16.msra.mxu1 %v7975_v48  ;;  %3380 = vmatprep.mubr.f32.mxu1 %v13681_v62 }
 0x300   :  { %7986 = vmatprep.subr.bf16.mxu1 %v7985_v21  ;;  %v3489_v0 = vsel %vm3465_vm15, %v13843_v46, %v9058_v4 }
 0x302   :  { %7595 = vmatmul.mubr.msk.f32.gmra.mrb[44].mxu1 %vm82_vm0, %v7583_v43  ;;  %v7989_v43 = vpack.c.bf16 %v3489_v0, %v3488_v44 }
 0x303   :  { %3386 = vmatprep.mubr.f32.mxu1 %v13681_v62 }
 0x306   :  { %7596 = vmatmul.mubr.msk.f32.gmra.mrb[46].mxu1 %vm82_vm0, %v7584_v57  ;;  %v13847_v57 = vpack.c.bf16 %v11125_v34, %v11119_v50 }
 0x307   :  { %3571 = vmatprep.mubr.f32.mxu1 %v13681_v62 }
 0x30a   :  { %7601 = vmatmul.mubr.msk.f32.vlgmr.msra.gmra.mrb[24].mxu1 %vm82_vm0, %v11172_v56 }
 0x30b   :  { %7988 = vmatpush1.bf16.msra.mxu1 %v13846_v25  ;;  %3577 = vmatprep.mubr.f32.mxu1 %v13681_v62 }
 0x30c   :  { %7990 = vmatprep.subr.bf16.mxu1 %v7989_v43  ;;  %v11735_v43 = vpop.permute.xlu0 %3814 }
 0x30e   :  { %7602 = vmatmul.mubr.msk.f32.gmra.mrb[26].mxu1 %vm82_vm0, %v11183_v61 }
 0x30f   :  { %7992 = vmatpush1.bf16.msra.mxu1 %v13847_v57  ;;  %3583 = vmatprep.mubr.f32.mxu1 %v13681_v62  ;;  %v13848_v57 = vld [vmem:[#allocation4_spill] sm:$0xff] }
 0x312   :  { %7603 = vmatmul.mubr.msk.f32.gmra.mrb[28].mxu1 %vm82_vm0, %v11309_v16 }
 0x313   :  { %3589 = vmatprep.mubr.f32.mxu1 %v13681_v62 }
 0x316   :  { %7604 = vmatmul.mubr.msk.f32.gmra.mrb[30].mxu1 %vm82_vm0, %v11320_v41 }
 0x317   :  { %3749 = vmatprep.mubr.f32.mxu1 %v13681_v62 }
 0x31a   :  { %7609 = vmatmul.mubr.msk.f32.vlgmr.msra.gmra.mrb[40].mxu1 %vm82_vm0, %v11172_v56 }
 0x31b   :  { %3755 = vmatprep.mubr.f32.mxu1 %v13681_v62 }
 0x31c   :  { %v3662_v45 = vpop.f32.mrb[0].mxu0 }
 0x31d   :  { %v3664_v34 = vpop.f32.mrb[1].mxu0 }
 0x31e   :  { %7610 = vmatmul.mubr.msk.f32.gmra.mrb[42].mxu1 %vm82_vm0, %v11183_v61 }
 0x31f   :  { %3761 = vmatprep.mubr.f32.mxu1 %v13681_v62 }
 0x320   :  { %v3668_v50 = vpop.f32.mrb[2].mxu0 }
 0x321   :  { %v3670_v18 = vpop.f32.mrb[3].mxu0 }
 0x322   :  { %7611 = vmatmul.mubr.msk.f32.gmra.mrb[44].mxu1 %vm82_vm0, %v11309_v16 }
 0x323   :  { %3767 = vmatprep.mubr.f32.mxu1 %v13681_v62 }
 0x326   :  { %7612 = vmatmul.mubr.msk.f32.gmra.mrb[46].mxu1 %vm82_vm0, %v11320_v41 }
 0x33e   :  { %v3674_v56 = vpop.f32.mrb[4].mxu0 }
 0x33f   :  { %v3676_v59 = vpop.f32.mrb[5].mxu0 }
 0x347   :  { %v3680_v49 = vpop.f32.mrb[6].mxu0 }
 0x348   :  { %v3682_v10 = vpop.f32.mrb[7].mxu0 }
 0x395   :  { %v2900_v26 = vpop.f32.mrb[32].mxu1 }
 0x396   :  { %v8213_v42 = vadd.f32 %v3662_v45, %v2900_v26  ;;  %v2902_v61 = vpop.f32.mrb[33].mxu1  ;;  %v13849_v26 = vld [vmem:[#allocation5_spill] sm:$0xff] }
 0x397   :  { %v8214_v2 = vadd.f32 %v3664_v34, %v2902_v61  ;;  %v11743_v61 = vpop.permute.xlu1 %3819 }
 0x398   :  { %v3824_v15 = vadd.f32 %v8213_v42, %v11725_v17 }
 0x399   :  { %v2906_v4 = vpop.f32.mrb[34].mxu1  ;;  %v3825_v46 = vadd.f32 %v8214_v2, %v11725_v17 }
 0x39a   :  { %v8215_v27 = vadd.f32 %v3668_v50, %v2906_v4  ;;  %v2908_v33 = vpop.f32.mrb[35].mxu1  ;;  %vm3848_vm7 = vcmp.ge.f32.partialorder %v3824_v15, 0.0 }
 0x39b   :  { %v8216_v24 = vadd.f32 %v3670_v18, %v2908_v33  ;;  %vm3849_vm8 = vcmp.ge.f32.partialorder %v3825_v46, 0.0  ;;  %v3873_v2 = vmul.f32 0.01, %v3825_v46  ;;  %v13850_v33 = vld [vmem:[#allocation2_spill] sm:$0xff] }
 0x39d   :  { %v3831_v4 = vadd.f32 %v8216_v24, %v11729_v47 }
 0x3c5   :  { %v3293_v39 = vpop.f32.mrb[36].mxu1 }
 0x3c6   :  { %v11717_v16 = vadd.f32 %v3674_v56, %v3293_v39  ;;  %v3295_v9 = vpop.f32.mrb[37].mxu1  ;;  %v3872_v56 = vmul.f32 0.01, %v3824_v15 }
 0x3c7   :  { %v11719_v31 = vadd.f32 %v3676_v59, %v3295_v9  ;;  %v3830_v59 = vadd.f32 %v8215_v27, %v11729_v47 }
 0x3c9   :  { %v3299_v51 = vpop.f32.mrb[38].mxu1 }
 0x3ca   :  { %v11721_v41 = vadd.f32 %v3680_v49, %v3299_v51  ;;  %v3301_v13 = vpop.f32.mrb[39].mxu1  ;;  %v13851_v51 = vld [vmem:[#allocation3_spill] sm:$0xff] }
 0x3cb   :  { %v11723_v40 = vadd.f32 %v3682_v10, %v3301_v13 }
 0x3dd   :  { %v3573_v1 = vpop.f32.mrb[24].mxu1 }
 0x3de   :  { %v3822_v63 = vadd.f32 %v11725_v17, %v3573_v1  ;;  %v3575_v7 = vpop.f32.mrb[25].mxu1 }
 0x3df   :  { %v3823_v8 = vadd.f32 %v11725_v17, %v3575_v7 }
 0x3e0   :  { %vm3846_vm3 = vcmp.ge.f32.partialorder %v3822_v63, 0.0  ;;  %v3870_v14 = vmul.f32 0.01, %v3822_v63 }
 0x3e1   :  { %vm3847_vm4 = vcmp.ge.f32.partialorder %v3823_v8, 0.0  ;;  %v3871_v52 = vmul.f32 0.01, %v3823_v8  ;;  %v3579_v19 = vpop.f32.mrb[26].mxu1 }
 0x3e2   :  { %v3894_v48 = vsel %vm3846_vm3, %v3822_v63, %v3870_v14  ;;  %v3828_v21 = vadd.f32 %v11729_v47, %v3579_v19  ;;  %v3581_v58 = vpop.f32.mrb[27].mxu1  ;;  %vm3854_vm3 = vcmp.ge.f32.partialorder %v3830_v59, 0.0 }
 0x3e3   :  { %v3895_v22 = vsel %vm3847_vm4, %v3823_v8, %v3871_v52  ;;  %v3829_v44 = vadd.f32 %v11729_v47, %v3581_v58  ;;  %v3918_v55 = vadd.f32 %v3894_v48, %v9774_v11  ;;  %v3878_v8 = vmul.f32 0.01, %v3830_v59 }
 0x3e4   :  { %vm3852_vm5 = vcmp.ge.f32.partialorder %v3828_v21, 0.0  ;;  %v3876_v0 = vmul.f32 0.01, %v3828_v21  ;;  %v3919_v45 = vadd.f32 %v3895_v22, %v13848_v57  ;;  %v3896_v48 = vsel %vm3848_vm7, %v3824_v15, %v3872_v56 }
 0x3e5   :  { %vm3853_vm6 = vcmp.ge.f32.partialorder %v3829_v44, 0.0  ;;  %v3877_v3 = vmul.f32 0.01, %v3829_v44  ;;  %v3585_v25 = vpop.f32.mrb[28].mxu1  ;;  %v11747_v39 = vmul.f32 %v3918_v55, %v13850_v33  ;;  %v3902_v55 = vsel %vm3854_vm3, %v3830_v59, %v3878_v8 }
 0x3e6   :  { %v3900_v34 = vsel %vm3852_vm5, %v3828_v21, %v3876_v0  ;;  %v3834_v50 = vadd.f32 %v11735_v43, %v3585_v25  ;;  %v3587_v18 = vpop.f32.mrb[29].mxu1  ;;  %v3897_v21 = vsel %vm3849_vm8, %v3825_v46, %v3873_v2  ;;  %vm3855_vm5 = vcmp.ge.f32.partialorder %v3831_v4, 0.0 }
 0x3e7   :  { %v3924_v49 = vadd.f32 %v3900_v34, %v9777_v12  ;;  %v3901_v10 = vsel %vm3853_vm6, %v3829_v44, %v3877_v3  ;;  %v11753_v12 = vmul.f32 %v3919_v45, %v13851_v51  ;;  %v3879_v44 = vmul.f32 0.01, %v3831_v4 }
 0x3e8   :  { %v3925_v42 = vadd.f32 %v3901_v10, %v13849_v26  ;;  %vm3858_vm9 = vcmp.ge.f32.partialorder %v3834_v50, 0.0  ;;  %v3882_v11 = vmul.f32 0.01, %v3834_v50  ;;  %v3835_v3 = vadd.f32 %v11735_v43, %v3587_v18 }
 0x3e9   :  { %v11750_v9 = vmul.f32 %v3924_v49, %v13850_v33  ;;  %v3591_v27 = vpop.f32.mrb[30].mxu1  ;;  %v3920_v25 = vadd.f32 %v3896_v48, %v9851_v35  ;;  %v11781_v57 = vadd.f32 %v3897_v21, %v9898_v23  ;;  %v3926_v18 = vadd.f32 %v3902_v55, %v9867_v53 }
 0x3ea   :  { %v11756_v13 = vmul.f32 %v3925_v42, %v13851_v51  ;;  %v3906_v1 = vsel %vm3858_vm9, %v3834_v50, %v3882_v11  ;;  %v3840_v63 = vadd.f32 %v11743_v61, %v3591_v27  ;;  %v3593_v7 = vpop.f32.mrb[31].mxu1  ;;  %v3836_v35 = vadd.f32 %v11717_v16, %v11735_v43  ;;  %v13852_v11 = vld [vmem:[#allocation6_spill] sm:$0xff] }
 0x3eb   :  { %v11761_v24 = vpack.i.bf16 %v11750_v9, %v11747_v39  ;;  %v3930_v14 = vadd.f32 %v3906_v1, %v9801_v28  ;;  %v3841_v58 = vadd.f32 %v11743_v61, %v3593_v7  ;;  %v3883_v49 = vmul.f32 0.01, %v3835_v3 }
 0x3ec   :  { %vm3864_vm4 = vcmp.ge.f32.partialorder %v3840_v63, 0.0  ;;  %v3888_v52 = vmul.f32 0.01, %v3840_v63  ;;  %v11766_v19 = vpack.i.bf16 %v11756_v13, %v11753_v12  ;;  %v11799_v2 = vmul.f32 %v3920_v25, %v13852_v11 }
 0x3ed   :  { %9090 = vrot.lane.b32.xlu0 %v11761_v24, %s9571_s1  ;;  %v3751_v22 = vpop.f32.mrb[40].mxu1  ;;  %v11784_v45 = vmul.f32 %v3930_v14, %v13850_v33  ;;  %v3889_v50 = vmul.f32 0.01, %v3841_v58  ;;  %vm3865_vm7 = vcmp.ge.f32.partialorder %v3841_v58, 0.0  ;;  %v11803_v53 = vadd.f32 %v11719_v31, %v11735_v43 }
 0x3ee   :  { %v3912_v0 = vsel %vm3864_vm4, %v3840_v63, %v3888_v52  ;;  %9095 = vrot.lane.b32.xlu1 %v11766_v19, %s9571_s1  ;;  %v3753_v28 = vpop.f32.mrb[41].mxu1  ;;  %v3842_v16 = vadd.f32 %v11721_v41, %v11743_v61  ;;  %vm3859_vm8 = vcmp.ge.f32.partialorder %v3835_v3, 0.0  ;;  %v11811_v7 = vmul.f32 %v3926_v18, %v13852_v11 }
 0x3ef   :  { %v3936_v15 = vadd.f32 %v3912_v0, %v9804_v29  ;;  %v3827_v46 = vadd.f32 %v11725_v17, %v3753_v28  ;;  %v3903_v29 = vsel %vm3855_vm5, %v3831_v4, %v3879_v44  ;;  %v3913_v27 = vsel %vm3865_vm7, %v3841_v58, %v3889_v50 }
 0x3f0   :  { %v3927_v4 = vadd.f32 %v3903_v29, %v9874_v54  ;;  %vm3860_vm3 = vcmp.ge.f32.partialorder %v3836_v35, 0.0  ;;  %v3884_v8 = vmul.f32 0.01, %v3836_v35  ;;  %v3843_v41 = vadd.f32 %v11723_v40, %v11743_v61 }
 0x3f1   :  { %v11787_v34 = vmul.f32 %v3936_v15, %v13850_v33  ;;  %vm3851_vm6 = vcmp.ge.f32.partialorder %v3827_v46, 0.0  ;;  %v3875_v56 = vmul.f32 0.01, %v3827_v46  ;;  %v3757_v59 = vpop.f32.mrb[42].mxu1  ;;  %v3907_v52 = vsel %vm3859_vm8, %v3835_v3, %v3883_v49  ;;  %v13853_v3 = vld [vmem:[#allocation8_spill] sm:$0xff] }
 0x3f2   :  { %v3759_v23 = vpop.f32.mrb[43].mxu1  ;;  %vm3861_vm4 = vcmp.ge.f32.partialorder %v11803_v53, 0.0  ;;  %v3890_v21 = vmul.f32 0.01, %v3842_v16  ;;  %v3937_v58 = vadd.f32 %v3913_v27, %v9835_v6  ;;  %vm3866_vm5 = vcmp.ge.f32.partialorder %v3842_v16, 0.0 }
 0x3f3   :  { %v3899_v10 = vsel %vm3851_vm6, %v3827_v46, %v3875_v56  ;;  %v3833_v26 = vadd.f32 %v11729_v47, %v3759_v23  ;;  %v11796_v42 = vpack.i.bf16 %v11787_v34, %v11784_v45  ;;  %v3832_v0 = vadd.f32 %v11729_v47, %v3757_v59 }
 0x3f4   :  { %v3923_v31 = vadd.f32 %v3899_v10, %v9845_v30  ;;  %v3885_v55 = vmul.f32 0.01, %v11803_v53  ;;  %v3931_v40 = vadd.f32 %v3907_v52, %v9832_v5  ;;  %vm3867_vm7 = vcmp.ge.f32.partialorder %v3843_v41, 0.0 }
 0x3f5   :  { %vm3857_vm9 = vcmp.ge.f32.partialorder %v3833_v26, 0.0  ;;  %v3881_v1 = vmul.f32 0.01, %v3833_v26  ;;  %9100 = vrot.lane.b32.xlu1 %v11796_v42, %s9571_s1  ;;  %v3763_v63 = vpop.f32.mrb[44].mxu1  ;;  %v3826_v6 = vadd.f32 %v11725_v17, %v3751_v22  ;;  %v3914_v50 = vsel %vm3866_vm5, %v3842_v16, %v3890_v21  ;;  %v13856_v21 = vld [vmem:[#allocation13_spill] sm:$0xff] }
 0x3f6   :  { %v3765_v14 = vpop.f32.mrb[45].mxu1  ;;  %v11824_v15 = vmul.f32 %v3923_v31, %v13853_v3  ;;  %v3891_v56 = vmul.f32 0.01, %v3843_v41  ;;  %v11832_v59 = vmul.f32 %v3937_v58, %v13851_v51  ;;  %v3880_v18 = vmul.f32 0.01, %v3832_v0 }
 0x3f7   :  { %v3905_v54 = vsel %vm3857_vm9, %v3833_v26, %v3881_v1  ;;  %v3839_v48 = vadd.f32 %v11735_v43, %v3765_v14  ;;  %v3908_v49 = vsel %vm3860_vm3, %v3836_v35, %v3884_v8  ;;  %v11841_v17 = vmul.f32 %v3931_v40, %v13851_v51  ;;  %v13854_v8 = vld [vmem:[#allocation7_spill] sm:$0xff] }
 0x3f8   :  { %v3929_v44 = vadd.f32 %v3905_v54, %v9848_v32  ;;  %vm3856_vm9 = vcmp.ge.f32.partialorder %v3832_v0, 0.0  ;;  %v3938_v10 = vadd.f32 %v3914_v50, %v9887_v20  ;;  %v3874_v26 = vmul.f32 0.01, %v3826_v6  ;;  %v13858_v40 = vld [vmem:[#allocation15_spill] sm:$0xff] }
 0x3f9   :  { %vm3863_vm6 = vcmp.ge.f32.partialorder %v3839_v48, 0.0  ;;  %v3887_v30 = vmul.f32 0.01, %v3839_v48  ;;  %v3769_v28 = vpop.f32.mrb[46].mxu1  ;;  %v3838_v16 = vadd.f32 %v11735_v43, %v3763_v63  ;;  %vm3850_vm5 = vcmp.ge.f32.partialorder %v3826_v6, 0.0 }
 0x3fa   :  { %v11827_v46 = vmul.f32 %v3929_v44, %v13853_v3  ;;  %v3771_v25 = vpop.f32.mrb[47].mxu1  ;;  %v3844_v29 = vadd.f32 %v11743_v61, %v3769_v28  ;;  %v11852_v1 = vpack.i.bf16 %v11832_v59, %v11841_v17  ;;  %v3904_v31 = vsel %vm3856_vm9, %v3832_v0, %v3880_v18  ;;  %v13857_v28 = vld [vmem:[#allocation14_spill] sm:$0xff] }
 0x3fb   :  { %v3911_v32 = vsel %vm3863_vm6, %v3839_v48, %v3887_v30  ;;  %v3845_v47 = vadd.f32 %v11743_v61, %v3771_v25  ;;  %v3915_v61 = vsel %vm3867_vm7, %v3843_v41, %v3891_v56  ;;  %v11859_v20 = vpack.i.bf16 %v11811_v7, %v11799_v2  ;;  %v13855_v41 = vld [vmem:[#allocation12_spill] sm:$0xff] }
 0x3fc   :  { %v11836_v5 = vpack.i.bf16 %v11827_v46, %v11824_v15  ;;  %v3935_v22 = vadd.f32 %v3911_v32, %v13772_v37  ;;  %v11855_v37 = vmul.f32 %v3927_v4, %v13854_v8  ;;  %v3892_v14 = vmul.f32 0.01, %v3844_v29  ;;  %v13860_v56 = vld [vmem:[#allocation16_spill] sm:$0xff] }
 0x3fd   :  { %vm3869_vm8 = vcmp.ge.f32.partialorder %v3845_v47, 0.0  ;;  %v3893_v23 = vmul.f32 0.01, %v3845_v47  ;;  %v3932_v43 = vadd.f32 %v3908_v49, %v9901_v60  ;;  %vm3868_vm3 = vcmp.ge.f32.partialorder %v3844_v29, 0.0 }
 0x3fe   :  { %9105 = vrot.lane.b32.xlu0 %v11836_v5, %s9571_s1  ;;  %v11863_v63 = vmul.f32 %v3935_v22, %v13853_v3  ;;  %v3909_v4 = vsel %vm3861_vm4, %v11803_v53, %v3885_v55  ;;  %v3939_v52 = vadd.f32 %v3915_v61, %v13855_v41  ;;  %v3898_v54 = vsel %vm3850_vm5, %v3826_v6, %v3874_v26  ;;  %v13861_v22 = vld [vmem:[#allocation17_spill] sm:$0xff] }
 0x3ff   :  { %v3917_v27 = vsel %vm3869_vm8, %v3845_v47, %v3893_v23  ;;  %v3886_v48 = vmul.f32 0.01, %v3838_v16  ;;  %v11875_v60 = vmul.f32 %v3938_v10, %v13852_v11  ;;  %v3928_v58 = vadd.f32 %v3904_v31, %v13856_v21  ;;  %v13859_v47 = vld [vmem:[#allocation11_spill] sm:$0xff] }
 0x400   :  { %v3941_v35 = vadd.f32 %v3917_v27, %v13773_v36  ;;  %vm3862_vm6 = vcmp.ge.f32.partialorder %v3838_v16, 0.0  ;;  %v11884_v0 = vmul.f32 %v11781_v57, %v13854_v8  ;;  %v3916_v30 = vsel %vm3868_vm3, %v3844_v29, %v3892_v14 }
 0x401   :  { %v11887_v53 = vmul.f32 %v3932_v43, %v13852_v11  ;;  %v3933_v55 = vadd.f32 %v3909_v4, %v13857_v28  ;;  %v3922_v25 = vadd.f32 %v3898_v54, %v13858_v40  ;;  %v3910_v6 = vsel %vm3862_vm6, %v3838_v16, %v3886_v48 }
 0x402   :  { %v11866_v36 = vmul.f32 %v3941_v35, %v13853_v3  ;;  %9110 = vrot.lane.b32.xlu0 %v11852_v1, %s9571_s1  ;;  %v11897_v32 = vpack.i.bf16 %v11855_v37, %v11884_v0  ;;  %v11900_v57 = vmul.f32 %v3939_v52, %v13854_v8  ;;  %v11903_v50 = vmul.f32 %v3928_v58, %v13859_v47 }
 0x403   :  { %v3940_v18 = vadd.f32 %v3916_v30, %v13860_v56  ;;  %v11908_v29 = vpack.i.bf16 %v11875_v60, %v11887_v53  ;;  %v11911_v23 = vmul.f32 %v3933_v55, %v13854_v8  ;;  %v11914_v49 = vmul.f32 %v3922_v25, %v13859_v47 }
 0x404   :  { %v11880_v44 = vpack.i.bf16 %v11866_v36, %v11863_v63  ;;  %v3934_v10 = vadd.f32 %v3910_v6, %v13861_v22 }
 0x405   :  { %v11922_v26 = vmul.f32 %v3940_v18, %v13859_v47  ;;  %v11926_v16 = vpack.i.bf16 %v11903_v50, %v11914_v49  ;;  %v11930_v27 = vpack.i.bf16 %v11900_v57, %v11911_v23 }
 0x406   :  { %9120 = vrot.lane.b32.xlu0 %v11859_v20, %s9571_s1  ;;  %9115 = vrot.lane.b32.xlu1 %v11880_v44, %s9571_s1  ;;  %v11933_v61 = vmul.f32 %v3934_v10, %v13859_v47 }
 0x408   :  { %v11941_v35 = vpack.i.bf16 %v11922_v26, %v11933_v61 }
 0x40a   :  { %9130 = vrot.lane.b32.xlu0 %v11908_v29, %s9571_s1  ;;  %9125 = vrot.lane.b32.xlu1 %v11897_v32, %s9571_s1 }
 0x40e   :  { %9140 = vrot.lane.b32.xlu0 %v11926_v16, %s9571_s1  ;;  %9135 = vrot.lane.b32.xlu1 %v11930_v27, %s9571_s1 }
 0x412   :  { %9150 = vrot.lane.b32.xlu0 %v11761_v24, %s9572_s24  ;;  %9145 = vrot.lane.b32.xlu1 %v11941_v35, %s9571_s1 }
 0x416   :  { %9160 = vrot.lane.b32.xlu0 %v11836_v5, %s9572_s24  ;;  %9155 = vrot.lane.b32.xlu1 %v11766_v19, %s9572_s24 }
 0x41a   :  { %9170 = vrot.lane.b32.xlu0 %v11852_v1, %s9572_s24  ;;  %9165 = vrot.lane.b32.xlu1 %v11796_v42, %s9572_s24 }
 0x41e   :  { %9180 = vrot.lane.b32.xlu0 %v11859_v20, %s9572_s24  ;;  %9175 = vrot.lane.b32.xlu1 %v11880_v44, %s9572_s24 }
 0x422   :  { %9190 = vrot.lane.b32.xlu0 %v11908_v29, %s9572_s24  ;;  %9185 = vrot.lane.b32.xlu1 %v11897_v32, %s9572_s24 }
 0x426   :  { %9200 = vrot.lane.b32.xlu0 %v11926_v16, %s9572_s24  ;;  %9195 = vrot.lane.b32.xlu1 %v11930_v27, %s9572_s24 }
 0x42a   :  { %9210 = vrot.lane.b32.xlu0 %v11761_v24, %s9573_s25  ;;  %9205 = vrot.lane.b32.xlu1 %v11941_v35, %s9572_s24 }
 0x42e   :  { %9220 = vrot.lane.b32.xlu0 %v11836_v5, %s9573_s25  ;;  %9215 = vrot.lane.b32.xlu1 %v11766_v19, %s9573_s25 }
 0x432   :  { %9230 = vrot.lane.b32.xlu0 %v11852_v1, %s9573_s25  ;;  %9225 = vrot.lane.b32.xlu1 %v11796_v42, %s9573_s25 }
 0x436   :  { %9240 = vrot.lane.b32.xlu0 %v11859_v20, %s9573_s25  ;;  %9235 = vrot.lane.b32.xlu1 %v11880_v44, %s9573_s25 }
 0x43a   :  { %9250 = vrot.lane.b32.xlu0 %v11908_v29, %s9573_s25  ;;  %9245 = vrot.lane.b32.xlu1 %v11897_v32, %s9573_s25 }
 0x43e   :  { %9260 = vrot.lane.b32.xlu0 %v11926_v16, %s9573_s25  ;;  %9255 = vrot.lane.b32.xlu1 %v11930_v27, %s9573_s25 }
 0x442   :  { %9270 = vrot.lane.b32.xlu0 %v11761_v24, %s9574_s26  ;;  %9265 = vrot.lane.b32.xlu1 %v11941_v35, %s9573_s25 }
 0x446   :  { %9280 = vrot.lane.b32.xlu0 %v11836_v5, %s9574_s26  ;;  %9275 = vrot.lane.b32.xlu1 %v11766_v19, %s9574_s26 }
 0x44a   :  { %9290 = vrot.lane.b32.xlu0 %v11852_v1, %s9574_s26  ;;  %9285 = vrot.lane.b32.xlu1 %v11796_v42, %s9574_s26 }
 0x44e   :  { %9300 = vrot.lane.b32.xlu0 %v11859_v20, %s9574_s26  ;;  %9295 = vrot.lane.b32.xlu1 %v11880_v44, %s9574_s26 }
 0x452   :  { %9310 = vrot.lane.b32.xlu0 %v11908_v29, %s9574_s26  ;;  %9305 = vrot.lane.b32.xlu1 %v11897_v32, %s9574_s26 }
 0x456   :  { %9320 = vrot.lane.b32.xlu0 %v11926_v16, %s9574_s26  ;;  %9315 = vrot.lane.b32.xlu1 %v11930_v27, %s9574_s26 }
 0x45a   :  { %9330 = vrot.lane.b32.xlu0 %v11766_v19, %s9575_s27  ;;  %9325 = vrot.lane.b32.xlu1 %v11941_v35, %s9574_s26 }
 0x45e   :  { %9340 = vrot.lane.b32.xlu0 %v11761_v24, %s9575_s27  ;;  %9335 = vrot.lane.b32.xlu1 %v11859_v20, %s9575_s27 }
 0x45f   :  { %v9091_v31 = vpop.permute.xlu0 %9090 }
 0x460   :  { %v9093_v14 = vunpack.i.h.bf16 %v9091_v31  ;;  %v9092_v43 = vunpack.i.l.bf16 %v9091_v31  ;;  %v9096_v4 = vpop.permute.xlu1 %9095 }
 0x461   :  { %v9098_v41 = vunpack.i.h.bf16 %v9096_v4  ;;  %v9097_v52 = vunpack.i.l.bf16 %v9096_v4 }
 0x462   :  { %9350 = vrot.lane.b32.xlu0 %v11908_v29, %s9575_s27  ;;  %9345 = vrot.lane.b32.xlu1 %v11852_v1, %s9575_s27 }
 0x463   :  { %v4106_v54 = vsel %vm616_vm10, %v9092_v43, %v9097_v52  ;;  %v4107_v48 = vsel %vm616_vm10, %v9093_v14, %v9098_v41 }
 0x464   :  { %v7993_v21 = vpack.c.bf16 %v4107_v48, %v4106_v54 }
 0x466   :  { %7994 = vmatprep.subr.bf16.mxu0 %v7993_v21  ;;  %9360 = vrot.lane.b32.xlu0 %v11897_v32, %s9575_s27 }
 0x467   :  { %9355 = vrot.lane.b32.xlu1 %v11796_v42, %s9575_s27  ;;  %v9101_v55 = vpop.permute.xlu1 %9100 }
 0x468   :  { %v9103_v18 = vunpack.i.h.bf16 %v9101_v55  ;;  %v9102_v22 = vunpack.i.l.bf16 %v9101_v55 }
 0x46a   :  { %9370 = vrot.lane.b32.xlu0 %v11930_v27, %s9575_s27 }
 0x46b   :  { %9365 = vrot.lane.b32.xlu1 %v11926_v16, %s9575_s27 }
 0x46e   :  { %9380 = vrot.lane.b32.xlu0 %v11836_v5, %s9575_s27 }
 0x46f   :  { %9375 = vrot.lane.b32.xlu1 %v11941_v35, %s9575_s27 }
 0x470   :  { %v12043_v58 = vpop.permute.xlu0 %9105 }
 0x471   :  { %v13652_v30 = vunpack.i.h.bf16 %v12043_v58  ;;  %v13653_v28 = vunpack.i.l.bf16 %v12043_v58 }
 0x472   :  { %9390 = vrot.lane.b32.xlu0 %v11766_v19, %s9576_s28 }
 0x473   :  { %v4111_v40 = vsel %vm616_vm10, %v13652_v30, %v9093_v14  ;;  %v4110_v25 = vsel %vm616_vm10, %v13653_v28, %v9092_v43  ;;  %9385 = vrot.lane.b32.xlu1 %v11880_v44, %s9575_s27 }
 0x474   :  { %v7995_v6 = vpack.c.bf16 %v4111_v40, %v4110_v25  ;;  %v9111_v56 = vpop.permute.xlu0 %9110 }
 0x475   :  { %v9113_v10 = vunpack.i.h.bf16 %v9111_v56  ;;  %v9112_v31 = vunpack.i.l.bf16 %v9111_v56 }
 0x476   :  { %9400 = vrot.lane.b32.xlu0 %v11761_v24, %s9576_s28  ;;  %7996 = vmatpush1.bf16.msra.mxu0 %v7995_v6 }
 0x477   :  { %9395 = vrot.lane.b32.xlu1 %v11859_v20, %s9576_s28  ;;  %v4108_v14 = vsel %vm616_vm10, %v9102_v22, %v9112_v31  ;;  %v4109_v43 = vsel %vm616_vm10, %v9103_v18, %v9113_v10 }
 0x478   :  { %v9121_v4 = vpop.permute.xlu0 %9120  ;;  %v12067_v54 = vpop.permute.xlu1 %9115  ;;  %v7997_v48 = vpack.c.bf16 %v4109_v43, %v4108_v14 }
 0x479   :  { %v9123_v21 = vunpack.i.h.bf16 %v9121_v4  ;;  %v9122_v55 = vunpack.i.l.bf16 %v9121_v4  ;;  %v13655_v40 = vunpack.i.h.bf16 %v12067_v54  ;;  %v13656_v25 = vunpack.i.l.bf16 %v12067_v54 }
 0x47a   :  { %9410 = vrot.lane.b32.xlu0 %v11908_v29, %s9576_s28  ;;  %7998 = vmatprep.subr.bf16.mxu0 %v7997_v48 }
 0x47b   :  { %v4113_v6 = vsel %vm616_vm10, %v13655_v40, %v9103_v18  ;;  %v4112_v56 = vsel %vm616_vm10, %v13656_v25, %v9102_v22  ;;  %9405 = vrot.lane.b32.xlu1 %v11852_v1, %s9576_s28  ;;  %v4103_v30 = vsel %vm616_vm10, %v9098_v41, %v9123_v21  ;;  %v4102_v48 = vsel %vm616_vm10, %v9097_v52, %v9122_v55  ;;  %v12092_v18 = vld [vmem:[%s13538_s6 + $0x20] sm:$0xff] }
 0x47c   :  { %v7999_v14 = vpack.c.bf16 %v4113_v6, %v4112_v56  ;;  %v9131_v43 = vpop.permute.xlu0 %9130  ;;  %v9126_v4 = vpop.permute.xlu1 %9125  ;;  %v8003_v22 = vpack.c.bf16 %v4103_v30, %v4102_v48  ;;  %v12107_v30 = vld [vmem:[%s13538_s6 + $0x28] sm:$0xff] }
 0x47d   :  { %v9128_v28 = vunpack.i.h.bf16 %v9126_v4  ;;  %v9127_v3 = vunpack.i.l.bf16 %v9126_v4  ;;  %v9133_v6 = vunpack.i.h.bf16 %v9131_v43  ;;  %v9132_v56 = vunpack.i.l.bf16 %v9131_v43 }
 0x47e   :  { %9420 = vrot.lane.b32.xlu0 %v11897_v32, %s9576_s28  ;;  %8000 = vmatpush1.bf16.msra.mxu0 %v7999_v14 }
 0x47f   :  { %9415 = vrot.lane.b32.xlu1 %v11796_v42, %s9576_s28  ;;  %v4098_v41 = vsel %vm616_vm10, %v9122_v55, %v9127_v3  ;;  %v4099_v52 = vsel %vm616_vm10, %v9123_v21, %v9128_v28  ;;  %v4104_v55 = vsel %vm616_vm10, %v9112_v31, %v9132_v56 }
 0x480   :  { %v9141_v4 = vpop.permute.xlu0 %9140  ;;  %v9136_v40 = vpop.permute.xlu1 %9135  ;;  %v8001_v14 = vpack.c.bf16 %v4099_v52, %v4098_v41  ;;  %v13862_v41 = vunpack.i.l.bf16 %v12043_v58 }
 0x481   :  { %v9143_v25 = vunpack.i.h.bf16 %v9141_v4  ;;  %v9142_v47 = vunpack.i.l.bf16 %v9141_v4  ;;  %v9138_v8 = vunpack.i.h.bf16 %v9136_v40  ;;  %v9137_v11 = vunpack.i.l.bf16 %v9136_v40  ;;  %7617 = vmatmul.mubr.msk.f32.vlgmr.msra.gmra.mrb[8].mxu0 %vm82_vm0, %v12092_v18 }
 0x482   :  { %9430 = vrot.lane.b32.xlu0 %v11930_v27, %s9576_s28  ;;  %8002 = vmatprep.subr.bf16.mxu0 %v8001_v14  ;;  %v4105_v40 = vsel %vm616_vm10, %v9113_v10, %v9133_v6  ;;  %v12151_v14 = vld [vmem:[%s13538_s6 + $0x38] sm:$0xff] }
 0x483   :  { %9425 = vrot.lane.b32.xlu1 %v11926_v16, %s9576_s28  ;;  %8004 = vmatpush1.bf16.msra.mxu0 %v8003_v22  ;;  %v4100_v21 = vsel %vm616_vm10, %v9132_v56, %v9137_v11  ;;  %v4101_v43 = vsel %vm616_vm10, %v9133_v6, %v9138_v8  ;;  %v4090_v52 = vsel %vm616_vm10, %v9142_v47, %v13862_v41  ;;  %v13863_v22 = vunpack.i.h.bf16 %v12043_v58  ;;  %v12138_v56 = vld [vmem:[%s13538_s6 + $0x30] sm:$0xff] }
 0x484   :  { %4201 = vmatprep.mubr.f32.mxu0 %v13681_v62  ;;  %v9146_v48 = vpop.permute.xlu1 %9145  ;;  %v8005_v10 = vpack.c.bf16 %v4101_v43, %v4100_v21  ;;  %v8007_v6 = vpack.c.bf16 %v4105_v40, %v4104_v55  ;;  %v9151_v40 = vpop.permute.xlu0 %9150  ;;  %v4094_v43 = vsel %vm616_vm10, %v9127_v3, %v9142_v47  ;;  %v4095_v41 = vsel %vm616_vm10, %v9128_v28, %v9143_v25 }
 0x485   :  { %7618 = vmatmul.mubr.msk.f32.gmra.mrb[10].mxu0 %vm82_vm0, %v12107_v30  ;;  %v4091_v31 = vsel %vm616_vm10, %v9143_v25, %v13863_v22  ;;  %v9148_v21 = vunpack.i.h.bf16 %v9146_v48  ;;  %v9147_v55 = vunpack.i.l.bf16 %v9146_v48  ;;  %v13864_v3 = vunpack.i.l.bf16 %v12067_v54 }
 0x486   :  { %9440 = vrot.lane.b32.xlu0 %v11836_v5, %s9576_s28  ;;  %4207 = vmatprep.mubr.f32.mxu0 %v13681_v62  ;;  %v8009_v58 = vpack.c.bf16 %v4091_v31, %v4090_v52  ;;  %v13865_v28 = vunpack.i.h.bf16 %v12067_v54  ;;  %v8011_v22 = vpack.c.bf16 %v4095_v41, %v4094_v43 }
 0x487   :  { %9435 = vrot.lane.b32.xlu1 %v11941_v35, %s9576_s28  ;;  %8006 = vmatprep.subr.bf16.mxu0 %v8005_v10  ;;  %v4092_v47 = vsel %vm616_vm10, %v9147_v55, %v13864_v3  ;;  %v9153_v10 = vunpack.i.h.bf16 %v9151_v40  ;;  %v4097_v48 = vsel %vm616_vm10, %v9138_v8, %v9148_v21 }
 0x488   :  { %8008 = vmatpush1.bf16.msra.mxu0 %v8007_v6  ;;  %v12142_v4 = vpop.permute.xlu1 %9155  ;;  %v4093_v25 = vsel %vm616_vm10, %v9148_v21, %v13865_v28  ;;  %v9152_v6 = vunpack.i.l.bf16 %v9151_v40  ;;  %v12181_v52 = vpop.permute.xlu0 %9160 }
 0x489   :  { %8010 = vmatprep.subr.bf16.mxu0 %v8009_v58  ;;  %7619 = vmatmul.mubr.msk.f32.gmra.mrb[12].mxu0 %vm82_vm0, %v12138_v56  ;;  %v4096_v58 = vsel %vm616_vm10, %v9137_v11, %v9147_v55  ;;  %v8013_v54 = vpack.c.bf16 %v4093_v25, %v4092_v47  ;;  %v13866_v40 = vunpack.i.l.bf16 %v12142_v4  ;;  %v13867_v8 = vunpack.i.h.bf16 %v12142_v4 }
 0x48a   :  { %9450 = vrot.lane.b32.xlu0 %v11766_v19, %s9577_s12  ;;  %4213 = vmatprep.mubr.f32.mxu0 %v13681_v62  ;;  %v8015_v55 = vpack.c.bf16 %v4097_v48, %v4096_v58  ;;  %v13660_v48 = vunpack.i.h.bf16 %v12181_v52  ;;  %v13661_v47 = vunpack.i.l.bf16 %v12181_v52 }
 0x48b   :  { %9445 = vrot.lane.b32.xlu1 %v11880_v44, %s9576_s28  ;;  %v4030_v11 = vsel %vm539_vm11, %v9152_v6, %v13866_v40  ;;  %v4031_v21 = vsel %vm539_vm11, %v9153_v10, %v13867_v8 }
 0x48c   :  { %v9166_v31 = vpop.permute.xlu1 %9165  ;;  %v8017_v41 = vpack.c.bf16 %v4031_v21, %v4030_v11  ;;  %v12205_v3 = vpop.permute.xlu0 %9170  ;;  %v4034_v40 = vsel %vm539_vm11, %v13661_v47, %v9152_v6  ;;  %v4035_v11 = vsel %vm539_vm11, %v13660_v48, %v9153_v10 }
 0x48d   :  { %7620 = vmatmul.mubr.msk.f32.gmra.mrb[14].mxu0 %vm82_vm0, %v12151_v14  ;;  %v9173_v28 = vunpack.i.h.bf16 %v12205_v3  ;;  %v13663_v25 = vunpack.i.l.bf16 %v12205_v3  ;;  %v9167_v58 = vunpack.i.l.bf16 %v9166_v31  ;;  %v8019_v48 = vpack.c.bf16 %v4035_v11, %v4034_v40 }
 0x48e   :  { %9460 = vrot.lane.b32.xlu0 %v11761_v24, %s9577_s12  ;;  %4284 = vmatprep.mubr.f32.mxu0 %v13681_v62 }
 0x48f   :  { %9455 = vrot.lane.b32.xlu1 %v11859_v20, %s9577_s12  ;;  %v4032_v10 = vsel %vm539_vm11, %v9167_v58, %v13663_v25 }
 0x490   :  { %v12198_v43 = vpop.permute.xlu1 %9175  ;;  %v9181_v21 = vpop.permute.xlu0 %9180 }
 0x491   :  { %7621 = vmatmul.mubr.msk.f32.vlgmr.msra.gmra.mrb[16].mxu0 %vm82_vm0, %v12092_v18  ;;  %v9177_v8 = vunpack.i.l.bf16 %v12198_v43  ;;  %v9183_v47 = vunpack.i.h.bf16 %v9181_v21 }
 0x492   :  { %8012 = vmatpush1.bf16.msra.mxu0 %v8011_v22  ;;  %9470 = vrot.lane.b32.xlu0 %v11908_v29, %s9577_s12  ;;  %v9168_v22 = vunpack.i.h.bf16 %v9166_v31  ;;  %v9178_v31 = vunpack.i.h.bf16 %v12198_v43 }
 0x493   :  { %9465 = vrot.lane.b32.xlu1 %v11852_v1, %s9577_s12  ;;  %8014 = vmatprep.subr.bf16.mxu0 %v8013_v54 }
 0x494   :  { %4290 = vmatprep.mubr.f32.mxu0 %v13681_v62  ;;  %v12218_v54 = vpop.permute.xlu1 %9185  ;;  %v4033_v6 = vsel %vm539_vm11, %v9168_v22, %v9173_v28  ;;  %v4037_v51 = vsel %vm539_vm11, %v9178_v31, %v9168_v22  ;;  %v9191_v11 = vpop.permute.xlu0 %9190 }
 0x495   :  { %7622 = vmatmul.mubr.msk.f32.gmra.mrb[18].mxu0 %vm82_vm0, %v12107_v30  ;;  %v8021_v25 = vpack.c.bf16 %v4033_v6, %v4032_v10  ;;  %v13869_v22 = vunpack.i.h.bf16 %v12218_v54  ;;  %v9193_v10 = vunpack.i.h.bf16 %v9191_v11  ;;  %v9192_v6 = vunpack.i.l.bf16 %v9191_v11 }
 0x496   :  { %8016 = vmatpush1.bf16.msra.mxu0 %v8015_v55  ;;  %4296 = vmatprep.mubr.f32.mxu0 %v13681_v62  ;;  %v9182_v55 = vunpack.i.l.bf16 %v9181_v21 }
 0x497   :  { %9480 = vrot.lane.b32.xlu0 %v11897_v32, %s9577_s12  ;;  %9475 = vrot.lane.b32.xlu1 %v11796_v42, %s9577_s12 }
 0x498   :  { %8018 = vmatprep.subr.bf16.mxu0 %v8017_v41  ;;  %v4036_v41 = vsel %vm539_vm11, %v9177_v8, %v9167_v58  ;;  %v13868_v58 = vunpack.i.l.bf16 %v12218_v54  ;;  %v12277_v21 = vpop.permute.xlu1 %9195 }
 0x499   :  { %7623 = vmatmul.mubr.msk.f32.gmra.mrb[20].mxu0 %vm82_vm0, %v12138_v56 }
 0x49a   :  { %4302 = vmatprep.mubr.f32.mxu0 %v13681_v62  ;;  %v4022_v40 = vsel %vm539_vm11, %v9182_v55, %v13868_v58 }
 0x49b   :  { %9490 = vrot.lane.b32.xlu0 %v11930_v27, %s9577_s12  ;;  %9485 = vrot.lane.b32.xlu1 %v11926_v16, %s9577_s12 }
 0x49d   :  { %7624 = vmatmul.mubr.msk.f32.gmra.mrb[22].mxu0 %vm82_vm0, %v12151_v14 }
 0x49e   :  { %4373 = vmatprep.mubr.f32.mxu0 %v13681_v62 }
 0x49f   :  { %9500 = vrot.lane.b32.xlu0 %v11836_v5, %s9577_s12  ;;  %9495 = vrot.lane.b32.xlu1 %v11941_v35, %s9577_s12 }
 0x4a1   :  { %7625 = vmatmul.mubr.msk.f32.vlgmr.msra.gmra.mrb[24].mxu0 %vm82_vm0, %v12092_v18  ;;  %v4023_v18 = vsel %vm539_vm11, %v9183_v47, %v13869_v22  ;;  %v12330_v22 = vld [vmem:[%s13538_s6 + $0x8] sm:$0xff] }
 0x4a2   :  { %8020 = vmatpush1.bf16.msra.mxu0 %v8019_v48  ;;  %4379 = vmatprep.mubr.f32.mxu0 %v13681_v62  ;;  %v8023_v48 = vpack.c.bf16 %v4037_v51, %v4036_v41  ;;  %v9198_v51 = vunpack.i.h.bf16 %v12277_v21 }
 0x4a3   :  { %9510 = vrot.lane.b32.xlu0 %v11766_v19, %s9578_s15  ;;  %9505 = vrot.lane.b32.xlu1 %v11880_v44, %s9577_s12  ;;  %v8025_v19 = vpack.c.bf16 %v4023_v18, %v4022_v40  ;;  %v9206_v18 = vpop.permute.xlu1 %9205 }
 0x4a4   :  { %8022 = vmatprep.subr.bf16.mxu0 %v8021_v25 }
 0x4a5   :  { %7626 = vmatmul.mubr.msk.f32.gmra.mrb[26].mxu0 %vm82_vm0, %v12107_v30  ;;  %v9197_v30 = vunpack.i.l.bf16 %v12277_v21 }
 0x4a6   :  { %8024 = vmatpush1.bf16.msra.mxu0 %v8023_v48  ;;  %4385 = vmatprep.mubr.f32.mxu0 %v13681_v62  ;;  %v13874_v48 = vunpack.i.h.bf16 %v12181_v52 }
 0x4a7   :  { %9520 = vrot.lane.b32.xlu0 %v11761_v24, %s9578_s15  ;;  %9515 = vrot.lane.b32.xlu1 %v11859_v20, %s9578_s15  ;;  %v9201_v24 = vpop.permute.xlu0 %9200  ;;  %v13870_v20 = vunpack.i.l.bf16 %v12142_v4 }
 0x4a8   :  { %8026 = vmatprep.subr.bf16.mxu0 %v8025_v19  ;;  %v9202_v58 = vunpack.i.l.bf16 %v9201_v24 }
 0x4a9   :  { %7627 = vmatmul.mubr.msk.f32.gmra.mrb[28].mxu0 %vm82_vm0, %v12138_v56  ;;  %v4026_v25 = vsel %vm539_vm11, %v13870_v20, %v9182_v55  ;;  %v13871_v56 = vunpack.i.h.bf16 %v12142_v4  ;;  %v4024_v4 = vsel %vm539_vm11, %v9192_v6, %v9197_v30  ;;  %v13872_v55 = vunpack.i.l.bf16 %v12205_v3 }
 0x4aa   :  { %4391 = vmatprep.mubr.f32.mxu0 %v13681_v62  ;;  %v13873_v3 = vunpack.i.l.bf16 %v12181_v52  ;;  %v7265_v52 = vld [vmem:[%s13539_s7] sm:$0xff]  ;;  %v9208_v20 = vunpack.i.h.bf16 %v9206_v18 }
 0x4ab   :  { %9530 = vrot.lane.b32.xlu0 %v11908_v29, %s9578_s15  ;;  %9525 = vrot.lane.b32.xlu1 %v11852_v1, %s9578_s15  ;;  %v4027_v41 = vsel %vm539_vm11, %v13871_v56, %v9183_v47  ;;  %v12302_v1 = vld [vmem:[%s13538_s6] sm:$0xff]  ;;  %v9203_v29 = vunpack.i.h.bf16 %v9201_v24  ;;  %v4028_v40 = vsel %vm539_vm11, %v13872_v55, %v9192_v6  ;;  %v12359_v24 = vpop.permute.xlu1 %9215  ;;  %v7267_v56 = vld [vmem:[%s13539_s7 + $0x10] sm:$0xff] }
 0x4ac   :  { %v8027_v47 = vpack.c.bf16 %v4027_v41, %v4026_v25  ;;  %v9207_v25 = vunpack.i.l.bf16 %v9206_v18  ;;  %v7266_v41 = vld [vmem:[%s13539_s7 + $0x8] sm:$0xff]  ;;  %v4021_v43 = vsel %vm539_vm11, %v9198_v51, %v9208_v20 }
 0x4ad   :  { %7628 = vmatmul.mubr.msk.f32.gmra.mrb[30].mxu0 %vm82_vm0, %v12151_v14  ;;  %v4025_v14 = vsel %vm539_vm11, %v9193_v10, %v9198_v51  ;;  %v4015_v11 = vsel %vm539_vm11, %v9203_v29, %v13874_v48 }
 0x4ae   :  { %4474 = vmatprep.mubr.f32.mxu0 %v13681_v62  ;;  %v4016_v55 = vsel %vm539_vm11, %v9207_v25, %v9177_v8  ;;  %v4020_v8 = vsel %vm539_vm11, %v9197_v30, %v9207_v25 }
 0x4af   :  { %9540 = vrot.lane.b32.xlu0 %v11897_v32, %s9578_s15  ;;  %9535 = vrot.lane.b32.xlu1 %v11796_v42, %s9578_s15  ;;  %v4029_v42 = vsel %vm539_vm11, %v9173_v28, %v9193_v10  ;;  %v8029_v32 = vpack.c.bf16 %v4025_v14, %v4024_v4  ;;  %v4014_v28 = vsel %vm539_vm11, %v9202_v58, %v13873_v3  ;;  %v13875_v10 = vunpack.i.l.bf16 %v12218_v54 }
 0x4b0   :  { %v8031_v19 = vpack.c.bf16 %v4029_v42, %v4028_v40  ;;  %v13876_v4 = vunpack.i.h.bf16 %v12218_v54  ;;  %v4017_v54 = vsel %vm539_vm11, %v9208_v20, %v9178_v31  ;;  %v8039_v51 = vpack.c.bf16 %v4021_v43, %v4020_v8 }
 0x4b1   :  { %7629 = vmatmul.mubr.msk.f32.vlgmr.msra.gmra.mrb[8].mxu0 %vm82_vm0, %v12302_v1  ;;  %v4018_v6 = vsel %vm539_vm11, %v13875_v10, %v9202_v58  ;;  %v8037_v18 = vpack.c.bf16 %v4017_v54, %v4016_v55 }
 0x4b2   :  { %8028 = vmatpush1.bf16.msra.mxu0 %v8027_v47  ;;  %4480 = vmatprep.mubr.f32.mxu0 %v13681_v62  ;;  %v4019_v14 = vsel %vm539_vm11, %v13876_v4, %v9203_v29  ;;  %v9217_v47 = vunpack.i.l.bf16 %v12359_v24  ;;  %v9226_v29 = vpop.permute.xlu1 %9225 }
 0x4b3   :  { %9550 = vrot.lane.b32.xlu0 %v11930_v27, %s9578_s15  ;;  %9545 = vrot.lane.b32.xlu1 %v11926_v16, %s9578_s15  ;;  %v8033_v27 = vpack.c.bf16 %v4015_v11, %v4014_v28  ;;  %v12350_v16 = vld [vmem:[%s13538_s6 + $0x10] sm:$0xff]  ;;  %v8035_v58 = vpack.c.bf16 %v4019_v14, %v4018_v6  ;;  %v9228_v20 = vunpack.i.h.bf16 %v9226_v29  ;;  %v9227_v25 = vunpack.i.l.bf16 %v9226_v29 }
 0x4b4   :  { %8030 = vmatprep.subr.bf16.mxu0 %v8029_v32  ;;  %v7268_v32 = vld [vmem:[%s13539_s7 + $0x18] sm:$0xff] }
 0x4b5   :  { %7630 = vmatmul.mubr.msk.f32.gmra.mrb[10].mxu0 %vm82_vm0, %v12330_v22 }
 0x4b6   :  { %8032 = vmatpush1.bf16.msra.mxu0 %v8031_v19  ;;  %4486 = vmatprep.mubr.f32.mxu0 %v13681_v62  ;;  %v12422_v30 = vpop.permute.xlu1 %9235 }
 0x4b7   :  { %9560 = vrot.lane.b32.xlu0 %v11836_v5, %s9578_s15  ;;  %9555 = vrot.lane.b32.xlu1 %v11941_v35, %s9578_s15  ;;  %v12367_v5 = vld [vmem:[%s13538_s6 + $0x18] sm:$0xff]  ;;  %v9211_v35 = vpop.permute.xlu0 %9210  ;;  %v9238_v6 = vunpack.i.h.bf16 %v12422_v30  ;;  %v9237_v4 = vunpack.i.l.bf16 %v12422_v30 }
 0x4b8   :  { %8034 = vmatprep.subr.bf16.mxu0 %v8033_v27  ;;  %v9213_v40 = vunpack.i.h.bf16 %v9211_v35  ;;  %v9212_v42 = vunpack.i.l.bf16 %v9211_v35 }
 0x4b9   :  { %7631 = vmatmul.mubr.msk.f32.gmra.mrb[12].mxu0 %vm82_vm0, %v12350_v16  ;;  %v4748_v8 = vsel %vm1252_vm12, %v9238_v6, %v9228_v20 }
 0x4ba   :  { %4492 = vmatprep.mubr.f32.mxu0 %v13681_v62  ;;  %v4741_v3 = vsel %vm1252_vm12, %v9212_v42, %v9217_v47  ;;  %v12432_v35 = vpop.permute.xlu1 %9245 }
 0x4bb   :  { %7271 = vperm.xlu0 %8607, %v7265_v52   ;;  %9565 = vrot.lane.b32.xlu1 %v11880_v44, %s9578_s15  ;;  %v9218_v44 = vunpack.i.h.bf16 %v12359_v24  ;;  %v12409_v31 = vpop.permute.xlu0 %9220  ;;  %v9248_v14 = vunpack.i.h.bf16 %v12432_v35  ;;  %v9247_v55 = vunpack.i.l.bf16 %v12432_v35 }
 0x4bc   :  { %v9223_v11 = vunpack.i.h.bf16 %v12409_v31  ;;  %v9222_v19 = vunpack.i.l.bf16 %v12409_v31 }
 0x4bd   :  { %7632 = vmatmul.mubr.msk.f32.gmra.mrb[14].mxu0 %vm82_vm0, %v12367_v5  ;;  %v4742_v21 = vsel %vm1252_vm12, %v9213_v40, %v9218_v44 }
 0x4be   :  { %4563 = vmatprep.mubr.f32.mxu0 %v13681_v62  ;;  %v8041_v28 = vpack.c.bf16 %v4742_v21, %v4741_v3 }
 0x4bf   :  { %7281 = vperm.xlu0 %8607, %v7267_v56   ;;  %7276 = vperm.xlu1 %8608, %v7266_v41   ;;  %v9231_v48 = vpop.permute.xlu0 %9230  ;;  %v4745_v56 = vsel %vm1252_vm12, %v9222_v19, %v9212_v42  ;;  %v4746_v41 = vsel %vm1252_vm12, %v9223_v11, %v9213_v40 }
 0x4c0   :  { %v9233_v27 = vunpack.i.h.bf16 %v9231_v48  ;;  %v9232_v52 = vunpack.i.l.bf16 %v9231_v48 }
 0x4c1   :  { %7633 = vmatmul.mubr.msk.f32.vlgmr.msra.gmra.mrb[16].mxu0 %vm82_vm0, %v12302_v1 }
 0x4c2   :  { %8036 = vmatpush1.bf16.msra.mxu0 %v8035_v58  ;;  %4569 = vmatprep.mubr.f32.mxu0 %v13681_v62  ;;  %v4743_v54 = vsel %vm1252_vm12, %v9227_v25, %v9232_v52  ;;  %v4744_v29 = vsel %vm1252_vm12, %v9228_v20, %v9233_v27  ;;  %v8043_v58 = vpack.c.bf16 %v4746_v41, %v4745_v56 }
 0x4c3   :  { %7286 = vperm.xlu1 %8608, %v7268_v32   ;;  %8038 = vmatprep.subr.bf16.mxu0 %v8037_v18  ;;  %v9241_v10 = vpop.permute.xlu0 %9240  ;;  %v4747_v32 = vsel %vm1252_vm12, %v9237_v4, %v9227_v25  ;;  %v8045_v43 = vpack.c.bf16 %v4744_v29, %v4743_v54  ;;  %v12492_v29 = vld [vmem:[%s13538_s6 + $0x40] sm:$0xff] }
 0x4c4   :  { %v9243_v40 = vunpack.i.h.bf16 %v9241_v10  ;;  %v9242_v42 = vunpack.i.l.bf16 %v9241_v10  ;;  %v8047_v21 = vpack.c.bf16 %v4748_v8, %v4747_v32 }
 0x4c5   :  { %7634 = vmatmul.mubr.msk.f32.gmra.mrb[18].mxu0 %vm82_vm0, %v12330_v22 }
 0x4c6   :  { %8040 = vmatpush1.bf16.msra.mxu0 %v8039_v51  ;;  %4575 = vmatprep.mubr.f32.mxu0 %v13681_v62  ;;  %v4733_v18 = vsel %vm1252_vm12, %v9242_v42, %v9247_v55  ;;  %v4734_v3 = vsel %vm1252_vm12, %v9243_v40, %v9248_v14  ;;  %v4738_v10 = vsel %vm1252_vm12, %v9218_v44, %v9243_v40 }
 0x4c7   :  { %8042 = vmatprep.subr.bf16.mxu0 %v8041_v28  ;;  %v9251_v51 = vpop.permute.xlu0 %9250  ;;  %v9256_v28 = vpop.permute.xlu1 %9255 }
 0x4c8   :  { %v9258_v48 = vunpack.i.h.bf16 %v9256_v28  ;;  %v9257_v20 = vunpack.i.l.bf16 %v9256_v28  ;;  %v9253_v56 = vunpack.i.h.bf16 %v9251_v51  ;;  %v9252_v41 = vunpack.i.l.bf16 %v9251_v51 }
 0x4c9   :  { %7635 = vmatmul.mubr.msk.f32.gmra.mrb[20].mxu0 %vm82_vm0, %v12350_v16 }
 0x4ca   :  { %4581 = vmatprep.mubr.f32.mxu0 %v13681_v62  ;;  %v4736_v24 = vsel %vm1252_vm12, %v9253_v56, %v9258_v48  ;;  %v4739_v44 = vsel %vm1252_vm12, %v9232_v52, %v9252_v41 }
 0x4cb   :  { %v9261_v25 = vpop.permute.xlu0 %9260  ;;  %v9266_v32 = vpop.permute.xlu1 %9265 }
 0x4cc   :  { %v9262_v54 = vunpack.i.l.bf16 %v9261_v25 }
 0x4cd   :  { %7636 = vmatmul.mubr.msk.f32.gmra.mrb[22].mxu0 %vm82_vm0, %v12367_v5 }
 0x4ce   :  { %4652 = vmatprep.mubr.f32.mxu0 %v13681_v62  ;;  %v4725_v52 = vsel %vm1252_vm12, %v9262_v54, %v9222_v19  ;;  %v9267_v19 = vunpack.i.l.bf16 %v9266_v32  ;;  %v4729_v51 = vsel %vm1252_vm12, %v9247_v55, %v9262_v54 }
 0x4cf   :  { %v12526_v31 = vpop.permute.xlu1 %9275 }
 0x4d0   :  { %v9278_v28 = vunpack.i.h.bf16 %v12526_v31 }
 0x4d1   :  { %7637 = vmatmul.mubr.msk.f32.vlgmr.msra.gmra.mrb[24].mxu0 %vm82_vm0, %v12302_v1  ;;  %v8049_v1 = vpack.c.bf16 %v4734_v3, %v4733_v18  ;;  %v12524_v18 = vld [vmem:[%s13538_s6 + $0x50] sm:$0xff]  ;;  %v12534_v3 = vld [vmem:[%s13538_s6 + $0x58] sm:$0xff] }
 0x4d2   :  { %8044 = vmatpush1.bf16.msra.mxu0 %v8043_v58  ;;  %4658 = vmatprep.mubr.f32.mxu0 %v13681_v62 }
 0x4d3   :  { %8046 = vmatprep.subr.bf16.mxu0 %v8045_v43 }
 0x4d5   :  { %7638 = vmatmul.mubr.msk.f32.gmra.mrb[26].mxu0 %vm82_vm0, %v12330_v22  ;;  %v4737_v22 = vsel %vm1252_vm12, %v9217_v47, %v9242_v42  ;;  %v4735_v47 = vsel %vm1252_vm12, %v9252_v41, %v9257_v20  ;;  %v12508_v42 = vld [vmem:[%s13538_s6 + $0x48] sm:$0xff] }
 0x4d6   :  { %8048 = vmatpush1.bf16.msra.mxu0 %v8047_v21  ;;  %4664 = vmatprep.mubr.f32.mxu0 %v13681_v62  ;;  %v8051_v58 = vpack.c.bf16 %v4738_v10, %v4737_v22  ;;  %v8053_v40 = vpack.c.bf16 %v4736_v24, %v4735_v47  ;;  %v9271_v21 = vpop.permute.xlu0 %9270  ;;  %v4731_v10 = vsel %vm1252_vm12, %v9257_v20, %v9267_v19 }
 0x4d7   :  { %8050 = vmatprep.subr.bf16.mxu0 %v8049_v1  ;;  %v9273_v41 = vunpack.i.h.bf16 %v9271_v21  ;;  %v9272_v22 = vunpack.i.l.bf16 %v9271_v21 }
 0x4d9   :  { %7639 = vmatmul.mubr.msk.f32.gmra.mrb[28].mxu0 %vm82_vm0, %v12350_v16  ;;  %v9263_v16 = vunpack.i.h.bf16 %v9261_v25  ;;  %v9277_v25 = vunpack.i.l.bf16 %v12526_v31 }
 0x4da   :  { %4670 = vmatprep.mubr.f32.mxu0 %v13681_v62  ;;  %v12561_v54 = vpop.permute.xlu0 %9280 }
 0x4db   :  { %v4730_v1 = vsel %vm1252_vm12, %v9248_v14, %v9263_v16  ;;  %v9286_v14 = vpop.permute.xlu1 %9285  ;;  %v5121_v30 = vsel %vm1633_vm13, %v9272_v22, %v9277_v25 }
 0x4dc   :  { %v8059_v55 = vpack.c.bf16 %v4730_v1, %v4729_v51 }
 0x4dd   :  { %7640 = vmatmul.mubr.msk.f32.gmra.mrb[30].mxu0 %vm82_vm0, %v12367_v5  ;;  %v4740_v5 = vsel %vm1252_vm12, %v9233_v27, %v9253_v56  ;;  %v4726_v27 = vsel %vm1252_vm12, %v9263_v16, %v9223_v11  ;;  %v9268_v11 = vunpack.i.h.bf16 %v9266_v32  ;;  %v4727_v56 = vsel %vm1252_vm12, %v9267_v19, %v9237_v4 }
 0x4de   :  { %4830 = vmatprep.mubr.f32.mxu0 %v13681_v62  ;;  %v8055_v8 = vpack.c.bf16 %v4740_v5, %v4739_v44  ;;  %v8057_v43 = vpack.c.bf16 %v4726_v27, %v4725_v52  ;;  %v9291_v24 = vpop.permute.xlu0 %9290  ;;  %v9282_v44 = vunpack.i.l.bf16 %v12561_v54  ;;  %v9288_v52 = vunpack.i.h.bf16 %v9286_v14 }
 0x4df   :  { %v4728_v35 = vsel %vm1252_vm12, %v9268_v11, %v9238_v6  ;;  %v4732_v16 = vsel %vm1252_vm12, %v9258_v48, %v9268_v11  ;;  %v5122_v6 = vsel %vm1633_vm13, %v9273_v41, %v9278_v28  ;;  %v12574_v20 = vpop.permute.xlu1 %9295  ;;  %v9293_v5 = vunpack.i.h.bf16 %v9291_v24 }
 0x4e0   :  { %v8061_v4 = vpack.c.bf16 %v4728_v35, %v4727_v56  ;;  %v8063_v48 = vpack.c.bf16 %v4732_v16, %v4731_v10  ;;  %v8065_v47 = vpack.c.bf16 %v5122_v6, %v5121_v30  ;;  %v9287_v27 = vunpack.i.l.bf16 %v9286_v14 }
 0x4e1   :  { %7645 = vmatmul.mubr.msk.f32.vlgmr.msra.gmra.mrb[8].mxu0 %vm82_vm0, %v12492_v29  ;;  %v9298_v19 = vunpack.i.h.bf16 %v12574_v20  ;;  %v9297_v21 = vunpack.i.l.bf16 %v12574_v20  ;;  %v5124_v35 = vsel %vm1633_vm13, %v9288_v52, %v9293_v5  ;;  %v8089_v20 = vpack.c.bf16 %v11756_v13, %v11753_v12 }
 0x4e2   :  { %8052 = vmatpush1.bf16.msra.mxu0 %v8051_v58  ;;  %4836 = vmatprep.mubr.f32.mxu0 %v13681_v62  ;;  %v9283_v58 = vunpack.i.h.bf16 %v12561_v54  ;;  %v9301_v11 = vpop.permute.xlu0 %9300 }
 0x4e3   :  { %8054 = vmatprep.subr.bf16.mxu0 %v8053_v40  ;;  %v9292_v40 = vunpack.i.l.bf16 %v9291_v24  ;;  %v12584_v32 = vpop.permute.xlu1 %9305  ;;  %v5128_v10 = vsel %vm1633_vm13, %v9298_v19, %v9288_v52 }
 0x4e4   :  { %v9308_v51 = vunpack.i.h.bf16 %v12584_v32  ;;  %v9307_v1 = vunpack.i.l.bf16 %v12584_v32 }
 0x4e5   :  { %7646 = vmatmul.mubr.msk.f32.gmra.mrb[10].mxu0 %vm82_vm0, %v12508_v42  ;;  %v5123_v56 = vsel %vm1633_vm13, %v9287_v27, %v9292_v40 }
 0x4e6   :  { %8056 = vmatpush1.bf16.msra.mxu0 %v8055_v8  ;;  %4842 = vmatprep.mubr.f32.mxu0 %v13681_v62  ;;  %v5125_v8 = vsel %vm1633_vm13, %v9282_v44, %v9272_v22  ;;  %v5127_v22 = vsel %vm1633_vm13, %v9297_v21, %v9287_v27  ;;  %v8069_v16 = vpack.c.bf16 %v5124_v35, %v5123_v56  ;;  %v7657_v35 = vld [vmem:[%s13538_s6 + $0x60] sm:$0xff] }
 0x4e7   :  { %8058 = vmatprep.subr.bf16.mxu0 %v8057_v43  ;;  %v5126_v43 = vsel %vm1633_vm13, %v9283_v58, %v9273_v41  ;;  %v9302_v41 = vunpack.i.l.bf16 %v9301_v11  ;;  %v8071_v6 = vpack.c.bf16 %v5128_v10, %v5127_v22 }
 0x4e8   :  { %v8067_v14 = vpack.c.bf16 %v5126_v43, %v5125_v8 }
 0x4e9   :  { %7647 = vmatmul.mubr.msk.f32.gmra.mrb[12].mxu0 %vm82_vm0, %v12524_v18 }
 0x4ea   :  { %4848 = vmatprep.mubr.f32.mxu0 %v13681_v62 }
 0x4ed   :  { %7648 = vmatmul.mubr.msk.f32.gmra.mrb[14].mxu0 %vm82_vm0, %v12534_v3 }
 0x4ee   :  { %4919 = vmatprep.mubr.f32.mxu0 %v13681_v62 }
 0x4f1   :  { %7649 = vmatmul.mubr.msk.f32.vlgmr.msra.gmra.mrb[16].mxu0 %vm82_vm0, %v12492_v29 }
 0x4f2   :  { %8060 = vmatpush1.bf16.msra.mxu0 %v8059_v55  ;;  %4925 = vmatprep.mubr.f32.mxu0 %v13681_v62  ;;  %v9303_v55 = vunpack.i.h.bf16 %v9301_v11 }
 0x4f3   :  { %8062 = vmatprep.subr.bf16.mxu0 %v8061_v4  ;;  %v5113_v4 = vsel %vm1633_vm13, %v9302_v41, %v9307_v1 }
 0x4f4   :  { %v5114_v30 = vsel %vm1633_vm13, %v9303_v55, %v9308_v51  ;;  %v5118_v11 = vsel %vm1633_vm13, %v9278_v28, %v9303_v55 }
 0x4f5   :  { %7650 = vmatmul.mubr.msk.f32.gmra.mrb[18].mxu0 %vm82_vm0, %v12508_v42 }
 0x4f6   :  { %8064 = vmatpush1.bf16.msra.mxu0 %v8063_v48  ;;  %4931 = vmatprep.mubr.f32.mxu0 %v13681_v62  ;;  %v9311_v48 = vpop.permute.xlu0 %9310 }
 0x4f7   :  { %8066 = vmatprep.subr.bf16.mxu0 %v8065_v47  ;;  %v9316_v47 = vpop.permute.xlu1 %9315  ;;  %v9313_v8 = vunpack.i.h.bf16 %v9311_v48  ;;  %v9312_v43 = vunpack.i.l.bf16 %v9311_v48 }
 0x4f8   :  { %v9318_v24 = vunpack.i.h.bf16 %v9316_v47  ;;  %v9317_v52 = vunpack.i.l.bf16 %v9316_v47 }
 0x4f9   :  { %7651 = vmatmul.mubr.msk.f32.gmra.mrb[20].mxu0 %vm82_vm0, %v12524_v18  ;;  %v5119_v28 = vsel %vm1633_vm13, %v9292_v40, %v9312_v43 }
 0x4fa   :  { %4937 = vmatprep.mubr.f32.mxu0 %v13681_v62  ;;  %v9321_v27 = vpop.permute.xlu0 %9320  ;;  %v5116_v31 = vsel %vm1633_vm13, %v9313_v8, %v9318_v24 }
 0x4fb   :  { %v9322_v56 = vunpack.i.l.bf16 %v9321_v27 }
 0x4fd   :  { %7652 = vmatmul.mubr.msk.f32.gmra.mrb[22].mxu0 %vm82_vm0, %v12534_v3  ;;  %v5105_v22 = vsel %vm1633_vm13, %v9322_v56, %v9282_v44 }
 0x4fe   :  { %5008 = vmatprep.mubr.f32.mxu0 %v13681_v62 }
 0x501   :  { %7653 = vmatmul.mubr.msk.f32.vlgmr.msra.gmra.mrb[24].mxu0 %vm82_vm0, %v12492_v29  ;;  %v8073_v29 = vpack.c.bf16 %v5114_v30, %v5113_v4  ;;  %v9326_v4 = vpop.permute.xlu1 %9325  ;;  %v5109_v30 = vsel %vm1633_vm13, %v9307_v1, %v9322_v56  ;;  %v8105_v56 = vpack.c.bf16 %v11827_v46, %v11824_v15 }
 0x502   :  { %8068 = vmatpush1.bf16.msra.mxu0 %v8067_v14  ;;  %5014 = vmatprep.mubr.f32.mxu0 %v13681_v62  ;;  %v5115_v14 = vsel %vm1633_vm13, %v9312_v43, %v9317_v52  ;;  %v9328_v54 = vunpack.i.h.bf16 %v9326_v4  ;;  %v9327_v44 = vunpack.i.l.bf16 %v9326_v4  ;;  %v8099_v43 = vpack.c.bf16 %v11811_v7, %v11799_v2 }
 0x503   :  { %8070 = vmatprep.subr.bf16.mxu0 %v8069_v16  ;;  %v8077_v55 = vpack.c.bf16 %v5116_v31, %v5115_v14  ;;  %v7659_v16 = vld [vmem:[%s13538_s6 + $0x70] sm:$0xff]  ;;  %v12760_v31 = vld [vmem:[%s13538_s6 + $0x98] sm:$0xff] }
 0x504   :  { %v5107_v48 = vsel %vm1633_vm13, %v9327_v44, %v9297_v21  ;;  %v5111_v32 = vsel %vm1633_vm13, %v9317_v52, %v9327_v44  ;;  %v8095_v52 = vpack.c.bf16 %v11787_v34, %v11784_v45 }
 0x505   :  { %7654 = vmatmul.mubr.msk.f32.gmra.mrb[26].mxu0 %vm82_vm0, %v12508_v42  ;;  %v5117_v42 = vsel %vm1633_vm13, %v9277_v25, %v9302_v41  ;;  %v7658_v41 = vld [vmem:[%s13538_s6 + $0x68] sm:$0xff]  ;;  %v12752_v14 = vpop.permute.xlu1 %9335 }
 0x506   :  { %8072 = vmatpush1.bf16.msra.mxu0 %v8071_v6  ;;  %5020 = vmatprep.mubr.f32.mxu0 %v13681_v62  ;;  %v8075_v25 = vpack.c.bf16 %v5118_v11, %v5117_v42  ;;  %v8101_v42 = vpack.c.bf16 %v11900_v57, %v11911_v23  ;;  %v12738_v11 = vld [vmem:[%s13538_s6 + $0x88] sm:$0xff] }
 0x507   :  { %8074 = vmatprep.subr.bf16.mxu0 %v8073_v29  ;;  %v5108_v29 = vsel %vm1633_vm13, %v9328_v54, %v9298_v19  ;;  %v8091_v19 = vpack.c.bf16 %v11750_v9, %v11747_v39 }
 0x508   :  { %v8085_v47 = vpack.c.bf16 %v5108_v29, %v5107_v48 }
 0x509   :  { %7655 = vmatmul.mubr.msk.f32.gmra.mrb[28].mxu0 %vm82_vm0, %v12524_v18  ;;  %v9323_v18 = vunpack.i.h.bf16 %v9321_v27  ;;  %v8097_v27 = vpack.c.bf16 %v11855_v37, %v11884_v0 }
 0x50a   :  { %5026 = vmatprep.mubr.f32.mxu0 %v13681_v62 }
 0x50b   :  { %v5110_v6 = vsel %vm1633_vm13, %v9308_v51, %v9323_v18  ;;  %v5112_v51 = vsel %vm1633_vm13, %v9318_v24, %v9328_v54  ;;  %v8093_v24 = vpack.c.bf16 %v11832_v59, %v11841_v17  ;;  %v8111_v54 = vpack.c.bf16 %v11922_v26, %v11933_v61 }
 0x50c   :  { %v8083_v1 = vpack.c.bf16 %v5110_v6, %v5109_v30  ;;  %v8087_v21 = vpack.c.bf16 %v5112_v51, %v5111_v32 }
 0x50d   :  { %7656 = vmatmul.mubr.msk.f32.gmra.mrb[30].mxu0 %vm82_vm0, %v12534_v3  ;;  %v5120_v3 = vsel %vm1633_vm13, %v9293_v5, %v9313_v8  ;;  %v5106_v5 = vsel %vm1633_vm13, %v9323_v18, %v9283_v58  ;;  %v7660_v58 = vld [vmem:[%s13538_s6 + $0x78] sm:$0xff]  ;;  %v12726_v8 = vld [vmem:[%s13538_s6 + $0x80] sm:$0xff]  ;;  %v8103_v18 = vpack.c.bf16 %v11875_v60, %v11887_v53 }
 0x50e   :  { %5210 = vmatprep.mubr.f32.mxu0 %v13681_v62  ;;  %v8079_v40 = vpack.c.bf16 %v5120_v3, %v5119_v28  ;;  %v8081_v10 = vpack.c.bf16 %v5106_v5, %v5105_v22  ;;  %v9338_v28 = vunpack.i.h.bf16 %v12752_v14  ;;  %v9337_v3 = vunpack.i.l.bf16 %v12752_v14 }
 0x50f   :  { %v8107_v5 = vpack.c.bf16 %v11903_v50, %v11914_v49 }
 0x511   :  { %7661 = vmatmul.mubr.msk.f32.vlgmr.msra.gmra.mrb[8].mxu0 %vm82_vm0, %v7657_v35 }
 0x512   :  { %8076 = vmatpush1.bf16.msra.mxu0 %v8075_v25  ;;  %5216 = vmatprep.mubr.f32.mxu0 %v13681_v62  ;;  %v9331_v25 = vpop.permute.xlu0 %9330 }
 0x513   :  { %8078 = vmatprep.subr.bf16.mxu0 %v8077_v55  ;;  %v9346_v55 = vpop.permute.xlu1 %9345  ;;  %v9332_v22 = vunpack.i.l.bf16 %v9331_v25 }
 0x514   :  { %v9348_v32 = vunpack.i.h.bf16 %v9346_v55  ;;  %v9347_v51 = vunpack.i.l.bf16 %v9346_v55 }
 0x515   :  { %7662 = vmatmul.mubr.msk.f32.gmra.mrb[10].mxu0 %vm82_vm0, %v7658_v41 }
 0x516   :  { %8080 = vmatpush1.bf16.msra.mxu0 %v8079_v40  ;;  %5222 = vmatprep.mubr.f32.mxu0 %v13681_v62  ;;  %v12769_v40 = vpop.permute.xlu0 %9340 }
 0x517   :  { %8082 = vmatprep.subr.bf16.mxu0 %v8081_v10  ;;  %v8109_v10 = vpack.c.bf16 %v11866_v36, %v11863_v63  ;;  %v12786_v44 = vpop.permute.xlu1 %9355  ;;  %v9343_v6 = vunpack.i.h.bf16 %v12769_v40  ;;  %v9342_v48 = vunpack.i.l.bf16 %v12769_v40 }
 0x519   :  { %7663 = vmatmul.mubr.msk.f32.gmra.mrb[12].mxu0 %vm82_vm0, %v7659_v16 }
 0x51a   :  { %5228 = vmatprep.mubr.f32.mxu0 %v13681_v62  ;;  %v9351_v30 = vpop.permute.xlu0 %9350 }
 0x51b   :  { %v9353_v29 = vunpack.i.h.bf16 %v9351_v30 }
 0x51d   :  { %7664 = vmatmul.mubr.msk.f32.gmra.mrb[14].mxu0 %vm82_vm0, %v7660_v58 }
 0x51e   :  { %5299 = vmatprep.mubr.f32.mxu0 %v13681_v62 }
 0x521   :  { %7665 = vmatmul.mubr.msk.f32.vlgmr.msra.gmra.mrb[16].mxu0 %vm82_vm0, %v7657_v35 }
 0x522   :  { %8084 = vmatpush1.bf16.msra.mxu0 %v8083_v1  ;;  %5305 = vmatprep.mubr.f32.mxu0 %v13681_v62  ;;  %v9352_v1 = vunpack.i.l.bf16 %v9351_v30 }
 0x523   :  { %8086 = vmatprep.subr.bf16.mxu0 %v8085_v47  ;;  %v12796_v47 = vpop.permute.xlu1 %9365 }
 0x525   :  { %7666 = vmatmul.mubr.msk.f32.gmra.mrb[18].mxu0 %vm82_vm0, %v7658_v41 }
 0x526   :  { %8088 = vmatpush1.bf16.msra.mxu0 %v8087_v21  ;;  %5311 = vmatprep.mubr.f32.mxu0 %v13681_v62  ;;  %v5809_v21 = vsel %vm2322_vm1, %v9342_v48, %v9332_v22 }
 0x527   :  { %8090 = vmatprep.subr.bf16.mxu0 %v8089_v20 }
 0x529   :  { %7667 = vmatmul.mubr.msk.f32.gmra.mrb[20].mxu0 %vm82_vm0, %v7659_v16 }
 0x52a   :  { %5317 = vmatprep.mubr.f32.mxu0 %v13681_v62 }
 0x52d   :  { %7668 = vmatmul.mubr.msk.f32.gmra.mrb[22].mxu0 %vm82_vm0, %v7660_v58 }
 0x52e   :  { %5388 = vmatprep.mubr.f32.mxu0 %v13681_v62 }
 0x531   :  { %7669 = vmatmul.mubr.msk.f32.vlgmr.msra.gmra.mrb[24].mxu0 %vm82_vm0, %v7657_v35  ;;  %v12750_v35 = vld [vmem:[%s13538_s6 + $0x90] sm:$0xff] }
 0x532   :  { %8092 = vmatpush1.bf16.msra.mxu0 %v8091_v19  ;;  %5394 = vmatprep.mubr.f32.mxu0 %v13681_v62  ;;  %v9361_v19 = vpop.permute.xlu0 %9360 }
 0x533   :  { %8094 = vmatprep.subr.bf16.mxu0 %v8093_v24  ;;  %v9358_v24 = vunpack.i.h.bf16 %v12786_v44  ;;  %v9362_v55 = vunpack.i.l.bf16 %v9361_v19 }
 0x535   :  { %7670 = vmatmul.mubr.msk.f32.gmra.mrb[26].mxu0 %vm82_vm0, %v7658_v41  ;;  %v9333_v41 = vunpack.i.h.bf16 %v9331_v25  ;;  %v9363_v25 = vunpack.i.h.bf16 %v9361_v19 }
 0x536   :  { %8096 = vmatpush1.bf16.msra.mxu0 %v8095_v52  ;;  %5400 = vmatprep.mubr.f32.mxu0 %v13681_v62  ;;  %v9357_v52 = vunpack.i.l.bf16 %v12786_v44 }
 0x537   :  { %8098 = vmatprep.subr.bf16.mxu0 %v8097_v27  ;;  %v5806_v4 = vsel %vm2322_vm1, %v9333_v41, %v9338_v28  ;;  %v5810_v20 = vsel %vm2322_vm1, %v9343_v6, %v9333_v41  ;;  %v9368_v27 = vunpack.i.h.bf16 %v12796_v47  ;;  %v5802_v19 = vsel %vm2322_vm1, %v9338_v28, %v9363_v25 }
 0x538   :  { %v5811_v41 = vsel %vm2322_vm1, %v9357_v52, %v9347_v51 }
 0x539   :  { %7671 = vmatmul.mubr.msk.f32.gmra.mrb[28].mxu0 %vm82_vm0, %v7659_v16  ;;  %v5805_v16 = vsel %vm2322_vm1, %v9332_v22, %v9337_v3  ;;  %v5812_v22 = vsel %vm2322_vm1, %v9358_v24, %v9348_v32 }
 0x53a   :  { %5406 = vmatprep.mubr.f32.mxu0 %v13681_v62 }
 0x53d   :  { %7672 = vmatmul.mubr.msk.f32.gmra.mrb[30].mxu0 %vm82_vm0, %v7660_v58  ;;  %v8113_v58 = vpack.c.bf16 %v5806_v4, %v5805_v16  ;;  %v5798_v16 = vsel %vm2322_vm1, %v9363_v25, %v9368_v27  ;;  %v8119_v4 = vpack.c.bf16 %v5812_v22, %v5811_v41 }
 0x53e   :  { %5518 = vmatprep.mubr.f32.mxu0 %v13681_v62 }
 0x541   :  { %7677 = vmatmul.mubr.msk.f32.vlgmr.msra.gmra.mrb[8].mxu0 %vm82_vm0, %v12726_v8 }
 0x542   :  { %8100 = vmatpush1.bf16.msra.mxu0 %v8099_v43  ;;  %5524 = vmatprep.mubr.f32.mxu0 %v13681_v62  ;;  %v9367_v43 = vunpack.i.l.bf16 %v12796_v47 }
 0x543   :  { %8102 = vmatprep.subr.bf16.mxu0 %v8101_v42  ;;  %v5807_v42 = vsel %vm2322_vm1, %v9347_v51, %v9352_v1 }
 0x545   :  { %7678 = vmatmul.mubr.msk.f32.gmra.mrb[10].mxu0 %vm82_vm0, %v12738_v11 }
 0x546   :  { %8104 = vmatpush1.bf16.msra.mxu0 %v8103_v18  ;;  %5530 = vmatprep.mubr.f32.mxu0 %v13681_v62  ;;  %v5808_v18 = vsel %vm2322_vm1, %v9348_v32, %v9353_v29 }
 0x547   :  { %8106 = vmatprep.subr.bf16.mxu0 %v8105_v56  ;;  %v8115_v56 = vpack.c.bf16 %v5810_v20, %v5809_v21 }
 0x549   :  { %7679 = vmatmul.mubr.msk.f32.gmra.mrb[12].mxu0 %vm82_vm0, %v12750_v35 }
 0x54a   :  { %5536 = vmatprep.mubr.f32.mxu0 %v13681_v62 }
 0x54d   :  { %7680 = vmatmul.mubr.msk.f32.gmra.mrb[14].mxu0 %vm82_vm0, %v12760_v31 }
 0x54e   :  { %5607 = vmatprep.mubr.f32.mxu0 %v13681_v62 }
 0x551   :  { %7681 = vmatmul.mubr.msk.f32.vlgmr.msra.gmra.mrb[16].mxu0 %vm82_vm0, %v12726_v8 }
 0x552   :  { %8108 = vmatpush1.bf16.msra.mxu0 %v8107_v5  ;;  %5613 = vmatprep.mubr.f32.mxu0 %v13681_v62  ;;  %v8117_v5 = vpack.c.bf16 %v5808_v18, %v5807_v42  ;;  %v12856_v18 = vld [vmem:[%s13538_s6 + $0xa0] sm:$0xff] }
 0x553   :  { %8110 = vmatprep.subr.bf16.mxu0 %v8109_v10  ;;  %v5797_v10 = vsel %vm2322_vm1, %v9362_v55, %v9367_v43 }
 0x555   :  { %7682 = vmatmul.mubr.msk.f32.gmra.mrb[18].mxu0 %vm82_vm0, %v12738_v11 }
 0x556   :  { %8112 = vmatpush1.bf16.msra.mxu0 %v8111_v54  ;;  %5619 = vmatprep.mubr.f32.mxu0 %v13681_v62  ;;  %v9371_v54 = vpop.permute.xlu0 %9370 }
 0x557   :  { %8114 = vmatprep.subr.bf16.mxu0 %v8113_v58  ;;  %v9376_v58 = vpop.permute.xlu1 %9375  ;;  %v9373_v21 = vunpack.i.h.bf16 %v9371_v54  ;;  %v9372_v20 = vunpack.i.l.bf16 %v9371_v54 }
 0x558   :  { %v9378_v30 = vunpack.i.h.bf16 %v9376_v58  ;;  %v9377_v32 = vunpack.i.l.bf16 %v9376_v58 }
 0x559   :  { %7683 = vmatmul.mubr.msk.f32.gmra.mrb[20].mxu0 %vm82_vm0, %v12750_v35  ;;  %v5803_v28 = vsel %vm2322_vm1, %v9352_v1, %v9372_v20 }
 0x55a   :  { %5625 = vmatprep.mubr.f32.mxu0 %v13681_v62  ;;  %v9381_v51 = vpop.permute.xlu0 %9380  ;;  %v5800_v14 = vsel %vm2322_vm1, %v9373_v21, %v9378_v30 }
 0x55b   :  { %v9382_v42 = vunpack.i.l.bf16 %v9381_v51  ;;  %v9386_v41 = vpop.permute.xlu1 %9385 }
 0x55d   :  { %7684 = vmatmul.mubr.msk.f32.gmra.mrb[22].mxu0 %vm82_vm0, %v12760_v31  ;;  %v5813_v1 = vsel %vm2322_vm1, %v9382_v42, %v9342_v48  ;;  %v9387_v48 = vunpack.i.l.bf16 %v9386_v41  ;;  %v5793_v54 = vsel %vm2322_vm1, %v9367_v43, %v9382_v42 }
 0x55e   :  { %5696 = vmatprep.mubr.f32.mxu0 %v13681_v62 }
 0x55f   :  { %v12890_v40 = vpop.permute.xlu1 %9395 }
 0x560   :  { %v9398_v58 = vunpack.i.h.bf16 %v12890_v40 }
 0x561   :  { %7685 = vmatmul.mubr.msk.f32.vlgmr.msra.gmra.mrb[24].mxu0 %vm82_vm0, %v12726_v8  ;;  %v8121_v8 = vpack.c.bf16 %v5798_v16, %v5797_v10  ;;  %v12888_v10 = vld [vmem:[%s13538_s6 + $0xb0] sm:$0xff]  ;;  %v12898_v16 = vld [vmem:[%s13538_s6 + $0xb8] sm:$0xff] }
 0x562   :  { %8116 = vmatpush1.bf16.msra.mxu0 %v8115_v56  ;;  %5702 = vmatprep.mubr.f32.mxu0 %v13681_v62 }
 0x563   :  { %8118 = vmatprep.subr.bf16.mxu0 %v8117_v5 }
 0x565   :  { %7686 = vmatmul.mubr.msk.f32.gmra.mrb[26].mxu0 %vm82_vm0, %v12738_v11  ;;  %v5801_v11 = vsel %vm2322_vm1, %v9337_v3, %v9362_v55  ;;  %v5799_v3 = vsel %vm2322_vm1, %v9372_v20, %v9377_v32  ;;  %v12872_v55 = vld [vmem:[%s13538_s6 + $0xa8] sm:$0xff] }
 0x566   :  { %8120 = vmatpush1.bf16.msra.mxu0 %v8119_v4  ;;  %5708 = vmatprep.mubr.f32.mxu0 %v13681_v62  ;;  %v8123_v56 = vpack.c.bf16 %v5802_v19, %v5801_v11  ;;  %v8125_v25 = vpack.c.bf16 %v5800_v14, %v5799_v3  ;;  %v9391_v4 = vpop.permute.xlu0 %9390  ;;  %v5795_v19 = vsel %vm2322_vm1, %v9377_v32, %v9387_v48 }
 0x567   :  { %8122 = vmatprep.subr.bf16.mxu0 %v8121_v8  ;;  %v9393_v20 = vunpack.i.h.bf16 %v9391_v4  ;;  %v9392_v11 = vunpack.i.l.bf16 %v9391_v4 }
 0x569   :  { %7687 = vmatmul.mubr.msk.f32.gmra.mrb[28].mxu0 %vm82_vm0, %v12750_v35  ;;  %v9383_v35 = vunpack.i.h.bf16 %v9381_v51  ;;  %v9397_v51 = vunpack.i.l.bf16 %v12890_v40 }
 0x56a   :  { %5714 = vmatprep.mubr.f32.mxu0 %v13681_v62  ;;  %v12925_v42 = vpop.permute.xlu0 %9400 }
 0x56b   :  { %v5794_v8 = vsel %vm2322_vm1, %v9368_v27, %v9383_v35  ;;  %v9406_v27 = vpop.permute.xlu1 %9405  ;;  %v6185_v44 = vsel %vm2703_vm2, %v9392_v11, %v9397_v51 }
 0x56c   :  { %v8131_v43 = vpack.c.bf16 %v5794_v8, %v5793_v54 }
 0x56d   :  { %7688 = vmatmul.mubr.msk.f32.gmra.mrb[30].mxu0 %vm82_vm0, %v12760_v31  ;;  %v5804_v31 = vsel %vm2322_vm1, %v9353_v29, %v9373_v21  ;;  %v5814_v29 = vsel %vm2322_vm1, %v9383_v35, %v9343_v6  ;;  %v9388_v6 = vunpack.i.h.bf16 %v9386_v41  ;;  %v5815_v21 = vsel %vm2322_vm1, %v9387_v48, %v9357_v52 }
 0x56e   :  { %5898 = vmatprep.mubr.f32.mxu0 %v13681_v62  ;;  %v8127_v22 = vpack.c.bf16 %v5804_v31, %v5803_v28  ;;  %v8129_v5 = vpack.c.bf16 %v5814_v29, %v5813_v1  ;;  %v9411_v14 = vpop.permute.xlu0 %9410  ;;  %v9402_v28 = vunpack.i.l.bf16 %v12925_v42  ;;  %v9408_v1 = vunpack.i.h.bf16 %v9406_v27 }
 0x56f   :  { %v5816_v47 = vsel %vm2322_vm1, %v9388_v6, %v9358_v24  ;;  %v5796_v35 = vsel %vm2322_vm1, %v9378_v30, %v9388_v6  ;;  %v6186_v24 = vsel %vm2703_vm2, %v9393_v20, %v9398_v58  ;;  %v12938_v32 = vpop.permute.xlu1 %9415  ;;  %v9413_v31 = vunpack.i.h.bf16 %v9411_v14 }
 0x570   :  { %v8133_v52 = vpack.c.bf16 %v5816_v47, %v5815_v21  ;;  %v8135_v30 = vpack.c.bf16 %v5796_v35, %v5795_v19  ;;  %v8137_v3 = vpack.c.bf16 %v6186_v24, %v6185_v44  ;;  %v9407_v29 = vunpack.i.l.bf16 %v9406_v27 }
 0x571   :  { %7693 = vmatmul.mubr.msk.f32.vlgmr.msra.gmra.mrb[8].mxu0 %vm82_vm0, %v12856_v18  ;;  %v9418_v48 = vunpack.i.h.bf16 %v12938_v32  ;;  %v9417_v4 = vunpack.i.l.bf16 %v12938_v32  ;;  %v6188_v47 = vsel %vm2703_vm2, %v9408_v1, %v9413_v31 }
 0x572   :  { %8124 = vmatpush1.bf16.msra.mxu0 %v8123_v56  ;;  %5904 = vmatprep.mubr.f32.mxu0 %v13681_v62  ;;  %v9403_v56 = vunpack.i.h.bf16 %v12925_v42  ;;  %v9421_v6 = vpop.permute.xlu0 %9420 }
 0x573   :  { %8126 = vmatprep.subr.bf16.mxu0 %v8125_v25  ;;  %v9412_v25 = vunpack.i.l.bf16 %v9411_v14  ;;  %v12948_v41 = vpop.permute.xlu1 %9425  ;;  %v6192_v19 = vsel %vm2703_vm2, %v9418_v48, %v9408_v1 }
 0x574   :  { %v9428_v54 = vunpack.i.h.bf16 %v12948_v41  ;;  %v9427_v8 = vunpack.i.l.bf16 %v12948_v41 }
 0x575   :  { %7694 = vmatmul.mubr.msk.f32.gmra.mrb[10].mxu0 %vm82_vm0, %v12872_v55  ;;  %v6187_v21 = vsel %vm2703_vm2, %v9407_v29, %v9412_v25 }
 0x576   :  { %8128 = vmatpush1.bf16.msra.mxu0 %v8127_v22  ;;  %5910 = vmatprep.mubr.f32.mxu0 %v13681_v62  ;;  %v6189_v22 = vsel %vm2703_vm2, %v9402_v28, %v9392_v11  ;;  %v6191_v11 = vsel %vm2703_vm2, %v9417_v4, %v9407_v29  ;;  %v8141_v35 = vpack.c.bf16 %v6188_v47, %v6187_v21  ;;  %v13008_v47 = vld [vmem:[%s13538_s6 + $0xc0] sm:$0xff] }
 0x577   :  { %8130 = vmatprep.subr.bf16.mxu0 %v8129_v5  ;;  %v6190_v5 = vsel %vm2703_vm2, %v9403_v56, %v9393_v20  ;;  %v9422_v20 = vunpack.i.l.bf16 %v9421_v6  ;;  %v8143_v24 = vpack.c.bf16 %v6192_v19, %v6191_v11 }
 0x578   :  { %v8139_v27 = vpack.c.bf16 %v6190_v5, %v6189_v22 }
 0x579   :  { %7695 = vmatmul.mubr.msk.f32.gmra.mrb[12].mxu0 %vm82_vm0, %v12888_v10 }
 0x57a   :  { %5916 = vmatprep.mubr.f32.mxu0 %v13681_v62 }
 0x57d   :  { %7696 = vmatmul.mubr.msk.f32.gmra.mrb[14].mxu0 %vm82_vm0, %v12898_v16 }
 0x57e   :  { %5987 = vmatprep.mubr.f32.mxu0 %v13681_v62 }
 0x581   :  { %7697 = vmatmul.mubr.msk.f32.vlgmr.msra.gmra.mrb[16].mxu0 %vm82_vm0, %v12856_v18 }
 0x582   :  { %8132 = vmatpush1.bf16.msra.mxu0 %v8131_v43  ;;  %5993 = vmatprep.mubr.f32.mxu0 %v13681_v62  ;;  %v9423_v43 = vunpack.i.h.bf16 %v9421_v6 }
 0x583   :  { %8134 = vmatprep.subr.bf16.mxu0 %v8133_v52  ;;  %v6177_v52 = vsel %vm2703_vm2, %v9422_v20, %v9427_v8 }
 0x584   :  { %v6178_v44 = vsel %vm2703_vm2, %v9423_v43, %v9428_v54  ;;  %v6182_v6 = vsel %vm2703_vm2, %v9398_v58, %v9423_v43 }
 0x585   :  { %7698 = vmatmul.mubr.msk.f32.gmra.mrb[18].mxu0 %vm82_vm0, %v12872_v55 }
 0x586   :  { %8136 = vmatpush1.bf16.msra.mxu0 %v8135_v30  ;;  %5999 = vmatprep.mubr.f32.mxu0 %v13681_v62  ;;  %v9431_v30 = vpop.permute.xlu0 %9430 }
 0x587   :  { %8138 = vmatprep.subr.bf16.mxu0 %v8137_v3  ;;  %v9436_v3 = vpop.permute.xlu1 %9435  ;;  %v9433_v22 = vunpack.i.h.bf16 %v9431_v30  ;;  %v9432_v5 = vunpack.i.l.bf16 %v9431_v30 }
 0x588   :  { %v9438_v14 = vunpack.i.h.bf16 %v9436_v3  ;;  %v9437_v1 = vunpack.i.l.bf16 %v9436_v3 }
 0x589   :  { %7699 = vmatmul.mubr.msk.f32.gmra.mrb[20].mxu0 %vm82_vm0, %v12888_v10  ;;  %v6183_v58 = vsel %vm2703_vm2, %v9412_v25, %v9432_v5 }
 0x58a   :  { %6005 = vmatprep.mubr.f32.mxu0 %v13681_v62  ;;  %v9441_v29 = vpop.permute.xlu0 %9440  ;;  %v6180_v40 = vsel %vm2703_vm2, %v9433_v22, %v9438_v14 }
 0x58b   :  { %v9442_v21 = vunpack.i.l.bf16 %v9441_v29  ;;  %v9446_v11 = vpop.permute.xlu1 %9445 }
 0x58d   :  { %7700 = vmatmul.mubr.msk.f32.gmra.mrb[22].mxu0 %vm82_vm0, %v12898_v16  ;;  %v6193_v25 = vsel %vm2703_vm2, %v9442_v21, %v9402_v28  ;;  %v9447_v28 = vunpack.i.l.bf16 %v9446_v11  ;;  %v6173_v30 = vsel %vm2703_vm2, %v9427_v8, %v9442_v21 }
 0x58e   :  { %6076 = vmatprep.mubr.f32.mxu0 %v13681_v62 }
 0x58f   :  { %v13042_v42 = vpop.permute.xlu1 %9455 }
 0x590   :  { %v9458_v3 = vunpack.i.h.bf16 %v13042_v42 }
 0x591   :  { %7701 = vmatmul.mubr.msk.f32.vlgmr.msra.gmra.mrb[24].mxu0 %vm82_vm0, %v12856_v18  ;;  %v8145_v18 = vpack.c.bf16 %v6178_v44, %v6177_v52  ;;  %v13040_v52 = vld [vmem:[%s13538_s6 + $0xd0] sm:$0xff]  ;;  %v13050_v44 = vld [vmem:[%s13538_s6 + $0xd8] sm:$0xff] }
 0x592   :  { %8140 = vmatpush1.bf16.msra.mxu0 %v8139_v27  ;;  %6082 = vmatprep.mubr.f32.mxu0 %v13681_v62 }
 0x593   :  { %8142 = vmatprep.subr.bf16.mxu0 %v8141_v35 }
 0x595   :  { %7702 = vmatmul.mubr.msk.f32.gmra.mrb[26].mxu0 %vm82_vm0, %v12872_v55  ;;  %v6181_v55 = vsel %vm2703_vm2, %v9397_v51, %v9422_v20  ;;  %v6179_v51 = vsel %vm2703_vm2, %v9432_v5, %v9437_v1  ;;  %v13024_v20 = vld [vmem:[%s13538_s6 + $0xc8] sm:$0xff] }
 0x596   :  { %8144 = vmatpush1.bf16.msra.mxu0 %v8143_v24  ;;  %6088 = vmatprep.mubr.f32.mxu0 %v13681_v62  ;;  %v8147_v27 = vpack.c.bf16 %v6182_v6, %v6181_v55  ;;  %v8149_v43 = vpack.c.bf16 %v6180_v40, %v6179_v51  ;;  %v9451_v24 = vpop.permute.xlu0 %9450  ;;  %v6175_v6 = vsel %vm2703_vm2, %v9437_v1, %v9447_v28 }
 0x597   :  { %8146 = vmatprep.subr.bf16.mxu0 %v8145_v18  ;;  %v9453_v5 = vunpack.i.h.bf16 %v9451_v24  ;;  %v9452_v55 = vunpack.i.l.bf16 %v9451_v24 }
 0x599   :  { %7703 = vmatmul.mubr.msk.f32.gmra.mrb[28].mxu0 %vm82_vm0, %v12888_v10  ;;  %v9443_v10 = vunpack.i.h.bf16 %v9441_v29  ;;  %v9457_v29 = vunpack.i.l.bf16 %v13042_v42 }
 0x59a   :  { %6094 = vmatprep.mubr.f32.mxu0 %v13681_v62  ;;  %v13077_v21 = vpop.permute.xlu0 %9460 }
 0x59b   :  { %v6174_v18 = vsel %vm2703_vm2, %v9428_v54, %v9443_v10  ;;  %v9466_v54 = vpop.permute.xlu1 %9465  ;;  %v6565_v32 = vsel %vm3084_vm14, %v9452_v55, %v9457_v29 }
 0x59c   :  { %v8155_v8 = vpack.c.bf16 %v6174_v18, %v6173_v30 }
 0x59d   :  { %7704 = vmatmul.mubr.msk.f32.gmra.mrb[30].mxu0 %vm82_vm0, %v12898_v16  ;;  %v6184_v16 = vsel %vm2703_vm2, %v9413_v31, %v9433_v22  ;;  %v6194_v31 = vsel %vm2703_vm2, %v9443_v10, %v9403_v56  ;;  %v9448_v56 = vunpack.i.h.bf16 %v9446_v11  ;;  %v6195_v22 = vsel %vm2703_vm2, %v9447_v28, %v9417_v4 }
 0x59e   :  { %6278 = vmatprep.mubr.f32.mxu0 %v13681_v62  ;;  %v8151_v19 = vpack.c.bf16 %v6184_v16, %v6183_v58  ;;  %v8153_v35 = vpack.c.bf16 %v6194_v31, %v6193_v25  ;;  %v9471_v40 = vpop.permute.xlu0 %9470  ;;  %v9462_v58 = vunpack.i.l.bf16 %v13077_v21  ;;  %v9468_v25 = vunpack.i.h.bf16 %v9466_v54 }
 0x59f   :  { %v6196_v41 = vsel %vm2703_vm2, %v9448_v56, %v9418_v48  ;;  %v6176_v10 = vsel %vm2703_vm2, %v9438_v14, %v9448_v56  ;;  %v6566_v48 = vsel %vm3084_vm14, %v9453_v5, %v9458_v3  ;;  %v13090_v1 = vpop.permute.xlu1 %9475  ;;  %v9473_v16 = vunpack.i.h.bf16 %v9471_v40 }
 0x5a0   :  { %v8157_v4 = vpack.c.bf16 %v6196_v41, %v6195_v22  ;;  %v8159_v14 = vpack.c.bf16 %v6176_v10, %v6175_v6  ;;  %v8161_v51 = vpack.c.bf16 %v6566_v48, %v6565_v32  ;;  %v9467_v31 = vunpack.i.l.bf16 %v9466_v54 }
 0x5a1   :  { %7709 = vmatmul.mubr.msk.f32.vlgmr.msra.gmra.mrb[8].mxu0 %vm82_vm0, %v13008_v47  ;;  %v9478_v28 = vunpack.i.h.bf16 %v13090_v1  ;;  %v9477_v24 = vunpack.i.l.bf16 %v13090_v1  ;;  %v6568_v41 = vsel %vm3084_vm14, %v9468_v25, %v9473_v16 }
 0x5a2   :  { %8148 = vmatpush1.bf16.msra.mxu0 %v8147_v27  ;;  %6284 = vmatprep.mubr.f32.mxu0 %v13681_v62  ;;  %v9463_v27 = vunpack.i.h.bf16 %v13077_v21  ;;  %v9481_v56 = vpop.permute.xlu0 %9480 }
 0x5a3   :  { %8150 = vmatprep.subr.bf16.mxu0 %v8149_v43  ;;  %v9472_v43 = vunpack.i.l.bf16 %v9471_v40  ;;  %v13100_v11 = vpop.permute.xlu1 %9485  ;;  %v6572_v6 = vsel %vm3084_vm14, %v9478_v28, %v9468_v25 }
 0x5a4   :  { %v9488_v30 = vunpack.i.h.bf16 %v13100_v11  ;;  %v9487_v18 = vunpack.i.l.bf16 %v13100_v11 }
 0x5a5   :  { %7710 = vmatmul.mubr.msk.f32.gmra.mrb[10].mxu0 %vm82_vm0, %v13024_v20  ;;  %v6567_v22 = vsel %vm3084_vm14, %v9467_v31, %v9472_v43 }
 0x5a6   :  { %8152 = vmatpush1.bf16.msra.mxu0 %v8151_v19  ;;  %6290 = vmatprep.mubr.f32.mxu0 %v13681_v62  ;;  %v6569_v19 = vsel %vm3084_vm14, %v9462_v58, %v9452_v55  ;;  %v6571_v55 = vsel %vm3084_vm14, %v9477_v24, %v9467_v31  ;;  %v8165_v10 = vpack.c.bf16 %v6568_v41, %v6567_v22  ;;  %v13160_v41 = vld [vmem:[%s13538_s6 + $0xe0] sm:$0xff] }
 0x5a7   :  { %8154 = vmatprep.subr.bf16.mxu0 %v8153_v35  ;;  %v6570_v35 = vsel %vm3084_vm14, %v9463_v27, %v9453_v5  ;;  %v9482_v5 = vunpack.i.l.bf16 %v9481_v56  ;;  %v8167_v48 = vpack.c.bf16 %v6572_v6, %v6571_v55 }
 0x5a8   :  { %v8163_v54 = vpack.c.bf16 %v6570_v35, %v6569_v19 }
 0x5a9   :  { %7711 = vmatmul.mubr.msk.f32.gmra.mrb[12].mxu0 %vm82_vm0, %v13040_v52 }
 0x5aa   :  { %6296 = vmatprep.mubr.f32.mxu0 %v13681_v62 }
 0x5ad   :  { %7712 = vmatmul.mubr.msk.f32.gmra.mrb[14].mxu0 %vm82_vm0, %v13050_v44 }
 0x5ae   :  { %6367 = vmatprep.mubr.f32.mxu0 %v13681_v62 }
 0x5b1   :  { %7713 = vmatmul.mubr.msk.f32.vlgmr.msra.gmra.mrb[16].mxu0 %vm82_vm0, %v13008_v47 }
 0x5b2   :  { %8156 = vmatpush1.bf16.msra.mxu0 %v8155_v8  ;;  %6373 = vmatprep.mubr.f32.mxu0 %v13681_v62  ;;  %v9483_v8 = vunpack.i.h.bf16 %v9481_v56 }
 0x5b3   :  { %8158 = vmatprep.subr.bf16.mxu0 %v8157_v4  ;;  %v6557_v4 = vsel %vm3084_vm14, %v9482_v5, %v9487_v18 }
 0x5b4   :  { %v6558_v32 = vsel %vm3084_vm14, %v9483_v8, %v9488_v30  ;;  %v6562_v56 = vsel %vm3084_vm14, %v9458_v3, %v9483_v8 }
 0x5b5   :  { %7714 = vmatmul.mubr.msk.f32.gmra.mrb[18].mxu0 %vm82_vm0, %v13024_v20 }
 0x5b6   :  { %8160 = vmatpush1.bf16.msra.mxu0 %v8159_v14  ;;  %6379 = vmatprep.mubr.f32.mxu0 %v13681_v62  ;;  %v9491_v14 = vpop.permute.xlu0 %9490 }
 0x5b7   :  { %8162 = vmatprep.subr.bf16.mxu0 %v8161_v51  ;;  %v9496_v51 = vpop.permute.xlu1 %9495  ;;  %v9493_v19 = vunpack.i.h.bf16 %v9491_v14  ;;  %v9492_v35 = vunpack.i.l.bf16 %v9491_v14 }
 0x5b8   :  { %v9498_v40 = vunpack.i.h.bf16 %v9496_v51  ;;  %v9497_v25 = vunpack.i.l.bf16 %v9496_v51 }
 0x5b9   :  { %7715 = vmatmul.mubr.msk.f32.gmra.mrb[20].mxu0 %vm82_vm0, %v13040_v52  ;;  %v6563_v3 = vsel %vm3084_vm14, %v9472_v43, %v9492_v35 }
 0x5ba   :  { %6385 = vmatprep.mubr.f32.mxu0 %v13681_v62  ;;  %v9501_v31 = vpop.permute.xlu0 %9500  ;;  %v6560_v42 = vsel %vm3084_vm14, %v9493_v19, %v9498_v40 }
 0x5bb   :  { %v9502_v22 = vunpack.i.l.bf16 %v9501_v31  ;;  %v9506_v55 = vpop.permute.xlu1 %9505 }
 0x5bd   :  { %7716 = vmatmul.mubr.msk.f32.gmra.mrb[22].mxu0 %vm82_vm0, %v13050_v44  ;;  %v6573_v43 = vsel %vm3084_vm14, %v9502_v22, %v9462_v58  ;;  %v9507_v58 = vunpack.i.l.bf16 %v9506_v55  ;;  %v6553_v14 = vsel %vm3084_vm14, %v9487_v18, %v9502_v22 }
 0x5be   :  { %6456 = vmatprep.mubr.f32.mxu0 %v13681_v62 }
 0x5bf   :  { %v13194_v21 = vpop.permute.xlu1 %9515 }
 0x5c0   :  { %v9518_v51 = vunpack.i.h.bf16 %v13194_v21 }
 0x5c1   :  { %7717 = vmatmul.mubr.msk.f32.vlgmr.msra.gmra.mrb[24].mxu0 %vm82_vm0, %v13008_v47  ;;  %v8169_v47 = vpack.c.bf16 %v6558_v32, %v6557_v4  ;;  %v13192_v4 = vld [vmem:[%s13538_s6 + $0xf0] sm:$0xff]  ;;  %v13202_v32 = vld [vmem:[%s13538_s6 + $0xf8] sm:$0xff] }
 0x5c2   :  { %8164 = vmatpush1.bf16.msra.mxu0 %v8163_v54  ;;  %6462 = vmatprep.mubr.f32.mxu0 %v13681_v62 }
 0x5c3   :  { %8166 = vmatprep.subr.bf16.mxu0 %v8165_v10 }
 0x5c5   :  { %7718 = vmatmul.mubr.msk.f32.gmra.mrb[26].mxu0 %vm82_vm0, %v13024_v20  ;;  %v6561_v20 = vsel %vm3084_vm14, %v9457_v29, %v9482_v5  ;;  %v6559_v29 = vsel %vm3084_vm14, %v9492_v35, %v9497_v25  ;;  %v13176_v5 = vld [vmem:[%s13538_s6 + $0xe8] sm:$0xff] }
 0x5c6   :  { %8168 = vmatpush1.bf16.msra.mxu0 %v8167_v48  ;;  %6468 = vmatprep.mubr.f32.mxu0 %v13681_v62  ;;  %v8171_v54 = vpack.c.bf16 %v6562_v56, %v6561_v20  ;;  %v8173_v8 = vpack.c.bf16 %v6560_v42, %v6559_v29  ;;  %v9511_v48 = vpop.permute.xlu0 %9510  ;;  %v6555_v56 = vsel %vm3084_vm14, %v9497_v25, %v9507_v58 }
 0x5c7   :  { %8170 = vmatprep.subr.bf16.mxu0 %v8169_v47  ;;  %v9513_v35 = vunpack.i.h.bf16 %v9511_v48  ;;  %v9512_v20 = vunpack.i.l.bf16 %v9511_v48 }
 0x5c9   :  { %7719 = vmatmul.mubr.msk.f32.gmra.mrb[28].mxu0 %vm82_vm0, %v13040_v52  ;;  %v9503_v52 = vunpack.i.h.bf16 %v9501_v31  ;;  %v9517_v31 = vunpack.i.l.bf16 %v13194_v21 }
 0x5ca   :  { %6474 = vmatprep.mubr.f32.mxu0 %v13681_v62  ;;  %v13229_v22 = vpop.permute.xlu0 %9520 }
 0x5cb   :  { %v6554_v47 = vsel %vm3084_vm14, %v9488_v30, %v9503_v52  ;;  %v9526_v30 = vpop.permute.xlu1 %9525  ;;  %v6945_v1 = vsel %vm3465_vm15, %v9512_v20, %v9517_v31 }
 0x5cc   :  { %v8179_v18 = vpack.c.bf16 %v6554_v47, %v6553_v14 }
 0x5cd   :  { %7720 = vmatmul.mubr.msk.f32.gmra.mrb[30].mxu0 %vm82_vm0, %v13050_v44  ;;  %v6564_v44 = vsel %vm3084_vm14, %v9473_v16, %v9493_v19  ;;  %v6574_v16 = vsel %vm3084_vm14, %v9503_v52, %v9463_v27  ;;  %v9508_v27 = vunpack.i.h.bf16 %v9506_v55  ;;  %v6575_v19 = vsel %vm3084_vm14, %v9507_v58, %v9477_v24 }
 0x5ce   :  { %6658 = vmatprep.mubr.f32.mxu0 %v13681_v62  ;;  %v8175_v6 = vpack.c.bf16 %v6564_v44, %v6563_v3  ;;  %v8177_v10 = vpack.c.bf16 %v6574_v16, %v6573_v43  ;;  %v9531_v42 = vpop.permute.xlu0 %9530  ;;  %v9522_v3 = vunpack.i.l.bf16 %v13229_v22  ;;  %v9528_v43 = vunpack.i.h.bf16 %v9526_v30 }
 0x5cf   :  { %v6576_v11 = vsel %vm3084_vm14, %v9508_v27, %v9478_v28  ;;  %v6556_v52 = vsel %vm3084_vm14, %v9498_v40, %v9508_v27  ;;  %v6946_v28 = vsel %vm3465_vm15, %v9513_v35, %v9518_v51  ;;  %v13242_v25 = vpop.permute.xlu1 %9535  ;;  %v9533_v44 = vunpack.i.h.bf16 %v9531_v42 }
 0x5d0   :  { %v8181_v24 = vpack.c.bf16 %v6576_v11, %v6575_v19  ;;  %v8183_v40 = vpack.c.bf16 %v6556_v52, %v6555_v56  ;;  %v8185_v29 = vpack.c.bf16 %v6946_v28, %v6945_v1  ;;  %v9527_v16 = vunpack.i.l.bf16 %v9526_v30 }
 0x5d1   :  { %7725 = vmatmul.mubr.msk.f32.vlgmr.msra.gmra.mrb[8].mxu0 %vm82_vm0, %v13160_v41  ;;  %v9538_v58 = vunpack.i.h.bf16 %v13242_v25  ;;  %v9537_v48 = vunpack.i.l.bf16 %v13242_v25  ;;  %v6948_v11 = vsel %vm3465_vm15, %v9528_v43, %v9533_v44 }
 0x5d2   :  { %8172 = vmatpush1.bf16.msra.mxu0 %v8171_v54  ;;  %6664 = vmatprep.mubr.f32.mxu0 %v13681_v62  ;;  %v9523_v54 = vunpack.i.h.bf16 %v13229_v22  ;;  %v9541_v27 = vpop.permute.xlu0 %9540 }
 0x5d3   :  { %8174 = vmatprep.subr.bf16.mxu0 %v8173_v8  ;;  %v9532_v8 = vunpack.i.l.bf16 %v9531_v42  ;;  %v13252_v55 = vpop.permute.xlu1 %9545  ;;  %v6952_v56 = vsel %vm3465_vm15, %v9538_v58, %v9528_v43 }
 0x5d4   :  { %v9548_v14 = vunpack.i.h.bf16 %v13252_v55  ;;  %v9547_v47 = vunpack.i.l.bf16 %v13252_v55 }
 0x5d5   :  { %7726 = vmatmul.mubr.msk.f32.gmra.mrb[10].mxu0 %vm82_vm0, %v13176_v5  ;;  %v6947_v19 = vsel %vm3465_vm15, %v9527_v16, %v9532_v8 }
 0x5d6   :  { %8176 = vmatpush1.bf16.msra.mxu0 %v8175_v6  ;;  %6670 = vmatprep.mubr.f32.mxu0 %v13681_v62  ;;  %v6949_v6 = vsel %vm3465_vm15, %v9522_v3, %v9512_v20  ;;  %v6951_v20 = vsel %vm3465_vm15, %v9537_v48, %v9527_v16  ;;  %v8189_v52 = vpack.c.bf16 %v6948_v11, %v6947_v19  ;;  %v7737_v11 = vld [vmem:[%s13538_s6 + $0x100] sm:$0xff] }
 0x5d7   :  { %8178 = vmatprep.subr.bf16.mxu0 %v8177_v10  ;;  %v6950_v10 = vsel %vm3465_vm15, %v9523_v54, %v9513_v35  ;;  %v9542_v35 = vunpack.i.l.bf16 %v9541_v27  ;;  %v8191_v28 = vpack.c.bf16 %v6952_v56, %v6951_v20 }
 0x5d8   :  { %v8187_v30 = vpack.c.bf16 %v6950_v10, %v6949_v6 }
 0x5d9   :  { %7727 = vmatmul.mubr.msk.f32.gmra.mrb[12].mxu0 %vm82_vm0, %v13192_v4 }
 0x5da   :  { %6676 = vmatprep.mubr.f32.mxu0 %v13681_v62 }
 0x5dd   :  { %7728 = vmatmul.mubr.msk.f32.gmra.mrb[14].mxu0 %vm82_vm0, %v13202_v32 }
 0x5de   :  { %6747 = vmatprep.mubr.f32.mxu0 %v13681_v62 }
 0x5e1   :  { %7729 = vmatmul.mubr.msk.f32.vlgmr.msra.gmra.mrb[16].mxu0 %vm82_vm0, %v13160_v41 }
 0x5e2   :  { %8180 = vmatpush1.bf16.msra.mxu0 %v8179_v18  ;;  %6753 = vmatprep.mubr.f32.mxu0 %v13681_v62  ;;  %v9543_v18 = vunpack.i.h.bf16 %v9541_v27 }
 0x5e3   :  { %8182 = vmatprep.subr.bf16.mxu0 %v8181_v24  ;;  %v6937_v24 = vsel %vm3465_vm15, %v9542_v35, %v9547_v47 }
 0x5e4   :  { %v6938_v1 = vsel %vm3465_vm15, %v9543_v18, %v9548_v14  ;;  %v6942_v27 = vsel %vm3465_vm15, %v9518_v51, %v9543_v18 }
 0x5e5   :  { %7730 = vmatmul.mubr.msk.f32.gmra.mrb[18].mxu0 %vm82_vm0, %v13176_v5 }
 0x5e6   :  { %8184 = vmatpush1.bf16.msra.mxu0 %v8183_v40  ;;  %6759 = vmatprep.mubr.f32.mxu0 %v13681_v62  ;;  %v9551_v40 = vpop.permute.xlu0 %9550 }
 0x5e7   :  { %8186 = vmatprep.subr.bf16.mxu0 %v8185_v29  ;;  %v9556_v29 = vpop.permute.xlu1 %9555  ;;  %v9553_v6 = vunpack.i.h.bf16 %v9551_v40  ;;  %v9552_v10 = vunpack.i.l.bf16 %v9551_v40 }
 0x5e8   :  { %v9558_v42 = vunpack.i.h.bf16 %v9556_v29  ;;  %v9557_v43 = vunpack.i.l.bf16 %v9556_v29 }
 0x5e9   :  { %7731 = vmatmul.mubr.msk.f32.gmra.mrb[20].mxu0 %vm82_vm0, %v13192_v4  ;;  %v6943_v51 = vsel %vm3465_vm15, %v9532_v8, %v9552_v10 }
 0x5ea   :  { %6765 = vmatprep.mubr.f32.mxu0 %v13681_v62  ;;  %v9561_v16 = vpop.permute.xlu0 %9560  ;;  %v6940_v21 = vsel %vm3465_vm15, %v9553_v6, %v9558_v42 }
 0x5eb   :  { %v9562_v19 = vunpack.i.l.bf16 %v9561_v16 }
 0x5ed   :  { %7732 = vmatmul.mubr.msk.f32.gmra.mrb[22].mxu0 %vm82_vm0, %v13202_v32  ;;  %v6953_v20 = vsel %vm3465_vm15, %v9562_v19, %v9522_v3 }
 0x5ee   :  { %6836 = vmatprep.mubr.f32.mxu0 %v13681_v62  ;;  %v13380_v38 = vpop.permute.xlu0 %7271 }
 0x5f1   :  { %7733 = vmatmul.mubr.msk.f32.vlgmr.msra.gmra.mrb[24].mxu0 %vm82_vm0, %v13160_v41  ;;  %v8193_v41 = vpack.c.bf16 %v6938_v1, %v6937_v24  ;;  %v9566_v24 = vpop.permute.xlu1 %9565  ;;  %v6933_v1 = vsel %vm3465_vm15, %v9547_v47, %v9562_v19 }
 0x5f2   :  { %8188 = vmatpush1.bf16.msra.mxu0 %v8187_v30  ;;  %6842 = vmatprep.mubr.f32.mxu0 %v13681_v62  ;;  %v6939_v30 = vsel %vm3465_vm15, %v9552_v10, %v9557_v43  ;;  %v9568_v22 = vunpack.i.h.bf16 %v9566_v24  ;;  %v9567_v3 = vunpack.i.l.bf16 %v9566_v24 }
 0x5f3   :  { %8190 = vmatprep.subr.bf16.mxu0 %v8189_v52  ;;  %v8197_v18 = vpack.c.bf16 %v6940_v21, %v6939_v30  ;;  %v7739_v52 = vld [vmem:[%s13538_s6 + $0x110] sm:$0xff] }
 0x5f4   :  { %v6955_v40 = vsel %vm3465_vm15, %v9567_v3, %v9537_v48  ;;  %v6935_v55 = vsel %vm3465_vm15, %v9557_v43, %v9567_v3 }
 0x5f5   :  { %7734 = vmatmul.mubr.msk.f32.gmra.mrb[26].mxu0 %vm82_vm0, %v13176_v5  ;;  %v6941_v5 = vsel %vm3465_vm15, %v9517_v31, %v9542_v35  ;;  %v7738_v35 = vld [vmem:[%s13538_s6 + $0x108] sm:$0xff] }
 0x5f6   :  { %8192 = vmatpush1.bf16.msra.mxu0 %v8191_v28  ;;  %6848 = vmatprep.mubr.f32.mxu0 %v13681_v62  ;;  %v8195_v31 = vpack.c.bf16 %v6942_v27, %v6941_v5 }
 0x5f7   :  { %8194 = vmatprep.subr.bf16.mxu0 %v8193_v41  ;;  %v6956_v41 = vsel %vm3465_vm15, %v9568_v22, %v9538_v58 }
 0x5f8   :  { %v8205_v29 = vpack.c.bf16 %v6956_v41, %v6955_v40 }
 0x5f9   :  { %7735 = vmatmul.mubr.msk.f32.gmra.mrb[28].mxu0 %vm82_vm0, %v13192_v4  ;;  %v9563_v4 = vunpack.i.h.bf16 %v9561_v16 }
 0x5fa   :  { %6854 = vmatprep.mubr.f32.mxu0 %v13681_v62 }
 0x5fb   :  { %v6934_v28 = vsel %vm3465_vm15, %v9548_v14, %v9563_v4  ;;  %v6936_v14 = vsel %vm3465_vm15, %v9558_v42, %v9568_v22 }
 0x5fc   :  { %v8203_v47 = vpack.c.bf16 %v6934_v28, %v6933_v1  ;;  %v8207_v48 = vpack.c.bf16 %v6936_v14, %v6935_v55 }
 0x5fd   :  { %7736 = vmatmul.mubr.msk.f32.gmra.mrb[30].mxu0 %vm82_vm0, %v13202_v32  ;;  %v6944_v32 = vsel %vm3465_vm15, %v9533_v44, %v9553_v6  ;;  %v6954_v44 = vsel %vm3465_vm15, %v9563_v4, %v9523_v54  ;;  %v7740_v54 = vld [vmem:[%s13538_s6 + $0x118] sm:$0xff]  ;;  %v13384_v6 = vpop.permute.xlu1 %7276 }
 0x5fe   :  { %7038 = vmatprep.mubr.f32.mxu0 %v13681_v62  ;;  %v8199_v8 = vpack.c.bf16 %v6944_v32, %v6943_v51  ;;  %v8201_v56 = vpack.c.bf16 %v6954_v44, %v6953_v20  ;;  %v13390_v51 = vpop.permute.xlu0 %7281  ;;  %v13877_v20 = vld [vmem:[#allocation3_spill] sm:$0xff] }
 0x601   :  { %7741 = vmatmul.mubr.msk.f32.vlgmr.msra.gmra.mrb[8].mxu0 %vm82_vm0, %v7737_v11 }
 0x602   :  { %8196 = vmatpush1.bf16.msra.mxu0 %v8195_v31  ;;  %7044 = vmatprep.mubr.f32.mxu0 %v13681_v62 }
 0x603   :  { %8198 = vmatprep.subr.bf16.mxu0 %v8197_v18 }
 0x605   :  { %7742 = vmatmul.mubr.msk.f32.gmra.mrb[10].mxu0 %vm82_vm0, %v7738_v35 }
 0x606   :  { %8200 = vmatpush1.bf16.msra.mxu0 %v8199_v8  ;;  %7050 = vmatprep.mubr.f32.mxu0 %v13681_v62 }
 0x607   :  { %8202 = vmatprep.subr.bf16.mxu0 %v8201_v56 }
 0x609   :  { %7743 = vmatmul.mubr.msk.f32.gmra.mrb[12].mxu0 %vm82_vm0, %v7739_v52 }
 0x60a   :  { %7056 = vmatprep.mubr.f32.mxu0 %v13681_v62 }
 0x60d   :  { %7744 = vmatmul.mubr.msk.f32.gmra.mrb[14].mxu0 %vm82_vm0, %v7740_v54 }
 0x60e   :  { %7127 = vmatprep.mubr.f32.mxu0 %v13681_v62 }
 0x611   :  { %7745 = vmatmul.mubr.msk.f32.vlgmr.msra.gmra.mrb[16].mxu0 %vm82_vm0, %v7737_v11 }
 0x612   :  { %8204 = vmatpush1.bf16.msra.mxu0 %v8203_v47  ;;  %7133 = vmatprep.mubr.f32.mxu0 %v13681_v62 }
 0x613   :  { %8206 = vmatprep.subr.bf16.mxu0 %v8205_v29 }
 0x615   :  { %7746 = vmatmul.mubr.msk.f32.gmra.mrb[18].mxu0 %vm82_vm0, %v7738_v35 }
 0x616   :  { %8208 = vmatpush1.bf16.msra.mxu0 %v8207_v48  ;;  %7139 = vmatprep.mubr.f32.mxu0 %v13681_v62 }
 0x619   :  { %7747 = vmatmul.mubr.msk.f32.gmra.mrb[20].mxu0 %vm82_vm0, %v7739_v52 }
 0x61a   :  { %7145 = vmatprep.mubr.f32.mxu0 %v13681_v62 }
 0x61d   :  { %7748 = vmatmul.mubr.msk.f32.gmra.mrb[22].mxu0 %vm82_vm0, %v7740_v54 }
 0x61e   :  { %7216 = vmatprep.mubr.f32.mxu0 %v13681_v62 }
 0x621   :  { %7749 = vmatmul.mubr.msk.f32.vlgmr.msra.gmra.mrb[24].mxu0 %vm82_vm0, %v7737_v11 }
 0x622   :  { %7222 = vmatprep.mubr.f32.mxu0 %v13681_v62 }
 0x625   :  { %7750 = vmatmul.mubr.msk.f32.gmra.mrb[26].mxu0 %vm82_vm0, %v7738_v35 }
 0x626   :  { %7228 = vmatprep.mubr.f32.mxu0 %v13681_v62 }
 0x629   :  { %7751 = vmatmul.mubr.msk.f32.gmra.mrb[28].mxu0 %vm82_vm0, %v7739_v52 }
 0x62a   :  { %7234 = vmatprep.mubr.f32.mxu0 %v13681_v62 }
 0x62d   :  { %7752 = vmatmul.mubr.msk.f32.gmra.mrb[30].mxu0 %vm82_vm0, %v7740_v54  ;;  %v13404_v54 = vpop.permute.xlu1 %7286 }
 0x6d4   :  { %v7040_v25 = vpop.f32.mrb[8].mxu0 }
 0x6d5   :  { %v7289_v58 = vadd.f32 %v13380_v38, %v7040_v25  ;;  %v7042_v42 = vpop.f32.mrb[9].mxu0 }
 0x6d6   :  { %v7290_v43 = vadd.f32 %v13380_v38, %v7042_v42 }
 0x6d7   :  { %vm7313_vm10 = vcmp.ge.f32.partialorder %v7289_v58, 0.0  ;;  %v7337_v16 = vmul.f32 0.01, %v7289_v58 }
 0x6d8   :  { %vm7314_vm11 = vcmp.ge.f32.partialorder %v7290_v43, 0.0  ;;  %v7338_v10 = vmul.f32 0.01, %v7290_v43  ;;  %v7046_v5 = vpop.f32.mrb[10].mxu0 }
 0x6d9   :  { %v7361_v27 = vsel %vm7313_vm10, %v7289_v58, %v7337_v16  ;;  %v7295_v62 = vadd.f32 %v13384_v6, %v7046_v5  ;;  %v7048_v4 = vpop.f32.mrb[11].mxu0 }
 0x6da   :  { %v7385_v19 = vadd.f32 %v7361_v27, %v11747_v39  ;;  %v7362_v11 = vsel %vm7314_vm11, %v7290_v43, %v7338_v10  ;;  %v7296_v30 = vadd.f32 %v13384_v6, %v7048_v4 }
 0x6db   :  { %v7386_v21 = vadd.f32 %v7362_v11, %v11753_v12  ;;  %vm7319_vm0 = vcmp.ge.f32.partialorder %v7295_v62, 0.0  ;;  %v7343_v31 = vmul.f32 0.01, %v7295_v62 }
 0x6dc   :  { %v7409_v32 = vmul.f32 %v7385_v19, %v13850_v33  ;;  %vm7320_vm12 = vcmp.ge.f32.partialorder %v7296_v30, 0.0  ;;  %v7344_v18 = vmul.f32 0.01, %v7296_v30  ;;  %v7052_v35 = vpop.f32.mrb[12].mxu0 }
 0x6dd   :  { %v7410_v44 = vmul.f32 %v7386_v21, %v13877_v20  ;;  %v7367_v8 = vsel %vm7319_vm0, %v7295_v62, %v7343_v31  ;;  %v7301_v56 = vadd.f32 %v13390_v51, %v7052_v35  ;;  %v7054_v39 = vpop.f32.mrb[13].mxu0 }
 0x6de   :  { %7433 = vst [vmem:[%s13540_s8] sm:$0xff] %v7409_v32  ;;  %v7391_v12 = vadd.f32 %v7367_v8, %v11750_v9  ;;  %v7368_v52 = vsel %vm7320_vm12, %v7296_v30, %v7344_v18  ;;  %v7302_v24 = vadd.f32 %v13390_v51, %v7054_v39  ;;  %v13878_v8 = vld [vmem:[#allocation6_spill] sm:$0xff] }
 0x6df   :  { %7434 = vst [vmem:[%s13540_s8 + $0x8] sm:$0xff] %v7410_v44  ;;  %v7392_v22 = vadd.f32 %v7368_v52, %v11756_v13  ;;  %vm7325_vm13 = vcmp.ge.f32.partialorder %v7301_v56, 0.0  ;;  %v7349_v3 = vmul.f32 0.01, %v7301_v56  ;;  %v13879_v52 = vld [vmem:[#allocation7_spill] sm:$0xff] }
 0x6e0   :  { %v7415_v1 = vmul.f32 %v7391_v12, %v13850_v33  ;;  %vm7326_vm14 = vcmp.ge.f32.partialorder %v7302_v24, 0.0  ;;  %v7350_v28 = vmul.f32 0.01, %v7302_v24  ;;  %v7058_v40 = vpop.f32.mrb[14].mxu0 }
 0x6e1   :  { %v7416_v9 = vmul.f32 %v7392_v22, %v13877_v20  ;;  %v7373_v41 = vsel %vm7325_vm13, %v7301_v56, %v7349_v3  ;;  %v7307_v47 = vadd.f32 %v13404_v54, %v7058_v40  ;;  %v7060_v55 = vpop.f32.mrb[15].mxu0 }
 0x6e2   :  { %7439 = vst [vmem:[%s13540_s8 + $0x30] sm:$0xff] %v7415_v1  ;;  %v7397_v13 = vadd.f32 %v7373_v41, %v11784_v45  ;;  %v7374_v14 = vsel %vm7326_vm14, %v7302_v24, %v7350_v28  ;;  %v7308_v29 = vadd.f32 %v13404_v54, %v7060_v55 }
 0x6e3   :  { %7440 = vst [vmem:[%s13540_s8 + $0x38] sm:$0xff] %v7416_v9  ;;  %v7398_v48 = vadd.f32 %v7374_v14, %v11841_v17  ;;  %vm7331_vm15 = vcmp.ge.f32.partialorder %v7307_v47, 0.0  ;;  %v7355_v25 = vmul.f32 0.01, %v7307_v47 }
 0x6e4   :  { %v7421_v58 = vmul.f32 %v7397_v13, %v13850_v33  ;;  %vm7332_vm1 = vcmp.ge.f32.partialorder %v7308_v29, 0.0  ;;  %v7356_v42 = vmul.f32 0.01, %v7308_v29  ;;  %v7129_v43 = vpop.f32.mrb[16].mxu0 }
 0x6e5   :  { %v7422_v16 = vmul.f32 %v7398_v48, %v13877_v20  ;;  %v7379_v10 = vsel %vm7331_vm15, %v7307_v47, %v7355_v25  ;;  %v7291_v45 = vadd.f32 %v13380_v38, %v7129_v43  ;;  %v7131_v5 = vpop.f32.mrb[17].mxu0 }
 0x6e6   :  { %7445 = vst [vmem:[%s13540_s8 + $0x60] sm:$0xff] %v7421_v58  ;;  %v7403_v27 = vadd.f32 %v7379_v10, %v11787_v34  ;;  %v7380_v17 = vsel %vm7332_vm1, %v7308_v29, %v7356_v42  ;;  %v7292_v62 = vadd.f32 %v13380_v38, %v7131_v5 }
 0x6e7   :  { %7446 = vst [vmem:[%s13540_s8 + $0x68] sm:$0xff] %v7422_v16  ;;  %v7404_v4 = vadd.f32 %v7380_v17, %v11832_v59  ;;  %vm7315_vm2 = vcmp.ge.f32.partialorder %v7291_v45, 0.0  ;;  %v7339_v19 = vmul.f32 0.01, %v7291_v45 }
 0x6e8   :  { %v7427_v11 = vmul.f32 %v7403_v27, %v13850_v33  ;;  %vm7316_vm4 = vcmp.ge.f32.partialorder %v7292_v62, 0.0  ;;  %v7340_v30 = vmul.f32 0.01, %v7292_v62  ;;  %v7135_v21 = vpop.f32.mrb[18].mxu0 }
 0x6e9   :  { %v7428_v31 = vmul.f32 %v7404_v4, %v13877_v20  ;;  %v7363_v32 = vsel %vm7315_vm2, %v7291_v45, %v7339_v19  ;;  %v7297_v34 = vadd.f32 %v13384_v6, %v7135_v21  ;;  %v7137_v18 = vpop.f32.mrb[19].mxu0 }
 0x6ea   :  { %7451 = vst [vmem:[%s13540_s8 + $0x90] sm:$0xff] %v7427_v11  ;;  %v7387_v35 = vadd.f32 %v7363_v32, %v11799_v2  ;;  %v7364_v59 = vsel %vm7316_vm4, %v7292_v62, %v7340_v30  ;;  %v7298_v44 = vadd.f32 %v13384_v6, %v7137_v18 }
 0x6eb   :  { %7452 = vst [vmem:[%s13540_s8 + $0x98] sm:$0xff] %v7428_v31  ;;  %v7388_v33 = vadd.f32 %v7364_v59, %v11884_v0  ;;  %vm7321_vm7 = vcmp.ge.f32.partialorder %v7297_v34, 0.0  ;;  %v7345_v20 = vmul.f32 0.01, %v7297_v34 }
 0x6ec   :  { %v7411_v56 = vmul.f32 %v7387_v35, %v13878_v8  ;;  %vm7322_vm8 = vcmp.ge.f32.partialorder %v7298_v44, 0.0  ;;  %v7346_v39 = vmul.f32 0.01, %v7298_v44  ;;  %v7141_v12 = vpop.f32.mrb[20].mxu0 }
 0x6ed   :  { %v7412_v24 = vmul.f32 %v7388_v33, %v13879_v52  ;;  %v7369_v22 = vsel %vm7321_vm7, %v7297_v34, %v7345_v20  ;;  %v7303_v2 = vadd.f32 %v13390_v51, %v7141_v12  ;;  %v7143_v3 = vpop.f32.mrb[21].mxu0 }
 0x6ee   :  { %7435 = vst [vmem:[%s13540_s8 + $0x10] sm:$0xff] %v7411_v56  ;;  %v7393_v1 = vadd.f32 %v7369_v22, %v11811_v7  ;;  %v7370_v0 = vsel %vm7322_vm8, %v7298_v44, %v7346_v39  ;;  %v7304_v28 = vadd.f32 %v13390_v51, %v7143_v3  ;;  %v13880_v44 = vld [vmem:[#allocation11_spill] sm:$0xff]  ;;  %v13881_v56 = vld [vmem:[#allocation8_spill] sm:$0xff] }
 0x6ef   :  { %7436 = vst [vmem:[%s13540_s8 + $0x18] sm:$0xff] %v7412_v24  ;;  %v7394_v40 = vadd.f32 %v7370_v0, %v11855_v37  ;;  %vm7327_vm9 = vcmp.ge.f32.partialorder %v7303_v2, 0.0  ;;  %v7351_v9 = vmul.f32 0.01, %v7303_v2 }
 0x6f0   :  { %v7417_v41 = vmul.f32 %v7393_v1, %v13878_v8  ;;  %vm7328_vm5 = vcmp.ge.f32.partialorder %v7304_v28, 0.0  ;;  %v7352_v47 = vmul.f32 0.01, %v7304_v28  ;;  %v7147_v55 = vpop.f32.mrb[22].mxu0 }
 0x6f1   :  { %v7418_v13 = vmul.f32 %v7394_v40, %v13879_v52  ;;  %v7375_v14 = vsel %vm7327_vm9, %v7303_v2, %v7351_v9  ;;  %v7309_v7 = vadd.f32 %v13404_v54, %v7147_v55  ;;  %v7149_v29 = vpop.f32.mrb[23].mxu0 }
 0x6f2   :  { %7441 = vst [vmem:[%s13540_s8 + $0x40] sm:$0xff] %v7417_v41  ;;  %v7399_v48 = vadd.f32 %v7375_v14, %v11887_v53  ;;  %v7376_v37 = vsel %vm7328_vm5, %v7304_v28, %v7352_v47  ;;  %v7310_v25 = vadd.f32 %v13404_v54, %v7149_v29 }
 0x6f3   :  { %7442 = vst [vmem:[%s13540_s8 + $0x48] sm:$0xff] %v7418_v13  ;;  %v7400_v58 = vadd.f32 %v7376_v37, %v11911_v23  ;;  %vm7333_vm3 = vcmp.ge.f32.partialorder %v7309_v7, 0.0  ;;  %v7357_v42 = vmul.f32 0.01, %v7309_v7 }
 0x6f4   :  { %v7423_v43 = vmul.f32 %v7399_v48, %v13878_v8  ;;  %vm7334_vm6 = vcmp.ge.f32.partialorder %v7310_v25, 0.0  ;;  %v7358_v16 = vmul.f32 0.01, %v7310_v25  ;;  %v7218_v10 = vpop.f32.mrb[24].mxu0 }
 0x6f5   :  { %v7424_v45 = vmul.f32 %v7400_v58, %v13879_v52  ;;  %v7381_v5 = vsel %vm7333_vm3, %v7309_v7, %v7357_v42  ;;  %v7293_v53 = vadd.f32 %v13380_v38, %v7218_v10  ;;  %v7220_v27 = vpop.f32.mrb[25].mxu0 }
 0x6f6   :  { %7447 = vst [vmem:[%s13540_s8 + $0x70] sm:$0xff] %v7423_v43  ;;  %v7405_v17 = vadd.f32 %v7381_v5, %v11875_v60  ;;  %v7382_v23 = vsel %vm7334_vm6, %v7310_v25, %v7358_v16  ;;  %v7294_v62 = vadd.f32 %v13380_v38, %v7220_v27 }
 0x6f7   :  { %7448 = vst [vmem:[%s13540_s8 + $0x78] sm:$0xff] %v7424_v45  ;;  %v7406_v4 = vadd.f32 %v7382_v23, %v11900_v57  ;;  %vm7317_vm10 = vcmp.ge.f32.partialorder %v7293_v53, 0.0  ;;  %v7341_v19 = vmul.f32 0.01, %v7293_v53 }
 0x6f8   :  { %v7429_v11 = vmul.f32 %v7405_v17, %v13878_v8  ;;  %vm7318_vm11 = vcmp.ge.f32.partialorder %v7294_v62, 0.0  ;;  %v7342_v30 = vmul.f32 0.01, %v7294_v62  ;;  %v7224_v21 = vpop.f32.mrb[26].mxu0 }
 0x6f9   :  { %v7430_v31 = vmul.f32 %v7406_v4, %v13879_v52  ;;  %v7365_v32 = vsel %vm7317_vm10, %v7293_v53, %v7341_v19  ;;  %v7299_v60 = vadd.f32 %v13384_v6, %v7224_v21  ;;  %v7226_v34 = vpop.f32.mrb[27].mxu0 }
 0x6fa   :  { %7453 = vst [vmem:[%s13540_s8 + $0xa0] sm:$0xff] %v7429_v11  ;;  %v7389_v38 = vadd.f32 %v7365_v32, %v11914_v49  ;;  %v7366_v57 = vsel %vm7318_vm11, %v7294_v62, %v7342_v30  ;;  %v7300_v18 = vadd.f32 %v13384_v6, %v7226_v34 }
 0x6fb   :  { %7454 = vst [vmem:[%s13540_s8 + $0xa8] sm:$0xff] %v7430_v31  ;;  %v7390_v35 = vadd.f32 %v7366_v57, %v11824_v15  ;;  %vm7323_vm0 = vcmp.ge.f32.partialorder %v7299_v60, 0.0  ;;  %v7347_v59 = vmul.f32 0.01, %v7299_v60 }
 0x6fc   :  { %v7413_v33 = vmul.f32 %v7389_v38, %v13880_v44  ;;  %vm7324_vm12 = vcmp.ge.f32.partialorder %v7300_v18, 0.0  ;;  %v7348_v20 = vmul.f32 0.01, %v7300_v18  ;;  %v7230_v8 = vpop.f32.mrb[28].mxu0 }
 0x6fd   :  { %v7414_v39 = vmul.f32 %v7390_v35, %v13881_v56  ;;  %v7371_v12 = vsel %vm7323_vm0, %v7299_v60, %v7347_v59  ;;  %v7305_v49 = vadd.f32 %v13390_v51, %v7230_v8  ;;  %v7232_v52 = vpop.f32.mrb[29].mxu0 }
 0x6fe   :  { %7437 = vst [vmem:[%s13540_s8 + $0x20] sm:$0xff] %v7413_v33  ;;  %v7395_v6 = vadd.f32 %v7371_v12, %v11903_v50  ;;  %v7372_v15 = vsel %vm7324_vm12, %v7300_v18, %v7348_v20  ;;  %v7306_v24 = vadd.f32 %v13390_v51, %v7232_v52 }
 0x6ff   :  { %7438 = vst [vmem:[%s13540_s8 + $0x28] sm:$0xff] %v7414_v39  ;;  %v7396_v22 = vadd.f32 %v7372_v15, %v11827_v46  ;;  %vm7329_vm13 = vcmp.ge.f32.partialorder %v7305_v49, 0.0  ;;  %v7353_v2 = vmul.f32 0.01, %v7305_v49 }
 0x700   :  { %v7419_v3 = vmul.f32 %v7395_v6, %v13880_v44  ;;  %vm7330_vm14 = vcmp.ge.f32.partialorder %v7306_v24, 0.0  ;;  %v7354_v1 = vmul.f32 0.01, %v7306_v24  ;;  %v7236_v0 = vpop.f32.mrb[30].mxu0 }
 0x701   :  { %v7420_v28 = vmul.f32 %v7396_v22, %v13881_v56  ;;  %v7377_v40 = vsel %vm7329_vm13, %v7305_v49, %v7353_v2  ;;  %v7311_v50 = vadd.f32 %v13404_v54, %v7236_v0  ;;  %v7238_v9 = vpop.f32.mrb[31].mxu0 }
 0x702   :  { %7443 = vst [vmem:[%s13540_s8 + $0x50] sm:$0xff] %v7419_v3  ;;  %v7401_v51 = vadd.f32 %v7377_v40, %v11933_v61  ;;  %v7378_v46 = vsel %vm7330_vm14, %v7306_v24, %v7354_v1  ;;  %v7312_v41 = vadd.f32 %v13404_v54, %v7238_v9 }
 0x703   :  { %7444 = vst [vmem:[%s13540_s8 + $0x58] sm:$0xff] %v7420_v28  ;;  %v7402_v47 = vadd.f32 %v7378_v46, %v11863_v63  ;;  %vm7335_vm15 = vcmp.ge.f32.partialorder %v7311_v50, 0.0  ;;  %v7359_v55 = vmul.f32 0.01, %v7311_v50 }
 0x704   :  { %v7425_v13 = vmul.f32 %v7401_v51, %v13880_v44  ;;  %vm7336_vm1 = vcmp.ge.f32.partialorder %v7312_v41, 0.0  ;;  %v7360_v14 = vmul.f32 0.01, %v7312_v41 }
 0x705   :  { %v7426_v7 = vmul.f32 %v7402_v47, %v13881_v56  ;;  %v7383_v29 = vsel %vm7335_vm15, %v7311_v50, %v7359_v55 }
 0x706   :  { %7449 = vst [vmem:[%s13540_s8 + $0x80] sm:$0xff] %v7425_v13  ;;  %v7407_v61 = vadd.f32 %v7383_v29, %v11922_v26  ;;  %v7384_v54 = vsel %vm7336_vm1, %v7312_v41, %v7360_v14 }
 0x707   :  { %7450 = vst [vmem:[%s13540_s8 + $0x88] sm:$0xff] %v7426_v7  ;;  %v7408_v63 = vadd.f32 %v7384_v54, %v11866_v36 }
 0x708   :  { %v7431_v48 = vmul.f32 %v7407_v61, %v13880_v44 }
 0x709   :  { %v7432_v37 = vmul.f32 %v7408_v63, %v13881_v56 }
 0x70a   :  { %7455 = vst [vmem:[%s13540_s8 + $0xb0] sm:$0xff] %v7431_v48 }
 0x70b   :  { %7456 = vst [vmem:[%s13540_s8 + $0xb8] sm:$0xff] %v7432_v37 }

</bundles_post_ra>
